<compile_context>
chip_gen: v6e
topology: v6e:2x2x1
jax: 0.10.0
libtpu: 0.0.40
codegen_flags: <defaults>
</compile_context>

<pallas_src>
import jax
import jax.numpy as jnp
from jax.experimental import pallas as pl
from jax.experimental.pallas import tpu as pltpu


def _fnn_kernel(x_ref,
                w1_ref, b1_ref,
                w2_ref, b2_ref,
                w3_ref, b3_ref,
                w4_ref, b4_ref,
                w5_ref, b5_ref,
                o_ref):
    """All five layers computed back-to-back; activations stay in VMEM/vregs."""

    def layer(h_f32, w_ref, b_ref, relu):
        # bf16 x bf16 matmul on the MXU, f32 accumulation.
        y = jnp.dot(h_f32.astype(jnp.bfloat16), w_ref[...],
                    preferred_element_type=jnp.float32)
        y = y + b_ref[...].astype(jnp.float32)
        if relu:
            y = jnp.maximum(y, 0.0)
        return y

    h = x_ref[...]                      # (M, in_dim) f32
    h = layer(h, w1_ref, b1_ref, relu=True)
    h = layer(h, w2_ref, b2_ref, relu=True)
    h = layer(h, w3_ref, b3_ref, relu=True)
    h = layer(h, w4_ref, b4_ref, relu=True)
    h = layer(h, w5_ref, b5_ref, relu=False)
    o_ref[...] = h.astype(o_ref.dtype)


def fnn_forward_fused(x, params_bf16):
    """Fused 5-layer MLP: y = L5(ReLU(L4(ReLU(L3(ReLU(L2(ReLU(L1(x)))))))))."""
    M = x.shape[0]
    out_dim = params_bf16[-1][0].shape[1]

    flat_inputs = [x]
    for w, b in params_bf16:
        flat_inputs += [w, b]

    # Whole-array operands resident in VMEM, single copy each (no grid =>
    # no pipeline => no double-buffering).
    vmem_spec = pl.BlockSpec(memory_space=pltpu.MemorySpace.VMEM)

    return pl.pallas_call(
        _fnn_kernel,
        out_shape=jax.ShapeDtypeStruct((M, out_dim), x.dtype),
        in_specs=[vmem_spec] * len(flat_inputs),
        out_specs=vmem_spec,
        compiler_params=pltpu.CompilerParams(
            # ~4.7 MiB of bf16 weights, single-buffered.  16 MiB leaves ample
            # headroom for internal scratch on every generation (== v5e's
            # default scoped limit, well under v7x's 64 MiB physical VMEM).
            vmem_limit_bytes=16 * 1024 * 1024,
        ),
    )(*flat_inputs)


fnn_forward = jax.jit(fnn_forward_fused)


def init_fnn_params(key, input_dim, output_dim):
    """Init mimicking PyTorch nn.Linear defaults U(-1/sqrt(fan_in), +).

    Weights are stored transposed vs. PyTorch, i.e. shape (in, out), so the
    kernel computes y = x @ W + b directly on the MXU.
    """
    dims = [input_dim, 2048, 1024, 256, 64, output_dim]
    params = []
    for i in range(5):
        fan_in, fan_out = dims[i], dims[i + 1]
        key, kw, kb = jax.random.split(key, 3)
        bound = 1.0 / jnp.sqrt(jnp.float32(fan_in))
        w = jax.random.uniform(kw, (fan_in, fan_out), jnp.float32, -bound, bound)
        b = jax.random.uniform(kb, (fan_out,), jnp.float32, -bound, bound)
        params.append((w, b))
    return params


def pack_params_bf16(params_f32):
    """One-time packing: bf16 weights, bf16 (1, N) biases (out of hot path)."""
    return [(w.astype(jnp.bfloat16), b.reshape(1, -1).astype(jnp.bfloat16))
            for w, b in params_f32]


def fnn_reference_f32(x, params_f32):
    """Pure f32 reference matching the PyTorch module's math."""
    h = x
    for i, (w, b) in enumerate(params_f32):
        h = h @ w + b
        if i < len(params_f32) - 1:
            h = jnp.maximum(h, 0.0)
    return h


def fnn_reference_bf16(x, params_bf16):
    """Reference emulating the kernel's numerics (bf16 weights/activations,
    f32 accumulation) for a tight-tolerance check."""
    h = x
    for i, (w, b) in enumerate(params_bf16):
        h = jnp.dot(h.astype(jnp.bfloat16).astype(jnp.float32),
                    w.astype(jnp.float32),
                    preferred_element_type=jnp.float32)
        h = h + b.astype(jnp.float32)
        if i < len(params_bf16) - 1:
            h = jnp.maximum(h, 0.0)
    return h


if __name__ == "__main__":
    key = jax.random.PRNGKey(0)
    batch, input_dim, output_dim = 8, 32, 8

    k_x, k_p = jax.random.split(key)
    x = jax.random.normal(k_x, (batch, input_dim), jnp.float32)

    params_f32 = init_fnn_params(k_p, input_dim, output_dim)
    params_bf16 = pack_params_bf16(params_f32)

    out = fnn_forward(x, params_bf16)
    jax.block_until_ready(out)

    assert out.shape == (batch, output_dim)

    # Tight check vs. a reference using identical (bf16-weight) numerics.
    ref_bf16 = fnn_reference_bf16(x, params_bf16)
    assert jnp.allclose(out, ref_bf16, atol=2e-3, rtol=2e-3), (
        float(jnp.max(jnp.abs(out - ref_bf16))))

    # Loose sanity check vs. the full-f32 PyTorch-equivalent math.
    ref_f32 = fnn_reference_f32(x, params_f32)
    assert jnp.allclose(out, ref_f32, atol=1e-1), (
        float(jnp.max(jnp.abs(out - ref_f32))))

    print("KERNEL_OK")
</pallas_src>

<mosaic_0001>
module attributes {stable_mosaic.version = 11 : i64} {
  func.func @_fnn_kernel(%arg0: memref<8x32xf32, #tpu.memory_space<vmem>>, %arg1: memref<32x2048xbf16, #tpu.memory_space<vmem>>, %arg2: memref<1x2048xbf16, #tpu.memory_space<vmem>>, %arg3: memref<2048x1024xbf16, #tpu.memory_space<vmem>>, %arg4: memref<1x1024xbf16, #tpu.memory_space<vmem>>, %arg5: memref<1024x256xbf16, #tpu.memory_space<vmem>>, %arg6: memref<1x256xbf16, #tpu.memory_space<vmem>>, %arg7: memref<256x64xbf16, #tpu.memory_space<vmem>>, %arg8: memref<1x64xbf16, #tpu.memory_space<vmem>>, %arg9: memref<64x8xbf16, #tpu.memory_space<vmem>>, %arg10: memref<1x8xbf16, #tpu.memory_space<vmem>>, %arg11: memref<8x8xf32, #tpu.memory_space<vmem>>) attributes {dimension_semantics = [], scalar_prefetch = 0 : i64, scratch_operands = 0 : i64, tpu.core_type = #tpu.core_type<tc>} {
    %c0 = arith.constant 0 : index
    %c0_0 = arith.constant 0 : index
    %0 = vector.load %arg0[%c0, %c0_0] : memref<8x32xf32, #tpu.memory_space<vmem>>, vector<8x32xf32>
    %1 = arith.truncf %0 : vector<8x32xf32> to vector<8x32xbf16>
    %c0_1 = arith.constant 0 : index
    %c0_2 = arith.constant 0 : index
    %2 = vector.load %arg1[%c0_1, %c0_2] : memref<32x2048xbf16, #tpu.memory_space<vmem>>, vector<32x2048xbf16>
    %cst = arith.constant dense<0.000000e+00> : vector<8x2048xf32>
    %3 = tpu.matmul %1, %2, %cst {dimension_numbers = #tpu.dot_dimension_numbers<[1], [0], [0], [1], [0, 0, 1, 1], [], []>} : vector<8x32xbf16>, vector<32x2048xbf16>, vector<8x2048xf32> -> vector<8x2048xf32>
    %c0_3 = arith.constant 0 : index
    %c0_4 = arith.constant 0 : index
    %4 = vector.load %arg2[%c0_3, %c0_4] : memref<1x2048xbf16, #tpu.memory_space<vmem>>, vector<1x2048xbf16>
    %5 = arith.extf %4 : vector<1x2048xbf16> to vector<1x2048xf32>
    %6 = vector.broadcast %5 : vector<1x2048xf32> to vector<8x2048xf32>
    %7 = arith.addf %3, %6 : vector<8x2048xf32>
    %cst_5 = arith.constant 0.000000e+00 : f32
    %8 = vector.broadcast %cst_5 : f32 to vector<8x2048xf32>
    %9 = arith.maximumf %7, %8 : vector<8x2048xf32>
    %10 = arith.truncf %9 : vector<8x2048xf32> to vector<8x2048xbf16>
    %c0_6 = arith.constant 0 : index
    %c0_7 = arith.constant 0 : index
    %11 = vector.load %arg3[%c0_6, %c0_7] : memref<2048x1024xbf16, #tpu.memory_space<vmem>>, vector<2048x1024xbf16>
    %cst_8 = arith.constant dense<0.000000e+00> : vector<8x1024xf32>
    %12 = tpu.matmul %10, %11, %cst_8 {dimension_numbers = #tpu.dot_dimension_numbers<[1], [0], [0], [1], [0, 0, 1, 1], [], []>} : vector<8x2048xbf16>, vector<2048x1024xbf16>, vector<8x1024xf32> -> vector<8x1024xf32>
    %c0_9 = arith.constant 0 : index
    %c0_10 = arith.constant 0 : index
    %13 = vector.load %arg4[%c0_9, %c0_10] : memref<1x1024xbf16, #tpu.memory_space<vmem>>, vector<1x1024xbf16>
    %14 = arith.extf %13 : vector<1x1024xbf16> to vector<1x1024xf32>
    %15 = vector.broadcast %14 : vector<1x1024xf32> to vector<8x1024xf32>
    %16 = arith.addf %12, %15 : vector<8x1024xf32>
    %cst_11 = arith.constant 0.000000e+00 : f32
    %17 = vector.broadcast %cst_11 : f32 to vector<8x1024xf32>
    %18 = arith.maximumf %16, %17 : vector<8x1024xf32>
    %19 = arith.truncf %18 : vector<8x1024xf32> to vector<8x1024xbf16>
    %c0_12 = arith.constant 0 : index
    %c0_13 = arith.constant 0 : index
    %20 = vector.load %arg5[%c0_12, %c0_13] : memref<1024x256xbf16, #tpu.memory_space<vmem>>, vector<1024x256xbf16>
    %cst_14 = arith.constant dense<0.000000e+00> : vector<8x256xf32>
    %21 = tpu.matmul %19, %20, %cst_14 {dimension_numbers = #tpu.dot_dimension_numbers<[1], [0], [0], [1], [0, 0, 1, 1], [], []>} : vector<8x1024xbf16>, vector<1024x256xbf16>, vector<8x256xf32> -> vector<8x256xf32>
    %c0_15 = arith.constant 0 : index
    %c0_16 = arith.constant 0 : index
    %22 = vector.load %arg6[%c0_15, %c0_16] : memref<1x256xbf16, #tpu.memory_space<vmem>>, vector<1x256xbf16>
    %23 = arith.extf %22 : vector<1x256xbf16> to vector<1x256xf32>
    %24 = vector.broadcast %23 : vector<1x256xf32> to vector<8x256xf32>
    %25 = arith.addf %21, %24 : vector<8x256xf32>
    %cst_17 = arith.constant 0.000000e+00 : f32
    %26 = vector.broadcast %cst_17 : f32 to vector<8x256xf32>
    %27 = arith.maximumf %25, %26 : vector<8x256xf32>
    %28 = arith.truncf %27 : vector<8x256xf32> to vector<8x256xbf16>
    %c0_18 = arith.constant 0 : index
    %c0_19 = arith.constant 0 : index
    %29 = vector.load %arg7[%c0_18, %c0_19] : memref<256x64xbf16, #tpu.memory_space<vmem>>, vector<256x64xbf16>
    %cst_20 = arith.constant dense<0.000000e+00> : vector<8x64xf32>
    %30 = tpu.matmul %28, %29, %cst_20 {dimension_numbers = #tpu.dot_dimension_numbers<[1], [0], [0], [1], [0, 0, 1, 1], [], []>} : vector<8x256xbf16>, vector<256x64xbf16>, vector<8x64xf32> -> vector<8x64xf32>
    %c0_21 = arith.constant 0 : index
    %c0_22 = arith.constant 0 : index
    %31 = vector.load %arg8[%c0_21, %c0_22] : memref<1x64xbf16, #tpu.memory_space<vmem>>, vector<1x64xbf16>
    %32 = arith.extf %31 : vector<1x64xbf16> to vector<1x64xf32>
    %33 = vector.broadcast %32 : vector<1x64xf32> to vector<8x64xf32>
    %34 = arith.addf %30, %33 : vector<8x64xf32>
    %cst_23 = arith.constant 0.000000e+00 : f32
    %35 = vector.broadcast %cst_23 : f32 to vector<8x64xf32>
    %36 = arith.maximumf %34, %35 : vector<8x64xf32>
    %37 = arith.truncf %36 : vector<8x64xf32> to vector<8x64xbf16>
    %c0_24 = arith.constant 0 : index
    %c0_25 = arith.constant 0 : index
    %38 = vector.load %arg9[%c0_24, %c0_25] : memref<64x8xbf16, #tpu.memory_space<vmem>>, vector<64x8xbf16>
    %cst_26 = arith.constant dense<0.000000e+00> : vector<8x8xf32>
    %39 = tpu.matmul %37, %38, %cst_26 {dimension_numbers = #tpu.dot_dimension_numbers<[1], [0], [0], [1], [0, 0, 1, 1], [], []>} : vector<8x64xbf16>, vector<64x8xbf16>, vector<8x8xf32> -> vector<8x8xf32>
    %c0_27 = arith.constant 0 : index
    %c0_28 = arith.constant 0 : index
    %40 = vector.load %arg10[%c0_27, %c0_28] : memref<1x8xbf16, #tpu.memory_space<vmem>>, vector<1x8xbf16>
    %41 = arith.extf %40 : vector<1x8xbf16> to vector<1x8xf32>
    %42 = vector.broadcast %41 : vector<1x8xf32> to vector<8x8xf32>
    %43 = arith.addf %39, %42 : vector<8x8xf32>
    %c0_29 = arith.constant 0 : index
    %c0_30 = arith.constant 0 : index
    %44 = vector.load %arg11[%c0_29, %c0_30] : memref<8x8xf32, #tpu.memory_space<vmem>>, vector<8x8xf32>
    tpu.vector_store %arg11[%c0_29, %c0_30], %43 {strides = array<i32>} : memref<8x8xf32, #tpu.memory_space<vmem>>, vector<8x8xf32>,
    return
  }
}

</mosaic_0001>

<bundles_post_ra>
// kernel: fnn_forward_fused.1
= control target key start
LH: loop header
LB: loop body
LE: loop exit
PB: predicated region body
PF: predicated region fallthrough
CT: control target
= control target key end

     0   :  { %16 = vsyncpa [#allocation3], 0  ;;  %s11862_s0 = inlined_call_operand.hbm [shape: f32[8,32], index: 0, kind: input, shape index: {}]   ;;  %s11863_s1 = inlined_call_operand.hbm [shape: bf16[32,2048], index: 1, kind: input, shape index: {}]   ;;  %s11864_s2 = inlined_call_operand.hbm [shape: bf16[1,2048], index: 2, kind: input, shape index: {}]   ;;  %s11865_s3 = inlined_call_operand.hbm [shape: bf16[2048,1024], index: 3, kind: input, shape index: {}]   ;;  %s11866_s4 = inlined_call_operand.hbm [shape: bf16[1,1024], index: 4, kind: input, shape index: {}]   ;;  %s11867_s5 = inlined_call_operand.hbm [shape: bf16[1024,256], index: 5, kind: input, shape index: {}]   ;;  %s11868_s6 = inlined_call_operand.hbm [shape: bf16[1,256], index: 6, kind: input, shape index: {}]   ;;  %s11869_s7 = inlined_call_operand.vmem [shape: bf16[256,64], index: 7, kind: input, shape index: {}]   ;;  %s11870_s8 = inlined_call_operand.hbm [shape: bf16[1,64], index: 8, kind: input, shape index: {}]   ;;  %s11871_s9 = inlined_call_operand.vmem [shape: bf16[64,8], index: 9, kind: input, shape index: {}]   ;;  %s11872_s10 = inlined_call_operand.hbm [shape: bf16[1,8], index: 10, kind: input, shape index: {}]   ;;  %s11873_s11 = inlined_call_operand.hbm [shape: f32[8,8], index: 11, kind: output, shape index: {}]  }
   0x1   :  { %17 = vsyncpa [#allocation6], 0 }
   0x2   :  { %18 = vsyncpa [#allocation9], 0 }
   0x3   :  { %19 = vsyncpa [#allocation12], 0 }
   0x4   :  { %20 = vsyncpa [#allocation15], 0 }
   0x5   :  { %21 = vsyncpa [#allocation4], 0  ;;  %s11343_s17 = smov [#allocation5]  }
   0x6   :  { %s37_s18 = sshll.u32 %s11343_s17, 4  ;;  %s38_s18 = int_to_ptr.vmem [resolvable:$true] %s37_s18 }
   0x7   :  { %s11139_s19 = scalar_lea.vmem %s38_s18, 4096  ;;  %p11144_p1 = scmp.lt.s32.totalorder %s38_s18, %s38_s18 }
   0x8   :  { %p11140_p0 = scmp.ne.s32.totalorder %s38_s18, %s11139_s19  ;;  %p11145_p2 = scmp.lt.s32.totalorder %s11139_s19, %s11139_s19 }
   0xa   :  { %p11146_p3 = por %p11145_p2, %p11144_p1 }
   0xc   :  { %p11147_p4 = pnand %p11146_p3, %p11140_p0 }
   0xe   :  { %11150 = shalt.err (!%p11147_p4)
}
   0xf   :  { %s11344_s20 = smov 1024   ;;  %s11345_s21 = smov 64  }
  0x10   :  { %43 = dma.hbm_to_vmem [thread:$0]  %s11863_s1, 4096, %s38_s18, [#allocation6], %s11344_s20, %s11344_s20, %s11345_s21  }
  0x11   :  { %s11346_s24 = smov [#allocation8]  }
  0x12   :  { %s59_s25 = sshll.u32 %s11346_s24, 4  ;;  %s60_s25 = int_to_ptr.vmem [resolvable:$true] %s59_s25 }
  0x13   :  { %s11159_s26 = scalar_lea.vmem %s60_s25, 131072  ;;  %p11164_p6 = scmp.lt.s32.totalorder %s60_s25, %s60_s25 }
  0x14   :  { %p11160_p5 = scmp.ne.s32.totalorder %s60_s25, %s11159_s26  ;;  %p11165_p7 = scmp.lt.s32.totalorder %s11159_s26, %s11159_s26 }
  0x16   :  { %p11166_p8 = por %p11165_p7, %p11164_p6 }
  0x18   :  { %p11167_p9 = pnand %p11166_p8, %p11160_p5 }
  0x1a   :  { %11170 = shalt.err (!%p11167_p9)
}
  0x1b   :  { %s11347_s27 = smov 512   ;;  %s11348_s28 = smov 32  }
  0x1c   :  { %65 = dma.hbm_to_vmem [thread:$0]  %s11865_s3, 131072, %s60_s25, [#allocation9], %s11347_s27, %s11347_s27, %s11348_s28  }
  0x1d   :  { %s11349_s12 = smov [#allocation11]  }
  0x1e   :  { %s81_s13 = sshll.u32 %s11349_s12, 4  ;;  %s82_s13 = int_to_ptr.vmem [resolvable:$true] %s81_s13 }
  0x1f   :  { %s11179_s1 = scalar_lea.vmem %s82_s13, 16384  ;;  %p11184_p11 = scmp.lt.s32.totalorder %s82_s13, %s82_s13 }
  0x20   :  { %p11180_p10 = scmp.ne.s32.totalorder %s82_s13, %s11179_s1  ;;  %p11185_p12 = scmp.lt.s32.totalorder %s11179_s1, %s11179_s1 }
  0x22   :  { %p11186_p13 = por %p11185_p12, %p11184_p11 }
  0x24   :  { %p11187_p0 = pnand %p11186_p13, %p11180_p10 }
  0x26   :  { %11190 = shalt.err (!%p11187_p0)
}
  0x27   :  { %s11350_s14 = smov 128   ;;  %s11351_s15 = smov 8  }
  0x28   :  { %87 = dma.hbm_to_vmem [thread:$0]  %s11867_s5, 16384, %s82_s13, [#allocation12], %s11350_s14, %s11350_s14, %s11351_s15  }
  0x29   :  { %s11352_s18 = smov [#allocation14]   ;;  %s11353_s3 = smov [#allocation2]  }
  0x2a   :  { %s106_s19 = sshll.u32 %s11352_s18, 4  ;;  %s28_s20 = sshll.u32 %s11353_s3, 4  ;;  %s107_s19 = int_to_ptr.vmem [resolvable:$true] %s106_s19  ;;  %s29_s20 = int_to_ptr.vmem [resolvable:$true] %s28_s20 }
  0x2b   :  { %s11199_s21 = scalar_lea.vmem %s107_s19, 16  ;;  %s11203_s22 = scalar_lea.vmem %s107_s19, 32 }
  0x2c   :  { %p11200_p1 = scmp.ne.s32.totalorder %s107_s19, %s11199_s21  ;;  %p11204_p2 = scmp.lt.s32.totalorder %s107_s19, %s107_s19 }
  0x2d   :  { %p11205_p3 = scmp.lt.s32.totalorder %s11203_s22, %s11199_s21 }
  0x2f   :  { %p11206_p4 = por %p11205_p3, %p11204_p2 }
  0x31   :  { %p11207_p5 = pnand %p11206_p4, %p11200_p1 }
  0x33   :  { %11210 = shalt.err (!%p11207_p5)
}
  0x34   :  { %109 = dma.hbm_to_vmem [thread:$0]  %s11870_s8, 16, %s107_s19, [#allocation15]  }
  0x35   :  { %s11219_s25 = scalar_lea.vmem %s29_s20, 128  ;;  %p11224_p7 = scmp.lt.s32.totalorder %s29_s20, %s29_s20 }
  0x36   :  { %p11220_p6 = scmp.ne.s32.totalorder %s29_s20, %s11219_s25  ;;  %p11225_p8 = scmp.lt.s32.totalorder %s11219_s25, %s11219_s25 }
  0x38   :  { %p11226_p9 = por %p11225_p8, %p11224_p7 }
  0x3a   :  { %p11227_p10 = pnand %p11226_p9, %p11220_p6 }
  0x3c   :  { %11230 = shalt.err (!%p11227_p10)
}
  0x3d   :  { %31 = dma.hbm_to_vmem [thread:$0]  %s11862_s0, 128, %s29_s20, [#allocation3]  }
  0x3e   :  { %s11354_s27 = smov [#allocation7]   ;;  %s11355_s29 = smov [#allocation10]  }
  0x3f   :  { %s50_s28 = sshll.u32 %s11354_s27, 4  ;;  %s72_s30 = sshll.u32 %s11355_s29, 4  ;;  %s51_s28 = int_to_ptr.vmem [resolvable:$true] %s50_s28  ;;  %s73_s30 = int_to_ptr.vmem [resolvable:$true] %s72_s30 }
  0x40   :  { %s11239_s12 = scalar_lea.vmem %s51_s28, 256  ;;  %p11244_p12 = scmp.lt.s32.totalorder %s51_s28, %s51_s28 }
  0x41   :  { %p11240_p11 = scmp.ne.s32.totalorder %s51_s28, %s11239_s12  ;;  %p11245_p13 = scmp.lt.s32.totalorder %s11239_s12, %s11239_s12 }
  0x43   :  { %p11246_p0 = por %p11245_p13, %p11244_p12 }
  0x45   :  { %p11247_p1 = pnand %p11246_p0, %p11240_p11 }
  0x47   :  { %11250 = shalt.err (!%p11247_p1)
}
  0x48   :  { %53 = dma.hbm_to_vmem [thread:$0]  %s11864_s2, 256, %s51_s28, [#allocation6]  }
  0x49   :  { %s11259_s1 = scalar_lea.vmem %s73_s30, 128  ;;  %p11264_p3 = scmp.lt.s32.totalorder %s73_s30, %s73_s30 }
  0x4a   :  { %p11260_p2 = scmp.ne.s32.totalorder %s73_s30, %s11259_s1  ;;  %p11265_p4 = scmp.lt.s32.totalorder %s11259_s1, %s11259_s1 }
  0x4c   :  { %p11266_p5 = por %p11265_p4, %p11264_p3 }
  0x4e   :  { %p11267_p6 = pnand %p11266_p5, %p11260_p2 }
  0x50   :  { %11270 = shalt.err (!%p11267_p6)
}
  0x51   :  { %75 = dma.hbm_to_vmem [thread:$0]  %s11866_s4, 128, %s73_s30, [#allocation9]  }
  0x52   :  { %s11356_s15 = smov [#allocation13]   ;;  %s11357_s17 = smov [#allocation16]  }
  0x53   :  { %s94_s16 = sshll.u32 %s11356_s15, 4  ;;  %s118_s18 = sshll.u32 %s11357_s17, 4  ;;  %s95_s16 = int_to_ptr.vmem [resolvable:$true] %s94_s16  ;;  %s119_s18 = int_to_ptr.vmem [resolvable:$true] %s118_s18 }
  0x54   :  { %s11279_s19 = scalar_lea.vmem %s95_s16, 32  ;;  %p11284_p8 = scmp.lt.s32.totalorder %s95_s16, %s95_s16 }
  0x55   :  { %p11280_p7 = scmp.ne.s32.totalorder %s95_s16, %s11279_s19  ;;  %p11285_p9 = scmp.lt.s32.totalorder %s11279_s19, %s11279_s19 }
  0x57   :  { %p11286_p10 = por %p11285_p9, %p11284_p8 }
  0x59   :  { %p11287_p11 = pnand %p11286_p10, %p11280_p7 }
  0x5b   :  { %11290 = shalt.err (!%p11287_p11)
}
  0x5c   :  { %97 = dma.hbm_to_vmem [thread:$0]  %s11868_s6, 32, %s95_s16, [#allocation12]  }
  0x5d   :  { %s11299_s20 = scalar_lea.vmem %s119_s18, 16  ;;  %s11303_s4 = scalar_lea.vmem %s119_s18, 32 }
  0x5e   :  { %p11300_p12 = scmp.ne.s32.totalorder %s119_s18, %s11299_s20  ;;  %p11304_p13 = scmp.lt.s32.totalorder %s119_s18, %s119_s18 }
  0x5f   :  { %p11305_p0 = scmp.lt.s32.totalorder %s11303_s4, %s11299_s20 }
  0x61   :  { %p11306_p1 = por %p11305_p0, %p11304_p13 }
  0x63   :  { %p11307_p2 = pnand %p11306_p1, %p11300_p12 }
  0x65   :  { %11310 = shalt.err (!%p11307_p2)
}
  0x66   :  { %121 = dma.hbm_to_vmem [thread:$0]  %s11872_s10, 16, %s119_s18, [#allocation15]  }
  0x67   :  { %11331 = dma.done.wait [#allocation3], 128  }
  0x68   :  { %11332 = vsyncadd [#allocation3], 4294967168 }
  0x69   :  { %11333 = dma.done.wait [#allocation6], 4352  }
  0x6a   :  { %11334 = vsyncadd [#allocation6], 4294962944 }
  0x6b   :  { %11335 = dma.done.wait [#allocation9], 131200  }
  0x6c   :  { %11336 = vsyncadd [#allocation9], 4294836096 }
  0x6d   :  { %11337 = dma.done.wait [#allocation12], 16416  }
  0x6e   :  { %11338 = vsyncadd [#allocation12], 4294950880 }
  0x6f   :  { %11339 = dma.done.wait [#allocation15], 32  }
  0x70   :  { %11340 = vsyncadd [#allocation15], 4294967264  ;;  %v11358_v0 = vmov 0   ;;  %v168_v1 = vld [vmem:[#allocation5 + $0x80] sm:$0xff]  ;;  %v169_v8 = vld [vmem:[#allocation5 + $0x88] sm:$0xff]  ;;  %vm498_vm0 = vcmask 261120  }
  0x71   :  { %534 = vmatprep.mubr.bf16.mxu1 %v11358_v0  ;;  %616 = vmatprep.mubr.bf16.mxu0 %v11358_v0  ;;  %v176_v2 = vld [vmem:[#allocation5 + $0xc0] sm:$0xff]  ;;  %v177_v9 = vld [vmem:[#allocation5 + $0xc8] sm:$0xff]  ;;  %v170_v10 = vld [vmem:[#allocation5 + $0x90] sm:$0xff]  ;;  %vm11360_vm1 = vmmov 0   ;;  %vm9582_vm2 = vcmask 523264   ;;  %vm9626_vm3 = vcmask 64512  }
  0x72   :  { %v152_v3 = vld [vmem:[#allocation5] sm:$0xff]  ;;  %v9664_v4 = vcombine.high %v168_v1, %v176_v2  ;;  %v9663_v5 = vcombine.low %v168_v1, %v176_v2  ;;  %v178_v11 = vld [vmem:[#allocation5 + $0xd0] sm:$0xff]  ;;  %v150_v14 = vld [vmem:[#allocation2] sm:$0xff]  ;;  %v9666_v18 = vcombine.high %v169_v8, %v177_v9  ;;  %v9665_v26 = vcombine.low %v169_v8, %v177_v9 }
  0x73   :  { %v160_v6 = vld [vmem:[#allocation5 + $0x40] sm:$0xff]  ;;  %v154_v12 = vld [vmem:[#allocation5 + $0x10] sm:$0xff]  ;;  %v9668_v15 = vcombine.high %v170_v10, %v178_v11  ;;  %v9667_v16 = vcombine.low %v170_v10, %v178_v11  ;;  %v153_v19 = vld [vmem:[#allocation5 + $0x8] sm:$0xff]  ;;  %v11451_v24 = vpack.c.bf16 %v150_v14, %v150_v14 }
  0x74   :  { %v9648_v7 = vcombine.high %v152_v3, %v160_v6  ;;  %514 = vmatprep.subr.bf16.mxu1 %v9664_v4  ;;  %v9647_v13 = vcombine.low %v152_v3, %v160_v6  ;;  %v162_v17 = vld [vmem:[#allocation5 + $0x50] sm:$0xff]  ;;  %v161_v21 = vld [vmem:[#allocation5 + $0x48] sm:$0xff]  ;;  %v172_v22 = vld [vmem:[#allocation5 + $0xa0] sm:$0xff] }
  0x75   :  { %515 = vmatpush1.bf16.msra.mxu1 %v9663_v5  ;;  %v9652_v20 = vcombine.high %v154_v12, %v162_v17  ;;  %596 = vmatprep.subr.bf16.mxu0 %v9668_v15  ;;  %v180_v23 = vld [vmem:[#allocation5 + $0xe0] sm:$0xff]  ;;  %v9651_v25 = vcombine.low %v154_v12, %v162_v17  ;;  %v9650_v27 = vcombine.high %v153_v19, %v161_v21  ;;  %v171_v31 = vld [vmem:[#allocation5 + $0x98] sm:$0xff]  ;;  %v174_v39 = vld [vmem:[#allocation5 + $0xb0] sm:$0xff] }
  0x76   :  { %516 = vmatprep.subr.bf16.mxu1 %v9648_v7  ;;  %597 = vmatpush1.bf16.msra.mxu0 %v9667_v16  ;;  %v9672_v28 = vcombine.high %v172_v22, %v180_v23  ;;  %v156_v29 = vld [vmem:[#allocation5 + $0x20] sm:$0xff]  ;;  %v179_v32 = vld [vmem:[#allocation5 + $0xd8] sm:$0xff]  ;;  %v9671_v33 = vcombine.low %v172_v22, %v180_v23  ;;  %v9649_v34 = vcombine.low %v153_v19, %v161_v21  ;;  %v182_v40 = vld [vmem:[#allocation5 + $0xf0] sm:$0xff] }
  0x77   :  { %598 = vmatprep.subr.bf16.mxu0 %v9652_v20  ;;  %v164_v30 = vld [vmem:[#allocation5 + $0x60] sm:$0xff]  ;;  %v9670_v36 = vcombine.high %v171_v31, %v179_v32  ;;  %v155_v37 = vld [vmem:[#allocation5 + $0x18] sm:$0xff]  ;;  %v9669_v42 = vcombine.low %v171_v31, %v179_v32  ;;  %v9676_v44 = vcombine.high %v174_v39, %v182_v40  ;;  %v158_v45 = vld [vmem:[#allocation5 + $0x30] sm:$0xff]  ;;  %v9675_v49 = vcombine.low %v174_v39, %v182_v40 }
  0x78   :  { %v9656_v35 = vcombine.high %v156_v29, %v164_v30  ;;  %v163_v38 = vld [vmem:[#allocation5 + $0x58] sm:$0xff]  ;;  %v9655_v41 = vcombine.low %v156_v29, %v164_v30  ;;  %v166_v46 = vld [vmem:[#allocation5 + $0x70] sm:$0xff]  ;;  %v173_v47 = vld [vmem:[#allocation5 + $0xa8] sm:$0xff] }
  0x79   :  { %517 = vmatpush1.bf16.msra.mxu1 %v9647_v13  ;;  %v9654_v43 = vcombine.high %v155_v37, %v163_v38  ;;  %v181_v48 = vld [vmem:[#allocation5 + $0xe8] sm:$0xff]  ;;  %v9653_v50 = vcombine.low %v155_v37, %v163_v38  ;;  %v9660_v51 = vcombine.high %v158_v45, %v166_v46  ;;  %v918_v55 = vld [vmem:[#allocation8 + $0x1c0] sm:$0xff]  ;;  %v9659_v57 = vcombine.low %v158_v45, %v166_v46  ;;  %v175_v63 = vld [vmem:[#allocation5 + $0xb8] sm:$0xff] }
  0x7a   :  { %555 = vmatprep.subr.bf16.mxu1 %v9666_v18  ;;  %599 = vmatpush1.bf16.msra.mxu0 %v9651_v25  ;;  %v9674_v52 = vcombine.high %v173_v47, %v181_v48  ;;  %v157_v53 = vld [vmem:[#allocation5 + $0x28] sm:$0xff]  ;;  %v922_v56 = vld [vmem:[#allocation8 + $0x1e0] sm:$0xff]  ;;  %v9673_v58 = vcombine.low %v173_v47, %v181_v48  ;;  %v183_v1 = vld [vmem:[#allocation5 + $0xf8] sm:$0xff] }
  0x7b   :  { %678 = vmatprep.subr.bf16.mxu0 %v9672_v28  ;;  %v165_v54 = vld [vmem:[#allocation5 + $0x68] sm:$0xff]  ;;  %v9744_v60 = vcombine.high %v918_v55, %v922_v56  ;;  %v910_v61 = vld [vmem:[#allocation8 + $0x180] sm:$0xff]  ;;  %v9743_v2 = vcombine.low %v918_v55, %v922_v56  ;;  %v159_v4 = vld [vmem:[#allocation5 + $0x38] sm:$0xff]  ;;  %v9678_v9 = vcombine.high %v175_v63, %v183_v1  ;;  %v9677_v13 = vcombine.low %v175_v63, %v183_v1 }
  0x7c   :  { %9679 = vmatmul.mubr.msk.bf16.vlgmr.msra.gmra.mxu1 %vm498_vm0, %v11451_v24  ;;  %v9658_v59 = vcombine.high %v157_v53, %v165_v54  ;;  %v914_v62 = vld [vmem:[#allocation8 + $0x1a0] sm:$0xff]  ;;  %v9657_v3 = vcombine.low %v157_v53, %v165_v54  ;;  %v167_v5 = vld [vmem:[#allocation5 + $0x78] sm:$0xff] }
  0x7d   :  { %556 = vmatpush1.bf16.msra.mxu1 %v9665_v26  ;;  %575 = vmatprep.mubr.bf16.mxu1 %v11358_v0  ;;  %v9736_v6 = vcombine.high %v910_v61, %v914_v62  ;;  %v902_v7 = vld [vmem:[#allocation8 + $0x140] sm:$0xff]  ;;  %v9735_v10 = vcombine.low %v910_v61, %v914_v62  ;;  %v9662_v16 = vcombine.high %v159_v4, %v167_v5 }
  0x7e   :  { %557 = vmatprep.subr.bf16.mxu1 %v9650_v27  ;;  %9681 = vmatmul.mubr.msk.bf16.vlgmr.msra.gmra.mxu0 %vm498_vm0, %v11451_v24  ;;  %v906_v8 = vld [vmem:[#allocation8 + $0x160] sm:$0xff]  ;;  %v9661_v21 = vcombine.low %v159_v4, %v167_v5 }
  0x7f   :  { %679 = vmatpush1.bf16.msra.mxu0 %v9671_v33  ;;  %698 = vmatprep.mubr.bf16.mxu0 %v11358_v0  ;;  %v894_v11 = vld [vmem:[#allocation8 + $0x100] sm:$0xff]  ;;  %v9728_v17 = vcombine.high %v902_v7, %v906_v8  ;;  %v9727_v18 = vcombine.low %v902_v7, %v906_v8 }
  0x80   :  { %680 = vmatprep.subr.bf16.mxu0 %v9656_v35  ;;  %v898_v12 = vld [vmem:[#allocation8 + $0x120] sm:$0xff] }
  0x81   :  { %558 = vmatpush1.bf16.msra.mxu1 %v9649_v34  ;;  %v1046_v14 = vld [vmem:[#allocation8 + $0x5c0] sm:$0xff]  ;;  %v9720_v22 = vcombine.high %v894_v11, %v898_v12  ;;  %v9719_v27 = vcombine.low %v894_v11, %v898_v12 }
  0x82   :  { %637 = vmatprep.subr.bf16.mxu1 %v9670_v36  ;;  %v1050_v15 = vld [vmem:[#allocation8 + $0x5e0] sm:$0xff] }
  0x83   :  { %681 = vmatpush1.bf16.msra.mxu0 %v9655_v41  ;;  %v886_v19 = vld [vmem:[#allocation8 + $0xc0] sm:$0xff]  ;;  %v9872_v26 = vcombine.high %v1046_v14, %v1050_v15  ;;  %v9871_v30 = vcombine.low %v1046_v14, %v1050_v15 }
  0x84   :  { %9680 = vmatmul.mubr.msk.bf16.vlgmr.msra.gmra.mxu1 %vm498_vm0, %v11451_v24  ;;  %760 = vmatprep.subr.bf16.mxu0 %v9676_v44  ;;  %v890_v20 = vld [vmem:[#allocation8 + $0xe0] sm:$0xff] }
  0x85   :  { %638 = vmatpush1.bf16.msra.mxu1 %v9669_v42  ;;  %657 = vmatprep.mubr.bf16.mxu1 %v11358_v0  ;;  %v1038_v23 = vld [vmem:[#allocation8 + $0x580] sm:$0xff]  ;;  %v9712_v31 = vcombine.high %v886_v19, %v890_v20 }
  0x86   :  { %639 = vmatprep.subr.bf16.mxu1 %v9654_v43  ;;  %9683 = vmatmul.mubr.msk.bf16.vlgmr.msra.gmra.mxu0 %vm498_vm0, %v11451_v24  ;;  %v1042_v25 = vld [vmem:[#allocation8 + $0x5a0] sm:$0xff] }
  0x87   :  { %761 = vmatpush1.bf16.msra.mxu0 %v9675_v49  ;;  %780 = vmatprep.mubr.bf16.mxu0 %v11358_v0  ;;  %v878_v28 = vld [vmem:[#allocation8 + $0x80] sm:$0xff]  ;;  %v9864_v34 = vcombine.high %v1038_v23, %v1042_v25  ;;  %v9863_v37 = vcombine.low %v1038_v23, %v1042_v25 }
  0x88   :  { %762 = vmatprep.subr.bf16.mxu0 %v9660_v51  ;;  %v882_v29 = vld [vmem:[#allocation8 + $0xa0] sm:$0xff] }
  0x89   :  { %640 = vmatpush1.bf16.msra.mxu1 %v9653_v50  ;;  %v1030_v32 = vld [vmem:[#allocation8 + $0x540] sm:$0xff]  ;;  %v9704_v38 = vcombine.high %v878_v28, %v882_v29  ;;  %v9703_v42 = vcombine.low %v878_v28, %v882_v29 }
  0x8a   :  { %719 = vmatprep.subr.bf16.mxu1 %v9674_v52  ;;  %v1034_v33 = vld [vmem:[#allocation8 + $0x560] sm:$0xff] }
  0x8b   :  { %763 = vmatpush1.bf16.msra.mxu0 %v9659_v57  ;;  %v870_v35 = vld [vmem:[#allocation8 + $0x40] sm:$0xff]  ;;  %v9856_v41 = vcombine.high %v1030_v32, %v1034_v33  ;;  %v9855_v45 = vcombine.low %v1030_v32, %v1034_v33 }
  0x8c   :  { %9682 = vmatmul.mubr.msk.bf16.vlgmr.msra.gmra.mxu1 %vm498_vm0, %v11451_v24  ;;  %7083 = vmatprep.subr.bf16.mxu0 %v9744_v60  ;;  %v874_v36 = vld [vmem:[#allocation8 + $0x60] sm:$0xff] }
  0x8d   :  { %720 = vmatpush1.bf16.msra.mxu1 %v9673_v58  ;;  %739 = vmatprep.mubr.bf16.mxu1 %v11358_v0  ;;  %v1022_v39 = vld [vmem:[#allocation8 + $0x500] sm:$0xff]  ;;  %v9695_v49 = vcombine.low %v870_v35, %v874_v36 }
  0x8e   :  { %721 = vmatprep.subr.bf16.mxu1 %v9658_v59  ;;  %9685 = vmatmul.mubr.msk.bf16.vlgmr.msra.gmra.mxu0 %vm498_vm0, %v11451_v24  ;;  %v1026_v40 = vld [vmem:[#allocation8 + $0x520] sm:$0xff] }
  0x8f   :  { %7084 = vmatpush1.bf16.msra.mxu0 %v9743_v2  ;;  %v862_v43 = vld [vmem:[#allocation8] sm:$0xff]  ;;  %v9848_v48 = vcombine.high %v1022_v39, %v1026_v40  ;;  %v9847_v52 = vcombine.low %v1022_v39, %v1026_v40 }
  0x90   :  { %7085 = vmatprep.subr.bf16.mxu0 %v9736_v6  ;;  %v866_v44 = vld [vmem:[#allocation8 + $0x20] sm:$0xff] }
  0x91   :  { %722 = vmatpush1.bf16.msra.mxu1 %v9657_v3  ;;  %v1014_v46 = vld [vmem:[#allocation8 + $0x4c0] sm:$0xff]  ;;  %v9688_v53 = vcombine.high %v862_v43, %v866_v44  ;;  %v9687_v57 = vcombine.low %v862_v43, %v866_v44 }
  0x92   :  { %801 = vmatprep.subr.bf16.mxu1 %v9678_v9  ;;  %v1018_v47 = vld [vmem:[#allocation8 + $0x4e0] sm:$0xff] }
  0x93   :  { %7086 = vmatpush1.bf16.msra.mxu0 %v9735_v10  ;;  %v982_v50 = vld [vmem:[#allocation8 + $0x3c0] sm:$0xff]  ;;  %v9840_v56 = vcombine.high %v1014_v46, %v1018_v47  ;;  %v9839_v60 = vcombine.low %v1014_v46, %v1018_v47 }
  0x94   :  { %9684 = vmatmul.mubr.msk.bf16.vlgmr.msra.gmra.mxu1 %vm498_vm0, %v11451_v24  ;;  %7087 = vmatprep.subr.bf16.mxu0 %v9728_v17  ;;  %v986_v51 = vld [vmem:[#allocation8 + $0x3e0] sm:$0xff] }
  0x95   :  { %802 = vmatpush1.bf16.msra.mxu1 %v9677_v13  ;;  %821 = vmatprep.mubr.bf16.mxu1 %v11358_v0  ;;  %v9711_v0 = vcombine.low %v886_v19, %v890_v20  ;;  %v1006_v54 = vld [vmem:[#allocation8 + $0x480] sm:$0xff]  ;;  %v9808_v61 = vcombine.high %v982_v50, %v986_v51  ;;  %v9807_v2 = vcombine.low %v982_v50, %v986_v51 }
  0x96   :  { %803 = vmatprep.subr.bf16.mxu1 %v9662_v16  ;;  %v1010_v55 = vld [vmem:[#allocation8 + $0x4a0] sm:$0xff] }
  0x97   :  { %7088 = vmatpush1.bf16.msra.mxu0 %v9727_v18  ;;  %v974_v58 = vld [vmem:[#allocation8 + $0x380] sm:$0xff]  ;;  %v9832_v1 = vcombine.high %v1006_v54, %v1010_v55  ;;  %v9831_v5 = vcombine.low %v1006_v54, %v1010_v55 }
  0x98   :  { %7089 = vmatprep.subr.bf16.mxu0 %v9720_v22  ;;  %v978_v59 = vld [vmem:[#allocation8 + $0x3a0] sm:$0xff] }
  0x99   :  { %804 = vmatpush1.bf16.msra.mxu1 %v9661_v21  ;;  %v998_v62 = vld [vmem:[#allocation8 + $0x440] sm:$0xff]  ;;  %v9800_v6 = vcombine.high %v974_v58, %v978_v59  ;;  %v9799_v10 = vcombine.low %v974_v58, %v978_v59 }
  0x9a   :  { %7124 = vmatprep.subr.bf16.mxu1 %v9872_v26  ;;  %v1002_v63 = vld [vmem:[#allocation8 + $0x460] sm:$0xff] }
  0x9b   :  { %7090 = vmatpush1.bf16.msra.mxu0 %v9719_v27  ;;  %v966_v3 = vld [vmem:[#allocation8 + $0x340] sm:$0xff]  ;;  %v9824_v9 = vcombine.high %v998_v62, %v1002_v63  ;;  %v9823_v13 = vcombine.low %v998_v62, %v1002_v63 }
  0x9c   :  { %9686 = vmatmul.mubr.msk.bf16.vlgmr.msra.gmra.mxu1 %vm498_vm0, %v11451_v24  ;;  %7091 = vmatprep.subr.bf16.mxu0 %v9712_v31  ;;  %v9696_v24 = vcombine.high %v870_v35, %v874_v36  ;;  %v970_v4 = vld [vmem:[#allocation8 + $0x360] sm:$0xff] }
  0x9d   :  { %7125 = vmatpush1.bf16.msra.mxu1 %v9871_v30  ;;  %v990_v7 = vld [vmem:[#allocation8 + $0x400] sm:$0xff]  ;;  %v9792_v14 = vcombine.high %v966_v3, %v970_v4  ;;  %v9791_v18 = vcombine.low %v966_v3, %v970_v4 }
  0x9e   :  { %7126 = vmatprep.subr.bf16.mxu1 %v9864_v34  ;;  %v994_v8 = vld [vmem:[#allocation8 + $0x420] sm:$0xff] }
  0x9f   :  { %7092 = vmatpush1.bf16.msra.mxu0 %v9711_v0  ;;  %v958_v11 = vld [vmem:[#allocation8 + $0x300] sm:$0xff]  ;;  %v9816_v17 = vcombine.high %v990_v7, %v994_v8  ;;  %v9815_v21 = vcombine.low %v990_v7, %v994_v8 }
  0xa0   :  { %7093 = vmatprep.subr.bf16.mxu0 %v9704_v38  ;;  %v962_v12 = vld [vmem:[#allocation8 + $0x320] sm:$0xff] }
  0xa1   :  { %7127 = vmatpush1.bf16.msra.mxu1 %v9863_v37  ;;  %v1110_v15 = vld [vmem:[#allocation8 + $0x7c0] sm:$0xff]  ;;  %v9784_v22 = vcombine.high %v958_v11, %v962_v12  ;;  %v9783_v27 = vcombine.low %v958_v11, %v962_v12  ;;  %v194_v12 = vlaneseq }
  0xa2   :  { %7128 = vmatprep.subr.bf16.mxu1 %v9856_v41  ;;  %v1114_v16 = vld [vmem:[#allocation8 + $0x7e0] sm:$0xff] }
  0xa3   :  { %7094 = vmatpush1.bf16.msra.mxu0 %v9703_v42  ;;  %v950_v19 = vld [vmem:[#allocation8 + $0x2c0] sm:$0xff]  ;;  %v9936_v26 = vcombine.high %v1110_v15, %v1114_v16  ;;  %v9935_v28 = vcombine.low %v1110_v15, %v1114_v16 }
  0xa4   :  { %7095 = vmatprep.subr.bf16.mxu0 %v9696_v24  ;;  %v954_v20 = vld [vmem:[#allocation8 + $0x2e0] sm:$0xff] }
  0xa5   :  { %7129 = vmatpush1.bf16.msra.mxu1 %v9855_v45  ;;  %v1102_v23 = vld [vmem:[#allocation8 + $0x780] sm:$0xff]  ;;  %v9776_v29 = vcombine.high %v950_v19, %v954_v20  ;;  %v9775_v0 = vcombine.low %v950_v19, %v954_v20 }
  0xa6   :  { %7130 = vmatprep.subr.bf16.mxu1 %v9848_v48  ;;  %v1106_v25 = vld [vmem:[#allocation8 + $0x7a0] sm:$0xff] }
  0xa7   :  { %7096 = vmatpush1.bf16.msra.mxu0 %v9695_v49  ;;  %v9928_v30 = vcombine.high %v1102_v23, %v1106_v25  ;;  %v1094_v31 = vld [vmem:[#allocation8 + $0x740] sm:$0xff]  ;;  %v9927_v35 = vcombine.low %v1102_v23, %v1106_v25 }
  0xa8   :  { %7097 = vmatprep.subr.bf16.mxu0 %v9688_v53  ;;  %v942_v32 = vld [vmem:[#allocation8 + $0x280] sm:$0xff] }
  0xa9   :  { %7131 = vmatpush1.bf16.msra.mxu1 %v9847_v52  ;;  %v946_v33 = vld [vmem:[#allocation8 + $0x2a0] sm:$0xff] }
  0xaa   :  { %7132 = vmatprep.subr.bf16.mxu1 %v9840_v56  ;;  %v1098_v34 = vld [vmem:[#allocation8 + $0x760] sm:$0xff]  ;;  %v9768_v36 = vcombine.high %v942_v32, %v946_v33  ;;  %v9767_v42 = vcombine.low %v942_v32, %v946_v33 }
  0xab   :  { %7098 = vmatpush1.bf16.msra.mxu0 %v9687_v57  ;;  %v9920_v37 = vcombine.high %v1094_v31, %v1098_v34  ;;  %v1086_v38 = vld [vmem:[#allocation8 + $0x700] sm:$0xff]  ;;  %v9919_v43 = vcombine.low %v1094_v31, %v1098_v34 }
  0xac   :  { %7099 = vmatprep.subr.bf16.mxu0 %v9808_v61  ;;  %v934_v39 = vld [vmem:[#allocation8 + $0x240] sm:$0xff] }
  0xad   :  { %7133 = vmatpush1.bf16.msra.mxu1 %v9839_v60  ;;  %v938_v40 = vld [vmem:[#allocation8 + $0x260] sm:$0xff] }
  0xae   :  { %7134 = vmatprep.subr.bf16.mxu1 %v9832_v1  ;;  %v1090_v41 = vld [vmem:[#allocation8 + $0x720] sm:$0xff]  ;;  %v9760_v44 = vcombine.high %v934_v39, %v938_v40  ;;  %v9759_v51 = vcombine.low %v934_v39, %v938_v40 }
  0xaf   :  { %7100 = vmatpush2.bf16.msra.mxu0 %v9807_v2  ;;  %v1078_v45 = vld [vmem:[#allocation8 + $0x6c0] sm:$0xff]  ;;  %v9912_v46 = vcombine.high %v1086_v38, %v1090_v41  ;;  %v9911_v53 = vcombine.low %v1086_v38, %v1090_v41 }
  0xb0   :  { %7101 = vmatprep.subr.bf16.mxu0 %v9800_v6  ;;  %v1082_v24 = vld [vmem:[#allocation8 + $0x6e0] sm:$0xff] }
  0xb1   :  { %7135 = vmatpush1.bf16.msra.mxu1 %v9831_v5  ;;  %v926_v47 = vld [vmem:[#allocation8 + $0x200] sm:$0xff]  ;;  %v9904_v55 = vcombine.high %v1078_v45, %v1082_v24  ;;  %v9903_v59 = vcombine.low %v1078_v45, %v1082_v24 }
  0xb2   :  { %7136 = vmatprep.subr.bf16.mxu1 %v9824_v9  ;;  %v930_v48 = vld [vmem:[#allocation8 + $0x220] sm:$0xff] }
  0xb3   :  { %7102 = vmatpush2.bf16.msra.mxu0 %v9799_v10  ;;  %v11475_v49 = vld [vmem:[#allocation8 + $0x9c0] sm:$0xff]  ;;  %v9752_v54 = vcombine.high %v926_v47, %v930_v48  ;;  %v9751_v58 = vcombine.low %v926_v47, %v930_v48 }
  0xb4   :  { %7103 = vmatprep.subr.bf16.mxu0 %v9792_v14  ;;  %v11477_v50 = vld [vmem:[#allocation8 + $0x9e0] sm:$0xff]  ;;  %v184_v14 = vld [vmem:[#allocation7] sm:$0xff] }
  0xb5   :  { %7137 = vmatpush1.bf16.msra.mxu1 %v9823_v13  ;;  %v9999_v52 = vcombine.low %v11475_v49, %v11477_v50  ;;  %v1070_v56 = vld [vmem:[#allocation8 + $0x680] sm:$0xff]  ;;  %v10000_v60 = vcombine.high %v11475_v49, %v11477_v50  ;;  %v195_v13 = vshrl.u32 %v194_v12, 7  ;;  %v186_v15 = vunpack.c.l.bf16 %v184_v14 }
  0xb6   :  { %7138 = vmatprep.subr.bf16.mxu1 %v9816_v17  ;;  %v1074_v57 = vld [vmem:[#allocation8 + $0x6a0] sm:$0xff]  ;;  %v11496_v19 = vunpack.c.h.bf16 %v184_v14 }
  0xb7   :  { %7104 = vmatpush2.bf16.msra.mxu0 %v9791_v18  ;;  %v9896_v61 = vcombine.high %v1070_v56, %v1074_v57  ;;  %v1062_v62 = vld [vmem:[#allocation8 + $0x640] sm:$0xff]  ;;  %v9895_v3 = vcombine.low %v1070_v56, %v1074_v57  ;;  %v11491_v16 = vsub.s32 0, %v195_v13  ;;  %v11493_v17 = vsub.s32 2, %v195_v13 }
  0xb8   :  { %7105 = vmatprep.subr.bf16.mxu0 %v9784_v22  ;;  %v1066_v63 = vld [vmem:[#allocation8 + $0x660] sm:$0xff]  ;;  %v11500_v22 = vsub.s32 4, %v195_v13 }
  0xb9   :  { %7139 = vmatpush1.bf16.msra.mxu1 %v9815_v21  ;;  %v11483_v1 = vld [vmem:[#allocation8 + $0xdc0] sm:$0xff]  ;;  %v9888_v5 = vcombine.high %v1062_v62, %v1066_v63  ;;  %v9887_v8 = vcombine.low %v1062_v62, %v1066_v63  ;;  %v197_v18 = vrot.slane %v186_v15, %v11491_v16  ;;  %v201_v20 = vrot.slane %v186_v15, %v11493_v17 }
  0xba   :  { %7140 = vmatprep.subr.bf16.mxu1 %v9936_v26  ;;  %v11485_v2 = vld [vmem:[#allocation8 + $0xde0] sm:$0xff]  ;;  %v217_v23 = vrot.slane %v11496_v19, %v11493_v17  ;;  %v11505_v26 = vsub.s32 6, %v195_v13 }
  0xbb   :  { %7106 = vmatpush2.bf16.msra.mxu0 %v9783_v27  ;;  %v10127_v4 = vcombine.low %v11483_v1, %v11485_v2  ;;  %v1054_v6 = vld [vmem:[#allocation8 + $0x600] sm:$0xff]  ;;  %v10128_v11 = vcombine.high %v11483_v1, %v11485_v2  ;;  %v277_v21 = vrot.slane %v197_v18, %v11491_v16  ;;  %v281_v25 = vrot.slane %v201_v20, %v11491_v16 }
  0xbc   :  { %7107 = vmatprep.subr.bf16.mxu0 %v9776_v29  ;;  %v1058_v7 = vld [vmem:[#allocation8 + $0x620] sm:$0xff]  ;;  %v205_v29 = vrot.slane %v186_v15, %v11500_v22  ;;  %v297_v31 = vrot.slane %v217_v23, %v11491_v16  ;;  %v209_v33 = vrot.slane %v186_v15, %v11505_v26 }
  0xbd   :  { %7141 = vmatpush2.bf16.msra.mxu1 %v9935_v28  ;;  %v9880_v9 = vcombine.high %v1054_v6, %v1058_v7  ;;  %v9879_v10 = vcombine.low %v1054_v6, %v1058_v7  ;;  %v1166_v38 = vld [vmem:[#allocation8 + $0x980] sm:$0xff] }
  0xbe   :  { %7142 = vmatprep.subr.bf16.mxu1 %v9928_v30  ;;  %v1170_v39 = vld [vmem:[#allocation8 + $0x9a0] sm:$0xff] }
  0xbf   :  { %7108 = vmatpush2.bf16.msra.mxu0 %v9775_v0  ;;  %v9992_v47 = vcombine.high %v1166_v38, %v1170_v39  ;;  %v1150_v7 = vld [vmem:[#allocation8 + $0x900] sm:$0xff] }
  0xc0   :  { %7109 = vmatprep.subr.bf16.mxu0 %v9768_v36  ;;  %v1298_v49 = vld [vmem:[#allocation8 + $0xda0] sm:$0xff] }
  0xc1   :  { %7143 = vmatpush2.bf16.msra.mxu1 %v9927_v35 }
  0xc2   :  { %7144 = vmatprep.subr.bf16.mxu1 %v9920_v37  ;;  %v285_v37 = vrot.slane %v205_v29, %v11491_v16 }
  0xc3   :  { %7110 = vmatpush2.bf16.msra.mxu0 %v9767_v42 }
  0xc4   :  { %7111 = vmatprep.subr.bf16.mxu0 %v9760_v44  ;;  %v289_v44 = vrot.slane %v209_v33, %v11491_v16 }
  0xc5   :  { %7145 = vmatpush2.bf16.msra.mxu1 %v9919_v43 }
  0xc6   :  { %7146 = vmatprep.subr.bf16.mxu1 %v9912_v46 }
  0xc7   :  { %7112 = vmatpush2.bf16.msra.mxu0 %v9759_v51 }
  0xc8   :  { %7113 = vmatprep.subr.bf16.mxu0 %v9752_v54  ;;  %v1162_v54 = vld [vmem:[#allocation8 + $0x960] sm:$0xff] }
  0xc9   :  { %7147 = vmatpush2.bf16.msra.mxu1 %v9911_v53  ;;  %v1158_v53 = vld [vmem:[#allocation8 + $0x940] sm:$0xff] }
  0xca   :  { %7148 = vmatprep.subr.bf16.mxu1 %v9904_v55  ;;  %v9984_v6 = vcombine.high %v1158_v53, %v1162_v54  ;;  %v9983_v14 = vcombine.low %v1158_v53, %v1162_v54 }
  0xcb   :  { %7114 = vmatpush2.bf16.msra.mxu0 %v9751_v58  ;;  %v185_v58 = vld [vmem:[#allocation7 + $0x8] sm:$0xff] }
  0xcc   :  { %7165 = vmatprep.subr.bf16.mxu0 %v10000_v60  ;;  %v9991_v60 = vcombine.low %v1166_v38, %v1170_v39  ;;  %v11529_v63 = vunpack.c.h.bf16 %v185_v58  ;;  %v11541_v18 = vunpack.c.l.bf16 %v185_v58 }
  0xcd   :  { %7149 = vmatpush2.bf16.msra.mxu1 %v9903_v59 }
  0xce   :  { %7150 = vmatprep.subr.bf16.mxu1 %v9896_v61  ;;  %v225_v61 = vrot.slane %v11496_v19, %v11505_v26  ;;  %v249_v12 = vrot.slane %v11529_v63, %v11493_v17  ;;  %v237_v33 = vrot.slane %v11541_v18, %v11500_v22 }
  0xd0   :  { %v305_v15 = vrot.slane %v225_v61, %v11491_v16  ;;  %v317_v54 = vrot.slane %v237_v33, %v11491_v16 }
  0xd1   :  { %7151 = vmatpush2.bf16.msra.mxu1 %v9895_v3 }
  0xd2   :  { %7152 = vmatprep.subr.bf16.mxu1 %v9888_v5 }
  0xd5   :  { %7153 = vmatpush2.bf16.msra.mxu1 %v9887_v8 }
  0xd6   :  { %7154 = vmatprep.subr.bf16.mxu1 %v9880_v9  ;;  %v1154_v9 = vld [vmem:[#allocation8 + $0x920] sm:$0xff] }
  0xd7   :  { %v9976_v23 = vcombine.high %v1150_v7, %v1154_v9 }
  0xd9   :  { %7155 = vmatpush2.bf16.msra.mxu1 %v9879_v10  ;;  %v1294_v10 = vld [vmem:[#allocation8 + $0xd80] sm:$0xff] }
  0xda   :  { %7206 = vmatprep.subr.bf16.mxu1 %v10128_v11  ;;  %v10119_v38 = vcombine.low %v1294_v10, %v1298_v49 }
 0x13c   :  { %v536_v27 = vpop.f32.mrf.mxu1 }
 0x13d   :  { %v537_v28 = vadd.f32 %v536_v27, %v277_v21  ;;  %v1142_v27 = vld [vmem:[#allocation8 + $0x8c0] sm:$0xff] }
 0x13e   :  { %v538_v30 = vpop.f32.mrf.mxu1  ;;  %v11510_v34 = vpop.f32.mrf.mxu0 }
 0x13f   :  { %v539_v32 = vadd.f32 %v538_v30, %v281_v25  ;;  %v830_v0 = vmax.f32 %v537_v28, 0.0  ;;  %v10120_v25 = vcombine.high %v1294_v10, %v1298_v49  ;;  %v1146_v30 = vld [vmem:[#allocation8 + $0x8e0] sm:$0xff]  ;;  %v253_v10 = vrot.slane %v11529_v63, %v11500_v22 }
 0x140   :  { %v540_v35 = vpop.f32.mrf.mxu1  ;;  %v620_v40 = vpop.f32.mrf.mxu0 }
 0x141   :  { %v831_v36 = vmax.f32 %v539_v32, 0.0  ;;  %v621_v42 = vadd.f32 %v620_v40, %v297_v31  ;;  %v11516_v24 = vpack.c.bf16 %v830_v0, %v830_v0  ;;  %v1286_v31 = vld [vmem:[#allocation8 + $0xd40] sm:$0xff] }
 0x142   :  { %v541_v41 = vpop.f32.mrf.mxu1  ;;  %v622_v45 = vpop.f32.mrf.mxu0  ;;  %v1290_v32 = vld [vmem:[#allocation8 + $0xd60] sm:$0xff] }
 0x143   :  { %v11513_v43 = vpack.c.bf16 %v831_v36, %v831_v36  ;;  %v835_v48 = vmax.f32 %v621_v42, 0.0  ;;  %v329_v36 = vrot.slane %v249_v12, %v11491_v16  ;;  %v9968_v41 = vcombine.high %v1142_v27, %v1146_v30 }
 0x144   :  { %v577_v46 = vpop.f32.mrf.mxu1  ;;  %v623_v55 = vpop.f32.mrf.mxu0  ;;  %v10112_v42 = vcombine.high %v1286_v31, %v1290_v32 }
 0x145   :  { %v578_v51 = vadd.f32 %v577_v46, %v285_v37  ;;  %7115 = vmatprep.mubr.bf16.mxu0 %v11513_v43  ;;  %v11520_v57 = vpack.c.bf16 %v835_v48, %v835_v48  ;;  %v9975_v37 = vcombine.low %v1150_v7, %v1154_v9  ;;  %v1278_v48 = vld [vmem:[#allocation8 + $0xd00] sm:$0xff]  ;;  %v9967_v55 = vcombine.low %v1142_v27, %v1146_v30 }
 0x146   :  { %v579_v56 = vpop.f32.mrf.mxu1  ;;  %7116 = vmatmul.mubr.bf16.vlgmr.msra.gmra.mxu0 %v11516_v24  ;;  %v11527_v62 = vpop.f32.mrf.mxu0  ;;  %v1270_v7 = vld [vmem:[#allocation8 + $0xcc0] sm:$0xff] }
 0x147   :  { %v580_v59 = vadd.f32 %v579_v56, %v289_v44  ;;  %7166 = vmatpush1.bf16.msra.mxu0 %v9999_v52  ;;  %v832_v3 = vmax.f32 %v578_v51, 0.0  ;;  %7197 = vmatprep.mubr.bf16.mxu0 %v11520_v57  ;;  %v245_v52 = vrot.slane %v11529_v63, %v11491_v16  ;;  %v1134_v44 = vld [vmem:[#allocation8 + $0x880] sm:$0xff]  ;;  %v10111_v56 = vcombine.low %v1286_v31, %v1290_v32 }
 0x148   :  { %v581_v5 = vpop.f32.mrf.mxu1  ;;  %7167 = vmatprep.subr.bf16.mxu0 %v9992_v47  ;;  %v11532_v50 = vpop.f32.mrf.mxu0  ;;  %v1138_v47 = vld [vmem:[#allocation8 + $0x8a0] sm:$0xff]  ;;  %v333_v31 = vrot.slane %v253_v10, %v11491_v16 }
 0x149   :  { %v833_v8 = vmax.f32 %v580_v59, 0.0  ;;  %v11543_v21 = vpack.c.bf16 %v832_v3, %v832_v3  ;;  %v325_v29 = vrot.slane %v245_v52, %v11491_v16  ;;  %v1282_v51 = vld [vmem:[#allocation8 + $0xd20] sm:$0xff] }
 0x14a   :  { %v582_v11 = vpop.f32.mrf.mxu1  ;;  %v704_v20 = vpop.f32.mrf.mxu0  ;;  %v10104_v61 = vcombine.high %v1278_v48, %v1282_v51  ;;  %v1126_v3 = vld [vmem:[#allocation8 + $0x840] sm:$0xff]  ;;  %v10103_v12 = vcombine.low %v1278_v48, %v1282_v51 }
 0x14b   :  { %v11538_v13 = vpack.c.bf16 %v833_v8, %v833_v8  ;;  %7168 = vmatpush1.bf16.msra.mxu0 %v9991_v60  ;;  %v9960_v60 = vcombine.high %v1134_v44, %v1138_v47  ;;  %v1274_v8 = vld [vmem:[#allocation8 + $0xce0] sm:$0xff]  ;;  %v9959_v11 = vcombine.low %v1134_v44, %v1138_v47 }
 0x14c   :  { %7169 = vmatprep.subr.bf16.mxu0 %v9984_v6  ;;  %v11545_v28 = vpop.f32.mrf.mxu1  ;;  %v705_v0 = vpop.f32.mrf.mxu0  ;;  %v1130_v6 = vld [vmem:[#allocation8 + $0x860] sm:$0xff]  ;;  %v10096_v20 = vcombine.high %v1270_v7, %v1274_v8 }
 0x14d   :  { %7156 = vmatprep.mubr.bf16.mxu1 %v11538_v13  ;;  %v1122_v27 = vld [vmem:[#allocation8 + $0x820] sm:$0xff]  ;;  %v9951_v33 = vcombine.low %v1126_v3, %v1130_v6  ;;  %v10095_v0 = vcombine.low %v1270_v7, %v1274_v8 }
 0x14e   :  { %7157 = vmatmul.mubr.bf16.vlgmr.msra.gmra.mxu1 %v11543_v21  ;;  %v661_v35 = vpop.f32.mrf.mxu1  ;;  %v782_v40 = vpop.f32.mrf.mxu0  ;;  %v1266_v30 = vld [vmem:[#allocation8 + $0xca0] sm:$0xff] }
 0x14f   :  { %7170 = vmatpush1.bf16.msra.mxu0 %v9983_v14  ;;  %7207 = vmatpush1.bf16.msra.mxu1 %v10127_v4  ;;  %v662_v39 = vadd.f32 %v661_v35, %v305_v15  ;;  %v11556_v46 = vadd.f32 %v782_v40, %v325_v29  ;;  %v257_v14 = vrot.slane %v11529_v63, %v11505_v26  ;;  %v1262_v29 = vld [vmem:[#allocation8 + $0xc80] sm:$0xff] }
 0x150   :  { %7171 = vmatprep.subr.bf16.mxu0 %v9976_v23  ;;  %7208 = vmatprep.subr.bf16.mxu1 %v10120_v25  ;;  %v663_v45 = vpop.f32.mrf.mxu1  ;;  %v784_v1 = vpop.f32.mrf.mxu0  ;;  %v9952_v15 = vcombine.high %v1126_v3, %v1130_v6  ;;  %v1118_v23 = vld [vmem:[#allocation8 + $0x800] sm:$0xff]  ;;  %v10087_v47 = vcombine.low %v1262_v29, %v1266_v30 }
 0x151   :  { %v837_v53 = vmax.f32 %v662_v39, 0.0  ;;  %v11559_v4 = vadd.f32 %v784_v1, %v329_v36  ;;  %v337_v35 = vrot.slane %v257_v14, %v11491_v16  ;;  %v9944_v63 = vcombine.high %v1118_v23, %v1122_v27  ;;  %v1242_v39 = vld [vmem:[#allocation8 + $0xbe0] sm:$0xff] }
 0x152   :  { %v664_v2 = vpop.f32.mrf.mxu1  ;;  %v786_v59 = vpop.f32.mrf.mxu0  ;;  %v10088_v36 = vcombine.high %v1262_v29, %v1266_v30  ;;  %v1254_v40 = vld [vmem:[#allocation8 + $0xc40] sm:$0xff]  ;;  %v9943_v45 = vcombine.low %v1118_v23, %v1122_v27 }
 0x153   :  { %7172 = vmatpush1.bf16.msra.mxu0 %v9975_v37  ;;  %7209 = vmatpush1.bf16.msra.mxu1 %v10119_v38  ;;  %v11561_v58 = vpack.c.bf16 %v837_v53, %v837_v53  ;;  %v1238_v37 = vld [vmem:[#allocation8 + $0xbc0] sm:$0xff] }
 0x154   :  { %7173 = vmatprep.subr.bf16.mxu0 %v9968_v41  ;;  %7210 = vmatprep.subr.bf16.mxu1 %v10112_v42  ;;  %v741_v5 = vpop.f32.mrf.mxu1  ;;  %v787_v49 = vpop.f32.mrf.mxu0  ;;  %v1258_v41 = vld [vmem:[#allocation8 + $0xc60] sm:$0xff]  ;;  %v10064_v51 = vcombine.high %v1238_v37, %v1242_v39 }
 0x155   :  { %7238 = vmatprep.mubr.bf16.mxu1 %v11561_v58  ;;  %v11564_v9 = vadd.f32 %v741_v5, %v317_v54  ;;  %v10080_v53 = vcombine.high %v1254_v40, %v1258_v41  ;;  %v1230_v54 = vld [vmem:[#allocation8 + $0xb80] sm:$0xff] }
 0x156   :  { %v11568_v52 = vpop.f32.mrf.mxu1  ;;  %v1234_v2 = vld [vmem:[#allocation8 + $0xba0] sm:$0xff] }
 0x157   :  { %7174 = vmatpush1.bf16.msra.mxu0 %v9967_v55  ;;  %7211 = vmatpush1.bf16.msra.mxu1 %v10111_v56  ;;  %v1246_v55 = vld [vmem:[#allocation8 + $0xc00] sm:$0xff]  ;;  %v10056_v3 = vcombine.high %v1230_v54, %v1234_v2  ;;  %v10055_v49 = vcombine.low %v1230_v54, %v1234_v2 }
 0x158   :  { %7175 = vmatprep.subr.bf16.mxu0 %v9960_v60  ;;  %7212 = vmatprep.subr.bf16.mxu1 %v10104_v61  ;;  %v745_v25 = vpop.f32.mrf.mxu1  ;;  %v1250_v56 = vld [vmem:[#allocation8 + $0xc20] sm:$0xff]  ;;  %v10063_v60 = vcombine.low %v1238_v37, %v1242_v39  ;;  %v10079_v61 = vcombine.low %v1254_v40, %v1258_v41 }
 0x159   :  { %v10072_v5 = vcombine.high %v1246_v55, %v1250_v56  ;;  %v1222_v6 = vld [vmem:[#allocation8 + $0xb40] sm:$0xff] }
 0x15a   :  { %v746_v32 = vpop.f32.mrf.mxu1  ;;  %v1226_v7 = vld [vmem:[#allocation8 + $0xb60] sm:$0xff] }
 0x15b   :  { %7176 = vmatpush1.bf16.msra.mxu0 %v9959_v11  ;;  %7213 = vmatpush1.bf16.msra.mxu1 %v10103_v12  ;;  %v1366_v8 = vld [vmem:[#allocation8 + $0xfc0] sm:$0xff]  ;;  %v10071_v11 = vcombine.low %v1246_v55, %v1250_v56  ;;  %v10048_v12 = vcombine.high %v1222_v6, %v1226_v7  ;;  %v10047_v27 = vcombine.low %v1222_v6, %v1226_v7 }
 0x15c   :  { %7177 = vmatprep.subr.bf16.mxu0 %v9952_v15  ;;  %7214 = vmatprep.subr.bf16.mxu1 %v10096_v20  ;;  %v823_v38 = vpop.f32.mrf.mxu1  ;;  %v1370_v10 = vld [vmem:[#allocation8 + $0xfe0] sm:$0xff] }
 0x15d   :  { %v11574_v42 = vadd.f32 %v823_v38, %v333_v31  ;;  %v10192_v14 = vcombine.high %v1366_v8, %v1370_v10  ;;  %v1214_v15 = vld [vmem:[#allocation8 + $0xb00] sm:$0xff]  ;;  %v10191_v29 = vcombine.low %v1366_v8, %v1370_v10 }
 0x15e   :  { %v825_v44 = vpop.f32.mrf.mxu1  ;;  %v1218_v20 = vld [vmem:[#allocation8 + $0xb20] sm:$0xff] }
 0x15f   :  { %7178 = vmatpush1.bf16.msra.mxu0 %v9951_v33  ;;  %7215 = vmatpush1.bf16.msra.mxu1 %v10095_v0  ;;  %v11576_v48 = vadd.f32 %v825_v44, %v337_v35  ;;  %v1358_v23 = vld [vmem:[#allocation8 + $0xf80] sm:$0xff]  ;;  %v10040_v30 = vcombine.high %v1214_v15, %v1218_v20 }
 0x160   :  { %7179 = vmatprep.subr.bf16.mxu0 %v9944_v63  ;;  %7216 = vmatprep.subr.bf16.mxu1 %v10088_v36  ;;  %v827_v1 = vpop.f32.mrf.mxu1  ;;  %v1362_v25 = vld [vmem:[#allocation8 + $0xfa0] sm:$0xff]  ;;  %v10039_v63 = vcombine.low %v1214_v15, %v1218_v20  ;;  %v221_v20 = vrot.slane %v11496_v19, %v11500_v22 }
 0x161   :  { %v10184_v31 = vcombine.high %v1358_v23, %v1362_v25  ;;  %v1206_v32 = vld [vmem:[#allocation8 + $0xac0] sm:$0xff]  ;;  %v10183_v36 = vcombine.low %v1358_v23, %v1362_v25 }
 0x162   :  { %v828_v59 = vpop.f32.mrf.mxu1  ;;  %v1210_v33 = vld [vmem:[#allocation8 + $0xae0] sm:$0xff] }
 0x163   :  { %7180 = vmatpush1.bf16.msra.mxu0 %v9943_v45  ;;  %7217 = vmatpush1.bf16.msra.mxu1 %v10087_v47  ;;  %v1350_v0 = vld [vmem:[#allocation8 + $0xf40] sm:$0xff]  ;;  %v10032_v37 = vcombine.high %v1206_v32, %v1210_v33  ;;  %v213_v45 = vrot.slane %v11496_v19, %v11491_v16  ;;  %v10031_v47 = vcombine.low %v1206_v32, %v1210_v33 }
 0x164   :  { %7181 = vmatprep.subr.bf16.mxu0 %v10064_v51  ;;  %7218 = vmatprep.subr.bf16.mxu1 %v10080_v53  ;;  %v1354_v35 = vld [vmem:[#allocation8 + $0xf60] sm:$0xff]  ;;  %v233_v59 = vrot.slane %v11541_v18, %v11493_v17 }
 0x165   :  { %v10176_v38 = vcombine.high %v1350_v0, %v1354_v35  ;;  %v1198_v39 = vld [vmem:[#allocation8 + $0xa80] sm:$0xff]  ;;  %v10175_v51 = vcombine.low %v1350_v0, %v1354_v35 }
 0x166   :  { %v1202_v40 = vld [vmem:[#allocation8 + $0xaa0] sm:$0xff] }
 0x167   :  { %7182 = vmatpush2.bf16.msra.mxu0 %v10063_v60  ;;  %7219 = vmatpush1.bf16.msra.mxu1 %v10079_v61  ;;  %v1342_v41 = vld [vmem:[#allocation8 + $0xf00] sm:$0xff]  ;;  %v10024_v53 = vcombine.high %v1198_v39, %v1202_v40  ;;  %v293_v60 = vrot.slane %v213_v45, %v11491_v16  ;;  %v10023_v61 = vcombine.low %v1198_v39, %v1202_v40 }
 0x168   :  { %7183 = vmatprep.subr.bf16.mxu0 %v10056_v3  ;;  %7220 = vmatprep.subr.bf16.mxu1 %v10072_v5  ;;  %v1346_v44 = vld [vmem:[#allocation8 + $0xf20] sm:$0xff] }
 0x169   :  { %v10168_v54 = vcombine.high %v1342_v41, %v1346_v44  ;;  %v1190_v1 = vld [vmem:[#allocation8 + $0xa40] sm:$0xff]  ;;  %v10167_v3 = vcombine.low %v1342_v41, %v1346_v44 }
 0x16a   :  { %v1194_v2 = vld [vmem:[#allocation8 + $0xa60] sm:$0xff] }
 0x16b   :  { %7184 = vmatpush2.bf16.msra.mxu0 %v10055_v49  ;;  %7221 = vmatpush1.bf16.msra.mxu1 %v10071_v11  ;;  %v1334_v55 = vld [vmem:[#allocation8 + $0xec0] sm:$0xff]  ;;  %v10016_v5 = vcombine.high %v1190_v1, %v1194_v2  ;;  %v313_v11 = vrot.slane %v233_v59, %v11491_v16 }
 0x16c   :  { %7185 = vmatprep.subr.bf16.mxu0 %v10048_v12  ;;  %7222 = vmatprep.subr.bf16.mxu1 %v10192_v14  ;;  %v1338_v56 = vld [vmem:[#allocation8 + $0xee0] sm:$0xff]  ;;  %v619_v12 = vadd.f32 %v11510_v34, %v293_v60  ;;  %v10015_v14 = vcombine.low %v1190_v1, %v1194_v2  ;;  %v241_v34 = vrot.slane %v11541_v18, %v11505_v26 }
 0x16d   :  { %v10160_v6 = vcombine.high %v1334_v55, %v1338_v56  ;;  %v1182_v7 = vld [vmem:[#allocation8 + $0xa00] sm:$0xff]  ;;  %v10159_v15 = vcombine.low %v1334_v55, %v1338_v56  ;;  %v703_v32 = vadd.f32 %v11532_v50, %v313_v11 }
 0x16e   :  { %v1186_v8 = vld [vmem:[#allocation8 + $0xa20] sm:$0xff]  ;;  %v834_v33 = vmax.f32 %v619_v12, 0.0  ;;  %v321_v50 = vrot.slane %v241_v34, %v11491_v16 }
 0x16f   :  { %7186 = vmatpush2.bf16.msra.mxu0 %v10047_v27  ;;  %7223 = vmatpush2.bf16.msra.mxu1 %v10191_v29  ;;  %v1326_v10 = vld [vmem:[#allocation8 + $0xe80] sm:$0xff]  ;;  %v10008_v23 = vcombine.high %v1182_v7, %v1186_v8  ;;  %v10007_v0 = vcombine.low %v1182_v7, %v1186_v8  ;;  %v839_v41 = vmax.f32 %v703_v32, 0.0 }
 0x170   :  { %7187 = vmatprep.subr.bf16.mxu0 %v10040_v30  ;;  %7224 = vmatprep.subr.bf16.mxu1 %v10184_v31  ;;  %v1330_v49 = vld [vmem:[#allocation8 + $0xea0] sm:$0xff]  ;;  %v11592_v44 = vpack.c.bf16 %v834_v33, %v834_v33  ;;  %v744_v60 = vadd.f32 %v11568_v52, %v321_v50 }
 0x171   :  { %v10152_v25 = vcombine.high %v1326_v10, %v1330_v49  ;;  %v1318_v27 = vld [vmem:[#allocation8 + $0xe40] sm:$0xff]  ;;  %v10151_v35 = vcombine.low %v1326_v10, %v1330_v49  ;;  %v11595_v59 = vpack.c.bf16 %v839_v41, %v839_v41 }
 0x172   :  { %v1322_v29 = vld [vmem:[#allocation8 + $0xe60] sm:$0xff]  ;;  %v841_v11 = vmax.f32 %v744_v60, 0.0 }
 0x173   :  { %7188 = vmatpush2.bf16.msra.mxu0 %v10039_v63  ;;  %7225 = vmatpush2.bf16.msra.mxu1 %v10183_v36  ;;  %v1430_v30 = vld [vmem:[#allocation8 + $0x11c0] sm:$0xff]  ;;  %v301_v63 = vrot.slane %v221_v20, %v11491_v16  ;;  %v10144_v19 = vcombine.high %v1318_v27, %v1322_v29  ;;  %v10143_v45 = vcombine.low %v1318_v27, %v1322_v29 }
 0x174   :  { %7189 = vmatprep.subr.bf16.mxu0 %v10032_v37  ;;  %7226 = vmatprep.subr.bf16.mxu1 %v10176_v38  ;;  %v1434_v31 = vld [vmem:[#allocation8 + $0x11e0] sm:$0xff] }
 0x175   :  { %v10256_v36 = vcombine.high %v1430_v30, %v1434_v31  ;;  %v1310_v37 = vld [vmem:[#allocation8 + $0xe00] sm:$0xff] }
 0x176   :  { %v1314_v38 = vld [vmem:[#allocation8 + $0xe20] sm:$0xff] }
 0x177   :  { %7190 = vmatpush2.bf16.msra.mxu0 %v10031_v47  ;;  %7227 = vmatpush2.bf16.msra.mxu1 %v10175_v51  ;;  %v1422_v39 = vld [vmem:[#allocation8 + $0x1180] sm:$0xff]  ;;  %v10255_v47 = vcombine.low %v1430_v30, %v1434_v31  ;;  %v660_v51 = vadd.f32 %v11545_v28, %v301_v63  ;;  %v11602_v30 = vpack.c.bf16 %v841_v11, %v841_v11 }
 0x178   :  { %7191 = vmatprep.subr.bf16.mxu0 %v10024_v53  ;;  %7228 = vmatprep.subr.bf16.mxu1 %v10168_v54  ;;  %v1426_v40 = vld [vmem:[#allocation8 + $0x11a0] sm:$0xff]  ;;  %v10136_v53 = vcombine.high %v1310_v37, %v1314_v38 }
 0x179   :  { %v10248_v54 = vcombine.high %v1422_v39, %v1426_v40  ;;  %v1414_v1 = vld [vmem:[#allocation8 + $0x1140] sm:$0xff] }
 0x17a   :  { %v1418_v2 = vld [vmem:[#allocation8 + $0x1160] sm:$0xff] }
 0x17b   :  { %7192 = vmatpush2.bf16.msra.mxu0 %v10023_v61  ;;  %7229 = vmatpush2.bf16.msra.mxu1 %v10167_v3  ;;  %v1558_v55 = vld [vmem:[#allocation8 + $0x15c0] sm:$0xff]  ;;  %v10135_v61 = vcombine.low %v1310_v37, %v1314_v38  ;;  %v10247_v3 = vcombine.low %v1422_v39, %v1426_v40  ;;  %v10240_v28 = vcombine.high %v1414_v1, %v1418_v2 }
 0x17c   :  { %7193 = vmatprep.subr.bf16.mxu0 %v10016_v5  ;;  %7230 = vmatprep.subr.bf16.mxu1 %v10160_v6  ;;  %v1562_v56 = vld [vmem:[#allocation8 + $0x15e0] sm:$0xff]  ;;  %v836_v5 = vmax.f32 %v660_v51, 0.0  ;;  %v10239_v52 = vcombine.low %v1414_v1, %v1418_v2 }
 0x17d   :  { %v10384_v6 = vcombine.high %v1558_v55, %v1562_v56  ;;  %v1406_v7 = vld [vmem:[#allocation8 + $0x1100] sm:$0xff]  ;;  %v10383_v12 = vcombine.low %v1558_v55, %v1562_v56 }
 0x17e   :  { %v1410_v8 = vld [vmem:[#allocation8 + $0x1120] sm:$0xff] }
 0x17f   :  { %7194 = vmatpush2.bf16.msra.mxu0 %v10015_v14  ;;  %7231 = vmatpush2.bf16.msra.mxu1 %v10159_v15  ;;  %v1550_v10 = vld [vmem:[#allocation8 + $0x1580] sm:$0xff]  ;;  %v11600_v14 = vpack.c.bf16 %v836_v5, %v836_v5  ;;  %v10232_v15 = vcombine.high %v1406_v7, %v1410_v8  ;;  %v10231_v31 = vcombine.low %v1406_v7, %v1410_v8 }
 0x180   :  { %7195 = vmatprep.subr.bf16.mxu0 %v10008_v23  ;;  %7232 = vmatprep.subr.bf16.mxu1 %v10152_v25  ;;  %v1554_v49 = vld [vmem:[#allocation8 + $0x15a0] sm:$0xff] }
 0x181   :  { %v10376_v20 = vcombine.high %v1550_v10, %v1554_v49  ;;  %v1398_v23 = vld [vmem:[#allocation8 + $0x10c0] sm:$0xff]  ;;  %v10375_v32 = vcombine.low %v1550_v10, %v1554_v49 }
 0x182   :  { %v1402_v25 = vld [vmem:[#allocation8 + $0x10e0] sm:$0xff] }
 0x183   :  { %7196 = vmatpush2.bf16.msra.mxu0 %v10007_v0  ;;  %7233 = vmatpush2.bf16.msra.mxu1 %v10151_v35  ;;  %v1542_v27 = vld [vmem:[#allocation8 + $0x1540] sm:$0xff]  ;;  %v10224_v34 = vcombine.high %v1398_v23, %v1402_v25 }
 0x184   :  { %7234 = vmatprep.subr.bf16.mxu1 %v10144_v19  ;;  %7247 = vmatprep.subr.bf16.mxu0 %v10256_v36  ;;  %v1546_v29 = vld [vmem:[#allocation8 + $0x1560] sm:$0xff]  ;;  %v10223_v36 = vcombine.low %v1398_v23, %v1402_v25 }
 0x185   :  { %v10368_v33 = vcombine.high %v1542_v27, %v1546_v29  ;;  %v1390_v0 = vld [vmem:[#allocation8 + $0x1080] sm:$0xff]  ;;  %v10367_v37 = vcombine.low %v1542_v27, %v1546_v29 }
 0x186   :  { %7198 = vmatmul.mubr.bf16.vlgmr.msra.gmra.mxu0 %v11592_v44  ;;  %v1394_v35 = vld [vmem:[#allocation8 + $0x10a0] sm:$0xff] }
 0x187   :  { %7235 = vmatpush2.bf16.msra.mxu1 %v10143_v45  ;;  %7248 = vmatpush1.bf16.msra.mxu0 %v10255_v47  ;;  %v1534_v63 = vld [vmem:[#allocation8 + $0x1500] sm:$0xff]  ;;  %v10216_v38 = vcombine.high %v1390_v0, %v1394_v35  ;;  %v10215_v47 = vcombine.low %v1390_v0, %v1394_v35 }
 0x188   :  { %7236 = vmatprep.subr.bf16.mxu1 %v10136_v53  ;;  %7249 = vmatprep.subr.bf16.mxu0 %v10248_v54  ;;  %v1538_v19 = vld [vmem:[#allocation8 + $0x1520] sm:$0xff] }
 0x189   :  { %7279 = vmatprep.mubr.bf16.mxu0 %v11595_v59  ;;  %v10360_v39 = vcombine.high %v1534_v63, %v1538_v19  ;;  %v1382_v40 = vld [vmem:[#allocation8 + $0x1040] sm:$0xff]  ;;  %v10359_v51 = vcombine.low %v1534_v63, %v1538_v19 }
 0x18a   :  { %v1386_v41 = vld [vmem:[#allocation8 + $0x1060] sm:$0xff] }
 0x18b   :  { %7237 = vmatpush2.bf16.msra.mxu1 %v10135_v61  ;;  %7250 = vmatpush1.bf16.msra.mxu0 %v10247_v3  ;;  %v1526_v50 = vld [vmem:[#allocation8 + $0x14c0] sm:$0xff]  ;;  %v10208_v53 = vcombine.high %v1382_v40, %v1386_v41  ;;  %v10207_v60 = vcombine.low %v1382_v40, %v1386_v41 }
 0x18c   :  { %7251 = vmatprep.subr.bf16.mxu0 %v10240_v28  ;;  %7288 = vmatprep.subr.bf16.mxu1 %v10384_v6  ;;  %v1530_v45 = vld [vmem:[#allocation8 + $0x14e0] sm:$0xff] }
 0x18d   :  { %v10352_v54 = vcombine.high %v1526_v50, %v1530_v45  ;;  %v1374_v1 = vld [vmem:[#allocation8 + $0x1000] sm:$0xff]  ;;  %v10351_v61 = vcombine.low %v1526_v50, %v1530_v45 }
 0x18e   :  { %7239 = vmatmul.mubr.bf16.vlgmr.msra.gmra.mxu1 %v11600_v14  ;;  %v1378_v2 = vld [vmem:[#allocation8 + $0x1020] sm:$0xff] }
 0x18f   :  { %7252 = vmatpush1.bf16.msra.mxu0 %v10239_v52  ;;  %7289 = vmatpush1.bf16.msra.mxu1 %v10383_v12  ;;  %v1518_v55 = vld [vmem:[#allocation8 + $0x1480] sm:$0xff]  ;;  %v10200_v3 = vcombine.high %v1374_v1, %v1378_v2  ;;  %v10199_v10 = vcombine.low %v1374_v1, %v1378_v2 }
 0x190   :  { %7253 = vmatprep.subr.bf16.mxu0 %v10232_v15  ;;  %7290 = vmatprep.subr.bf16.mxu1 %v10376_v20  ;;  %v1522_v56 = vld [vmem:[#allocation8 + $0x14a0] sm:$0xff] }
 0x191   :  { %7320 = vmatprep.mubr.bf16.mxu1 %v11602_v30  ;;  %v10344_v5 = vcombine.high %v1518_v55, %v1522_v56  ;;  %v1494_v28 = vld [vmem:[#allocation8 + $0x13c0] sm:$0xff]  ;;  %v10343_v49 = vcombine.low %v1518_v55, %v1522_v56 }
 0x192   :  { %v1498_v6 = vld [vmem:[#allocation8 + $0x13e0] sm:$0xff] }
 0x193   :  { %7254 = vmatpush1.bf16.msra.mxu0 %v10231_v31  ;;  %7291 = vmatpush1.bf16.msra.mxu1 %v10375_v32  ;;  %v1510_v7 = vld [vmem:[#allocation8 + $0x1440] sm:$0xff]  ;;  %v10320_v11 = vcombine.high %v1494_v28, %v1498_v6  ;;  %v10319_v25 = vcombine.low %v1494_v28, %v1498_v6  ;;  %v229_v6 = vrot.slane %v11541_v18, %v11491_v16 }
 0x194   :  { %7255 = vmatprep.subr.bf16.mxu0 %v10224_v34  ;;  %7292 = vmatprep.subr.bf16.mxu1 %v10368_v33  ;;  %v1514_v8 = vld [vmem:[#allocation8 + $0x1460] sm:$0xff] }
 0x195   :  { %v10336_v52 = vcombine.high %v1510_v7, %v1514_v8  ;;  %v1486_v12 = vld [vmem:[#allocation8 + $0x1380] sm:$0xff]  ;;  %v10335_v27 = vcombine.low %v1510_v7, %v1514_v8 }
 0x196   :  { %v1490_v15 = vld [vmem:[#allocation8 + $0x13a0] sm:$0xff] }
 0x197   :  { %7256 = vmatpush1.bf16.msra.mxu0 %v10223_v36  ;;  %7293 = vmatpush1.bf16.msra.mxu1 %v10367_v37  ;;  %v1502_v20 = vld [vmem:[#allocation8 + $0x1400] sm:$0xff]  ;;  %v10312_v29 = vcombine.high %v1486_v12, %v1490_v15  ;;  %v10311_v35 = vcombine.low %v1486_v12, %v1490_v15 }
 0x198   :  { %7257 = vmatprep.subr.bf16.mxu0 %v10216_v38  ;;  %7294 = vmatprep.subr.bf16.mxu1 %v10360_v39  ;;  %v1506_v23 = vld [vmem:[#allocation8 + $0x1420] sm:$0xff] }
 0x199   :  { %v10328_v31 = vcombine.high %v1502_v20, %v1506_v23  ;;  %v1478_v32 = vld [vmem:[#allocation8 + $0x1340] sm:$0xff]  ;;  %v10327_v63 = vcombine.low %v1502_v20, %v1506_v23  ;;  %v309_v20 = vrot.slane %v229_v6, %v11491_v16 }
 0x19a   :  { %v1482_v34 = vld [vmem:[#allocation8 + $0x1360] sm:$0xff] }
 0x19b   :  { %7258 = vmatpush1.bf16.msra.mxu0 %v10215_v47  ;;  %7295 = vmatpush1.bf16.msra.mxu1 %v10359_v51  ;;  %v1622_v33 = vld [vmem:[#allocation8 + $0x17c0] sm:$0xff]  ;;  %v10304_v19 = vcombine.high %v1478_v32, %v1482_v34  ;;  %v10303_v41 = vcombine.low %v1478_v32, %v1482_v34 }
 0x19c   :  { %7259 = vmatprep.subr.bf16.mxu0 %v10208_v53  ;;  %7296 = vmatprep.subr.bf16.mxu1 %v10352_v54  ;;  %v1626_v0 = vld [vmem:[#allocation8 + $0x17e0] sm:$0xff] }
 0x19d   :  { %v10448_v36 = vcombine.high %v1622_v33, %v1626_v0  ;;  %v1470_v37 = vld [vmem:[#allocation8 + $0x1300] sm:$0xff]  ;;  %v10447_v50 = vcombine.low %v1622_v33, %v1626_v0  ;;  %v701_v33 = vadd.f32 %v11527_v62, %v309_v20 }
 0x19e   :  { %v1474_v38 = vld [vmem:[#allocation8 + $0x1320] sm:$0xff] }
 0x19f   :  { %7260 = vmatpush1.bf16.msra.mxu0 %v10207_v60  ;;  %7297 = vmatpush1.bf16.msra.mxu1 %v10351_v61  ;;  %v1614_v39 = vld [vmem:[#allocation8 + $0x1780] sm:$0xff]  ;;  %v10296_v45 = vcombine.high %v1470_v37, %v1474_v38  ;;  %v10295_v2 = vcombine.low %v1470_v37, %v1474_v38 }
 0x1a0   :  { %7261 = vmatprep.subr.bf16.mxu0 %v10200_v3  ;;  %7298 = vmatprep.subr.bf16.mxu1 %v10344_v5  ;;  %v1618_v40 = vld [vmem:[#allocation8 + $0x17a0] sm:$0xff] }
 0x1a1   :  { %v10440_v47 = vcombine.high %v1614_v39, %v1618_v40  ;;  %v1462_v51 = vld [vmem:[#allocation8 + $0x12c0] sm:$0xff]  ;;  %v10439_v55 = vcombine.low %v1614_v39, %v1618_v40  ;;  %v838_v40 = vmax.f32 %v701_v33, 0.0 }
 0x1a2   :  { %v1466_v53 = vld [vmem:[#allocation8 + $0x12e0] sm:$0xff] }
 0x1a3   :  { %7262 = vmatpush1.bf16.msra.mxu0 %v10199_v10  ;;  %7299 = vmatpush1.bf16.msra.mxu1 %v10343_v49  ;;  %v1606_v54 = vld [vmem:[#allocation8 + $0x1740] sm:$0xff]  ;;  %v10288_v56 = vcombine.high %v1462_v51, %v1466_v53  ;;  %v10287_v7 = vcombine.low %v1462_v51, %v1466_v53  ;;  %v843_v51 = vmax.f32 %v11559_v4, 0.0 }
 0x1a4   :  { %7263 = vmatprep.subr.bf16.mxu0 %v10320_v11  ;;  %7300 = vmatprep.subr.bf16.mxu1 %v10336_v52  ;;  %v1610_v1 = vld [vmem:[#allocation8 + $0x1760] sm:$0xff] }
 0x1a5   :  { %v10432_v60 = vcombine.high %v1606_v54, %v1610_v1  ;;  %v1454_v61 = vld [vmem:[#allocation8 + $0x1280] sm:$0xff]  ;;  %v10431_v8 = vcombine.low %v1606_v54, %v1610_v1 }
 0x1a6   :  { %v1458_v3 = vld [vmem:[#allocation8 + $0x12a0] sm:$0xff] }
 0x1a7   :  { %7264 = vmatpush2.bf16.msra.mxu0 %v10319_v25  ;;  %7301 = vmatpush1.bf16.msra.mxu1 %v10335_v27  ;;  %v1598_v5 = vld [vmem:[#allocation8 + $0x1700] sm:$0xff]  ;;  %v10280_v10 = vcombine.high %v1454_v61, %v1458_v3  ;;  %v10279_v23 = vcombine.low %v1454_v61, %v1458_v3 }
 0x1a8   :  { %7265 = vmatprep.subr.bf16.mxu0 %v10312_v29  ;;  %7302 = vmatprep.subr.bf16.mxu1 %v10328_v31  ;;  %v1602_v28 = vld [vmem:[#allocation8 + $0x1720] sm:$0xff] }
 0x1a9   :  { %v10424_v49 = vcombine.high %v1598_v5, %v1602_v28  ;;  %v1446_v11 = vld [vmem:[#allocation8 + $0x1240] sm:$0xff]  ;;  %v10423_v25 = vcombine.low %v1598_v5, %v1602_v28  ;;  %v11613_v5 = vpack.c.bf16 %v843_v51, %v843_v51 }
 0x1aa   :  { %v1450_v52 = vld [vmem:[#allocation8 + $0x1260] sm:$0xff] }
 0x1ab   :  { %7266 = vmatpush2.bf16.msra.mxu0 %v10311_v35  ;;  %7303 = vmatpush1.bf16.msra.mxu1 %v10327_v63  ;;  %v1590_v12 = vld [vmem:[#allocation8 + $0x16c0] sm:$0xff]  ;;  %v10272_v18 = vcombine.high %v1446_v11, %v1450_v52  ;;  %v10271_v0 = vcombine.low %v1446_v11, %v1450_v52 }
 0x1ac   :  { %7267 = vmatprep.subr.bf16.mxu0 %v10304_v19  ;;  %7304 = vmatprep.subr.bf16.mxu1 %v10448_v36  ;;  %v1594_v15 = vld [vmem:[#allocation8 + $0x16e0] sm:$0xff] }
 0x1ad   :  { %v10416_v27 = vcombine.high %v1590_v12, %v1594_v15  ;;  %v1438_v29 = vld [vmem:[#allocation8 + $0x1200] sm:$0xff]  ;;  %v10415_v35 = vcombine.low %v1590_v12, %v1594_v15  ;;  %v845_v12 = vmax.f32 %v11576_v48, 0.0 }
 0x1ae   :  { %v1442_v31 = vld [vmem:[#allocation8 + $0x1220] sm:$0xff] }
 0x1af   :  { %7268 = vmatpush2.bf16.msra.mxu0 %v10303_v41  ;;  %7305 = vmatpush2.bf16.msra.mxu1 %v10447_v50  ;;  %v1582_v32 = vld [vmem:[#allocation8 + $0x1680] sm:$0xff]  ;;  %v10264_v63 = vcombine.high %v1438_v29, %v1442_v31  ;;  %v10263_v41 = vcombine.low %v1438_v29, %v1442_v31 }
 0x1b0   :  { %7269 = vmatprep.subr.bf16.mxu0 %v10296_v45  ;;  %7306 = vmatprep.subr.bf16.mxu1 %v10440_v47  ;;  %v1586_v34 = vld [vmem:[#allocation8 + $0x16a0] sm:$0xff] }
 0x1b1   :  { %v10408_v19 = vcombine.high %v1582_v32, %v1586_v34  ;;  %v1574_v36 = vld [vmem:[#allocation8 + $0x1640] sm:$0xff]  ;;  %v10407_v50 = vcombine.low %v1582_v32, %v1586_v34  ;;  %v11621_v32 = vpack.c.bf16 %v845_v12, %v845_v12 }
 0x1b2   :  { %v1578_v37 = vld [vmem:[#allocation8 + $0x1660] sm:$0xff] }
 0x1b3   :  { %7270 = vmatpush2.bf16.msra.mxu0 %v10295_v2  ;;  %7307 = vmatpush2.bf16.msra.mxu1 %v10439_v55  ;;  %v1686_v38 = vld [vmem:[#allocation8 + $0x19c0] sm:$0xff]  ;;  %v10400_v62 = vcombine.high %v1574_v36, %v1578_v37  ;;  %v11611_v2 = vpack.c.bf16 %v838_v40, %v838_v40  ;;  %v10399_v55 = vcombine.low %v1574_v36, %v1578_v37 }
 0x1b4   :  { %7271 = vmatprep.subr.bf16.mxu0 %v10288_v56  ;;  %7308 = vmatprep.subr.bf16.mxu1 %v10432_v60  ;;  %v1690_v39 = vld [vmem:[#allocation8 + $0x19e0] sm:$0xff] }
 0x1b5   :  { %v10512_v45 = vcombine.high %v1686_v38, %v1690_v39  ;;  %v1566_v47 = vld [vmem:[#allocation8 + $0x1600] sm:$0xff]  ;;  %v10511_v56 = vcombine.low %v1686_v38, %v1690_v39 }
 0x1b6   :  { %v1570_v53 = vld [vmem:[#allocation8 + $0x1620] sm:$0xff] }
 0x1b7   :  { %7272 = vmatpush2.bf16.msra.mxu0 %v10287_v7  ;;  %7309 = vmatpush2.bf16.msra.mxu1 %v10431_v8  ;;  %v1678_v54 = vld [vmem:[#allocation8 + $0x1980] sm:$0xff]  ;;  %v10392_v60 = vcombine.high %v1566_v47, %v1570_v53  ;;  %v10391_v4 = vcombine.low %v1566_v47, %v1570_v53 }
 0x1b8   :  { %7273 = vmatprep.subr.bf16.mxu0 %v10280_v10  ;;  %7310 = vmatprep.subr.bf16.mxu1 %v10424_v49  ;;  %v1682_v1 = vld [vmem:[#allocation8 + $0x19a0] sm:$0xff]  ;;  %v840_v10 = vmax.f32 %v11564_v9, 0.0 }
 0x1b9   :  { %v10504_v61 = vcombine.high %v1678_v54, %v1682_v1  ;;  %v1670_v3 = vld [vmem:[#allocation8 + $0x1940] sm:$0xff]  ;;  %v10503_v8 = vcombine.low %v1678_v54, %v1682_v1 }
 0x1ba   :  { %v1674_v28 = vld [vmem:[#allocation8 + $0x1960] sm:$0xff] }
 0x1bb   :  { %7274 = vmatpush2.bf16.msra.mxu0 %v10279_v23  ;;  %7311 = vmatpush2.bf16.msra.mxu1 %v10423_v25  ;;  %v1814_v6 = vld [vmem:[#allocation8 + $0x1dc0] sm:$0xff]  ;;  %v10496_v49 = vcombine.high %v1670_v3, %v1674_v28  ;;  %v10495_v25 = vcombine.low %v1670_v3, %v1674_v28 }
 0x1bc   :  { %7275 = vmatprep.subr.bf16.mxu0 %v10272_v18  ;;  %7312 = vmatprep.subr.bf16.mxu1 %v10416_v27  ;;  %v1818_v7 = vld [vmem:[#allocation8 + $0x1de0] sm:$0xff]  ;;  %v11619_v27 = vpack.c.bf16 %v840_v10, %v840_v10 }
 0x1bd   :  { %v10640_v11 = vcombine.high %v1814_v6, %v1818_v7  ;;  %v1662_v52 = vld [vmem:[#allocation8 + $0x1900] sm:$0xff]  ;;  %v10639_v18 = vcombine.low %v1814_v6, %v1818_v7 }
 0x1be   :  { %v1666_v15 = vld [vmem:[#allocation8 + $0x1920] sm:$0xff] }
 0x1bf   :  { %7276 = vmatpush2.bf16.msra.mxu0 %v10271_v0  ;;  %7313 = vmatpush2.bf16.msra.mxu1 %v10415_v35  ;;  %v1806_v20 = vld [vmem:[#allocation8 + $0x1d80] sm:$0xff]  ;;  %v10488_v9 = vcombine.high %v1662_v52, %v1666_v15  ;;  %v10487_v0 = vcombine.low %v1662_v52, %v1666_v15 }
 0x1c0   :  { %7277 = vmatprep.subr.bf16.mxu0 %v10264_v63  ;;  %7314 = vmatprep.subr.bf16.mxu1 %v10408_v19  ;;  %v1810_v23 = vld [vmem:[#allocation8 + $0x1da0] sm:$0xff] }
 0x1c1   :  { %v10632_v29 = vcombine.high %v1806_v20, %v1810_v23  ;;  %v1654_v31 = vld [vmem:[#allocation8 + $0x18c0] sm:$0xff]  ;;  %v10631_v35 = vcombine.low %v1806_v20, %v1810_v23 }
 0x1c2   :  { %v1658_v34 = vld [vmem:[#allocation8 + $0x18e0] sm:$0xff] }
 0x1c3   :  { %7278 = vmatpush2.bf16.msra.mxu0 %v10263_v41  ;;  %7315 = vmatpush2.bf16.msra.mxu1 %v10407_v50  ;;  %v1798_v48 = vld [vmem:[#allocation8 + $0x1d40] sm:$0xff]  ;;  %v10480_v63 = vcombine.high %v1654_v31, %v1658_v34  ;;  %v10479_v40 = vcombine.low %v1654_v31, %v1658_v34 }
 0x1c4   :  { %7316 = vmatprep.subr.bf16.mxu1 %v10400_v62  ;;  %7329 = vmatprep.subr.bf16.mxu0 %v10512_v45  ;;  %v1802_v33 = vld [vmem:[#allocation8 + $0x1d60] sm:$0xff] }
 0x1c5   :  { %v10624_v19 = vcombine.high %v1798_v48, %v1802_v33  ;;  %v1646_v36 = vld [vmem:[#allocation8 + $0x1880] sm:$0xff]  ;;  %v10623_v41 = vcombine.low %v1798_v48, %v1802_v33 }
 0x1c6   :  { %7280 = vmatmul.mubr.bf16.vlgmr.msra.gmra.mxu0 %v11611_v2  ;;  %v1650_v37 = vld [vmem:[#allocation8 + $0x18a0] sm:$0xff] }
 0x1c7   :  { %7317 = vmatpush2.bf16.msra.mxu1 %v10399_v55  ;;  %7330 = vmatpush1.bf16.msra.mxu0 %v10511_v56  ;;  %v1790_v38 = vld [vmem:[#allocation8 + $0x1d00] sm:$0xff]  ;;  %v10472_v50 = vcombine.high %v1646_v36, %v1650_v37  ;;  %v10471_v54 = vcombine.low %v1646_v36, %v1650_v37 }
 0x1c8   :  { %7318 = vmatprep.subr.bf16.mxu1 %v10392_v60  ;;  %7331 = vmatprep.subr.bf16.mxu0 %v10504_v61  ;;  %v1794_v39 = vld [vmem:[#allocation8 + $0x1d20] sm:$0xff] }
 0x1c9   :  { %7361 = vmatprep.mubr.bf16.mxu0 %v11613_v5  ;;  %v10616_v62 = vcombine.high %v1790_v38, %v1794_v39  ;;  %v1638_v45 = vld [vmem:[#allocation8 + $0x1840] sm:$0xff]  ;;  %v10615_v1 = vcombine.low %v1790_v38, %v1794_v39 }
 0x1ca   :  { %v1642_v47 = vld [vmem:[#allocation8 + $0x1860] sm:$0xff] }
 0x1cb   :  { %7319 = vmatpush2.bf16.msra.mxu1 %v10391_v4  ;;  %7332 = vmatpush1.bf16.msra.mxu0 %v10503_v8  ;;  %v1782_v51 = vld [vmem:[#allocation8 + $0x1cc0] sm:$0xff]  ;;  %v10464_v55 = vcombine.high %v1638_v45, %v1642_v47  ;;  %v10463_v6 = vcombine.low %v1638_v45, %v1642_v47 }
 0x1cc   :  { %7333 = vmatprep.subr.bf16.mxu0 %v10496_v49  ;;  %7370 = vmatprep.subr.bf16.mxu1 %v10640_v11  ;;  %v1786_v53 = vld [vmem:[#allocation8 + $0x1ce0] sm:$0xff] }
 0x1cd   :  { %v10608_v56 = vcombine.high %v1782_v51, %v1786_v53  ;;  %v1630_v60 = vld [vmem:[#allocation8 + $0x1800] sm:$0xff]  ;;  %v10607_v7 = vcombine.low %v1782_v51, %v1786_v53 }
 0x1ce   :  { %7321 = vmatmul.mubr.bf16.vlgmr.msra.gmra.mxu1 %v11619_v27  ;;  %v1634_v61 = vld [vmem:[#allocation8 + $0x1820] sm:$0xff] }
 0x1cf   :  { %7334 = vmatpush1.bf16.msra.mxu0 %v10495_v25  ;;  %7371 = vmatpush1.bf16.msra.mxu1 %v10639_v18  ;;  %v1774_v3 = vld [vmem:[#allocation8 + $0x1c80] sm:$0xff]  ;;  %v10456_v4 = vcombine.high %v1630_v60, %v1634_v61  ;;  %v10455_v12 = vcombine.low %v1630_v60, %v1634_v61 }
 0x1d0   :  { %7335 = vmatprep.subr.bf16.mxu0 %v10488_v9  ;;  %7372 = vmatprep.subr.bf16.mxu1 %v10632_v29  ;;  %v1778_v28 = vld [vmem:[#allocation8 + $0x1ca0] sm:$0xff] }
 0x1d1   :  { %7402 = vmatprep.mubr.bf16.mxu1 %v11621_v32  ;;  %v10600_v8 = vcombine.high %v1774_v3, %v1778_v28  ;;  %v1750_v10 = vld [vmem:[#allocation8 + $0x1bc0] sm:$0xff]  ;;  %v10599_v15 = vcombine.low %v1774_v3, %v1778_v28 }
 0x1d2   :  { %v1754_v49 = vld [vmem:[#allocation8 + $0x1be0] sm:$0xff] }
 0x1d3   :  { %7336 = vmatpush1.bf16.msra.mxu0 %v10487_v0  ;;  %7373 = vmatpush1.bf16.msra.mxu1 %v10631_v35  ;;  %v1766_v11 = vld [vmem:[#allocation8 + $0x1c40] sm:$0xff]  ;;  %v10576_v20 = vcombine.high %v1750_v10, %v1754_v49  ;;  %v10575_v31 = vcombine.low %v1750_v10, %v1754_v49 }
 0x1d4   :  { %7337 = vmatprep.subr.bf16.mxu0 %v10480_v63  ;;  %7374 = vmatprep.subr.bf16.mxu1 %v10624_v19  ;;  %v1770_v52 = vld [vmem:[#allocation8 + $0x1c60] sm:$0xff] }
 0x1d5   :  { %v10592_v23 = vcombine.high %v1766_v11, %v1770_v52  ;;  %v1742_v25 = vld [vmem:[#allocation8 + $0x1b80] sm:$0xff]  ;;  %v10591_v34 = vcombine.low %v1766_v11, %v1770_v52 }
 0x1d6   :  { %v1746_v18 = vld [vmem:[#allocation8 + $0x1ba0] sm:$0xff] }
 0x1d7   :  { %7338 = vmatpush1.bf16.msra.mxu0 %v10479_v40  ;;  %7375 = vmatpush1.bf16.msra.mxu1 %v10623_v41  ;;  %v1758_v9 = vld [vmem:[#allocation8 + $0x1c00] sm:$0xff]  ;;  %v10568_v48 = vcombine.high %v1742_v25, %v1746_v18  ;;  %v10567_v36 = vcombine.low %v1742_v25, %v1746_v18 }
 0x1d8   :  { %7339 = vmatprep.subr.bf16.mxu0 %v10472_v50  ;;  %7376 = vmatprep.subr.bf16.mxu1 %v10616_v62  ;;  %v1762_v29 = vld [vmem:[#allocation8 + $0x1c20] sm:$0xff] }
 0x1d9   :  { %v10584_v33 = vcombine.high %v1758_v9, %v1762_v29  ;;  %v1734_v0 = vld [vmem:[#allocation8 + $0x1b40] sm:$0xff]  ;;  %v10583_v37 = vcombine.low %v1758_v9, %v1762_v29 }
 0x1da   :  { %v1738_v35 = vld [vmem:[#allocation8 + $0x1b60] sm:$0xff] }
 0x1db   :  { %7340 = vmatpush1.bf16.msra.mxu0 %v10471_v54  ;;  %7377 = vmatpush1.bf16.msra.mxu1 %v10615_v1  ;;  %v1878_v63 = vld [vmem:[#allocation8 + $0x1fc0] sm:$0xff]  ;;  %v10560_v38 = vcombine.high %v1734_v0, %v1738_v35  ;;  %v10559_v45 = vcombine.low %v1734_v0, %v1738_v35 }
 0x1dc   :  { %7341 = vmatprep.subr.bf16.mxu0 %v10464_v55  ;;  %7378 = vmatprep.subr.bf16.mxu1 %v10608_v56  ;;  %v1882_v19 = vld [vmem:[#allocation8 + $0x1fe0] sm:$0xff] }
 0x1dd   :  { %v10704_v39 = vcombine.high %v1878_v63, %v1882_v19  ;;  %v1726_v40 = vld [vmem:[#allocation8 + $0x1b00] sm:$0xff]  ;;  %v10703_v47 = vcombine.low %v1878_v63, %v1882_v19 }
 0x1de   :  { %v1730_v41 = vld [vmem:[#allocation8 + $0x1b20] sm:$0xff] }
 0x1df   :  { %7342 = vmatpush1.bf16.msra.mxu0 %v10463_v6  ;;  %7379 = vmatpush1.bf16.msra.mxu1 %v10607_v7  ;;  %v1870_v50 = vld [vmem:[#allocation8 + $0x1f80] sm:$0xff]  ;;  %v10552_v51 = vcombine.high %v1726_v40, %v1730_v41  ;;  %v10551_v60 = vcombine.low %v1726_v40, %v1730_v41 }
 0x1e0   :  { %7343 = vmatprep.subr.bf16.mxu0 %v10456_v4  ;;  %7380 = vmatprep.subr.bf16.mxu1 %v10600_v8  ;;  %v1874_v62 = vld [vmem:[#allocation8 + $0x1fa0] sm:$0xff] }
 0x1e1   :  { %v10696_v53 = vcombine.high %v1870_v50, %v1874_v62  ;;  %v1718_v54 = vld [vmem:[#allocation8 + $0x1ac0] sm:$0xff]  ;;  %v10695_v61 = vcombine.low %v1870_v50, %v1874_v62  ;;  %v842_v62 = vmax.f32 %v11556_v46, 0.0  ;;  %v903_v46 = vld [vmem:[#allocation8 + $0x148] sm:$0xff] }
 0x1e2   :  { %v1722_v1 = vld [vmem:[#allocation8 + $0x1ae0] sm:$0xff] }
 0x1e3   :  { %7344 = vmatpush1.bf16.msra.mxu0 %v10455_v12  ;;  %7381 = vmatpush1.bf16.msra.mxu1 %v10599_v15  ;;  %v1862_v55 = vld [vmem:[#allocation8 + $0x1f40] sm:$0xff]  ;;  %v10544_v3 = vcombine.high %v1718_v54, %v1722_v1  ;;  %v10543_v10 = vcombine.low %v1718_v54, %v1722_v1  ;;  %v911_v1 = vld [vmem:[#allocation8 + $0x188] sm:$0xff] }
 0x1e4   :  { %7345 = vmatprep.subr.bf16.mxu0 %v10576_v20  ;;  %7382 = vmatprep.subr.bf16.mxu1 %v10592_v23  ;;  %v1866_v56 = vld [vmem:[#allocation8 + $0x1f60] sm:$0xff] }
 0x1e5   :  { %v10688_v28 = vcombine.high %v1862_v55, %v1866_v56  ;;  %v1710_v6 = vld [vmem:[#allocation8 + $0x1a80] sm:$0xff]  ;;  %v10687_v49 = vcombine.low %v1862_v55, %v1866_v56  ;;  %v915_v55 = vld [vmem:[#allocation8 + $0x1a8] sm:$0xff] }
 0x1e6   :  { %v1714_v7 = vld [vmem:[#allocation8 + $0x1aa0] sm:$0xff] }
 0x1e7   :  { %7346 = vmatpush2.bf16.msra.mxu0 %v10575_v31  ;;  %7383 = vmatpush1.bf16.msra.mxu1 %v10591_v34  ;;  %v1854_v4 = vld [vmem:[#allocation8 + $0x1f00] sm:$0xff]  ;;  %v10536_v11 = vcombine.high %v1710_v6, %v1714_v7  ;;  %v10535_v25 = vcombine.low %v1710_v6, %v1714_v7  ;;  %v9738_v6 = vcombine.high %v911_v1, %v915_v55  ;;  %v907_v7 = vld [vmem:[#allocation8 + $0x168] sm:$0xff] }
 0x1e8   :  { %7347 = vmatprep.subr.bf16.mxu0 %v10568_v48  ;;  %7384 = vmatprep.subr.bf16.mxu1 %v10584_v33  ;;  %v1858_v8 = vld [vmem:[#allocation8 + $0x1f20] sm:$0xff] }
 0x1e9   :  { %v10680_v52 = vcombine.high %v1854_v4, %v1858_v8  ;;  %v1702_v12 = vld [vmem:[#allocation8 + $0x1a40] sm:$0xff]  ;;  %v10679_v18 = vcombine.low %v1854_v4, %v1858_v8  ;;  %v1047_v4 = vld [vmem:[#allocation8 + $0x5c8] sm:$0xff] }
 0x1ea   :  { %v1706_v15 = vld [vmem:[#allocation8 + $0x1a60] sm:$0xff]  ;;  %v1051_v8 = vld [vmem:[#allocation8 + $0x5e8] sm:$0xff] }
 0x1eb   :  { %7348 = vmatpush2.bf16.msra.mxu0 %v10567_v36  ;;  %7385 = vmatpush1.bf16.msra.mxu1 %v10583_v37  ;;  %v1846_v20 = vld [vmem:[#allocation8 + $0x1ec0] sm:$0xff]  ;;  %v10528_v9 = vcombine.high %v1702_v12, %v1706_v15  ;;  %v10527_v0 = vcombine.low %v1702_v12, %v1706_v15  ;;  %v844_v12 = vmax.f32 %v11574_v42, 0.0  ;;  %v9873_v42 = vcombine.low %v1047_v4, %v1051_v8 }
 0x1ec   :  { %7349 = vmatprep.subr.bf16.mxu0 %v10560_v38  ;;  %7386 = vmatprep.subr.bf16.mxu1 %v10704_v39  ;;  %v1850_v23 = vld [vmem:[#allocation8 + $0x1ee0] sm:$0xff]  ;;  %v919_v38 = vld [vmem:[#allocation8 + $0x1c8] sm:$0xff] }
 0x1ed   :  { %v10672_v29 = vcombine.high %v1846_v20, %v1850_v23  ;;  %v1694_v31 = vld [vmem:[#allocation8 + $0x1a00] sm:$0xff]  ;;  %v10671_v35 = vcombine.low %v1846_v20, %v1850_v23  ;;  %v923_v39 = vld [vmem:[#allocation8 + $0x1e8] sm:$0xff]  ;;  %v9730_v20 = vcombine.high %v903_v46, %v907_v7  ;;  %v9874_v23 = vcombine.high %v1047_v4, %v1051_v8 }
 0x1ee   :  { %v1698_v34 = vld [vmem:[#allocation8 + $0x1a20] sm:$0xff] }
 0x1ef   :  { %7350 = vmatpush2.bf16.msra.mxu0 %v10559_v45  ;;  %7387 = vmatpush2.bf16.msra.mxu1 %v10703_v47  ;;  %v1838_v48 = vld [vmem:[#allocation8 + $0x1e80] sm:$0xff]  ;;  %v10520_v63 = vcombine.high %v1694_v31, %v1698_v34  ;;  %v10519_v41 = vcombine.low %v1694_v31, %v1698_v34  ;;  %v9746_v47 = vcombine.high %v919_v38, %v923_v39  ;;  %v1039_v31 = vld [vmem:[#allocation8 + $0x588] sm:$0xff] }
 0x1f0   :  { %7351 = vmatprep.subr.bf16.mxu0 %v10552_v51  ;;  %7388 = vmatprep.subr.bf16.mxu1 %v10696_v53  ;;  %v1842_v33 = vld [vmem:[#allocation8 + $0x1ea0] sm:$0xff]  ;;  %v1043_v34 = vld [vmem:[#allocation8 + $0x5a8] sm:$0xff] }
 0x1f1   :  { %v10664_v19 = vcombine.high %v1838_v48, %v1842_v33  ;;  %v1830_v36 = vld [vmem:[#allocation8 + $0x1e40] sm:$0xff]  ;;  %v10663_v50 = vcombine.low %v1838_v48, %v1842_v33  ;;  %v9729_v33 = vcombine.low %v903_v46, %v907_v7  ;;  %v1027_v46 = vld [vmem:[#allocation8 + $0x528] sm:$0xff] }
 0x1f2   :  { %v1834_v37 = vld [vmem:[#allocation8 + $0x1e60] sm:$0xff] }
 0x1f3   :  { %7352 = vmatpush2.bf16.msra.mxu0 %v10551_v60  ;;  %7389 = vmatpush2.bf16.msra.mxu1 %v10695_v61  ;;  %v1886_v40 = vld [vmem:[#allocation10] sm:$0xff]  ;;  %v10656_v45 = vcombine.high %v1830_v36, %v1834_v37  ;;  %v10655_v56 = vcombine.low %v1830_v36, %v1834_v37  ;;  %v9745_v60 = vcombine.low %v919_v38, %v923_v39  ;;  %v891_v38 = vld [vmem:[#allocation8 + $0xe8] sm:$0xff] }
 0x1f4   :  { %7353 = vmatprep.subr.bf16.mxu0 %v10544_v3  ;;  %7390 = vmatprep.subr.bf16.mxu1 %v10688_v28  ;;  %v11626_v51 = vunpack.c.l.bf16 %v1886_v40  ;;  %v1822_v53 = vld [vmem:[#allocation8 + $0x1e00] sm:$0xff]  ;;  %v11628_v61 = vpack.c.bf16 %v842_v62, %v842_v62  ;;  %v9866_v37 = vcombine.high %v1039_v31, %v1043_v34  ;;  %v1031_v39 = vld [vmem:[#allocation8 + $0x548] sm:$0xff] }
 0x1f5   :  { %v1826_v54 = vld [vmem:[#allocation8 + $0x1e20] sm:$0xff]  ;;  %v1035_v40 = vld [vmem:[#allocation8 + $0x568] sm:$0xff] }
 0x1f6   :  { %v10648_v3 = vcombine.high %v1822_v53, %v1826_v54  ;;  %v1894_v28 = vrot.slane %v11626_v51, %v11491_v16  ;;  %v9857_v7 = vcombine.low %v1031_v39, %v1035_v40 }
 0x1f7   :  { %7354 = vmatpush2.bf16.msra.mxu0 %v10543_v10  ;;  %7391 = vmatpush2.bf16.msra.mxu1 %v10687_v49  ;;  %v1898_v49 = vrot.slane %v11626_v51, %v11493_v17 }
 0x1f8   :  { %7355 = vmatprep.subr.bf16.mxu0 %v10536_v11  ;;  %7392 = vmatprep.subr.bf16.mxu1 %v10680_v52  ;;  %v10647_v11 = vcombine.low %v1822_v53, %v1826_v54  ;;  %v9737_v52 = vcombine.low %v911_v1, %v915_v55  ;;  %v9858_v1 = vcombine.high %v1031_v39, %v1035_v40  ;;  %v879_v55 = vld [vmem:[#allocation8 + $0x88] sm:$0xff] }
 0x1f9   :  { %v1938_v48 = vrot.slane %v1898_v49, %v11491_v16  ;;  %v871_v49 = vld [vmem:[#allocation8 + $0x48] sm:$0xff] }
 0x1fb   :  { %7356 = vmatpush2.bf16.msra.mxu0 %v10535_v25  ;;  %7393 = vmatpush2.bf16.msra.mxu1 %v10679_v18  ;;  %v1934_v25 = vrot.slane %v1894_v28, %v11491_v16  ;;  %v895_v18 = vld [vmem:[#allocation8 + $0x108] sm:$0xff] }
 0x1fc   :  { %7357 = vmatprep.subr.bf16.mxu0 %v10528_v9  ;;  %7394 = vmatprep.subr.bf16.mxu1 %v10672_v29  ;;  %v899_v9 = vld [vmem:[#allocation8 + $0x128] sm:$0xff] }
 0x1ff   :  { %7358 = vmatpush2.bf16.msra.mxu0 %v10527_v0  ;;  %7395 = vmatpush2.bf16.msra.mxu1 %v10671_v35  ;;  %v11639_v0 = vpack.c.bf16 %v844_v12, %v844_v12  ;;  %v1019_v12 = vld [vmem:[#allocation8 + $0x4e8] sm:$0xff] }
 0x200   :  { %7359 = vmatprep.subr.bf16.mxu0 %v10520_v63  ;;  %7396 = vmatprep.subr.bf16.mxu1 %v10664_v19  ;;  %v9722_v63 = vcombine.high %v895_v18, %v899_v9  ;;  %v887_v19 = vld [vmem:[#allocation8 + $0xc8] sm:$0xff] }
 0x201   :  { %v9714_v54 = vcombine.high %v887_v19, %v891_v38 }
 0x203   :  { %7360 = vmatpush2.bf16.msra.mxu0 %v10519_v41  ;;  %7397 = vmatpush2.bf16.msra.mxu1 %v10663_v50  ;;  %v9721_v50 = vcombine.low %v895_v18, %v899_v9  ;;  %v863_v18 = vld [vmem:[#allocation8 + $0x8] sm:$0xff] }
 0x204   :  { %7398 = vmatprep.subr.bf16.mxu1 %v10656_v45  ;;  %7411 = vmatprep.subr.bf16.mxu0 %v9746_v47  ;;  %v9865_v47 = vcombine.low %v1039_v31, %v1043_v34  ;;  %v867_v9 = vld [vmem:[#allocation8 + $0x28] sm:$0xff] }
 0x205   :  { %v1011_v31 = vld [vmem:[#allocation8 + $0x4a8] sm:$0xff] }
 0x206   :  { %7362 = vmatmul.mubr.bf16.vlgmr.msra.gmra.mxu0 %v11628_v61  ;;  %v7117_v10 = vpop.f32.mrf.mxu0 }
 0x207   :  { %7399 = vmatpush2.bf16.msra.mxu1 %v10655_v56  ;;  %7412 = vmatpush1.bf16.msra.mxu0 %v9745_v60  ;;  %v7118_v36 = vadd.f32 %v7117_v10, %v1934_v25  ;;  %v883_v60 = vld [vmem:[#allocation8 + $0xa8] sm:$0xff] }
 0x208   :  { %7443 = vmatprep.mubr.bf16.mxu0 %v11513_v43  ;;  %v7119_v15 = vpop.f32.mrf.mxu0  ;;  %7400 = vmatprep.subr.bf16.mxu1 %v10648_v3  ;;  %v1023_v3 = vld [vmem:[#allocation8 + $0x508] sm:$0xff]  ;;  %v9706_v8 = vcombine.high %v879_v55, %v883_v60 }
 0x209   :  { %7413 = vmatprep.subr.bf16.mxu0 %v9738_v6  ;;  %v7120_v62 = vadd.f32 %v7119_v15, %v1938_v48  ;;  %v9713_v6 = vcombine.low %v887_v19, %v891_v38  ;;  %v9850_v10 = vcombine.high %v1023_v3, %v1027_v46  ;;  %v9705_v15 = vcombine.low %v879_v55, %v883_v60  ;;  %v999_v19 = vld [vmem:[#allocation8 + $0x448] sm:$0xff] }
 0x20a   :  { %v7121_v29 = vpop.f32.mrf.mxu0  ;;  %v967_v60 = vld [vmem:[#allocation8 + $0x348] sm:$0xff] }
 0x20b   :  { %7401 = vmatpush2.bf16.msra.mxu1 %v10647_v11  ;;  %7414 = vmatpush1.bf16.msra.mxu0 %v9737_v52  ;;  %v875_v11 = vld [vmem:[#allocation8 + $0x68] sm:$0xff] }
 0x20c   :  { %v7122_v35 = vpop.f32.mrf.mxu0  ;;  %7415 = vmatprep.subr.bf16.mxu0 %v9730_v20  ;;  %7452 = vmatprep.subr.bf16.mxu1 %v9874_v23  ;;  %v1015_v52 = vld [vmem:[#allocation8 + $0x4c8] sm:$0xff]  ;;  %v9849_v20 = vcombine.low %v1023_v3, %v1027_v46  ;;  %v9698_v23 = vcombine.high %v871_v49, %v875_v11  ;;  %v9697_v34 = vcombine.low %v871_v49, %v875_v11 }
 0x20d   :  { %v9842_v25 = vcombine.high %v1015_v52, %v1019_v12  ;;  %v1007_v29 = vld [vmem:[#allocation8 + $0x488] sm:$0xff]  ;;  %v9841_v48 = vcombine.low %v1015_v52, %v1019_v12 }
 0x20e   :  { %7403 = vmatmul.mubr.bf16.vlgmr.msra.gmra.mxu1 %v11639_v0  ;;  %v7158_v41 = vpop.f32.mrf.mxu1  ;;  %v983_v35 = vld [vmem:[#allocation8 + $0x3c8] sm:$0xff]  ;;  %v9833_v38 = vcombine.low %v1007_v29, %v1011_v31 }
 0x20f   :  { %v11642_v45 = vadd.f32 %v7158_v41, %v7118_v36  ;;  %7416 = vmatpush1.bf16.msra.mxu0 %v9729_v33  ;;  %7453 = vmatpush1.bf16.msra.mxu1 %v9873_v42  ;;  %v9690_v33 = vcombine.high %v863_v18, %v867_v9  ;;  %v9834_v42 = vcombine.high %v1007_v29, %v1011_v31  ;;  %v1003_v36 = vld [vmem:[#allocation8 + $0x468] sm:$0xff] }
 0x210   :  { %7484 = vmatprep.mubr.bf16.mxu1 %v11538_v13  ;;  %v7160_v53 = vpop.f32.mrf.mxu1  ;;  %7417 = vmatprep.subr.bf16.mxu0 %v9722_v63  ;;  %v987_v63 = vld [vmem:[#allocation8 + $0x3e8] sm:$0xff]  ;;  %v9826_v40 = vcombine.high %v999_v19, %v1003_v36 }
 0x211   :  { %v11645_v56 = vadd.f32 %v7160_v53, %v7120_v62  ;;  %7454 = vmatprep.subr.bf16.mxu1 %v9866_v37  ;;  %v9689_v37 = vcombine.low %v863_v18, %v867_v9  ;;  %v9810_v39 = vcombine.high %v983_v35, %v987_v63  ;;  %v975_v41 = vld [vmem:[#allocation8 + $0x388] sm:$0xff]  ;;  %v9809_v53 = vcombine.low %v983_v35, %v987_v63 }
 0x212   :  { %v7162_v28 = vpop.f32.mrf.mxu1  ;;  %v991_v62 = vld [vmem:[#allocation8 + $0x408] sm:$0xff] }
 0x213   :  { %7418 = vmatpush1.bf16.msra.mxu0 %v9721_v50  ;;  %7455 = vmatpush1.bf16.msra.mxu1 %v9865_v47  ;;  %v979_v50 = vld [vmem:[#allocation8 + $0x3a8] sm:$0xff] }
 0x214   :  { %v7163_v4 = vpop.f32.mrf.mxu1  ;;  %7419 = vmatprep.subr.bf16.mxu0 %v9714_v54  ;;  %7456 = vmatprep.subr.bf16.mxu1 %v9858_v1  ;;  %v995_v47 = vld [vmem:[#allocation8 + $0x428] sm:$0xff]  ;;  %v9825_v54 = vcombine.low %v999_v19, %v1003_v36  ;;  %v9802_v1 = vcombine.high %v975_v41, %v979_v50 }
 0x215   :  { %v9818_v55 = vcombine.high %v991_v62, %v995_v47  ;;  %v971_v3 = vld [vmem:[#allocation8 + $0x368] sm:$0xff] }
 0x216   :  { %v1111_v46 = vld [vmem:[#allocation8 + $0x7c8] sm:$0xff]  ;;  %v9794_v4 = vcombine.high %v967_v60, %v971_v3  ;;  %v9793_v12 = vcombine.low %v967_v60, %v971_v3 }
 0x217   :  { %7420 = vmatpush1.bf16.msra.mxu0 %v9713_v6  ;;  %7457 = vmatpush1.bf16.msra.mxu1 %v9857_v7  ;;  %v1115_v28 = vld [vmem:[#allocation8 + $0x7e8] sm:$0xff]  ;;  %v9801_v6 = vcombine.low %v975_v41, %v979_v50  ;;  %v9817_v7 = vcombine.low %v991_v62, %v995_v47 }
 0x218   :  { %7421 = vmatprep.subr.bf16.mxu0 %v9706_v8  ;;  %7458 = vmatprep.subr.bf16.mxu1 %v9850_v10  ;;  %v9938_v8 = vcombine.high %v1111_v46, %v1115_v28  ;;  %v959_v10 = vld [vmem:[#allocation8 + $0x308] sm:$0xff] }
 0x219   :  { %v963_v49 = vld [vmem:[#allocation8 + $0x328] sm:$0xff] }
 0x21a   :  { %v1103_v11 = vld [vmem:[#allocation8 + $0x788] sm:$0xff]  ;;  %v9785_v31 = vcombine.low %v959_v10, %v963_v49 }
 0x21b   :  { %7422 = vmatpush1.bf16.msra.mxu0 %v9705_v15  ;;  %7459 = vmatpush1.bf16.msra.mxu1 %v9849_v20  ;;  %v1107_v52 = vld [vmem:[#allocation8 + $0x7a8] sm:$0xff]  ;;  %v9937_v15 = vcombine.low %v1111_v46, %v1115_v28  ;;  %v9786_v20 = vcombine.high %v959_v10, %v963_v49 }
 0x21c   :  { %7423 = vmatprep.subr.bf16.mxu0 %v9698_v23  ;;  %7460 = vmatprep.subr.bf16.mxu1 %v9842_v25  ;;  %v9930_v23 = vcombine.high %v1103_v11, %v1107_v52  ;;  %v951_v25 = vld [vmem:[#allocation8 + $0x2c8] sm:$0xff] }
 0x21d   :  { %v955_v18 = vld [vmem:[#allocation8 + $0x2e8] sm:$0xff] }
 0x21e   :  { %v1095_v9 = vld [vmem:[#allocation8 + $0x748] sm:$0xff]  ;;  %v9777_v36 = vcombine.low %v951_v25, %v955_v18 }
 0x21f   :  { %7424 = vmatpush1.bf16.msra.mxu0 %v9697_v34  ;;  %7461 = vmatpush1.bf16.msra.mxu1 %v9841_v48  ;;  %v1099_v29 = vld [vmem:[#allocation8 + $0x768] sm:$0xff]  ;;  %v9929_v34 = vcombine.low %v1103_v11, %v1107_v52  ;;  %v9778_v48 = vcombine.high %v951_v25, %v955_v18 }
 0x220   :  { %7425 = vmatprep.subr.bf16.mxu0 %v9690_v33  ;;  %7462 = vmatprep.subr.bf16.mxu1 %v9834_v42  ;;  %v9922_v33 = vcombine.high %v1095_v9, %v1099_v29  ;;  %v943_v42 = vld [vmem:[#allocation8 + $0x288] sm:$0xff] }
 0x221   :  { %v947_v35 = vld [vmem:[#allocation8 + $0x2a8] sm:$0xff] }
 0x222   :  { %v1087_v63 = vld [vmem:[#allocation8 + $0x708] sm:$0xff]  ;;  %v9769_v47 = vcombine.low %v943_v42, %v947_v35 }
 0x223   :  { %7426 = vmatpush1.bf16.msra.mxu0 %v9689_v37  ;;  %7463 = vmatpush1.bf16.msra.mxu1 %v9833_v38  ;;  %v1091_v19 = vld [vmem:[#allocation8 + $0x728] sm:$0xff]  ;;  %v9921_v37 = vcombine.low %v1095_v9, %v1099_v29  ;;  %v9770_v38 = vcombine.high %v943_v42, %v947_v35 }
 0x224   :  { %7427 = vmatprep.subr.bf16.mxu0 %v9810_v39  ;;  %7464 = vmatprep.subr.bf16.mxu1 %v9826_v40  ;;  %v9914_v39 = vcombine.high %v1087_v63, %v1091_v19  ;;  %v935_v40 = vld [vmem:[#allocation8 + $0x248] sm:$0xff] }
 0x225   :  { %v939_v41 = vld [vmem:[#allocation8 + $0x268] sm:$0xff] }
 0x226   :  { %v1079_v50 = vld [vmem:[#allocation8 + $0x6c8] sm:$0xff]  ;;  %v9761_v28 = vcombine.low %v935_v40, %v939_v41 }
 0x227   :  { %7428 = vmatpush2.bf16.msra.mxu0 %v9809_v53  ;;  %7465 = vmatpush1.bf16.msra.mxu1 %v9825_v54  ;;  %v1083_v62 = vld [vmem:[#allocation8 + $0x6e8] sm:$0xff]  ;;  %v9913_v53 = vcombine.low %v1087_v63, %v1091_v19  ;;  %v9762_v54 = vcombine.high %v935_v40, %v939_v41 }
 0x228   :  { %7429 = vmatprep.subr.bf16.mxu0 %v9802_v1  ;;  %7466 = vmatprep.subr.bf16.mxu1 %v9818_v55  ;;  %v9906_v1 = vcombine.high %v1079_v50, %v1083_v62  ;;  %v927_v55 = vld [vmem:[#allocation8 + $0x208] sm:$0xff] }
 0x229   :  { %v931_v60 = vld [vmem:[#allocation8 + $0x228] sm:$0xff] }
 0x22a   :  { %v1071_v3 = vld [vmem:[#allocation8 + $0x688] sm:$0xff]  ;;  %v9753_v52 = vcombine.low %v927_v55, %v931_v60 }
 0x22b   :  { %7430 = vmatpush2.bf16.msra.mxu0 %v9801_v6  ;;  %7467 = vmatpush1.bf16.msra.mxu1 %v9817_v7  ;;  %v1075_v46 = vld [vmem:[#allocation8 + $0x6a8] sm:$0xff]  ;;  %v9905_v6 = vcombine.low %v1079_v50, %v1083_v62  ;;  %v9754_v7 = vcombine.high %v927_v55, %v931_v60 }
 0x22c   :  { %7431 = vmatprep.subr.bf16.mxu0 %v9794_v4  ;;  %7468 = vmatprep.subr.bf16.mxu1 %v9938_v8  ;;  %v9898_v4 = vcombine.high %v1071_v3, %v1075_v46  ;;  %v1063_v8 = vld [vmem:[#allocation8 + $0x648] sm:$0xff] }
 0x22d   :  { %v1067_v10 = vld [vmem:[#allocation8 + $0x668] sm:$0xff] }
 0x22e   :  { %v1175_v49 = vld [vmem:[#allocation8 + $0x9c8] sm:$0xff]  ;;  %v9889_v29 = vcombine.low %v1063_v8, %v1067_v10 }
 0x22f   :  { %7432 = vmatpush2.bf16.msra.mxu0 %v9793_v12  ;;  %7469 = vmatpush2.bf16.msra.mxu1 %v9937_v15  ;;  %v1179_v11 = vld [vmem:[#allocation8 + $0x9e8] sm:$0xff]  ;;  %v9897_v12 = vcombine.low %v1071_v3, %v1075_v46  ;;  %v9890_v15 = vcombine.high %v1063_v8, %v1067_v10 }
 0x230   :  { %7433 = vmatprep.subr.bf16.mxu0 %v9786_v20  ;;  %7470 = vmatprep.subr.bf16.mxu1 %v9930_v23  ;;  %v10002_v20 = vcombine.high %v1175_v49, %v1179_v11  ;;  %v1055_v23 = vld [vmem:[#allocation8 + $0x608] sm:$0xff] }
 0x231   :  { %v1059_v25 = vld [vmem:[#allocation8 + $0x628] sm:$0xff] }
 0x232   :  { %v1167_v18 = vld [vmem:[#allocation8 + $0x988] sm:$0xff] }
 0x233   :  { %7434 = vmatpush2.bf16.msra.mxu0 %v9785_v31  ;;  %7471 = vmatpush2.bf16.msra.mxu1 %v9929_v34  ;;  %v1171_v9 = vld [vmem:[#allocation8 + $0x9a8] sm:$0xff]  ;;  %v10001_v31 = vcombine.low %v1175_v49, %v1179_v11  ;;  %v9882_v34 = vcombine.high %v1055_v23, %v1059_v25 }
 0x234   :  { %7435 = vmatprep.subr.bf16.mxu0 %v9778_v48  ;;  %7472 = vmatprep.subr.bf16.mxu1 %v9922_v33  ;;  %v1159_v48 = vld [vmem:[#allocation8 + $0x948] sm:$0xff]  ;;  %v9994_v33 = vcombine.high %v1167_v18, %v1171_v9 }
 0x235   :  { %v1163_v42 = vld [vmem:[#allocation8 + $0x968] sm:$0xff] }
 0x236   :  { %v1303_v35 = vld [vmem:[#allocation8 + $0xdc8] sm:$0xff]  ;;  %v9986_v40 = vcombine.high %v1159_v48, %v1163_v42 }
 0x237   :  { %7436 = vmatpush2.bf16.msra.mxu0 %v9777_v36  ;;  %7473 = vmatpush2.bf16.msra.mxu1 %v9921_v37  ;;  %v1307_v63 = vld [vmem:[#allocation8 + $0xde8] sm:$0xff]  ;;  %v9881_v37 = vcombine.low %v1055_v23, %v1059_v25 }
 0x238   :  { %7437 = vmatprep.subr.bf16.mxu0 %v9770_v38  ;;  %7474 = vmatprep.subr.bf16.mxu1 %v9914_v39  ;;  %v9993_v38 = vcombine.low %v1167_v18, %v1171_v9  ;;  %v10130_v41 = vcombine.high %v1303_v35, %v1307_v63  ;;  %v1151_v62 = vld [vmem:[#allocation8 + $0x908] sm:$0xff]  ;;  %v10129_v55 = vcombine.low %v1303_v35, %v1307_v63 }
 0x239   :  { %v1143_v46 = vld [vmem:[#allocation8 + $0x8c8] sm:$0xff] }
 0x23a   :  { %v1139_v23 = vld [vmem:[#allocation8 + $0x8a8] sm:$0xff] }
 0x23b   :  { %7438 = vmatpush2.bf16.msra.mxu0 %v9769_v47  ;;  %7475 = vmatpush2.bf16.msra.mxu1 %v9913_v53  ;;  %v1155_v47 = vld [vmem:[#allocation8 + $0x928] sm:$0xff] }
 0x23c   :  { %7439 = vmatprep.subr.bf16.mxu0 %v9762_v54  ;;  %7476 = vmatprep.subr.bf16.mxu1 %v9906_v1  ;;  %v1295_v54 = vld [vmem:[#allocation8 + $0xd88] sm:$0xff]  ;;  %v9978_v3 = vcombine.high %v1151_v62, %v1155_v47  ;;  %v9977_v10 = vcombine.low %v1151_v62, %v1155_v47 }
 0x23d   :  { %v1299_v1 = vld [vmem:[#allocation8 + $0xda8] sm:$0xff] }
 0x23e   :  { %v10121_v49 = vcombine.low %v1295_v54, %v1299_v1  ;;  %v1279_v25 = vld [vmem:[#allocation8 + $0xd08] sm:$0xff] }
 0x23f   :  { %7440 = vmatpush2.bf16.msra.mxu0 %v9761_v28  ;;  %7477 = vmatpush2.bf16.msra.mxu1 %v9905_v6  ;;  %v10122_v28 = vcombine.high %v1295_v54, %v1299_v1  ;;  %v1147_v6 = vld [vmem:[#allocation8 + $0x8e8] sm:$0xff] }
 0x240   :  { %7441 = vmatprep.subr.bf16.mxu0 %v9754_v7  ;;  %7478 = vmatprep.subr.bf16.mxu1 %v9898_v4  ;;  %v1287_v7 = vld [vmem:[#allocation8 + $0xd48] sm:$0xff] }
 0x241   :  { %v1291_v4 = vld [vmem:[#allocation8 + $0xd68] sm:$0xff] }
 0x242   :  { %v1283_v18 = vld [vmem:[#allocation8 + $0xd28] sm:$0xff] }
 0x243   :  { %7442 = vmatpush2.bf16.msra.mxu0 %v9753_v52  ;;  %7479 = vmatpush2.bf16.msra.mxu1 %v9897_v12  ;;  %v9970_v52 = vcombine.high %v1143_v46, %v1147_v6  ;;  %v10114_v12 = vcombine.high %v1287_v7, %v1291_v4  ;;  %v1131_v35 = vld [vmem:[#allocation8 + $0x868] sm:$0xff] }
 0x244   :  { %7480 = vmatprep.subr.bf16.mxu1 %v9890_v15  ;;  %7493 = vmatprep.subr.bf16.mxu0 %v10002_v20  ;;  %v1135_v15 = vld [vmem:[#allocation8 + $0x888] sm:$0xff] }
 0x245   :  { %v1271_v63 = vld [vmem:[#allocation8 + $0xcc8] sm:$0xff] }
 0x246   :  { %v7199_v19 = vpop.f32.mrf.mxu0  ;;  %7444 = vmatmul.mubr.bf16.vlgmr.msra.gmra.mxu0 %v11516_v24  ;;  %v1267_v62 = vld [vmem:[#allocation8 + $0xca8] sm:$0xff] }
 0x247   :  { %v7200_v36 = vadd.f32 %v7199_v19, %v11642_v45  ;;  %7481 = vmatpush2.bf16.msra.mxu1 %v9889_v29  ;;  %7494 = vmatpush1.bf16.msra.mxu0 %v10001_v31  ;;  %v9985_v45 = vcombine.low %v1159_v48, %v1163_v42  ;;  %v9969_v29 = vcombine.low %v1143_v46, %v1147_v6  ;;  %v1127_v42 = vld [vmem:[#allocation8 + $0x848] sm:$0xff] }
 0x248   :  { %7525 = vmatprep.mubr.bf16.mxu0 %v11520_v57  ;;  %v7201_v39 = vpop.f32.mrf.mxu0  ;;  %7482 = vmatprep.subr.bf16.mxu1 %v9882_v34  ;;  %v10113_v31 = vcombine.low %v1287_v7, %v1291_v4  ;;  %v9962_v48 = vcombine.high %v1135_v15, %v1139_v23  ;;  %v1275_v19 = vld [vmem:[#allocation8 + $0xce8] sm:$0xff]  ;;  %v9953_v47 = vcombine.low %v1127_v42, %v1131_v35 }
 0x249   :  { %v7202_v50 = vadd.f32 %v7201_v39, %v11645_v56  ;;  %7495 = vmatprep.subr.bf16.mxu0 %v9994_v33  ;;  %v10106_v33 = vcombine.high %v1279_v25, %v1283_v18  ;;  %v10098_v39 = vcombine.high %v1271_v63, %v1275_v19  ;;  %v1231_v4 = vld [vmem:[#allocation8 + $0xb88] sm:$0xff] }
 0x24a   :  { %v7203_v53 = vpop.f32.mrf.mxu0 }
 0x24b   :  { %7483 = vmatpush2.bf16.msra.mxu1 %v9881_v37  ;;  %7496 = vmatpush1.bf16.msra.mxu0 %v9993_v38  ;;  %v10105_v37 = vcombine.low %v1279_v25, %v1283_v18  ;;  %v9954_v38 = vcombine.high %v1127_v42, %v1131_v35  ;;  %v10097_v53 = vcombine.low %v1271_v63, %v1275_v19  ;;  %v1227_v25 = vld [vmem:[#allocation8 + $0xb68] sm:$0xff] }
 0x24c   :  { %v7204_v60 = vpop.f32.mrf.mxu0  ;;  %7497 = vmatprep.subr.bf16.mxu0 %v9986_v40  ;;  %7534 = vmatprep.subr.bf16.mxu1 %v10130_v41  ;;  %v1119_v40 = vld [vmem:[#allocation8 + $0x808] sm:$0xff] }
 0x24d   :  { %v1123_v41 = vld [vmem:[#allocation8 + $0x828] sm:$0xff] }
 0x24e   :  { %v7240_v56 = vpop.f32.mrf.mxu1  ;;  %7485 = vmatmul.mubr.bf16.vlgmr.msra.gmra.mxu1 %v11543_v21  ;;  %v9946_v54 = vcombine.high %v1119_v40, %v1123_v41  ;;  %v1255_v60 = vld [vmem:[#allocation8 + $0xc48] sm:$0xff]  ;;  %v9945_v46 = vcombine.low %v1119_v40, %v1123_v41 }
 0x24f   :  { %v11652_v8 = vadd.f32 %v7240_v56, %v7200_v36  ;;  %7498 = vmatpush1.bf16.msra.mxu0 %v9985_v45  ;;  %7535 = vmatpush1.bf16.msra.mxu1 %v10129_v55  ;;  %v9961_v36 = vcombine.low %v1135_v15, %v1139_v23  ;;  %v1239_v45 = vld [vmem:[#allocation8 + $0xbc8] sm:$0xff] }
 0x250   :  { %7566 = vmatprep.mubr.bf16.mxu1 %v11561_v58  ;;  %v7242_v11 = vpop.f32.mrf.mxu1  ;;  %7499 = vmatprep.subr.bf16.mxu0 %v9978_v3  ;;  %v1243_v55 = vld [vmem:[#allocation8 + $0xbe8] sm:$0xff] }
 0x251   :  { %v11655_v20 = vadd.f32 %v7242_v11, %v7202_v50  ;;  %7536 = vmatprep.subr.bf16.mxu1 %v10122_v28  ;;  %v1263_v50 = vld [vmem:[#allocation8 + $0xc88] sm:$0xff]  ;;  %v10066_v6 = vcombine.high %v1239_v45, %v1243_v55  ;;  %v10065_v11 = vcombine.low %v1239_v45, %v1243_v55 }
 0x252   :  { %v7244_v9 = vpop.f32.mrf.mxu1  ;;  %v10090_v1 = vcombine.high %v1263_v50, %v1267_v62  ;;  %v1259_v3 = vld [vmem:[#allocation8 + $0xc68] sm:$0xff]  ;;  %v10089_v28 = vcombine.low %v1263_v50, %v1267_v62 }
 0x253   :  { %7500 = vmatpush1.bf16.msra.mxu0 %v9977_v10  ;;  %7537 = vmatpush1.bf16.msra.mxu1 %v10121_v49  ;;  %v10082_v7 = vcombine.high %v1255_v60, %v1259_v3  ;;  %v1235_v56 = vld [vmem:[#allocation8 + $0xba8] sm:$0xff] }
 0x254   :  { %v7245_v34 = vpop.f32.mrf.mxu1  ;;  %7501 = vmatprep.subr.bf16.mxu0 %v9970_v52  ;;  %7538 = vmatprep.subr.bf16.mxu1 %v10114_v12  ;;  %v1247_v10 = vld [vmem:[#allocation8 + $0xc08] sm:$0xff]  ;;  %v10081_v52 = vcombine.low %v1255_v60, %v1259_v3  ;;  %v10058_v12 = vcombine.high %v1231_v4, %v1235_v56 }
 0x255   :  { %v1251_v49 = vld [vmem:[#allocation8 + $0xc28] sm:$0xff] }
 0x256   :  { %v10074_v15 = vcombine.high %v1247_v10, %v1251_v49  ;;  %v1223_v23 = vld [vmem:[#allocation8 + $0xb48] sm:$0xff] }
 0x257   :  { %7502 = vmatpush1.bf16.msra.mxu0 %v9969_v29  ;;  %7539 = vmatpush1.bf16.msra.mxu1 %v10113_v31  ;;  %v1367_v18 = vld [vmem:[#allocation8 + $0xfc8] sm:$0xff]  ;;  %v10057_v29 = vcombine.low %v1231_v4, %v1235_v56  ;;  %v10073_v31 = vcombine.low %v1247_v10, %v1251_v49  ;;  %v10050_v34 = vcombine.high %v1223_v23, %v1227_v25 }
 0x258   :  { %7503 = vmatprep.subr.bf16.mxu0 %v9962_v48  ;;  %7540 = vmatprep.subr.bf16.mxu1 %v10106_v33  ;;  %v1371_v9 = vld [vmem:[#allocation8 + $0xfe8] sm:$0xff]  ;;  %v10049_v19 = vcombine.low %v1223_v23, %v1227_v25 }
 0x259   :  { %v10194_v48 = vcombine.high %v1367_v18, %v1371_v9  ;;  %v1215_v33 = vld [vmem:[#allocation8 + $0xb08] sm:$0xff] }
 0x25a   :  { %v1219_v42 = vld [vmem:[#allocation8 + $0xb28] sm:$0xff] }
 0x25b   :  { %7504 = vmatpush1.bf16.msra.mxu0 %v9961_v36  ;;  %7541 = vmatpush1.bf16.msra.mxu1 %v10105_v37  ;;  %v1359_v35 = vld [vmem:[#allocation8 + $0xf88] sm:$0xff]  ;;  %v10193_v36 = vcombine.low %v1367_v18, %v1371_v9  ;;  %v10042_v37 = vcombine.high %v1215_v33, %v1219_v42  ;;  %v10041_v62 = vcombine.low %v1215_v33, %v1219_v42 }
 0x25c   :  { %7505 = vmatprep.subr.bf16.mxu0 %v9954_v38  ;;  %7542 = vmatprep.subr.bf16.mxu1 %v10098_v39  ;;  %v1363_v63 = vld [vmem:[#allocation8 + $0xfa8] sm:$0xff] }
 0x25d   :  { %v10186_v38 = vcombine.high %v1359_v35, %v1363_v63  ;;  %v1207_v39 = vld [vmem:[#allocation8 + $0xac8] sm:$0xff] }
 0x25e   :  { %v1211_v40 = vld [vmem:[#allocation8 + $0xae8] sm:$0xff] }
 0x25f   :  { %7506 = vmatpush1.bf16.msra.mxu0 %v9953_v47  ;;  %7543 = vmatpush1.bf16.msra.mxu1 %v10097_v53  ;;  %v1351_v41 = vld [vmem:[#allocation8 + $0xf48] sm:$0xff]  ;;  %v10185_v47 = vcombine.low %v1359_v35, %v1363_v63  ;;  %v10034_v53 = vcombine.high %v1207_v39, %v1211_v40  ;;  %v10033_v3 = vcombine.low %v1207_v39, %v1211_v40 }
 0x260   :  { %7507 = vmatprep.subr.bf16.mxu0 %v9946_v54  ;;  %7544 = vmatprep.subr.bf16.mxu1 %v10090_v1  ;;  %v1355_v50 = vld [vmem:[#allocation8 + $0xf68] sm:$0xff] }
 0x261   :  { %v10178_v54 = vcombine.high %v1351_v41, %v1355_v50  ;;  %v1199_v1 = vld [vmem:[#allocation8 + $0xa88] sm:$0xff] }
 0x262   :  { %v1203_v45 = vld [vmem:[#allocation8 + $0xaa8] sm:$0xff] }
 0x263   :  { %7508 = vmatpush1.bf16.msra.mxu0 %v9945_v46  ;;  %7545 = vmatpush1.bf16.msra.mxu1 %v10089_v28  ;;  %v1343_v55 = vld [vmem:[#allocation8 + $0xf08] sm:$0xff]  ;;  %v10177_v46 = vcombine.low %v1351_v41, %v1355_v50  ;;  %v10026_v28 = vcombine.high %v1199_v1, %v1203_v45  ;;  %v10025_v49 = vcombine.low %v1199_v1, %v1203_v45 }
 0x264   :  { %7509 = vmatprep.subr.bf16.mxu0 %v10066_v6  ;;  %7546 = vmatprep.subr.bf16.mxu1 %v10082_v7  ;;  %v1347_v60 = vld [vmem:[#allocation8 + $0xf28] sm:$0xff] }
 0x265   :  { %v10170_v6 = vcombine.high %v1343_v55, %v1347_v60  ;;  %v1191_v7 = vld [vmem:[#allocation8 + $0xa48] sm:$0xff] }
 0x266   :  { %v1195_v4 = vld [vmem:[#allocation8 + $0xa68] sm:$0xff] }
 0x267   :  { %7510 = vmatpush2.bf16.msra.mxu0 %v10065_v11  ;;  %7547 = vmatpush1.bf16.msra.mxu1 %v10081_v52  ;;  %v1335_v56 = vld [vmem:[#allocation8 + $0xec8] sm:$0xff]  ;;  %v10169_v11 = vcombine.low %v1343_v55, %v1347_v60  ;;  %v10018_v52 = vcombine.high %v1191_v7, %v1195_v4  ;;  %v10017_v9 = vcombine.low %v1191_v7, %v1195_v4 }
 0x268   :  { %7511 = vmatprep.subr.bf16.mxu0 %v10058_v12  ;;  %7548 = vmatprep.subr.bf16.mxu1 %v10074_v15  ;;  %v1339_v10 = vld [vmem:[#allocation8 + $0xee8] sm:$0xff] }
 0x269   :  { %v10162_v12 = vcombine.high %v1335_v56, %v1339_v10  ;;  %v1183_v15 = vld [vmem:[#allocation8 + $0xa08] sm:$0xff] }
 0x26a   :  { %v1187_v23 = vld [vmem:[#allocation8 + $0xa28] sm:$0xff] }
 0x26b   :  { %7512 = vmatpush2.bf16.msra.mxu0 %v10057_v29  ;;  %7549 = vmatpush1.bf16.msra.mxu1 %v10073_v31  ;;  %v1327_v25 = vld [vmem:[#allocation8 + $0xe88] sm:$0xff]  ;;  %v10161_v29 = vcombine.low %v1335_v56, %v1339_v10  ;;  %v10010_v31 = vcombine.high %v1183_v15, %v1187_v23  ;;  %v10009_v63 = vcombine.low %v1183_v15, %v1187_v23 }
 0x26c   :  { %7513 = vmatprep.subr.bf16.mxu0 %v10050_v34  ;;  %7550 = vmatprep.subr.bf16.mxu1 %v10194_v48  ;;  %v1331_v18 = vld [vmem:[#allocation8 + $0xea8] sm:$0xff] }
 0x26d   :  { %v10154_v34 = vcombine.high %v1327_v25, %v1331_v18  ;;  %v1319_v48 = vld [vmem:[#allocation8 + $0xe48] sm:$0xff] }
 0x26e   :  { %v1323_v33 = vld [vmem:[#allocation8 + $0xe68] sm:$0xff] }
 0x26f   :  { %7514 = vmatpush2.bf16.msra.mxu0 %v10049_v19  ;;  %7551 = vmatpush2.bf16.msra.mxu1 %v10193_v36  ;;  %v1431_v42 = vld [vmem:[#allocation8 + $0x11c8] sm:$0xff]  ;;  %v10153_v19 = vcombine.low %v1327_v25, %v1331_v18  ;;  %v10146_v36 = vcombine.high %v1319_v48, %v1323_v33  ;;  %v10145_v50 = vcombine.low %v1319_v48, %v1323_v33 }
 0x270   :  { %7515 = vmatprep.subr.bf16.mxu0 %v10042_v37  ;;  %7552 = vmatprep.subr.bf16.mxu1 %v10186_v38  ;;  %v1435_v35 = vld [vmem:[#allocation8 + $0x11e8] sm:$0xff] }
 0x271   :  { %v10258_v37 = vcombine.high %v1431_v42, %v1435_v35  ;;  %v1311_v38 = vld [vmem:[#allocation8 + $0xe08] sm:$0xff] }
 0x272   :  { %v1315_v39 = vld [vmem:[#allocation8 + $0xe28] sm:$0xff] }
 0x273   :  { %7516 = vmatpush2.bf16.msra.mxu0 %v10041_v62  ;;  %7553 = vmatpush2.bf16.msra.mxu1 %v10185_v47  ;;  %v1423_v40 = vld [vmem:[#allocation8 + $0x1188] sm:$0xff]  ;;  %v10257_v62 = vcombine.low %v1431_v42, %v1435_v35  ;;  %v10138_v47 = vcombine.high %v1311_v38, %v1315_v39 }
 0x274   :  { %7517 = vmatprep.subr.bf16.mxu0 %v10034_v53  ;;  %7554 = vmatprep.subr.bf16.mxu1 %v10178_v54  ;;  %v1427_v41 = vld [vmem:[#allocation8 + $0x11a8] sm:$0xff] }
 0x275   :  { %v1415_v53 = vld [vmem:[#allocation8 + $0x1148] sm:$0xff]  ;;  %v10250_v54 = vcombine.high %v1423_v40, %v1427_v41 }
 0x276   :  { %v1419_v1 = vld [vmem:[#allocation8 + $0x1168] sm:$0xff] }
 0x277   :  { %7518 = vmatpush2.bf16.msra.mxu0 %v10033_v3  ;;  %7555 = vmatpush2.bf16.msra.mxu1 %v10177_v46  ;;  %v1559_v45 = vld [vmem:[#allocation8 + $0x15c8] sm:$0xff]  ;;  %v10137_v46 = vcombine.low %v1311_v38, %v1315_v39  ;;  %v10242_v7 = vcombine.high %v1415_v53, %v1419_v1 }
 0x278   :  { %7519 = vmatprep.subr.bf16.mxu0 %v10026_v28  ;;  %7556 = vmatprep.subr.bf16.mxu1 %v10170_v6  ;;  %v1563_v55 = vld [vmem:[#allocation8 + $0x15e8] sm:$0xff]  ;;  %v10249_v28 = vcombine.low %v1423_v40, %v1427_v41 }
 0x279   :  { %v10386_v4 = vcombine.high %v1559_v45, %v1563_v55  ;;  %v1407_v10 = vld [vmem:[#allocation8 + $0x1108] sm:$0xff]  ;;  %v10385_v15 = vcombine.low %v1559_v45, %v1563_v55 }
 0x27a   :  { %v1399_v18 = vld [vmem:[#allocation8 + $0x10c8] sm:$0xff] }
 0x27b   :  { %7520 = vmatpush2.bf16.msra.mxu0 %v10025_v49  ;;  %7557 = vmatpush2.bf16.msra.mxu1 %v10169_v11  ;;  %v1411_v49 = vld [vmem:[#allocation8 + $0x1128] sm:$0xff] }
 0x27c   :  { %7521 = vmatprep.subr.bf16.mxu0 %v10018_v52  ;;  %7558 = vmatprep.subr.bf16.mxu1 %v10162_v12  ;;  %v1551_v52 = vld [vmem:[#allocation8 + $0x1588] sm:$0xff]  ;;  %v10234_v25 = vcombine.high %v1407_v10, %v1411_v49  ;;  %v10233_v33 = vcombine.low %v1407_v10, %v1411_v49 }
 0x27d   :  { %v1555_v12 = vld [vmem:[#allocation8 + $0x15a8] sm:$0xff] }
 0x27e   :  { %v10377_v42 = vcombine.low %v1551_v52, %v1555_v12  ;;  %v1395_v38 = vld [vmem:[#allocation8 + $0x10a8] sm:$0xff] }
 0x27f   :  { %7522 = vmatpush2.bf16.msra.mxu0 %v10017_v9  ;;  %7559 = vmatpush2.bf16.msra.mxu1 %v10161_v29  ;;  %v10378_v9 = vcombine.high %v1551_v52, %v1555_v12  ;;  %v1403_v29 = vld [vmem:[#allocation8 + $0x10e8] sm:$0xff] }
 0x280   :  { %7523 = vmatprep.subr.bf16.mxu0 %v10010_v31  ;;  %7560 = vmatprep.subr.bf16.mxu1 %v10154_v34  ;;  %v1543_v31 = vld [vmem:[#allocation8 + $0x1548] sm:$0xff] }
 0x281   :  { %v1547_v34 = vld [vmem:[#allocation8 + $0x1568] sm:$0xff] }
 0x282   :  { %v1535_v39 = vld [vmem:[#allocation8 + $0x1508] sm:$0xff] }
 0x283   :  { %7524 = vmatpush2.bf16.msra.mxu0 %v10009_v63  ;;  %7561 = vmatpush2.bf16.msra.mxu1 %v10153_v19  ;;  %v10226_v63 = vcombine.high %v1399_v18, %v1403_v29  ;;  %v10370_v19 = vcombine.high %v1543_v31, %v1547_v34  ;;  %v1539_v40 = vld [vmem:[#allocation8 + $0x1528] sm:$0xff] }
 0x284   :  { %7562 = vmatprep.subr.bf16.mxu1 %v10146_v36  ;;  %7575 = vmatprep.subr.bf16.mxu0 %v10258_v37  ;;  %v1391_v36 = vld [vmem:[#allocation8 + $0x1088] sm:$0xff] }
 0x285   :  { %v1387_v45 = vld [vmem:[#allocation8 + $0x1068] sm:$0xff] }
 0x286   :  { %v7281_v60 = vpop.f32.mrf.mxu0  ;;  %7526 = vmatmul.mubr.bf16.vlgmr.msra.gmra.mxu0 %v11592_v44  ;;  %v1527_v55 = vld [vmem:[#allocation8 + $0x14c8] sm:$0xff] }
 0x287   :  { %v7282_v3 = vadd.f32 %v7281_v60, %v11652_v8  ;;  %7563 = vmatpush2.bf16.msra.mxu1 %v10145_v50  ;;  %7576 = vmatpush1.bf16.msra.mxu0 %v10257_v62  ;;  %v10241_v8 = vcombine.low %v1415_v53, %v1419_v1  ;;  %v10225_v50 = vcombine.low %v1399_v18, %v1403_v29  ;;  %v1383_v1 = vld [vmem:[#allocation8 + $0x1048] sm:$0xff] }
 0x288   :  { %7607 = vmatprep.mubr.bf16.mxu0 %v11595_v59  ;;  %v7283_v6 = vpop.f32.mrf.mxu0  ;;  %7564 = vmatprep.subr.bf16.mxu1 %v10138_v47  ;;  %v10369_v62 = vcombine.low %v1543_v31, %v1547_v34  ;;  %v10218_v53 = vcombine.high %v1391_v36, %v1395_v38  ;;  %v1531_v60 = vld [vmem:[#allocation8 + $0x14e8] sm:$0xff]  ;;  %v10209_v49 = vcombine.low %v1383_v1, %v1387_v45 }
 0x289   :  { %v7284_v56 = vadd.f32 %v7283_v6, %v11655_v20  ;;  %7577 = vmatprep.subr.bf16.mxu0 %v10250_v54  ;;  %v10362_v54 = vcombine.high %v1535_v39, %v1539_v40  ;;  %v10354_v6 = vcombine.high %v1527_v55, %v1531_v60  ;;  %v1523_v10 = vld [vmem:[#allocation8 + $0x14a8] sm:$0xff] }
 0x28a   :  { %v7285_v11 = vpop.f32.mrf.mxu0  ;;  %v1487_v34 = vld [vmem:[#allocation8 + $0x1388] sm:$0xff] }
 0x28b   :  { %7565 = vmatpush2.bf16.msra.mxu1 %v10137_v46  ;;  %7578 = vmatpush1.bf16.msra.mxu0 %v10249_v28  ;;  %v10361_v46 = vcombine.low %v1535_v39, %v1539_v40  ;;  %v10210_v28 = vcombine.high %v1383_v1, %v1387_v45  ;;  %v10353_v11 = vcombine.low %v1527_v55, %v1531_v60  ;;  %v1483_v39 = vld [vmem:[#allocation8 + $0x1368] sm:$0xff] }
 0x28c   :  { %v7286_v23 = vpop.f32.mrf.mxu0  ;;  %7579 = vmatprep.subr.bf16.mxu0 %v10242_v7  ;;  %7616 = vmatprep.subr.bf16.mxu1 %v10386_v4  ;;  %v1375_v7 = vld [vmem:[#allocation8 + $0x1008] sm:$0xff] }
 0x28d   :  { %v1379_v4 = vld [vmem:[#allocation8 + $0x1028] sm:$0xff] }
 0x28e   :  { %v7322_v20 = vpop.f32.mrf.mxu1  ;;  %7567 = vmatmul.mubr.bf16.vlgmr.msra.gmra.mxu1 %v11600_v14  ;;  %v10202_v52 = vcombine.high %v1375_v7, %v1379_v4  ;;  %v1511_v23 = vld [vmem:[#allocation8 + $0x1448] sm:$0xff]  ;;  %v10201_v18 = vcombine.low %v1375_v7, %v1379_v4 }
 0x28f   :  { %v11662_v48 = vadd.f32 %v7322_v20, %v7282_v3  ;;  %7580 = vmatpush1.bf16.msra.mxu0 %v10241_v8  ;;  %7617 = vmatpush1.bf16.msra.mxu1 %v10385_v15  ;;  %v10217_v3 = vcombine.low %v1391_v36, %v1395_v38  ;;  %v1495_v8 = vld [vmem:[#allocation8 + $0x13c8] sm:$0xff] }
 0x290   :  { %7648 = vmatprep.mubr.bf16.mxu1 %v11602_v30  ;;  %v7324_v35 = vpop.f32.mrf.mxu1  ;;  %7581 = vmatprep.subr.bf16.mxu0 %v10234_v25  ;;  %v1499_v15 = vld [vmem:[#allocation8 + $0x13e8] sm:$0xff] }
 0x291   :  { %v11665_v37 = vadd.f32 %v7324_v35, %v7284_v56  ;;  %7618 = vmatprep.subr.bf16.mxu1 %v10378_v9  ;;  %v1519_v56 = vld [vmem:[#allocation8 + $0x1488] sm:$0xff]  ;;  %v10322_v29 = vcombine.high %v1495_v8, %v1499_v15  ;;  %v10321_v35 = vcombine.low %v1495_v8, %v1499_v15 }
 0x292   :  { %v7326_v41 = vpop.f32.mrf.mxu1  ;;  %v10346_v12 = vcombine.high %v1519_v56, %v1523_v10  ;;  %v1515_v25 = vld [vmem:[#allocation8 + $0x1468] sm:$0xff]  ;;  %v10345_v9 = vcombine.low %v1519_v56, %v1523_v10 }
 0x293   :  { %7582 = vmatpush1.bf16.msra.mxu0 %v10233_v33  ;;  %7619 = vmatpush1.bf16.msra.mxu1 %v10377_v42  ;;  %v10338_v31 = vcombine.high %v1511_v23, %v1515_v25  ;;  %v1491_v20 = vld [vmem:[#allocation8 + $0x13a8] sm:$0xff] }
 0x294   :  { %v7327_v47 = vpop.f32.mrf.mxu1  ;;  %7583 = vmatprep.subr.bf16.mxu0 %v10226_v63  ;;  %7620 = vmatprep.subr.bf16.mxu1 %v10370_v19  ;;  %v1503_v33 = vld [vmem:[#allocation8 + $0x1408] sm:$0xff]  ;;  %v10337_v63 = vcombine.low %v1511_v23, %v1515_v25  ;;  %v10314_v19 = vcombine.high %v1487_v34, %v1491_v20 }
 0x295   :  { %v1507_v42 = vld [vmem:[#allocation8 + $0x1428] sm:$0xff] }
 0x296   :  { %v10330_v36 = vcombine.high %v1503_v33, %v1507_v42  ;;  %v1479_v38 = vld [vmem:[#allocation8 + $0x1348] sm:$0xff] }
 0x297   :  { %7584 = vmatpush1.bf16.msra.mxu0 %v10225_v50  ;;  %7621 = vmatpush1.bf16.msra.mxu1 %v10369_v62  ;;  %v1623_v40 = vld [vmem:[#allocation8 + $0x17c8] sm:$0xff]  ;;  %v10313_v50 = vcombine.low %v1487_v34, %v1491_v20  ;;  %v10329_v62 = vcombine.low %v1503_v33, %v1507_v42  ;;  %v10306_v47 = vcombine.high %v1479_v38, %v1483_v39 }
 0x298   :  { %7585 = vmatprep.subr.bf16.mxu0 %v10218_v53  ;;  %7622 = vmatprep.subr.bf16.mxu1 %v10362_v54  ;;  %v1627_v41 = vld [vmem:[#allocation8 + $0x17e8] sm:$0xff]  ;;  %v10305_v60 = vcombine.low %v1479_v38, %v1483_v39 }
 0x299   :  { %v10450_v53 = vcombine.high %v1623_v40, %v1627_v41  ;;  %v1471_v54 = vld [vmem:[#allocation8 + $0x1308] sm:$0xff] }
 0x29a   :  { %v1475_v1 = vld [vmem:[#allocation8 + $0x1328] sm:$0xff] }
 0x29b   :  { %7586 = vmatpush1.bf16.msra.mxu0 %v10217_v3  ;;  %7623 = vmatpush1.bf16.msra.mxu1 %v10361_v46  ;;  %v1615_v45 = vld [vmem:[#allocation8 + $0x1788] sm:$0xff]  ;;  %v10449_v3 = vcombine.low %v1623_v40, %v1627_v41  ;;  %v10298_v46 = vcombine.high %v1471_v54, %v1475_v1  ;;  %v10297_v10 = vcombine.low %v1471_v54, %v1475_v1 }
 0x29c   :  { %7587 = vmatprep.subr.bf16.mxu0 %v10210_v28  ;;  %7624 = vmatprep.subr.bf16.mxu1 %v10354_v6  ;;  %v1619_v55 = vld [vmem:[#allocation8 + $0x17a8] sm:$0xff] }
 0x29d   :  { %v10442_v28 = vcombine.high %v1615_v45, %v1619_v55  ;;  %v1463_v6 = vld [vmem:[#allocation8 + $0x12c8] sm:$0xff] }
 0x29e   :  { %v1467_v7 = vld [vmem:[#allocation8 + $0x12e8] sm:$0xff] }
 0x29f   :  { %7588 = vmatpush1.bf16.msra.mxu0 %v10209_v49  ;;  %7625 = vmatpush1.bf16.msra.mxu1 %v10353_v11  ;;  %v1607_v4 = vld [vmem:[#allocation8 + $0x1748] sm:$0xff]  ;;  %v10441_v49 = vcombine.low %v1615_v45, %v1619_v55  ;;  %v10290_v11 = vcombine.high %v1463_v6, %v1467_v7  ;;  %v10289_v25 = vcombine.low %v1463_v6, %v1467_v7 }
 0x2a0   :  { %7589 = vmatprep.subr.bf16.mxu0 %v10202_v52  ;;  %7626 = vmatprep.subr.bf16.mxu1 %v10346_v12  ;;  %v1611_v56 = vld [vmem:[#allocation8 + $0x1768] sm:$0xff] }
 0x2a1   :  { %v10434_v52 = vcombine.high %v1607_v4, %v1611_v56  ;;  %v1455_v12 = vld [vmem:[#allocation8 + $0x1288] sm:$0xff] }
 0x2a2   :  { %v1459_v8 = vld [vmem:[#allocation8 + $0x12a8] sm:$0xff] }
 0x2a3   :  { %7590 = vmatpush1.bf16.msra.mxu0 %v10201_v18  ;;  %7627 = vmatpush1.bf16.msra.mxu1 %v10345_v9  ;;  %v1599_v15 = vld [vmem:[#allocation8 + $0x1708] sm:$0xff]  ;;  %v10433_v18 = vcombine.low %v1607_v4, %v1611_v56  ;;  %v10282_v9 = vcombine.high %v1455_v12, %v1459_v8  ;;  %v10281_v42 = vcombine.low %v1455_v12, %v1459_v8 }
 0x2a4   :  { %7591 = vmatprep.subr.bf16.mxu0 %v10322_v29  ;;  %7628 = vmatprep.subr.bf16.mxu1 %v10338_v31  ;;  %v1603_v23 = vld [vmem:[#allocation8 + $0x1728] sm:$0xff] }
 0x2a5   :  { %v10426_v29 = vcombine.high %v1599_v15, %v1603_v23  ;;  %v1447_v31 = vld [vmem:[#allocation8 + $0x1248] sm:$0xff] }
 0x2a6   :  { %v1451_v34 = vld [vmem:[#allocation8 + $0x1268] sm:$0xff] }
 0x2a7   :  { %7592 = vmatpush2.bf16.msra.mxu0 %v10321_v35  ;;  %7629 = vmatpush1.bf16.msra.mxu1 %v10337_v63  ;;  %v1591_v20 = vld [vmem:[#allocation8 + $0x16c8] sm:$0xff]  ;;  %v10425_v35 = vcombine.low %v1599_v15, %v1603_v23  ;;  %v10274_v63 = vcombine.high %v1447_v31, %v1451_v34  ;;  %v10273_v41 = vcombine.low %v1447_v31, %v1451_v34 }
 0x2a8   :  { %7593 = vmatprep.subr.bf16.mxu0 %v10314_v19  ;;  %7630 = vmatprep.subr.bf16.mxu1 %v10330_v36  ;;  %v1595_v33 = vld [vmem:[#allocation8 + $0x16e8] sm:$0xff] }
 0x2a9   :  { %v10418_v19 = vcombine.high %v1591_v20, %v1595_v33  ;;  %v1439_v36 = vld [vmem:[#allocation8 + $0x1208] sm:$0xff] }
 0x2aa   :  { %v1443_v38 = vld [vmem:[#allocation8 + $0x1228] sm:$0xff] }
 0x2ab   :  { %7594 = vmatpush2.bf16.msra.mxu0 %v10313_v50  ;;  %7631 = vmatpush1.bf16.msra.mxu1 %v10329_v62  ;;  %v1583_v39 = vld [vmem:[#allocation8 + $0x1688] sm:$0xff]  ;;  %v10417_v50 = vcombine.low %v1591_v20, %v1595_v33  ;;  %v10266_v62 = vcombine.high %v1439_v36, %v1443_v38  ;;  %v10265_v55 = vcombine.low %v1439_v36, %v1443_v38 }
 0x2ac   :  { %7595 = vmatprep.subr.bf16.mxu0 %v10306_v47  ;;  %7632 = vmatprep.subr.bf16.mxu1 %v10450_v53  ;;  %v1587_v40 = vld [vmem:[#allocation8 + $0x16a8] sm:$0xff] }
 0x2ad   :  { %v10410_v47 = vcombine.high %v1583_v39, %v1587_v40  ;;  %v1575_v53 = vld [vmem:[#allocation8 + $0x1648] sm:$0xff] }
 0x2ae   :  { %v1579_v54 = vld [vmem:[#allocation8 + $0x1668] sm:$0xff] }
 0x2af   :  { %7596 = vmatpush2.bf16.msra.mxu0 %v10305_v60  ;;  %7633 = vmatpush2.bf16.msra.mxu1 %v10449_v3  ;;  %v1687_v1 = vld [vmem:[#allocation8 + $0x19c8] sm:$0xff]  ;;  %v10409_v60 = vcombine.low %v1583_v39, %v1587_v40  ;;  %v10402_v3 = vcombine.high %v1575_v53, %v1579_v54  ;;  %v10401_v56 = vcombine.low %v1575_v53, %v1579_v54 }
 0x2b0   :  { %7597 = vmatprep.subr.bf16.mxu0 %v10298_v46  ;;  %7634 = vmatprep.subr.bf16.mxu1 %v10442_v28  ;;  %v1691_v45 = vld [vmem:[#allocation8 + $0x19e8] sm:$0xff] }
 0x2b1   :  { %v10514_v46 = vcombine.high %v1687_v1, %v1691_v45  ;;  %v1567_v28 = vld [vmem:[#allocation8 + $0x1608] sm:$0xff] }
 0x2b2   :  { %v1571_v6 = vld [vmem:[#allocation8 + $0x1628] sm:$0xff] }
 0x2b3   :  { %7598 = vmatpush2.bf16.msra.mxu0 %v10297_v10  ;;  %7635 = vmatpush2.bf16.msra.mxu1 %v10441_v49  ;;  %v1679_v7 = vld [vmem:[#allocation8 + $0x1988] sm:$0xff]  ;;  %v10513_v10 = vcombine.low %v1687_v1, %v1691_v45  ;;  %v10394_v49 = vcombine.high %v1567_v28, %v1571_v6 }
 0x2b4   :  { %7599 = vmatprep.subr.bf16.mxu0 %v10290_v11  ;;  %7636 = vmatprep.subr.bf16.mxu1 %v10434_v52  ;;  %v1683_v4 = vld [vmem:[#allocation8 + $0x19a8] sm:$0xff] }
 0x2b5   :  { %v1671_v11 = vld [vmem:[#allocation8 + $0x1948] sm:$0xff]  ;;  %v10506_v52 = vcombine.high %v1679_v7, %v1683_v4 }
 0x2b6   :  { %v1675_v12 = vld [vmem:[#allocation8 + $0x1968] sm:$0xff] }
 0x2b7   :  { %7600 = vmatpush2.bf16.msra.mxu0 %v10289_v25  ;;  %7637 = vmatpush2.bf16.msra.mxu1 %v10433_v18  ;;  %v1815_v8 = vld [vmem:[#allocation8 + $0x1dc8] sm:$0xff]  ;;  %v10393_v18 = vcombine.low %v1567_v28, %v1571_v6  ;;  %v10498_v31 = vcombine.high %v1671_v11, %v1675_v12 }
 0x2b8   :  { %7601 = vmatprep.subr.bf16.mxu0 %v10282_v9  ;;  %7638 = vmatprep.subr.bf16.mxu1 %v10426_v29  ;;  %v1819_v15 = vld [vmem:[#allocation8 + $0x1de8] sm:$0xff]  ;;  %v10505_v9 = vcombine.low %v1679_v7, %v1683_v4 }
 0x2b9   :  { %v10642_v34 = vcombine.high %v1815_v8, %v1819_v15  ;;  %v1663_v33 = vld [vmem:[#allocation8 + $0x1908] sm:$0xff]  ;;  %v10641_v36 = vcombine.low %v1815_v8, %v1819_v15 }
 0x2ba   :  { %v1655_v40 = vld [vmem:[#allocation8 + $0x18c8] sm:$0xff] }
 0x2bb   :  { %7602 = vmatpush2.bf16.msra.mxu0 %v10281_v42  ;;  %7639 = vmatpush2.bf16.msra.mxu1 %v10425_v35  ;;  %v1667_v42 = vld [vmem:[#allocation8 + $0x1928] sm:$0xff] }
 0x2bc   :  { %7603 = vmatprep.subr.bf16.mxu0 %v10274_v63  ;;  %7640 = vmatprep.subr.bf16.mxu1 %v10418_v19  ;;  %v1807_v63 = vld [vmem:[#allocation8 + $0x1d88] sm:$0xff]  ;;  %v10490_v39 = vcombine.high %v1663_v33, %v1667_v42  ;;  %v10489_v54 = vcombine.low %v1663_v33, %v1667_v42 }
 0x2bd   :  { %v1811_v19 = vld [vmem:[#allocation8 + $0x1da8] sm:$0xff] }
 0x2be   :  { %v10633_v1 = vcombine.low %v1807_v63, %v1811_v19  ;;  %v1651_v28 = vld [vmem:[#allocation8 + $0x18a8] sm:$0xff] }
 0x2bf   :  { %7604 = vmatpush2.bf16.msra.mxu0 %v10273_v41  ;;  %7641 = vmatpush2.bf16.msra.mxu1 %v10417_v50  ;;  %v10634_v41 = vcombine.high %v1807_v63, %v1811_v19  ;;  %v1659_v50 = vld [vmem:[#allocation8 + $0x18e8] sm:$0xff] }
 0x2c0   :  { %7605 = vmatprep.subr.bf16.mxu0 %v10266_v62  ;;  %7642 = vmatprep.subr.bf16.mxu1 %v10410_v47  ;;  %v1799_v62 = vld [vmem:[#allocation8 + $0x1d48] sm:$0xff] }
 0x2c1   :  { %v1803_v47 = vld [vmem:[#allocation8 + $0x1d68] sm:$0xff] }
 0x2c2   :  { %v1791_v6 = vld [vmem:[#allocation8 + $0x1d08] sm:$0xff] }
 0x2c3   :  { %7606 = vmatpush2.bf16.msra.mxu0 %v10265_v55  ;;  %7643 = vmatpush2.bf16.msra.mxu1 %v10409_v60  ;;  %v10482_v55 = vcombine.high %v1655_v40, %v1659_v50  ;;  %v10626_v60 = vcombine.high %v1799_v62, %v1803_v47  ;;  %v1795_v7 = vld [vmem:[#allocation8 + $0x1d28] sm:$0xff] }
 0x2c4   :  { %7644 = vmatprep.subr.bf16.mxu1 %v10402_v3  ;;  %7657 = vmatprep.subr.bf16.mxu0 %v10514_v46  ;;  %v1647_v3 = vld [vmem:[#allocation8 + $0x1888] sm:$0xff] }
 0x2c5   :  { %v1643_v8 = vld [vmem:[#allocation8 + $0x1868] sm:$0xff] }
 0x2c6   :  { %v7363_v23 = vpop.f32.mrf.mxu0  ;;  %7608 = vmatmul.mubr.bf16.vlgmr.msra.gmra.mxu0 %v11611_v2  ;;  %v1783_v15 = vld [vmem:[#allocation8 + $0x1cc8] sm:$0xff] }
 0x2c7   :  { %v7364_v25 = vadd.f32 %v7363_v23, %v11662_v48  ;;  %7645 = vmatpush2.bf16.msra.mxu1 %v10401_v56  ;;  %7658 = vmatpush1.bf16.msra.mxu0 %v10513_v10  ;;  %v10497_v48 = vcombine.low %v1671_v11, %v1675_v12  ;;  %v10481_v56 = vcombine.low %v1655_v40, %v1659_v50  ;;  %v1639_v12 = vld [vmem:[#allocation8 + $0x1848] sm:$0xff] }
 0x2c8   :  { %7689 = vmatprep.mubr.bf16.mxu0 %v11613_v5  ;;  %v7365_v29 = vpop.f32.mrf.mxu0  ;;  %7646 = vmatprep.subr.bf16.mxu1 %v10394_v49  ;;  %v10625_v10 = vcombine.low %v1799_v62, %v1803_v47  ;;  %v10474_v11 = vcombine.high %v1647_v3, %v1651_v28  ;;  %v1787_v23 = vld [vmem:[#allocation8 + $0x1ce8] sm:$0xff]  ;;  %v10465_v42 = vcombine.low %v1639_v12, %v1643_v8 }
 0x2c9   :  { %v7366_v20 = vadd.f32 %v7365_v29, %v11665_v37  ;;  %7659 = vmatprep.subr.bf16.mxu0 %v10506_v52  ;;  %v10618_v52 = vcombine.high %v1791_v6, %v1795_v7  ;;  %v10610_v29 = vcombine.high %v1783_v15, %v1787_v23  ;;  %v1779_v33 = vld [vmem:[#allocation8 + $0x1ca8] sm:$0xff] }
 0x2ca   :  { %v7367_v35 = vpop.f32.mrf.mxu0  ;;  %v1743_v47 = vld [vmem:[#allocation8 + $0x1b88] sm:$0xff] }
 0x2cb   :  { %7647 = vmatpush2.bf16.msra.mxu1 %v10393_v18  ;;  %7660 = vmatpush1.bf16.msra.mxu0 %v10505_v9  ;;  %v10617_v18 = vcombine.low %v1791_v6, %v1795_v7  ;;  %v10466_v9 = vcombine.high %v1639_v12, %v1643_v8  ;;  %v10609_v35 = vcombine.low %v1783_v15, %v1787_v23  ;;  %v1739_v6 = vld [vmem:[#allocation8 + $0x1b68] sm:$0xff] }
 0x2cc   :  { %v7368_v38 = vpop.f32.mrf.mxu0  ;;  %7661 = vmatprep.subr.bf16.mxu0 %v10498_v31  ;;  %7698 = vmatprep.subr.bf16.mxu1 %v10642_v34  ;;  %v1631_v31 = vld [vmem:[#allocation8 + $0x1808] sm:$0xff] }
 0x2cd   :  { %v1635_v34 = vld [vmem:[#allocation8 + $0x1828] sm:$0xff] }
 0x2ce   :  { %v7404_v37 = vpop.f32.mrf.mxu1  ;;  %7649 = vmatmul.mubr.bf16.vlgmr.msra.gmra.mxu1 %v11619_v27  ;;  %v10458_v63 = vcombine.high %v1631_v31, %v1635_v34  ;;  %v1767_v38 = vld [vmem:[#allocation8 + $0x1c48] sm:$0xff]  ;;  %v10457_v40 = vcombine.low %v1631_v31, %v1635_v34 }
 0x2cf   :  { %v11672_v53 = vadd.f32 %v7404_v37, %v7364_v25  ;;  %7662 = vmatpush1.bf16.msra.mxu0 %v10497_v48  ;;  %7699 = vmatpush1.bf16.msra.mxu1 %v10641_v36  ;;  %v10473_v25 = vcombine.low %v1647_v3, %v1651_v28  ;;  %v1751_v48 = vld [vmem:[#allocation8 + $0x1bc8] sm:$0xff] }
 0x2d0   :  { %7730 = vmatprep.mubr.bf16.mxu1 %v11621_v32  ;;  %v7406_v45 = vpop.f32.mrf.mxu1  ;;  %7663 = vmatprep.subr.bf16.mxu0 %v10490_v39  ;;  %v1755_v36 = vld [vmem:[#allocation8 + $0x1be8] sm:$0xff] }
 0x2d1   :  { %v11675_v46 = vadd.f32 %v7406_v45, %v7366_v20  ;;  %7700 = vmatprep.subr.bf16.mxu1 %v10634_v41  ;;  %v1775_v20 = vld [vmem:[#allocation8 + $0x1c88] sm:$0xff]  ;;  %v10578_v50 = vcombine.high %v1751_v48, %v1755_v36  ;;  %v10577_v45 = vcombine.low %v1751_v48, %v1755_v36 }
 0x2d2   :  { %v7408_v4 = vpop.f32.mrf.mxu1  ;;  %v10602_v19 = vcombine.high %v1775_v20, %v1779_v33  ;;  %v1771_v39 = vld [vmem:[#allocation8 + $0x1c68] sm:$0xff]  ;;  %v10601_v41 = vcombine.low %v1775_v20, %v1779_v33 }
 0x2d3   :  { %7664 = vmatpush1.bf16.msra.mxu0 %v10489_v54  ;;  %7701 = vmatpush1.bf16.msra.mxu1 %v10633_v1  ;;  %v10594_v62 = vcombine.high %v1767_v38, %v1771_v39  ;;  %v1747_v37 = vld [vmem:[#allocation8 + $0x1ba8] sm:$0xff] }
 0x2d4   :  { %v7409_v49 = vpop.f32.mrf.mxu1  ;;  %7665 = vmatprep.subr.bf16.mxu0 %v10482_v55  ;;  %7702 = vmatprep.subr.bf16.mxu1 %v10626_v60  ;;  %v1759_v54 = vld [vmem:[#allocation8 + $0x1c08] sm:$0xff]  ;;  %v10593_v55 = vcombine.low %v1767_v38, %v1771_v39  ;;  %v10570_v60 = vcombine.high %v1743_v47, %v1747_v37 }
 0x2d5   :  { %v1763_v1 = vld [vmem:[#allocation8 + $0x1c28] sm:$0xff] }
 0x2d6   :  { %v10586_v3 = vcombine.high %v1759_v54, %v1763_v1  ;;  %v1735_v28 = vld [vmem:[#allocation8 + $0x1b48] sm:$0xff] }
 0x2d7   :  { %7666 = vmatpush1.bf16.msra.mxu0 %v10481_v56  ;;  %7703 = vmatpush1.bf16.msra.mxu1 %v10625_v10  ;;  %v1879_v7 = vld [vmem:[#allocation8 + $0x1fc8] sm:$0xff]  ;;  %v10569_v56 = vcombine.low %v1743_v47, %v1747_v37  ;;  %v10585_v10 = vcombine.low %v1759_v54, %v1763_v1  ;;  %v10562_v49 = vcombine.high %v1735_v28, %v1739_v6 }
 0x2d8   :  { %7667 = vmatprep.subr.bf16.mxu0 %v10474_v11  ;;  %7704 = vmatprep.subr.bf16.mxu1 %v10618_v52  ;;  %v1883_v4 = vld [vmem:[#allocation8 + $0x1fe8] sm:$0xff]  ;;  %v10561_v23 = vcombine.low %v1735_v28, %v1739_v6 }
 0x2d9   :  { %v10706_v11 = vcombine.high %v1879_v7, %v1883_v4  ;;  %v1727_v52 = vld [vmem:[#allocation8 + $0x1b08] sm:$0xff] }
 0x2da   :  { %v1731_v12 = vld [vmem:[#allocation8 + $0x1b28] sm:$0xff] }
 0x2db   :  { %7668 = vmatpush1.bf16.msra.mxu0 %v10473_v25  ;;  %7705 = vmatpush1.bf16.msra.mxu1 %v10617_v18  ;;  %v1871_v8 = vld [vmem:[#allocation8 + $0x1f88] sm:$0xff]  ;;  %v10705_v25 = vcombine.low %v1879_v7, %v1883_v4  ;;  %v10554_v18 = vcombine.high %v1727_v52, %v1731_v12  ;;  %v10553_v33 = vcombine.low %v1727_v52, %v1731_v12  ;;  %v920_v12 = vld [vmem:[#allocation8 + $0x1d0] sm:$0xff] }
 0x2dc   :  { %7669 = vmatprep.subr.bf16.mxu0 %v10466_v9  ;;  %7706 = vmatprep.subr.bf16.mxu1 %v10610_v29  ;;  %v1875_v15 = vld [vmem:[#allocation8 + $0x1fa8] sm:$0xff] }
 0x2dd   :  { %v10698_v9 = vcombine.high %v1871_v8, %v1875_v15  ;;  %v1719_v29 = vld [vmem:[#allocation8 + $0x1ac8] sm:$0xff] }
 0x2de   :  { %v1723_v31 = vld [vmem:[#allocation8 + $0x1ae8] sm:$0xff] }
 0x2df   :  { %7670 = vmatpush1.bf16.msra.mxu0 %v10465_v42  ;;  %7707 = vmatpush1.bf16.msra.mxu1 %v10609_v35  ;;  %v1863_v34 = vld [vmem:[#allocation8 + $0x1f48] sm:$0xff]  ;;  %v10697_v42 = vcombine.low %v1871_v8, %v1875_v15  ;;  %v10546_v35 = vcombine.high %v1719_v29, %v1723_v31  ;;  %v10545_v39 = vcombine.low %v1719_v29, %v1723_v31  ;;  %v924_v8 = vld [vmem:[#allocation8 + $0x1f0] sm:$0xff] }
 0x2e0   :  { %7671 = vmatprep.subr.bf16.mxu0 %v10458_v63  ;;  %7708 = vmatprep.subr.bf16.mxu1 %v10602_v19  ;;  %v1867_v20 = vld [vmem:[#allocation8 + $0x1f68] sm:$0xff]  ;;  %v912_v31 = vld [vmem:[#allocation8 + $0x190] sm:$0xff] }
 0x2e1   :  { %v10690_v63 = vcombine.high %v1863_v34, %v1867_v20  ;;  %v1711_v19 = vld [vmem:[#allocation8 + $0x1a88] sm:$0xff] }
 0x2e2   :  { %v1715_v48 = vld [vmem:[#allocation8 + $0x1aa8] sm:$0xff] }
 0x2e3   :  { %7672 = vmatpush1.bf16.msra.mxu0 %v10457_v40  ;;  %7709 = vmatpush1.bf16.msra.mxu1 %v10601_v41  ;;  %v1855_v36 = vld [vmem:[#allocation8 + $0x1f08] sm:$0xff]  ;;  %v10689_v40 = vcombine.low %v1863_v34, %v1867_v20  ;;  %v10538_v41 = vcombine.high %v1711_v19, %v1715_v48  ;;  %v10537_v1 = vcombine.low %v1711_v19, %v1715_v48  ;;  %v916_v34 = vld [vmem:[#allocation8 + $0x1b0] sm:$0xff] }
 0x2e4   :  { %7673 = vmatprep.subr.bf16.mxu0 %v10578_v50  ;;  %7710 = vmatprep.subr.bf16.mxu1 %v10594_v62  ;;  %v1859_v38 = vld [vmem:[#allocation8 + $0x1f28] sm:$0xff]  ;;  %v9740_v19 = vcombine.high %v912_v31, %v916_v34  ;;  %v908_v48 = vld [vmem:[#allocation8 + $0x170] sm:$0xff] }
 0x2e5   :  { %v10682_v50 = vcombine.high %v1855_v36, %v1859_v38  ;;  %v1703_v62 = vld [vmem:[#allocation8 + $0x1a48] sm:$0xff] }
 0x2e6   :  { %v1707_v47 = vld [vmem:[#allocation8 + $0x1a68] sm:$0xff] }
 0x2e7   :  { %7674 = vmatpush2.bf16.msra.mxu0 %v10577_v45  ;;  %7711 = vmatpush1.bf16.msra.mxu1 %v10593_v55  ;;  %v1847_v37 = vld [vmem:[#allocation8 + $0x1ec8] sm:$0xff]  ;;  %v10681_v45 = vcombine.low %v1855_v36, %v1859_v38  ;;  %v10530_v55 = vcombine.high %v1703_v62, %v1707_v47  ;;  %v10529_v4 = vcombine.low %v1703_v62, %v1707_v47  ;;  %v1048_v36 = vld [vmem:[#allocation8 + $0x5d0] sm:$0xff] }
 0x2e8   :  { %7675 = vmatprep.subr.bf16.mxu0 %v10570_v60  ;;  %7712 = vmatprep.subr.bf16.mxu1 %v10586_v3  ;;  %v1851_v54 = vld [vmem:[#allocation8 + $0x1ee8] sm:$0xff]  ;;  %v1052_v38 = vld [vmem:[#allocation8 + $0x5f0] sm:$0xff] }
 0x2e9   :  { %v10674_v60 = vcombine.high %v1847_v37, %v1851_v54  ;;  %v1695_v3 = vld [vmem:[#allocation8 + $0x1a08] sm:$0xff] }
 0x2ea   :  { %v1699_v28 = vld [vmem:[#allocation8 + $0x1a28] sm:$0xff] }
 0x2eb   :  { %7676 = vmatpush2.bf16.msra.mxu0 %v10569_v56  ;;  %7713 = vmatpush1.bf16.msra.mxu1 %v10585_v10  ;;  %v1839_v6 = vld [vmem:[#allocation8 + $0x1e88] sm:$0xff]  ;;  %v10673_v56 = vcombine.low %v1847_v37, %v1851_v54  ;;  %v10522_v10 = vcombine.high %v1695_v3, %v1699_v28  ;;  %v10521_v15 = vcombine.low %v1695_v3, %v1699_v28  ;;  %v1044_v3 = vld [vmem:[#allocation8 + $0x5b0] sm:$0xff] }
 0x2ec   :  { %7677 = vmatprep.subr.bf16.mxu0 %v10562_v49  ;;  %7714 = vmatprep.subr.bf16.mxu1 %v10706_v11  ;;  %v1843_v7 = vld [vmem:[#allocation8 + $0x1ea8] sm:$0xff]  ;;  %v9876_v37 = vcombine.high %v1048_v36, %v1052_v38 }
 0x2ed   :  { %v10666_v49 = vcombine.high %v1839_v6, %v1843_v7  ;;  %v1831_v11 = vld [vmem:[#allocation8 + $0x1e48] sm:$0xff] }
 0x2ee   :  { %v1835_v52 = vld [vmem:[#allocation8 + $0x1e68] sm:$0xff] }
 0x2ef   :  { %7678 = vmatpush2.bf16.msra.mxu0 %v10561_v23  ;;  %7715 = vmatpush2.bf16.msra.mxu1 %v10705_v25  ;;  %v10665_v23 = vcombine.low %v1839_v6, %v1843_v7  ;;  %v10658_v25 = vcombine.high %v1831_v11, %v1835_v52  ;;  %v1827_v29 = vld [vmem:[#allocation8 + $0x1e28] sm:$0xff]  ;;  %v10657_v20 = vcombine.low %v1831_v11, %v1835_v52  ;;  %v892_v11 = vld [vmem:[#allocation8 + $0xf0] sm:$0xff] }
 0x2f0   :  { %7679 = vmatprep.subr.bf16.mxu0 %v10554_v18  ;;  %7716 = vmatprep.subr.bf16.mxu1 %v10698_v9  ;;  %v9748_v18 = vcombine.high %v920_v12, %v924_v8  ;;  %v1823_v9 = vld [vmem:[#allocation8 + $0x1e08] sm:$0xff]  ;;  %v9875_v6 = vcombine.low %v1048_v36, %v1052_v38  ;;  %v1032_v52 = vld [vmem:[#allocation8 + $0x550] sm:$0xff] }
 0x2f3   :  { %7680 = vmatpush2.bf16.msra.mxu0 %v10553_v33  ;;  %7717 = vmatpush2.bf16.msra.mxu1 %v10697_v42  ;;  %v9747_v33 = vcombine.low %v920_v12, %v924_v8  ;;  %v10650_v42 = vcombine.high %v1823_v9, %v1827_v29  ;;  %v1036_v12 = vld [vmem:[#allocation8 + $0x570] sm:$0xff] }
 0x2f4   :  { %7681 = vmatprep.subr.bf16.mxu0 %v10546_v35  ;;  %7718 = vmatprep.subr.bf16.mxu1 %v10690_v63  ;;  %v904_v35 = vld [vmem:[#allocation8 + $0x150] sm:$0xff]  ;;  %v1902_v63 = vrot.slane %v11626_v51, %v11500_v22 }
 0x2f5   :  { %v9732_v47 = vcombine.high %v904_v35, %v908_v48 }
 0x2f6   :  { %v1942_v54 = vrot.slane %v1902_v63, %v11491_v16 }
 0x2f7   :  { %7682 = vmatpush2.bf16.msra.mxu0 %v10545_v39  ;;  %7719 = vmatpush2.bf16.msra.mxu1 %v10689_v40  ;;  %v1906_v40 = vrot.slane %v11626_v51, %v11505_v26  ;;  %v9731_v51 = vcombine.low %v904_v35, %v908_v48  ;;  %v1028_v35 = vld [vmem:[#allocation8 + $0x530] sm:$0xff]  ;;  %v9859_v48 = vcombine.low %v1032_v52, %v1036_v12 }
 0x2f8   :  { %7683 = vmatprep.subr.bf16.mxu0 %v10538_v41  ;;  %7720 = vmatprep.subr.bf16.mxu1 %v10682_v50  ;;  %v10649_v41 = vcombine.low %v1823_v9, %v1827_v29  ;;  %v9739_v50 = vcombine.low %v912_v31, %v916_v34  ;;  %v9860_v31 = vcombine.high %v1032_v52, %v1036_v12  ;;  %v880_v34 = vld [vmem:[#allocation8 + $0x90] sm:$0xff] }
 0x2f9   :  { %v1946_v28 = vrot.slane %v1906_v40, %v11491_v16  ;;  %v872_v40 = vld [vmem:[#allocation8 + $0x50] sm:$0xff] }
 0x2fb   :  { %7684 = vmatpush2.bf16.msra.mxu0 %v10537_v1  ;;  %7721 = vmatpush2.bf16.msra.mxu1 %v10681_v45  ;;  %v896_v1 = vld [vmem:[#allocation8 + $0x110] sm:$0xff] }
 0x2fc   :  { %7685 = vmatprep.subr.bf16.mxu0 %v10530_v55  ;;  %7722 = vmatprep.subr.bf16.mxu1 %v10674_v60  ;;  %v900_v45 = vld [vmem:[#allocation8 + $0x130] sm:$0xff] }
 0x2fd   :  { %v1040_v60 = vld [vmem:[#allocation8 + $0x590] sm:$0xff] }
 0x2ff   :  { %7686 = vmatpush2.bf16.msra.mxu0 %v10529_v4  ;;  %7723 = vmatpush2.bf16.msra.mxu1 %v10673_v56  ;;  %v9724_v4 = vcombine.high %v896_v1, %v900_v45  ;;  %v888_v56 = vld [vmem:[#allocation8 + $0xd0] sm:$0xff] }
 0x300   :  { %7687 = vmatprep.subr.bf16.mxu0 %v10522_v10  ;;  %7724 = vmatprep.subr.bf16.mxu1 %v10666_v49  ;;  %v9868_v49 = vcombine.high %v1040_v60, %v1044_v3  ;;  %v9716_v29 = vcombine.high %v888_v56, %v892_v11 }
 0x303   :  { %7688 = vmatpush2.bf16.msra.mxu0 %v10521_v15  ;;  %7725 = vmatpush2.bf16.msra.mxu1 %v10665_v23  ;;  %v9723_v15 = vcombine.low %v896_v1, %v900_v45  ;;  %v864_v45 = vld [vmem:[#allocation8 + $0x10] sm:$0xff] }
 0x304   :  { %7726 = vmatprep.subr.bf16.mxu1 %v10658_v25  ;;  %7739 = vmatprep.subr.bf16.mxu0 %v9748_v18  ;;  %v9867_v18 = vcombine.low %v1040_v60, %v1044_v3  ;;  %v1008_v60 = vld [vmem:[#allocation8 + $0x490] sm:$0xff] }
 0x305   :  { %v1012_v3 = vld [vmem:[#allocation8 + $0x4b0] sm:$0xff] }
 0x306   :  { %v7445_v39 = vpop.f32.mrf.mxu0  ;;  %7690 = vmatmul.mubr.bf16.vlgmr.msra.gmra.mxu0 %v11628_v61  ;;  %v9835_v52 = vcombine.low %v1008_v60, %v1012_v3 }
 0x307   :  { %7727 = vmatpush2.bf16.msra.mxu1 %v10657_v20  ;;  %7740 = vmatpush1.bf16.msra.mxu0 %v9747_v33  ;;  %v7446_v10 = vadd.f32 %v7445_v39, %v1942_v54  ;;  %v884_v33 = vld [vmem:[#allocation8 + $0xb0] sm:$0xff] }
 0x308   :  { %7771 = vmatprep.mubr.bf16.mxu0 %v11513_v43  ;;  %v7447_v62 = vpop.f32.mrf.mxu0  ;;  %7728 = vmatprep.subr.bf16.mxu1 %v10650_v42  ;;  %v1024_v42 = vld [vmem:[#allocation8 + $0x510] sm:$0xff]  ;;  %v9708_v38 = vcombine.high %v880_v34, %v884_v33 }
 0x309   :  { %7741 = vmatprep.subr.bf16.mxu0 %v9740_v19  ;;  %v7448_v23 = vadd.f32 %v7447_v62, %v1946_v28  ;;  %v9715_v19 = vcombine.low %v888_v56, %v892_v11  ;;  %v9852_v39 = vcombine.high %v1024_v42, %v1028_v35  ;;  %v1020_v62 = vld [vmem:[#allocation8 + $0x4f0] sm:$0xff] }
 0x30a   :  { %v7449_v55 = vpop.f32.mrf.mxu0  ;;  %v988_v56 = vld [vmem:[#allocation8 + $0x3f0] sm:$0xff] }
 0x30b   :  { %7729 = vmatpush2.bf16.msra.mxu1 %v10649_v41  ;;  %7742 = vmatpush1.bf16.msra.mxu0 %v9739_v50  ;;  %v876_v41 = vld [vmem:[#allocation8 + $0x70] sm:$0xff] }
 0x30c   :  { %v7450_v7 = vpop.f32.mrf.mxu0  ;;  %7743 = vmatprep.subr.bf16.mxu0 %v9732_v47  ;;  %7780 = vmatprep.subr.bf16.mxu1 %v9876_v37  ;;  %v1016_v50 = vld [vmem:[#allocation8 + $0x4d0] sm:$0xff]  ;;  %v9707_v47 = vcombine.low %v880_v34, %v884_v33  ;;  %v9851_v37 = vcombine.low %v1024_v42, %v1028_v35  ;;  %v9700_v54 = vcombine.high %v872_v40, %v876_v41 }
 0x30d   :  { %v9844_v1 = vcombine.high %v1016_v50, %v1020_v62  ;;  %v868_v55 = vld [vmem:[#allocation8 + $0x30] sm:$0xff]  ;;  %v9699_v28 = vcombine.low %v872_v40, %v876_v41  ;;  %v9836_v7 = vcombine.high %v1008_v60, %v1012_v3 }
 0x30e   :  { %v7486_v8 = vpop.f32.mrf.mxu1  ;;  %7731 = vmatmul.mubr.bf16.vlgmr.msra.gmra.mxu1 %v11639_v0  ;;  %v9691_v11 = vcombine.low %v864_v45, %v868_v55  ;;  %v968_v42 = vld [vmem:[#allocation8 + $0x350] sm:$0xff] }
 0x30f   :  { %v11686_v25 = vadd.f32 %v7486_v8, %v7446_v10  ;;  %7744 = vmatpush1.bf16.msra.mxu0 %v9731_v51  ;;  %7781 = vmatpush1.bf16.msra.mxu1 %v9875_v6  ;;  %v9843_v51 = vcombine.low %v1016_v50, %v1020_v62  ;;  %v9692_v6 = vcombine.high %v864_v45, %v868_v55  ;;  %v1000_v10 = vld [vmem:[#allocation8 + $0x450] sm:$0xff] }
 0x310   :  { %7812 = vmatprep.mubr.bf16.mxu1 %v11538_v13  ;;  %v7488_v9 = vpop.f32.mrf.mxu1  ;;  %7745 = vmatprep.subr.bf16.mxu0 %v9724_v4  ;;  %v984_v4 = vld [vmem:[#allocation8 + $0x3d0] sm:$0xff] }
 0x311   :  { %v11689_v20 = vadd.f32 %v7488_v9, %v7448_v23  ;;  %7782 = vmatprep.subr.bf16.mxu1 %v9868_v49  ;;  %v1004_v49 = vld [vmem:[#allocation8 + $0x470] sm:$0xff]  ;;  %v9812_v12 = vcombine.high %v984_v4, %v988_v56 }
 0x312   :  { %v7490_v63 = vpop.f32.mrf.mxu1  ;;  %v9828_v8 = vcombine.high %v1000_v10, %v1004_v49  ;;  %v980_v23 = vld [vmem:[#allocation8 + $0x3b0] sm:$0xff] }
 0x313   :  { %7746 = vmatpush1.bf16.msra.mxu0 %v9723_v15  ;;  %7783 = vmatpush1.bf16.msra.mxu1 %v9867_v18  ;;  %v976_v15 = vld [vmem:[#allocation8 + $0x390] sm:$0xff] }
 0x314   :  { %v7491_v36 = vpop.f32.mrf.mxu1  ;;  %7747 = vmatprep.subr.bf16.mxu0 %v9716_v29  ;;  %7784 = vmatprep.subr.bf16.mxu1 %v9860_v31  ;;  %v992_v18 = vld [vmem:[#allocation8 + $0x410] sm:$0xff]  ;;  %v9811_v29 = vcombine.low %v984_v4, %v988_v56  ;;  %v9827_v31 = vcombine.low %v1000_v10, %v1004_v49  ;;  %v9804_v34 = vcombine.high %v976_v15, %v980_v23 }
 0x315   :  { %v996_v9 = vld [vmem:[#allocation8 + $0x430] sm:$0xff] }
 0x316   :  { %v9820_v33 = vcombine.high %v992_v18, %v996_v9  ;;  %v972_v35 = vld [vmem:[#allocation8 + $0x370] sm:$0xff]  ;;  %v9819_v36 = vcombine.low %v992_v18, %v996_v9 }
 0x317   :  { %7748 = vmatpush1.bf16.msra.mxu0 %v9715_v19  ;;  %7785 = vmatpush1.bf16.msra.mxu1 %v9859_v48  ;;  %v1112_v63 = vld [vmem:[#allocation8 + $0x7d0] sm:$0xff]  ;;  %v9803_v48 = vcombine.low %v976_v15, %v980_v23 }
 0x318   :  { %7749 = vmatprep.subr.bf16.mxu0 %v9708_v38  ;;  %7786 = vmatprep.subr.bf16.mxu1 %v9852_v39  ;;  %v1116_v19 = vld [vmem:[#allocation8 + $0x7f0] sm:$0xff]  ;;  %v9796_v38 = vcombine.high %v968_v42, %v972_v35 }
 0x319   :  { %v9940_v39 = vcombine.high %v1112_v63, %v1116_v19  ;;  %v960_v40 = vld [vmem:[#allocation8 + $0x310] sm:$0xff] }
 0x31a   :  { %v964_v41 = vld [vmem:[#allocation8 + $0x330] sm:$0xff] }
 0x31b   :  { %7750 = vmatpush1.bf16.msra.mxu0 %v9707_v47  ;;  %7787 = vmatpush1.bf16.msra.mxu1 %v9851_v37  ;;  %v1104_v50 = vld [vmem:[#allocation8 + $0x790] sm:$0xff]  ;;  %v9795_v47 = vcombine.low %v968_v42, %v972_v35  ;;  %v9939_v37 = vcombine.low %v1112_v63, %v1116_v19 }
 0x31c   :  { %7751 = vmatprep.subr.bf16.mxu0 %v9700_v54  ;;  %7788 = vmatprep.subr.bf16.mxu1 %v9844_v1  ;;  %v1108_v62 = vld [vmem:[#allocation8 + $0x7b0] sm:$0xff]  ;;  %v9788_v54 = vcombine.high %v960_v40, %v964_v41 }
 0x31d   :  { %v9932_v1 = vcombine.high %v1104_v50, %v1108_v62  ;;  %v952_v45 = vld [vmem:[#allocation8 + $0x2d0] sm:$0xff] }
 0x31e   :  { %v956_v55 = vld [vmem:[#allocation8 + $0x2f0] sm:$0xff] }
 0x31f   :  { %7752 = vmatpush1.bf16.msra.mxu0 %v9699_v28  ;;  %7789 = vmatpush1.bf16.msra.mxu1 %v9843_v51  ;;  %v1096_v60 = vld [vmem:[#allocation8 + $0x750] sm:$0xff]  ;;  %v9787_v28 = vcombine.low %v960_v40, %v964_v41  ;;  %v9931_v51 = vcombine.low %v1104_v50, %v1108_v62 }
 0x320   :  { %7753 = vmatprep.subr.bf16.mxu0 %v9692_v6  ;;  %7790 = vmatprep.subr.bf16.mxu1 %v9836_v7  ;;  %v1100_v3 = vld [vmem:[#allocation8 + $0x770] sm:$0xff]  ;;  %v9780_v6 = vcombine.high %v952_v45, %v956_v55 }
 0x321   :  { %v9924_v7 = vcombine.high %v1096_v60, %v1100_v3  ;;  %v944_v4 = vld [vmem:[#allocation8 + $0x290] sm:$0xff] }
 0x322   :  { %v948_v56 = vld [vmem:[#allocation8 + $0x2b0] sm:$0xff] }
 0x323   :  { %7754 = vmatpush1.bf16.msra.mxu0 %v9691_v11  ;;  %7791 = vmatpush1.bf16.msra.mxu1 %v9835_v52  ;;  %v1088_v10 = vld [vmem:[#allocation8 + $0x710] sm:$0xff]  ;;  %v9779_v11 = vcombine.low %v952_v45, %v956_v55  ;;  %v9923_v52 = vcombine.low %v1096_v60, %v1100_v3 }
 0x324   :  { %7755 = vmatprep.subr.bf16.mxu0 %v9812_v12  ;;  %7792 = vmatprep.subr.bf16.mxu1 %v9828_v8  ;;  %v1092_v49 = vld [vmem:[#allocation8 + $0x730] sm:$0xff]  ;;  %v9772_v12 = vcombine.high %v944_v4, %v948_v56 }
 0x325   :  { %v9916_v8 = vcombine.high %v1088_v10, %v1092_v49  ;;  %v936_v15 = vld [vmem:[#allocation8 + $0x250] sm:$0xff] }
 0x326   :  { %v940_v23 = vld [vmem:[#allocation8 + $0x270] sm:$0xff] }
 0x327   :  { %7756 = vmatpush2.bf16.msra.mxu0 %v9811_v29  ;;  %7793 = vmatpush1.bf16.msra.mxu1 %v9827_v31  ;;  %v1080_v18 = vld [vmem:[#allocation8 + $0x6d0] sm:$0xff]  ;;  %v9771_v29 = vcombine.low %v944_v4, %v948_v56  ;;  %v9915_v31 = vcombine.low %v1088_v10, %v1092_v49 }
 0x328   :  { %7757 = vmatprep.subr.bf16.mxu0 %v9804_v34  ;;  %7794 = vmatprep.subr.bf16.mxu1 %v9820_v33  ;;  %v1084_v9 = vld [vmem:[#allocation8 + $0x6f0] sm:$0xff]  ;;  %v9764_v34 = vcombine.high %v936_v15, %v940_v23 }
 0x329   :  { %v9908_v33 = vcombine.high %v1080_v18, %v1084_v9  ;;  %v928_v42 = vld [vmem:[#allocation8 + $0x210] sm:$0xff] }
 0x32a   :  { %v932_v35 = vld [vmem:[#allocation8 + $0x230] sm:$0xff] }
 0x32b   :  { %7758 = vmatpush2.bf16.msra.mxu0 %v9803_v48  ;;  %7795 = vmatpush1.bf16.msra.mxu1 %v9819_v36  ;;  %v1072_v63 = vld [vmem:[#allocation8 + $0x690] sm:$0xff]  ;;  %v9763_v48 = vcombine.low %v936_v15, %v940_v23  ;;  %v9907_v36 = vcombine.low %v1080_v18, %v1084_v9 }
 0x32c   :  { %7759 = vmatprep.subr.bf16.mxu0 %v9796_v38  ;;  %7796 = vmatprep.subr.bf16.mxu1 %v9940_v39  ;;  %v1076_v19 = vld [vmem:[#allocation8 + $0x6b0] sm:$0xff]  ;;  %v9756_v38 = vcombine.high %v928_v42, %v932_v35 }
 0x32d   :  { %v9900_v39 = vcombine.high %v1072_v63, %v1076_v19  ;;  %v1064_v40 = vld [vmem:[#allocation8 + $0x650] sm:$0xff] }
 0x32e   :  { %v1068_v41 = vld [vmem:[#allocation8 + $0x670] sm:$0xff] }
 0x32f   :  { %7760 = vmatpush2.bf16.msra.mxu0 %v9795_v47  ;;  %7797 = vmatpush2.bf16.msra.mxu1 %v9939_v37  ;;  %v1176_v50 = vld [vmem:[#allocation8 + $0x9d0] sm:$0xff]  ;;  %v9755_v47 = vcombine.low %v928_v42, %v932_v35  ;;  %v9899_v37 = vcombine.low %v1072_v63, %v1076_v19 }
 0x330   :  { %7761 = vmatprep.subr.bf16.mxu0 %v9788_v54  ;;  %7798 = vmatprep.subr.bf16.mxu1 %v9932_v1  ;;  %v1180_v62 = vld [vmem:[#allocation8 + $0x9f0] sm:$0xff]  ;;  %v9892_v54 = vcombine.high %v1064_v40, %v1068_v41 }
 0x331   :  { %v10004_v1 = vcombine.high %v1176_v50, %v1180_v62  ;;  %v1056_v45 = vld [vmem:[#allocation8 + $0x610] sm:$0xff] }
 0x332   :  { %v1060_v55 = vld [vmem:[#allocation8 + $0x630] sm:$0xff] }
 0x333   :  { %7762 = vmatpush2.bf16.msra.mxu0 %v9787_v28  ;;  %7799 = vmatpush2.bf16.msra.mxu1 %v9931_v51  ;;  %v1168_v60 = vld [vmem:[#allocation8 + $0x990] sm:$0xff]  ;;  %v9891_v28 = vcombine.low %v1064_v40, %v1068_v41  ;;  %v10003_v51 = vcombine.low %v1176_v50, %v1180_v62 }
 0x334   :  { %7763 = vmatprep.subr.bf16.mxu0 %v9780_v6  ;;  %7800 = vmatprep.subr.bf16.mxu1 %v9924_v7  ;;  %v1172_v3 = vld [vmem:[#allocation8 + $0x9b0] sm:$0xff]  ;;  %v9884_v6 = vcombine.high %v1056_v45, %v1060_v55 }
 0x335   :  { %v1160_v7 = vld [vmem:[#allocation8 + $0x950] sm:$0xff]  ;;  %v9996_v4 = vcombine.high %v1168_v60, %v1172_v3 }
 0x336   :  { %v1164_v56 = vld [vmem:[#allocation8 + $0x970] sm:$0xff] }
 0x337   :  { %7764 = vmatpush2.bf16.msra.mxu0 %v9779_v11  ;;  %7801 = vmatpush2.bf16.msra.mxu1 %v9923_v52  ;;  %v1304_v10 = vld [vmem:[#allocation8 + $0xdd0] sm:$0xff]  ;;  %v9988_v23 = vcombine.high %v1160_v7, %v1164_v56 }
 0x338   :  { %7765 = vmatprep.subr.bf16.mxu0 %v9772_v12  ;;  %7802 = vmatprep.subr.bf16.mxu1 %v9916_v8  ;;  %v1308_v49 = vld [vmem:[#allocation8 + $0xdf0] sm:$0xff]  ;;  %v9883_v12 = vcombine.low %v1056_v45, %v1060_v55  ;;  %v9995_v8 = vcombine.low %v1168_v60, %v1172_v3 }
 0x339   :  { %v10132_v18 = vcombine.high %v1304_v10, %v1308_v49  ;;  %v1300_v42 = vld [vmem:[#allocation8 + $0xdb0] sm:$0xff]  ;;  %v10131_v35 = vcombine.low %v1304_v10, %v1308_v49 }
 0x33a   :  { %v1292_v40 = vld [vmem:[#allocation8 + $0xd70] sm:$0xff] }
 0x33b   :  { %7766 = vmatpush2.bf16.msra.mxu0 %v9771_v29  ;;  %7803 = vmatpush2.bf16.msra.mxu1 %v9915_v31  ;;  %v1152_v29 = vld [vmem:[#allocation8 + $0x910] sm:$0xff] }
 0x33c   :  { %7767 = vmatprep.subr.bf16.mxu0 %v9764_v34  ;;  %7804 = vmatprep.subr.bf16.mxu1 %v9908_v33  ;;  %v1156_v31 = vld [vmem:[#allocation8 + $0x930] sm:$0xff] }
 0x33d   :  { %v1296_v33 = vld [vmem:[#allocation8 + $0xd90] sm:$0xff]  ;;  %v9980_v19 = vcombine.high %v1152_v29, %v1156_v31  ;;  %v9979_v50 = vcombine.low %v1152_v29, %v1156_v31 }
 0x33e   :  { %v10123_v62 = vcombine.low %v1296_v33, %v1300_v42  ;;  %v1140_v55 = vld [vmem:[#allocation8 + $0x8b0] sm:$0xff] }
 0x33f   :  { %7768 = vmatpush2.bf16.msra.mxu0 %v9763_v48  ;;  %7805 = vmatpush2.bf16.msra.mxu1 %v9907_v36  ;;  %v1144_v48 = vld [vmem:[#allocation8 + $0x8d0] sm:$0xff]  ;;  %v10124_v36 = vcombine.high %v1296_v33, %v1300_v42 }
 0x340   :  { %7769 = vmatprep.subr.bf16.mxu0 %v9756_v38  ;;  %7806 = vmatprep.subr.bf16.mxu1 %v9900_v39  ;;  %v1148_v38 = vld [vmem:[#allocation8 + $0x8f0] sm:$0xff] }
 0x341   :  { %v1288_v39 = vld [vmem:[#allocation8 + $0xd50] sm:$0xff] }
 0x342   :  { %v1280_v60 = vld [vmem:[#allocation8 + $0xd10] sm:$0xff] }
 0x343   :  { %7770 = vmatpush2.bf16.msra.mxu0 %v9755_v47  ;;  %7807 = vmatpush2.bf16.msra.mxu1 %v9899_v37  ;;  %v9972_v37 = vcombine.high %v1144_v48, %v1148_v38  ;;  %v1284_v3 = vld [vmem:[#allocation8 + $0xd30] sm:$0xff] }
 0x344   :  { %7808 = vmatprep.subr.bf16.mxu1 %v9892_v54  ;;  %7821 = vmatprep.subr.bf16.mxu0 %v10004_v1  ;;  %v10116_v54 = vcombine.high %v1288_v39, %v1292_v40  ;;  %v1136_v1 = vld [vmem:[#allocation8 + $0x890] sm:$0xff] }
 0x345   :  { %v1128_v10 = vld [vmem:[#allocation8 + $0x850] sm:$0xff] }
 0x346   :  { %v7527_v11 = vpop.f32.mrf.mxu0  ;;  %7772 = vmatmul.mubr.bf16.vlgmr.msra.gmra.mxu0 %v11516_v24  ;;  %v1132_v49 = vld [vmem:[#allocation8 + $0x870] sm:$0xff] }
 0x347   :  { %v7528_v52 = vadd.f32 %v7527_v11, %v11686_v25  ;;  %7809 = vmatpush2.bf16.msra.mxu1 %v9891_v28  ;;  %7822 = vmatpush1.bf16.msra.mxu0 %v10003_v51  ;;  %v9987_v25 = vcombine.low %v1160_v7, %v1164_v56  ;;  %v9971_v51 = vcombine.low %v1144_v48, %v1148_v38  ;;  %v1272_v11 = vld [vmem:[#allocation8 + $0xcd0] sm:$0xff] }
 0x348   :  { %7853 = vmatprep.mubr.bf16.mxu0 %v11520_v57  ;;  %v7529_v15 = vpop.f32.mrf.mxu0  ;;  %7810 = vmatprep.subr.bf16.mxu1 %v9884_v6  ;;  %v10115_v6 = vcombine.low %v1288_v39, %v1292_v40  ;;  %v10108_v56 = vcombine.high %v1280_v60, %v1284_v3  ;;  %v1264_v29 = vld [vmem:[#allocation8 + $0xc90] sm:$0xff] }
 0x349   :  { %v7530_v9 = vadd.f32 %v7529_v15, %v11689_v20  ;;  %7823 = vmatprep.subr.bf16.mxu0 %v9996_v4  ;;  %v9964_v4 = vcombine.high %v1136_v1, %v1140_v55  ;;  %v9956_v15 = vcombine.high %v1128_v10, %v1132_v49  ;;  %v1268_v31 = vld [vmem:[#allocation8 + $0xcb0] sm:$0xff] }
 0x34a   :  { %v7531_v34 = vpop.f32.mrf.mxu0  ;;  %v1260_v48 = vld [vmem:[#allocation8 + $0xc70] sm:$0xff]  ;;  %v10091_v38 = vcombine.low %v1264_v29, %v1268_v31 }
 0x34b   :  { %7811 = vmatpush2.bf16.msra.mxu1 %v9883_v12  ;;  %7824 = vmatpush1.bf16.msra.mxu0 %v9995_v8  ;;  %v9963_v12 = vcombine.low %v1136_v1, %v1140_v55  ;;  %v10107_v8 = vcombine.low %v1280_v60, %v1284_v3  ;;  %v9955_v34 = vcombine.low %v1128_v10, %v1132_v49  ;;  %v1224_v60 = vld [vmem:[#allocation8 + $0xb50] sm:$0xff] }
 0x34c   :  { %v7532_v63 = vpop.f32.mrf.mxu0  ;;  %7825 = vmatprep.subr.bf16.mxu0 %v9988_v23  ;;  %7862 = vmatprep.subr.bf16.mxu1 %v10132_v18  ;;  %v1120_v18 = vld [vmem:[#allocation8 + $0x810] sm:$0xff] }
 0x34d   :  { %v1244_v63 = vld [vmem:[#allocation8 + $0xbf0] sm:$0xff] }
 0x34e   :  { %v7568_v20 = vpop.f32.mrf.mxu1  ;;  %7813 = vmatmul.mubr.bf16.vlgmr.msra.gmra.mxu1 %v11543_v21  ;;  %v1228_v3 = vld [vmem:[#allocation8 + $0xb70] sm:$0xff] }
 0x34f   :  { %v11696_v41 = vadd.f32 %v7568_v20, %v7528_v52  ;;  %7826 = vmatpush1.bf16.msra.mxu0 %v9987_v25  ;;  %7863 = vmatpush1.bf16.msra.mxu1 %v10131_v35  ;;  %v1276_v52 = vld [vmem:[#allocation8 + $0xcf0] sm:$0xff]  ;;  %v10092_v25 = vcombine.high %v1264_v29, %v1268_v31 }
 0x350   :  { %7894 = vmatprep.mubr.bf16.mxu1 %v11561_v58  ;;  %v7570_v47 = vpop.f32.mrf.mxu1  ;;  %7827 = vmatprep.subr.bf16.mxu0 %v9980_v19  ;;  %v10100_v23 = vcombine.high %v1272_v11, %v1276_v52  ;;  %v10099_v33 = vcombine.low %v1272_v11, %v1276_v52  ;;  %v1240_v35 = vld [vmem:[#allocation8 + $0xbd0] sm:$0xff] }
 0x351   :  { %v11699_v45 = vadd.f32 %v7570_v47, %v7530_v9  ;;  %7864 = vmatprep.subr.bf16.mxu1 %v10124_v36  ;;  %v1124_v9 = vld [vmem:[#allocation8 + $0x830] sm:$0xff]  ;;  %v10068_v39 = vcombine.high %v1240_v35, %v1244_v63 }
 0x352   :  { %v7572_v28 = vpop.f32.mrf.mxu1  ;;  %v9948_v42 = vcombine.high %v1120_v18, %v1124_v9  ;;  %v1256_v19 = vld [vmem:[#allocation8 + $0xc50] sm:$0xff]  ;;  %v9947_v36 = vcombine.low %v1120_v18, %v1124_v9 }
 0x353   :  { %7828 = vmatpush1.bf16.msra.mxu0 %v9979_v50  ;;  %7865 = vmatpush1.bf16.msra.mxu1 %v10123_v62  ;;  %v10084_v40 = vcombine.high %v1256_v19, %v1260_v48  ;;  %v1232_v20 = vld [vmem:[#allocation8 + $0xb90] sm:$0xff] }
 0x354   :  { %v7573_v7 = vpop.f32.mrf.mxu1  ;;  %7829 = vmatprep.subr.bf16.mxu0 %v9972_v37  ;;  %7866 = vmatprep.subr.bf16.mxu1 %v10116_v54  ;;  %v1236_v50 = vld [vmem:[#allocation8 + $0xbb0] sm:$0xff]  ;;  %v10067_v37 = vcombine.low %v1240_v35, %v1244_v63  ;;  %v10083_v54 = vcombine.low %v1256_v19, %v1260_v48 }
 0x355   :  { %v1248_v62 = vld [vmem:[#allocation8 + $0xc10] sm:$0xff]  ;;  %v10060_v1 = vcombine.high %v1232_v20, %v1236_v50 }
 0x356   :  { %v1252_v47 = vld [vmem:[#allocation8 + $0xc30] sm:$0xff] }
 0x357   :  { %7830 = vmatpush1.bf16.msra.mxu0 %v9971_v51  ;;  %7867 = vmatpush1.bf16.msra.mxu1 %v10115_v6  ;;  %v10076_v55 = vcombine.high %v1248_v62, %v1252_v47  ;;  %v1368_v28 = vld [vmem:[#allocation8 + $0xfd0] sm:$0xff]  ;;  %v10059_v6 = vcombine.low %v1232_v20, %v1236_v50  ;;  %v10075_v7 = vcombine.low %v1248_v62, %v1252_v47 }
 0x358   :  { %7831 = vmatprep.subr.bf16.mxu0 %v9964_v4  ;;  %7868 = vmatprep.subr.bf16.mxu1 %v10108_v56  ;;  %v1372_v51 = vld [vmem:[#allocation8 + $0xff0] sm:$0xff]  ;;  %v10052_v4 = vcombine.high %v1224_v60, %v1228_v3 }
 0x359   :  { %v10196_v56 = vcombine.high %v1368_v28, %v1372_v51  ;;  %v1216_v10 = vld [vmem:[#allocation8 + $0xb10] sm:$0xff] }
 0x35a   :  { %v1220_v49 = vld [vmem:[#allocation8 + $0xb30] sm:$0xff] }
 0x35b   :  { %7832 = vmatpush1.bf16.msra.mxu0 %v9963_v12  ;;  %7869 = vmatpush1.bf16.msra.mxu1 %v10107_v8  ;;  %v1360_v11 = vld [vmem:[#allocation8 + $0xf90] sm:$0xff]  ;;  %v10051_v12 = vcombine.low %v1224_v60, %v1228_v3  ;;  %v10195_v8 = vcombine.low %v1368_v28, %v1372_v51 }
 0x35c   :  { %7833 = vmatprep.subr.bf16.mxu0 %v9956_v15  ;;  %7870 = vmatprep.subr.bf16.mxu1 %v10100_v23  ;;  %v1364_v52 = vld [vmem:[#allocation8 + $0xfb0] sm:$0xff]  ;;  %v10044_v15 = vcombine.high %v1216_v10, %v1220_v49 }
 0x35d   :  { %v10188_v23 = vcombine.high %v1360_v11, %v1364_v52  ;;  %v1208_v18 = vld [vmem:[#allocation8 + $0xad0] sm:$0xff] }
 0x35e   :  { %v1212_v9 = vld [vmem:[#allocation8 + $0xaf0] sm:$0xff] }
 0x35f   :  { %7834 = vmatpush1.bf16.msra.mxu0 %v9955_v34  ;;  %7871 = vmatpush1.bf16.msra.mxu1 %v10099_v33  ;;  %v1352_v29 = vld [vmem:[#allocation8 + $0xf50] sm:$0xff]  ;;  %v10043_v34 = vcombine.low %v1216_v10, %v1220_v49  ;;  %v10187_v33 = vcombine.low %v1360_v11, %v1364_v52 }
 0x360   :  { %7835 = vmatprep.subr.bf16.mxu0 %v9948_v42  ;;  %7872 = vmatprep.subr.bf16.mxu1 %v10092_v25  ;;  %v1356_v31 = vld [vmem:[#allocation8 + $0xf70] sm:$0xff]  ;;  %v10036_v42 = vcombine.high %v1208_v18, %v1212_v9 }
 0x361   :  { %v10180_v25 = vcombine.high %v1352_v29, %v1356_v31  ;;  %v1200_v35 = vld [vmem:[#allocation8 + $0xa90] sm:$0xff] }
 0x362   :  { %v1204_v63 = vld [vmem:[#allocation8 + $0xab0] sm:$0xff] }
 0x363   :  { %7836 = vmatpush1.bf16.msra.mxu0 %v9947_v36  ;;  %7873 = vmatpush1.bf16.msra.mxu1 %v10091_v38  ;;  %v1344_v19 = vld [vmem:[#allocation8 + $0xf10] sm:$0xff]  ;;  %v10035_v36 = vcombine.low %v1208_v18, %v1212_v9  ;;  %v10179_v38 = vcombine.low %v1352_v29, %v1356_v31 }
 0x364   :  { %7837 = vmatprep.subr.bf16.mxu0 %v10068_v39  ;;  %7874 = vmatprep.subr.bf16.mxu1 %v10084_v40  ;;  %v1348_v48 = vld [vmem:[#allocation8 + $0xf30] sm:$0xff]  ;;  %v10028_v39 = vcombine.high %v1200_v35, %v1204_v63 }
 0x365   :  { %v10172_v40 = vcombine.high %v1344_v19, %v1348_v48  ;;  %v1192_v20 = vld [vmem:[#allocation8 + $0xa50] sm:$0xff] }
 0x366   :  { %v1196_v50 = vld [vmem:[#allocation8 + $0xa70] sm:$0xff] }
 0x367   :  { %7838 = vmatpush2.bf16.msra.mxu0 %v10067_v37  ;;  %7875 = vmatpush1.bf16.msra.mxu1 %v10083_v54  ;;  %v1336_v62 = vld [vmem:[#allocation8 + $0xed0] sm:$0xff]  ;;  %v10027_v37 = vcombine.low %v1200_v35, %v1204_v63  ;;  %v10171_v54 = vcombine.low %v1344_v19, %v1348_v48 }
 0x368   :  { %7839 = vmatprep.subr.bf16.mxu0 %v10060_v1  ;;  %7876 = vmatprep.subr.bf16.mxu1 %v10076_v55  ;;  %v1340_v47 = vld [vmem:[#allocation8 + $0xef0] sm:$0xff]  ;;  %v10020_v1 = vcombine.high %v1192_v20, %v1196_v50 }
 0x369   :  { %v10164_v55 = vcombine.high %v1336_v62, %v1340_v47  ;;  %v1184_v60 = vld [vmem:[#allocation8 + $0xa10] sm:$0xff] }
 0x36a   :  { %v1188_v3 = vld [vmem:[#allocation8 + $0xa30] sm:$0xff] }
 0x36b   :  { %7840 = vmatpush2.bf16.msra.mxu0 %v10059_v6  ;;  %7877 = vmatpush1.bf16.msra.mxu1 %v10075_v7  ;;  %v1328_v28 = vld [vmem:[#allocation8 + $0xe90] sm:$0xff]  ;;  %v10019_v6 = vcombine.low %v1192_v20, %v1196_v50  ;;  %v10163_v7 = vcombine.low %v1336_v62, %v1340_v47 }
 0x36c   :  { %7841 = vmatprep.subr.bf16.mxu0 %v10052_v4  ;;  %7878 = vmatprep.subr.bf16.mxu1 %v10196_v56  ;;  %v1332_v51 = vld [vmem:[#allocation8 + $0xeb0] sm:$0xff]  ;;  %v10012_v4 = vcombine.high %v1184_v60, %v1188_v3 }
 0x36d   :  { %v10156_v56 = vcombine.high %v1328_v28, %v1332_v51  ;;  %v1320_v10 = vld [vmem:[#allocation8 + $0xe50] sm:$0xff] }
 0x36e   :  { %v1324_v49 = vld [vmem:[#allocation8 + $0xe70] sm:$0xff] }
 0x36f   :  { %7842 = vmatpush2.bf16.msra.mxu0 %v10051_v12  ;;  %7879 = vmatpush2.bf16.msra.mxu1 %v10195_v8  ;;  %v1432_v11 = vld [vmem:[#allocation8 + $0x11d0] sm:$0xff]  ;;  %v10011_v12 = vcombine.low %v1184_v60, %v1188_v3  ;;  %v10155_v8 = vcombine.low %v1328_v28, %v1332_v51 }
 0x370   :  { %7843 = vmatprep.subr.bf16.mxu0 %v10044_v15  ;;  %7880 = vmatprep.subr.bf16.mxu1 %v10188_v23  ;;  %v1436_v52 = vld [vmem:[#allocation8 + $0x11f0] sm:$0xff]  ;;  %v10148_v15 = vcombine.high %v1320_v10, %v1324_v49 }
 0x371   :  { %v10260_v23 = vcombine.high %v1432_v11, %v1436_v52  ;;  %v1312_v18 = vld [vmem:[#allocation8 + $0xe10] sm:$0xff] }
 0x372   :  { %v1316_v9 = vld [vmem:[#allocation8 + $0xe30] sm:$0xff] }
 0x373   :  { %7844 = vmatpush2.bf16.msra.mxu0 %v10043_v34  ;;  %7881 = vmatpush2.bf16.msra.mxu1 %v10187_v33  ;;  %v1424_v29 = vld [vmem:[#allocation8 + $0x1190] sm:$0xff]  ;;  %v10147_v34 = vcombine.low %v1320_v10, %v1324_v49  ;;  %v10259_v33 = vcombine.low %v1432_v11, %v1436_v52 }
 0x374   :  { %7845 = vmatprep.subr.bf16.mxu0 %v10036_v42  ;;  %7882 = vmatprep.subr.bf16.mxu1 %v10180_v25  ;;  %v1428_v31 = vld [vmem:[#allocation8 + $0x11b0] sm:$0xff]  ;;  %v10140_v42 = vcombine.high %v1312_v18, %v1316_v9 }
 0x375   :  { %v1416_v25 = vld [vmem:[#allocation8 + $0x1150] sm:$0xff]  ;;  %v10252_v35 = vcombine.high %v1424_v29, %v1428_v31 }
 0x376   :  { %v1420_v63 = vld [vmem:[#allocation8 + $0x1170] sm:$0xff] }
 0x377   :  { %7846 = vmatpush2.bf16.msra.mxu0 %v10035_v36  ;;  %7883 = vmatpush2.bf16.msra.mxu1 %v10179_v38  ;;  %v1560_v19 = vld [vmem:[#allocation8 + $0x15d0] sm:$0xff]  ;;  %v10244_v50 = vcombine.high %v1416_v25, %v1420_v63 }
 0x378   :  { %7847 = vmatprep.subr.bf16.mxu0 %v10028_v39  ;;  %7884 = vmatprep.subr.bf16.mxu1 %v10172_v40  ;;  %v1564_v48 = vld [vmem:[#allocation8 + $0x15f0] sm:$0xff]  ;;  %v10139_v39 = vcombine.low %v1312_v18, %v1316_v9  ;;  %v10251_v40 = vcombine.low %v1424_v29, %v1428_v31 }
 0x379   :  { %v10388_v62 = vcombine.high %v1560_v19, %v1564_v48  ;;  %v1556_v60 = vld [vmem:[#allocation8 + $0x15b0] sm:$0xff]  ;;  %v10387_v3 = vcombine.low %v1560_v19, %v1564_v48 }
 0x37a   :  { %v1548_v10 = vld [vmem:[#allocation8 + $0x1570] sm:$0xff] }
 0x37b   :  { %7848 = vmatpush2.bf16.msra.mxu0 %v10027_v37  ;;  %7885 = vmatpush2.bf16.msra.mxu1 %v10171_v54  ;;  %v1408_v37 = vld [vmem:[#allocation8 + $0x1110] sm:$0xff] }
 0x37c   :  { %7849 = vmatprep.subr.bf16.mxu0 %v10020_v1  ;;  %7886 = vmatprep.subr.bf16.mxu1 %v10164_v55  ;;  %v1412_v54 = vld [vmem:[#allocation8 + $0x1130] sm:$0xff] }
 0x37d   :  { %v1552_v55 = vld [vmem:[#allocation8 + $0x1590] sm:$0xff]  ;;  %v10236_v51 = vcombine.high %v1408_v37, %v1412_v54  ;;  %v10235_v11 = vcombine.low %v1408_v37, %v1412_v54 }
 0x37e   :  { %v10379_v52 = vcombine.low %v1552_v55, %v1556_v60  ;;  %v1396_v9 = vld [vmem:[#allocation8 + $0x10b0] sm:$0xff] }
 0x37f   :  { %7850 = vmatpush2.bf16.msra.mxu0 %v10019_v6  ;;  %7887 = vmatpush2.bf16.msra.mxu1 %v10163_v7  ;;  %v1400_v6 = vld [vmem:[#allocation8 + $0x10d0] sm:$0xff]  ;;  %v10380_v7 = vcombine.high %v1552_v55, %v1556_v60 }
 0x380   :  { %7851 = vmatprep.subr.bf16.mxu0 %v10012_v4  ;;  %7888 = vmatprep.subr.bf16.mxu1 %v10156_v56  ;;  %v1404_v4 = vld [vmem:[#allocation8 + $0x10f0] sm:$0xff] }
 0x381   :  { %v1544_v56 = vld [vmem:[#allocation8 + $0x1550] sm:$0xff] }
 0x382   :  { %v1536_v29 = vld [vmem:[#allocation8 + $0x1510] sm:$0xff] }
 0x383   :  { %7852 = vmatpush2.bf16.msra.mxu0 %v10011_v12  ;;  %7889 = vmatpush2.bf16.msra.mxu1 %v10155_v8  ;;  %v10228_v8 = vcombine.high %v1400_v6, %v1404_v4  ;;  %v1540_v31 = vld [vmem:[#allocation8 + $0x1530] sm:$0xff] }
 0x384   :  { %7890 = vmatprep.subr.bf16.mxu1 %v10148_v15  ;;  %7903 = vmatprep.subr.bf16.mxu0 %v10260_v23  ;;  %v10372_v15 = vcombine.high %v1544_v56, %v1548_v10  ;;  %v1392_v23 = vld [vmem:[#allocation8 + $0x1090] sm:$0xff] }
 0x385   :  { %v1384_v19 = vld [vmem:[#allocation8 + $0x1050] sm:$0xff] }
 0x386   :  { %v7609_v36 = vpop.f32.mrf.mxu0  ;;  %7854 = vmatmul.mubr.bf16.vlgmr.msra.gmra.mxu0 %v11592_v44  ;;  %v1388_v48 = vld [vmem:[#allocation8 + $0x1070] sm:$0xff] }
 0x387   :  { %v7610_v38 = vadd.f32 %v7609_v36, %v11696_v41  ;;  %7891 = vmatpush2.bf16.msra.mxu1 %v10147_v34  ;;  %7904 = vmatpush1.bf16.msra.mxu0 %v10259_v33  ;;  %v10243_v41 = vcombine.low %v1416_v25, %v1420_v63  ;;  %v10227_v33 = vcombine.low %v1400_v6, %v1404_v4  ;;  %v1528_v36 = vld [vmem:[#allocation8 + $0x14d0] sm:$0xff] }
 0x388   :  { %7935 = vmatprep.mubr.bf16.mxu0 %v11595_v59  ;;  %v7611_v20 = vpop.f32.mrf.mxu0  ;;  %7892 = vmatprep.subr.bf16.mxu1 %v10140_v42  ;;  %v10371_v42 = vcombine.low %v1544_v56, %v1548_v10  ;;  %v10364_v63 = vcombine.high %v1536_v29, %v1540_v31  ;;  %v1520_v37 = vld [vmem:[#allocation8 + $0x1490] sm:$0xff] }
 0x389   :  { %v7612_v47 = vadd.f32 %v7611_v20, %v11699_v45  ;;  %7905 = vmatprep.subr.bf16.mxu0 %v10252_v35  ;;  %v10220_v35 = vcombine.high %v1392_v23, %v1396_v9  ;;  %v10212_v20 = vcombine.high %v1384_v19, %v1388_v48  ;;  %v1524_v54 = vld [vmem:[#allocation8 + $0x14b0] sm:$0xff] }
 0x38a   :  { %v7613_v1 = vpop.f32.mrf.mxu0  ;;  %v1516_v6 = vld [vmem:[#allocation8 + $0x1470] sm:$0xff]  ;;  %v10347_v4 = vcombine.low %v1520_v37, %v1524_v54 }
 0x38b   :  { %7893 = vmatpush2.bf16.msra.mxu1 %v10139_v39  ;;  %7906 = vmatpush1.bf16.msra.mxu0 %v10251_v40  ;;  %v10219_v39 = vcombine.low %v1392_v23, %v1396_v9  ;;  %v10363_v40 = vcombine.low %v1536_v29, %v1540_v31  ;;  %v10211_v1 = vcombine.low %v1384_v19, %v1388_v48  ;;  %v1480_v29 = vld [vmem:[#allocation8 + $0x1350] sm:$0xff] }
 0x38c   :  { %v7614_v28 = vpop.f32.mrf.mxu0  ;;  %7907 = vmatprep.subr.bf16.mxu0 %v10244_v50  ;;  %7944 = vmatprep.subr.bf16.mxu1 %v10388_v62  ;;  %v1376_v62 = vld [vmem:[#allocation8 + $0x1010] sm:$0xff] }
 0x38d   :  { %v1500_v28 = vld [vmem:[#allocation8 + $0x13f0] sm:$0xff] }
 0x38e   :  { %v7650_v45 = vpop.f32.mrf.mxu1  ;;  %7895 = vmatmul.mubr.bf16.vlgmr.msra.gmra.mxu1 %v11600_v14  ;;  %v1484_v31 = vld [vmem:[#allocation8 + $0x1370] sm:$0xff] }
 0x38f   :  { %v11706_v49 = vadd.f32 %v7650_v45, %v7610_v38  ;;  %7908 = vmatpush1.bf16.msra.mxu0 %v10243_v41  ;;  %7945 = vmatpush1.bf16.msra.mxu1 %v10387_v3  ;;  %v1532_v38 = vld [vmem:[#allocation8 + $0x14f0] sm:$0xff]  ;;  %v10348_v41 = vcombine.high %v1520_v37, %v1524_v54 }
 0x390   :  { %7976 = vmatprep.mubr.bf16.mxu1 %v11602_v30  ;;  %v7652_v12 = vpop.f32.mrf.mxu1  ;;  %7909 = vmatprep.subr.bf16.mxu0 %v10236_v51  ;;  %v10356_v50 = vcombine.high %v1528_v36, %v1532_v38  ;;  %v10355_v55 = vcombine.low %v1528_v36, %v1532_v38  ;;  %v1496_v3 = vld [vmem:[#allocation8 + $0x13d0] sm:$0xff] }
 0x391   :  { %v11709_v18 = vadd.f32 %v7652_v12, %v7612_v47  ;;  %7946 = vmatprep.subr.bf16.mxu1 %v10380_v7  ;;  %v1380_v47 = vld [vmem:[#allocation8 + $0x1030] sm:$0xff]  ;;  %v10324_v56 = vcombine.high %v1496_v3, %v1500_v28 }
 0x392   :  { %v7654_v34 = vpop.f32.mrf.mxu1  ;;  %v10204_v60 = vcombine.high %v1376_v62, %v1380_v47  ;;  %v1512_v51 = vld [vmem:[#allocation8 + $0x1450] sm:$0xff]  ;;  %v10203_v7 = vcombine.low %v1376_v62, %v1380_v47 }
 0x393   :  { %7910 = vmatpush1.bf16.msra.mxu0 %v10235_v11  ;;  %7947 = vmatpush1.bf16.msra.mxu1 %v10379_v52  ;;  %v10340_v10 = vcombine.high %v1512_v51, %v1516_v6  ;;  %v1488_v45 = vld [vmem:[#allocation8 + $0x1390] sm:$0xff] }
 0x394   :  { %v7655_v25 = vpop.f32.mrf.mxu1  ;;  %7911 = vmatprep.subr.bf16.mxu0 %v10228_v8  ;;  %7948 = vmatprep.subr.bf16.mxu1 %v10372_v15  ;;  %v1492_v11 = vld [vmem:[#allocation8 + $0x13b0] sm:$0xff]  ;;  %v10323_v8 = vcombine.low %v1496_v3, %v1500_v28  ;;  %v10339_v15 = vcombine.low %v1512_v51, %v1516_v6 }
 0x395   :  { %v1504_v52 = vld [vmem:[#allocation8 + $0x1410] sm:$0xff]  ;;  %v10316_v23 = vcombine.high %v1488_v45, %v1492_v11 }
 0x396   :  { %v1508_v12 = vld [vmem:[#allocation8 + $0x1430] sm:$0xff] }
 0x397   :  { %7912 = vmatpush1.bf16.msra.mxu0 %v10227_v33  ;;  %7949 = vmatpush1.bf16.msra.mxu1 %v10371_v42  ;;  %v10332_v9 = vcombine.high %v1504_v52, %v1508_v12  ;;  %v1624_v34 = vld [vmem:[#allocation8 + $0x17d0] sm:$0xff]  ;;  %v10315_v42 = vcombine.low %v1488_v45, %v1492_v11  ;;  %v10331_v25 = vcombine.low %v1504_v52, %v1508_v12 }
 0x398   :  { %7913 = vmatprep.subr.bf16.mxu0 %v10220_v35  ;;  %7950 = vmatprep.subr.bf16.mxu1 %v10364_v63  ;;  %v1628_v33 = vld [vmem:[#allocation8 + $0x17f0] sm:$0xff]  ;;  %v10308_v35 = vcombine.high %v1480_v29, %v1484_v31 }
 0x399   :  { %v10452_v63 = vcombine.high %v1624_v34, %v1628_v33  ;;  %v1472_v19 = vld [vmem:[#allocation8 + $0x1310] sm:$0xff] }
 0x39a   :  { %v1476_v48 = vld [vmem:[#allocation8 + $0x1330] sm:$0xff] }
 0x39b   :  { %7914 = vmatpush1.bf16.msra.mxu0 %v10219_v39  ;;  %7951 = vmatpush1.bf16.msra.mxu1 %v10363_v40  ;;  %v1616_v36 = vld [vmem:[#allocation8 + $0x1790] sm:$0xff]  ;;  %v10307_v39 = vcombine.low %v1480_v29, %v1484_v31  ;;  %v10451_v40 = vcombine.low %v1624_v34, %v1628_v33 }
 0x39c   :  { %7915 = vmatprep.subr.bf16.mxu0 %v10212_v20  ;;  %7952 = vmatprep.subr.bf16.mxu1 %v10356_v50  ;;  %v1620_v38 = vld [vmem:[#allocation8 + $0x17b0] sm:$0xff]  ;;  %v10300_v20 = vcombine.high %v1472_v19, %v1476_v48 }
 0x39d   :  { %v10444_v50 = vcombine.high %v1616_v36, %v1620_v38  ;;  %v1464_v62 = vld [vmem:[#allocation8 + $0x12d0] sm:$0xff] }
 0x39e   :  { %v1468_v47 = vld [vmem:[#allocation8 + $0x12f0] sm:$0xff] }
 0x39f   :  { %7916 = vmatpush1.bf16.msra.mxu0 %v10211_v1  ;;  %7953 = vmatpush1.bf16.msra.mxu1 %v10355_v55  ;;  %v1608_v37 = vld [vmem:[#allocation8 + $0x1750] sm:$0xff]  ;;  %v10299_v1 = vcombine.low %v1472_v19, %v1476_v48  ;;  %v10443_v55 = vcombine.low %v1616_v36, %v1620_v38 }
 0x3a0   :  { %7917 = vmatprep.subr.bf16.mxu0 %v10204_v60  ;;  %7954 = vmatprep.subr.bf16.mxu1 %v10348_v41  ;;  %v1612_v54 = vld [vmem:[#allocation8 + $0x1770] sm:$0xff]  ;;  %v10292_v60 = vcombine.high %v1464_v62, %v1468_v47 }
 0x3a1   :  { %v10436_v41 = vcombine.high %v1608_v37, %v1612_v54  ;;  %v1456_v3 = vld [vmem:[#allocation8 + $0x1290] sm:$0xff] }
 0x3a2   :  { %v1460_v28 = vld [vmem:[#allocation8 + $0x12b0] sm:$0xff] }
 0x3a3   :  { %7918 = vmatpush1.bf16.msra.mxu0 %v10203_v7  ;;  %7955 = vmatpush1.bf16.msra.mxu1 %v10347_v4  ;;  %v1600_v51 = vld [vmem:[#allocation8 + $0x1710] sm:$0xff]  ;;  %v10291_v7 = vcombine.low %v1464_v62, %v1468_v47  ;;  %v10435_v4 = vcombine.low %v1608_v37, %v1612_v54 }
 0x3a4   :  { %7919 = vmatprep.subr.bf16.mxu0 %v10324_v56  ;;  %7956 = vmatprep.subr.bf16.mxu1 %v10340_v10  ;;  %v1604_v6 = vld [vmem:[#allocation8 + $0x1730] sm:$0xff]  ;;  %v10284_v56 = vcombine.high %v1456_v3, %v1460_v28 }
 0x3a5   :  { %v10428_v10 = vcombine.high %v1600_v51, %v1604_v6  ;;  %v1448_v45 = vld [vmem:[#allocation8 + $0x1250] sm:$0xff] }
 0x3a6   :  { %v1452_v11 = vld [vmem:[#allocation8 + $0x1270] sm:$0xff] }
 0x3a7   :  { %7920 = vmatpush2.bf16.msra.mxu0 %v10323_v8  ;;  %7957 = vmatpush1.bf16.msra.mxu1 %v10339_v15  ;;  %v1592_v52 = vld [vmem:[#allocation8 + $0x16d0] sm:$0xff]  ;;  %v10283_v8 = vcombine.low %v1456_v3, %v1460_v28  ;;  %v10427_v15 = vcombine.low %v1600_v51, %v1604_v6 }
 0x3a8   :  { %7921 = vmatprep.subr.bf16.mxu0 %v10316_v23  ;;  %7958 = vmatprep.subr.bf16.mxu1 %v10332_v9  ;;  %v1596_v12 = vld [vmem:[#allocation8 + $0x16f0] sm:$0xff]  ;;  %v10276_v23 = vcombine.high %v1448_v45, %v1452_v11 }
 0x3a9   :  { %v10420_v9 = vcombine.high %v1592_v52, %v1596_v12  ;;  %v1440_v29 = vld [vmem:[#allocation8 + $0x1210] sm:$0xff] }
 0x3aa   :  { %v1444_v31 = vld [vmem:[#allocation8 + $0x1230] sm:$0xff] }
 0x3ab   :  { %7922 = vmatpush2.bf16.msra.mxu0 %v10315_v42  ;;  %7959 = vmatpush1.bf16.msra.mxu1 %v10331_v25  ;;  %v1584_v34 = vld [vmem:[#allocation8 + $0x1690] sm:$0xff]  ;;  %v10275_v42 = vcombine.low %v1448_v45, %v1452_v11  ;;  %v10419_v25 = vcombine.low %v1592_v52, %v1596_v12 }
 0x3ac   :  { %7923 = vmatprep.subr.bf16.mxu0 %v10308_v35  ;;  %7960 = vmatprep.subr.bf16.mxu1 %v10452_v63  ;;  %v1588_v33 = vld [vmem:[#allocation8 + $0x16b0] sm:$0xff]  ;;  %v10268_v35 = vcombine.high %v1440_v29, %v1444_v31 }
 0x3ad   :  { %v10412_v63 = vcombine.high %v1584_v34, %v1588_v33  ;;  %v1576_v19 = vld [vmem:[#allocation8 + $0x1650] sm:$0xff] }
 0x3ae   :  { %v1580_v48 = vld [vmem:[#allocation8 + $0x1670] sm:$0xff] }
 0x3af   :  { %7924 = vmatpush2.bf16.msra.mxu0 %v10307_v39  ;;  %7961 = vmatpush2.bf16.msra.mxu1 %v10451_v40  ;;  %v1688_v36 = vld [vmem:[#allocation8 + $0x19d0] sm:$0xff]  ;;  %v10267_v39 = vcombine.low %v1440_v29, %v1444_v31  ;;  %v10411_v40 = vcombine.low %v1584_v34, %v1588_v33 }
 0x3b0   :  { %7925 = vmatprep.subr.bf16.mxu0 %v10300_v20  ;;  %7962 = vmatprep.subr.bf16.mxu1 %v10444_v50  ;;  %v1692_v38 = vld [vmem:[#allocation8 + $0x19f0] sm:$0xff]  ;;  %v10404_v20 = vcombine.high %v1576_v19, %v1580_v48 }
 0x3b1   :  { %v10516_v50 = vcombine.high %v1688_v36, %v1692_v38  ;;  %v1568_v62 = vld [vmem:[#allocation8 + $0x1610] sm:$0xff] }
 0x3b2   :  { %v1572_v47 = vld [vmem:[#allocation8 + $0x1630] sm:$0xff] }
 0x3b3   :  { %7926 = vmatpush2.bf16.msra.mxu0 %v10299_v1  ;;  %7963 = vmatpush2.bf16.msra.mxu1 %v10443_v55  ;;  %v1680_v37 = vld [vmem:[#allocation8 + $0x1990] sm:$0xff]  ;;  %v10403_v1 = vcombine.low %v1576_v19, %v1580_v48  ;;  %v10515_v55 = vcombine.low %v1688_v36, %v1692_v38 }
 0x3b4   :  { %7927 = vmatprep.subr.bf16.mxu0 %v10292_v60  ;;  %7964 = vmatprep.subr.bf16.mxu1 %v10436_v41  ;;  %v1684_v54 = vld [vmem:[#allocation8 + $0x19b0] sm:$0xff]  ;;  %v10396_v60 = vcombine.high %v1568_v62, %v1572_v47 }
 0x3b5   :  { %v1672_v41 = vld [vmem:[#allocation8 + $0x1950] sm:$0xff]  ;;  %v10508_v3 = vcombine.high %v1680_v37, %v1684_v54 }
 0x3b6   :  { %v1676_v28 = vld [vmem:[#allocation8 + $0x1970] sm:$0xff] }
 0x3b7   :  { %7928 = vmatpush2.bf16.msra.mxu0 %v10291_v7  ;;  %7965 = vmatpush2.bf16.msra.mxu1 %v10435_v4  ;;  %v1816_v51 = vld [vmem:[#allocation8 + $0x1dd0] sm:$0xff]  ;;  %v10500_v11 = vcombine.high %v1672_v41, %v1676_v28 }
 0x3b8   :  { %7929 = vmatprep.subr.bf16.mxu0 %v10284_v56  ;;  %7966 = vmatprep.subr.bf16.mxu1 %v10428_v10  ;;  %v1820_v6 = vld [vmem:[#allocation8 + $0x1df0] sm:$0xff]  ;;  %v10395_v56 = vcombine.low %v1568_v62, %v1572_v47  ;;  %v10507_v10 = vcombine.low %v1680_v37, %v1684_v54 }
 0x3b9   :  { %v10644_v52 = vcombine.high %v1816_v51, %v1820_v6  ;;  %v1812_v29 = vld [vmem:[#allocation8 + $0x1db0] sm:$0xff]  ;;  %v10643_v31 = vcombine.low %v1816_v51, %v1820_v6 }
 0x3ba   :  { %v1804_v19 = vld [vmem:[#allocation8 + $0x1d70] sm:$0xff] }
 0x3bb   :  { %7930 = vmatpush2.bf16.msra.mxu0 %v10283_v8  ;;  %7967 = vmatpush2.bf16.msra.mxu1 %v10427_v15  ;;  %v1664_v8 = vld [vmem:[#allocation8 + $0x1910] sm:$0xff] }
 0x3bc   :  { %7931 = vmatprep.subr.bf16.mxu0 %v10276_v23  ;;  %7968 = vmatprep.subr.bf16.mxu1 %v10420_v9  ;;  %v1668_v15 = vld [vmem:[#allocation8 + $0x1930] sm:$0xff] }
 0x3bd   :  { %v1808_v9 = vld [vmem:[#allocation8 + $0x1d90] sm:$0xff]  ;;  %v10492_v33 = vcombine.high %v1664_v8, %v1668_v15  ;;  %v10491_v36 = vcombine.low %v1664_v8, %v1668_v15 }
 0x3be   :  { %v10635_v38 = vcombine.low %v1808_v9, %v1812_v29  ;;  %v1652_v47 = vld [vmem:[#allocation8 + $0x18b0] sm:$0xff] }
 0x3bf   :  { %7932 = vmatpush2.bf16.msra.mxu0 %v10275_v42  ;;  %7969 = vmatpush2.bf16.msra.mxu1 %v10419_v25  ;;  %v1656_v42 = vld [vmem:[#allocation8 + $0x18d0] sm:$0xff]  ;;  %v10636_v25 = vcombine.high %v1808_v9, %v1812_v29 }
 0x3c0   :  { %7933 = vmatprep.subr.bf16.mxu0 %v10268_v35  ;;  %7970 = vmatprep.subr.bf16.mxu1 %v10412_v63  ;;  %v1660_v35 = vld [vmem:[#allocation8 + $0x18f0] sm:$0xff] }
 0x3c1   :  { %v1800_v63 = vld [vmem:[#allocation8 + $0x1d50] sm:$0xff] }
 0x3c2   :  { %v1792_v37 = vld [vmem:[#allocation8 + $0x1d10] sm:$0xff] }
 0x3c3   :  { %7934 = vmatpush2.bf16.msra.mxu0 %v10267_v39  ;;  %7971 = vmatpush2.bf16.msra.mxu1 %v10411_v40  ;;  %v10484_v40 = vcombine.high %v1656_v42, %v1660_v35  ;;  %v1796_v54 = vld [vmem:[#allocation8 + $0x1d30] sm:$0xff] }
 0x3c4   :  { %7972 = vmatprep.subr.bf16.mxu1 %v10404_v20  ;;  %7985 = vmatprep.subr.bf16.mxu0 %v10516_v50  ;;  %v10628_v20 = vcombine.high %v1800_v63, %v1804_v19  ;;  %v1648_v50 = vld [vmem:[#allocation8 + $0x1890] sm:$0xff] }
 0x3c5   :  { %v1640_v51 = vld [vmem:[#allocation8 + $0x1850] sm:$0xff] }
 0x3c6   :  { %v7691_v7 = vpop.f32.mrf.mxu0  ;;  %7936 = vmatmul.mubr.bf16.vlgmr.msra.gmra.mxu0 %v11611_v2  ;;  %v1644_v6 = vld [vmem:[#allocation8 + $0x1870] sm:$0xff] }
 0x3c7   :  { %v7692_v4 = vadd.f32 %v7691_v7, %v11706_v49  ;;  %7973 = vmatpush2.bf16.msra.mxu1 %v10403_v1  ;;  %7986 = vmatpush1.bf16.msra.mxu0 %v10515_v55  ;;  %v10499_v49 = vcombine.low %v1672_v41, %v1676_v28  ;;  %v10483_v55 = vcombine.low %v1656_v42, %v1660_v35  ;;  %v1784_v7 = vld [vmem:[#allocation8 + $0x1cd0] sm:$0xff] }
 0x3c8   :  { %8017 = vmatprep.mubr.bf16.mxu0 %v11613_v5  ;;  %v7693_v45 = vpop.f32.mrf.mxu0  ;;  %7974 = vmatprep.subr.bf16.mxu1 %v10396_v60  ;;  %v10627_v60 = vcombine.low %v1800_v63, %v1804_v19  ;;  %v10620_v28 = vcombine.high %v1792_v37, %v1796_v54  ;;  %v1776_v8 = vld [vmem:[#allocation8 + $0x1c90] sm:$0xff] }
 0x3c9   :  { %v7694_v12 = vadd.f32 %v7693_v45, %v11709_v18  ;;  %7987 = vmatprep.subr.bf16.mxu0 %v10508_v3  ;;  %v10476_v3 = vcombine.high %v1648_v50, %v1652_v47  ;;  %v10468_v45 = vcombine.high %v1640_v51, %v1644_v6  ;;  %v1780_v15 = vld [vmem:[#allocation8 + $0x1cb0] sm:$0xff] }
 0x3ca   :  { %v7695_v23 = vpop.f32.mrf.mxu0  ;;  %v1772_v42 = vld [vmem:[#allocation8 + $0x1c70] sm:$0xff]  ;;  %v10603_v35 = vcombine.low %v1776_v8, %v1780_v15 }
 0x3cb   :  { %7975 = vmatpush2.bf16.msra.mxu1 %v10395_v56  ;;  %7988 = vmatpush1.bf16.msra.mxu0 %v10507_v10  ;;  %v10475_v56 = vcombine.low %v1648_v50, %v1652_v47  ;;  %v10619_v10 = vcombine.low %v1792_v37, %v1796_v54  ;;  %v10467_v23 = vcombine.low %v1640_v51, %v1644_v6  ;;  %v1736_v37 = vld [vmem:[#allocation8 + $0x1b50] sm:$0xff] }
 0x3cc   :  { %v7696_v34 = vpop.f32.mrf.mxu0  ;;  %7989 = vmatprep.subr.bf16.mxu0 %v10500_v11  ;;  %8026 = vmatprep.subr.bf16.mxu1 %v10644_v52  ;;  %v1632_v52 = vld [vmem:[#allocation8 + $0x1810] sm:$0xff] }
 0x3cd   :  { %v1756_v34 = vld [vmem:[#allocation8 + $0x1bf0] sm:$0xff] }
 0x3ce   :  { %v7732_v18 = vpop.f32.mrf.mxu1  ;;  %7977 = vmatmul.mubr.bf16.vlgmr.msra.gmra.mxu1 %v11619_v27  ;;  %v1740_v54 = vld [vmem:[#allocation8 + $0x1b70] sm:$0xff] }
 0x3cf   :  { %v11716_v48 = vadd.f32 %v7732_v18, %v7692_v4  ;;  %7990 = vmatpush1.bf16.msra.mxu0 %v10499_v49  ;;  %8027 = vmatpush1.bf16.msra.mxu1 %v10643_v31  ;;  %v1788_v4 = vld [vmem:[#allocation8 + $0x1cf0] sm:$0xff]  ;;  %v10604_v49 = vcombine.high %v1776_v8, %v1780_v15 }
 0x3d0   :  { %8058 = vmatprep.mubr.bf16.mxu1 %v11621_v32  ;;  %v7734_v39 = vpop.f32.mrf.mxu1  ;;  %7991 = vmatprep.subr.bf16.mxu0 %v10492_v33  ;;  %v10612_v11 = vcombine.high %v1784_v7, %v1788_v4  ;;  %v10611_v9 = vcombine.low %v1784_v7, %v1788_v4  ;;  %v1752_v31 = vld [vmem:[#allocation8 + $0x1bd0] sm:$0xff] }
 0x3d1   :  { %v11719_v62 = vadd.f32 %v7734_v39, %v7694_v12  ;;  %8028 = vmatprep.subr.bf16.mxu1 %v10636_v25  ;;  %v1636_v12 = vld [vmem:[#allocation8 + $0x1830] sm:$0xff]  ;;  %v10580_v63 = vcombine.high %v1752_v31, %v1756_v34 }
 0x3d2   :  { %v7736_v1 = vpop.f32.mrf.mxu1  ;;  %v10460_v29 = vcombine.high %v1632_v52, %v1636_v12  ;;  %v1768_v33 = vld [vmem:[#allocation8 + $0x1c50] sm:$0xff]  ;;  %v10459_v25 = vcombine.low %v1632_v52, %v1636_v12 }
 0x3d3   :  { %7992 = vmatpush1.bf16.msra.mxu0 %v10491_v36  ;;  %8029 = vmatpush1.bf16.msra.mxu1 %v10635_v38  ;;  %v10596_v19 = vcombine.high %v1768_v33, %v1772_v42  ;;  %v1744_v18 = vld [vmem:[#allocation8 + $0x1b90] sm:$0xff] }
 0x3d4   :  { %v7737_v41 = vpop.f32.mrf.mxu1  ;;  %7993 = vmatprep.subr.bf16.mxu0 %v10484_v40  ;;  %8030 = vmatprep.subr.bf16.mxu1 %v10628_v20  ;;  %v1748_v36 = vld [vmem:[#allocation8 + $0x1bb0] sm:$0xff]  ;;  %v10579_v40 = vcombine.low %v1752_v31, %v1756_v34  ;;  %v10595_v20 = vcombine.low %v1768_v33, %v1772_v42 }
 0x3d5   :  { %v1760_v38 = vld [vmem:[#allocation8 + $0x1c10] sm:$0xff]  ;;  %v10572_v50 = vcombine.high %v1744_v18, %v1748_v36 }
 0x3d6   :  { %v1764_v39 = vld [vmem:[#allocation8 + $0x1c30] sm:$0xff] }
 0x3d7   :  { %7994 = vmatpush1.bf16.msra.mxu0 %v10483_v55  ;;  %8031 = vmatpush1.bf16.msra.mxu1 %v10627_v60  ;;  %v10588_v47 = vcombine.high %v1760_v38, %v1764_v39  ;;  %v1880_v1 = vld [vmem:[#allocation8 + $0x1fd0] sm:$0xff]  ;;  %v10571_v60 = vcombine.low %v1744_v18, %v1748_v36  ;;  %v10587_v41 = vcombine.low %v1760_v38, %v1764_v39 }
 0x3d8   :  { %7995 = vmatprep.subr.bf16.mxu0 %v10476_v3  ;;  %8032 = vmatprep.subr.bf16.mxu1 %v10620_v28  ;;  %v1884_v55 = vld [vmem:[#allocation8 + $0x1ff0] sm:$0xff]  ;;  %v10564_v3 = vcombine.high %v1736_v37, %v1740_v54 }
 0x3d9   :  { %v10708_v28 = vcombine.high %v1880_v1, %v1884_v55  ;;  %v1728_v51 = vld [vmem:[#allocation8 + $0x1b10] sm:$0xff] }
 0x3da   :  { %v1732_v6 = vld [vmem:[#allocation8 + $0x1b30] sm:$0xff] }
 0x3db   :  { %7996 = vmatpush1.bf16.msra.mxu0 %v10475_v56  ;;  %8033 = vmatpush1.bf16.msra.mxu1 %v10619_v10  ;;  %v1872_v7 = vld [vmem:[#allocation8 + $0x1f90] sm:$0xff]  ;;  %v10563_v56 = vcombine.low %v1736_v37, %v1740_v54  ;;  %v10707_v10 = vcombine.low %v1880_v1, %v1884_v55 }
 0x3dc   :  { %7997 = vmatprep.subr.bf16.mxu0 %v10468_v45  ;;  %8034 = vmatprep.subr.bf16.mxu1 %v10612_v11  ;;  %v1876_v4 = vld [vmem:[#allocation8 + $0x1fb0] sm:$0xff]  ;;  %v10556_v45 = vcombine.high %v1728_v51, %v1732_v6 }
 0x3dd   :  { %v10700_v11 = vcombine.high %v1872_v7, %v1876_v4  ;;  %v1720_v52 = vld [vmem:[#allocation8 + $0x1ad0] sm:$0xff] }
 0x3de   :  { %v1724_v12 = vld [vmem:[#allocation8 + $0x1af0] sm:$0xff] }
 0x3df   :  { %7998 = vmatpush1.bf16.msra.mxu0 %v10467_v23  ;;  %8035 = vmatpush1.bf16.msra.mxu1 %v10611_v9  ;;  %v1864_v8 = vld [vmem:[#allocation8 + $0x1f50] sm:$0xff]  ;;  %v10555_v23 = vcombine.low %v1728_v51, %v1732_v6  ;;  %v10699_v9 = vcombine.low %v1872_v7, %v1876_v4  ;;  %v921_v7 = vld [vmem:[#allocation8 + $0x1d8] sm:$0xff] }
 0x3e0   :  { %7999 = vmatprep.subr.bf16.mxu0 %v10460_v29  ;;  %8036 = vmatprep.subr.bf16.mxu1 %v10604_v49  ;;  %v1868_v15 = vld [vmem:[#allocation8 + $0x1f70] sm:$0xff]  ;;  %v10548_v29 = vcombine.high %v1720_v52, %v1724_v12  ;;  %v925_v4 = vld [vmem:[#allocation8 + $0x1f8] sm:$0xff] }
 0x3e1   :  { %v10692_v49 = vcombine.high %v1864_v8, %v1868_v15  ;;  %v1712_v31 = vld [vmem:[#allocation8 + $0x1a90] sm:$0xff] }
 0x3e2   :  { %v1716_v34 = vld [vmem:[#allocation8 + $0x1ab0] sm:$0xff] }
 0x3e3   :  { %8000 = vmatpush1.bf16.msra.mxu0 %v10459_v25  ;;  %8037 = vmatpush1.bf16.msra.mxu1 %v10603_v35  ;;  %v1856_v33 = vld [vmem:[#allocation8 + $0x1f10] sm:$0xff]  ;;  %v10547_v25 = vcombine.low %v1720_v52, %v1724_v12  ;;  %v10691_v35 = vcombine.low %v1864_v8, %v1868_v15  ;;  %v11130_v52 = vld [vmem:[#allocation10] sm:$0xff] }
 0x3e4   :  { %8001 = vmatprep.subr.bf16.mxu0 %v10580_v63  ;;  %8038 = vmatprep.subr.bf16.mxu1 %v10596_v19  ;;  %v1860_v42 = vld [vmem:[#allocation8 + $0x1f30] sm:$0xff]  ;;  %v10540_v63 = vcombine.high %v1712_v31, %v1716_v34  ;;  %v11721_v12 = vunpack.c.h.bf16 %v11130_v52 }
 0x3e5   :  { %v10684_v19 = vcombine.high %v1856_v33, %v1860_v42  ;;  %v1704_v18 = vld [vmem:[#allocation8 + $0x1a50] sm:$0xff] }
 0x3e6   :  { %v1708_v36 = vld [vmem:[#allocation8 + $0x1a70] sm:$0xff] }
 0x3e7   :  { %8002 = vmatpush2.bf16.msra.mxu0 %v10579_v40  ;;  %8039 = vmatpush1.bf16.msra.mxu1 %v10595_v20  ;;  %v1848_v38 = vld [vmem:[#allocation8 + $0x1ed0] sm:$0xff]  ;;  %v10539_v40 = vcombine.low %v1712_v31, %v1716_v34  ;;  %v10683_v20 = vcombine.low %v1856_v33, %v1860_v42  ;;  %v905_v34 = vld [vmem:[#allocation8 + $0x158] sm:$0xff]  ;;  %v1910_v33 = vrot.slane %v11721_v12, %v11491_v16 }
 0x3e8   :  { %8003 = vmatprep.subr.bf16.mxu0 %v10572_v50  ;;  %8040 = vmatprep.subr.bf16.mxu1 %v10588_v47  ;;  %v1852_v39 = vld [vmem:[#allocation8 + $0x1ef0] sm:$0xff]  ;;  %v10532_v50 = vcombine.high %v1704_v18, %v1708_v36 }
 0x3e9   :  { %v10676_v47 = vcombine.high %v1848_v38, %v1852_v39  ;;  %v1696_v37 = vld [vmem:[#allocation8 + $0x1a10] sm:$0xff] }
 0x3ea   :  { %v1700_v54 = vld [vmem:[#allocation8 + $0x1a30] sm:$0xff] }
 0x3eb   :  { %8004 = vmatpush2.bf16.msra.mxu0 %v10571_v60  ;;  %8041 = vmatpush1.bf16.msra.mxu1 %v10587_v41  ;;  %v1840_v1 = vld [vmem:[#allocation8 + $0x1e90] sm:$0xff]  ;;  %v10531_v60 = vcombine.low %v1704_v18, %v1708_v36  ;;  %v10675_v41 = vcombine.low %v1848_v38, %v1852_v39  ;;  %v1914_v18 = vrot.slane %v11721_v12, %v11493_v17 }
 0x3ec   :  { %8005 = vmatprep.subr.bf16.mxu0 %v10564_v3  ;;  %8042 = vmatprep.subr.bf16.mxu1 %v10708_v28  ;;  %v1844_v55 = vld [vmem:[#allocation8 + $0x1eb0] sm:$0xff]  ;;  %v10524_v3 = vcombine.high %v1696_v37, %v1700_v54 }
 0x3ed   :  { %v10668_v28 = vcombine.high %v1840_v1, %v1844_v55  ;;  %v1832_v51 = vld [vmem:[#allocation8 + $0x1e50] sm:$0xff] }
 0x3ee   :  { %v1836_v6 = vld [vmem:[#allocation8 + $0x1e70] sm:$0xff] }
 0x3ef   :  { %8006 = vmatpush2.bf16.msra.mxu0 %v10563_v56  ;;  %8043 = vmatpush2.bf16.msra.mxu1 %v10707_v10  ;;  %v10523_v56 = vcombine.low %v1696_v37, %v1700_v54  ;;  %v10667_v10 = vcombine.low %v1840_v1, %v1844_v55  ;;  %v1824_v8 = vld [vmem:[#allocation8 + $0x1e10] sm:$0xff]  ;;  %v901_v37 = vld [vmem:[#allocation8 + $0x138] sm:$0xff] }
 0x3f0   :  { %8007 = vmatprep.subr.bf16.mxu0 %v10556_v45  ;;  %8044 = vmatprep.subr.bf16.mxu1 %v10700_v11  ;;  %v10660_v45 = vcombine.high %v1832_v51, %v1836_v6  ;;  %v9750_v11 = vcombine.high %v921_v7, %v925_v4  ;;  %v1828_v15 = vld [vmem:[#allocation8 + $0x1e30] sm:$0xff]  ;;  %v1041_v1 = vld [vmem:[#allocation8 + $0x598] sm:$0xff] }
 0x3f1   :  { %v10652_v31 = vcombine.high %v1824_v8, %v1828_v15  ;;  %v10651_v36 = vcombine.low %v1824_v8, %v1828_v15  ;;  %v1045_v55 = vld [vmem:[#allocation8 + $0x5b8] sm:$0xff] }
 0x3f2   :  { %v9869_v15 = vcombine.low %v1041_v1, %v1045_v55 }
 0x3f3   :  { %8008 = vmatpush2.bf16.msra.mxu0 %v10555_v23  ;;  %8045 = vmatpush2.bf16.msra.mxu1 %v10699_v9  ;;  %v913_v23 = vld [vmem:[#allocation8 + $0x198] sm:$0xff] }
 0x3f4   :  { %8009 = vmatprep.subr.bf16.mxu0 %v10548_v29  ;;  %8046 = vmatprep.subr.bf16.mxu1 %v10692_v49  ;;  %v917_v9 = vld [vmem:[#allocation8 + $0x1b8] sm:$0xff]  ;;  %v10659_v29 = vcombine.low %v1832_v51, %v1836_v6  ;;  %v9749_v49 = vcombine.low %v921_v7, %v925_v4  ;;  %v9870_v7 = vcombine.high %v1041_v1, %v1045_v55 }
 0x3f5   :  { %v9742_v42 = vcombine.high %v913_v23, %v917_v9  ;;  %v9741_v38 = vcombine.low %v913_v23, %v917_v9  ;;  %v889_v51 = vld [vmem:[#allocation8 + $0xd8] sm:$0xff] }
 0x3f6   :  { %v893_v4 = vld [vmem:[#allocation8 + $0xf8] sm:$0xff] }
 0x3f7   :  { %8010 = vmatpush2.bf16.msra.mxu0 %v10547_v25  ;;  %8047 = vmatpush2.bf16.msra.mxu1 %v10691_v35  ;;  %v909_v25 = vld [vmem:[#allocation8 + $0x178] sm:$0xff]  ;;  %v9718_v9 = vcombine.high %v889_v51, %v893_v4 }
 0x3f8   :  { %8011 = vmatprep.subr.bf16.mxu0 %v10540_v63  ;;  %8048 = vmatprep.subr.bf16.mxu1 %v10684_v19  ;;  %v1049_v35 = vld [vmem:[#allocation8 + $0x5d8] sm:$0xff] }
 0x3f9   :  { %v1053_v63 = vld [vmem:[#allocation8 + $0x5f8] sm:$0xff] }
 0x3fa   :  { %v869_v1 = vld [vmem:[#allocation8 + $0x38] sm:$0xff] }
 0x3fb   :  { %8012 = vmatpush2.bf16.msra.mxu0 %v10539_v40  ;;  %8049 = vmatpush2.bf16.msra.mxu1 %v10683_v20  ;;  %v9734_v40 = vcombine.high %v905_v34, %v909_v25  ;;  %v9878_v20 = vcombine.high %v1049_v35, %v1053_v63  ;;  %v1009_v55 = vld [vmem:[#allocation8 + $0x498] sm:$0xff] }
 0x3fc   :  { %8013 = vmatprep.subr.bf16.mxu0 %v10532_v50  ;;  %8050 = vmatprep.subr.bf16.mxu1 %v10676_v47  ;;  %v1950_v50 = vrot.slane %v1910_v33, %v11491_v16  ;;  %v897_v47 = vld [vmem:[#allocation8 + $0x118] sm:$0xff] }
 0x3fd   :  { %v1025_v33 = vld [vmem:[#allocation8 + $0x518] sm:$0xff] }
 0x3ff   :  { %8014 = vmatpush2.bf16.msra.mxu0 %v10531_v60  ;;  %8051 = vmatpush2.bf16.msra.mxu1 %v10675_v41  ;;  %v1954_v60 = vrot.slane %v1914_v18, %v11491_v16  ;;  %v9733_v41 = vcombine.low %v905_v34, %v909_v25  ;;  %v885_v34 = vld [vmem:[#allocation8 + $0xb8] sm:$0xff] }
 0x400   :  { %8015 = vmatprep.subr.bf16.mxu0 %v10524_v3  ;;  %8052 = vmatprep.subr.bf16.mxu1 %v10668_v28  ;;  %v9877_v3 = vcombine.low %v1049_v35, %v1053_v63  ;;  %v9717_v35 = vcombine.low %v889_v51, %v893_v4  ;;  %v985_v51 = vld [vmem:[#allocation8 + $0x3d8] sm:$0xff] }
 0x401   :  { %v1005_v4 = vld [vmem:[#allocation8 + $0x478] sm:$0xff] }
 0x403   :  { %8016 = vmatpush2.bf16.msra.mxu0 %v10523_v56  ;;  %8053 = vmatpush2.bf16.msra.mxu1 %v10667_v10  ;;  %v1033_v56 = vld [vmem:[#allocation8 + $0x558] sm:$0xff] }
 0x404   :  { %8054 = vmatprep.subr.bf16.mxu1 %v10660_v45  ;;  %8067 = vmatprep.subr.bf16.mxu0 %v9750_v11  ;;  %v1037_v10 = vld [vmem:[#allocation8 + $0x578] sm:$0xff]  ;;  %v9725_v11 = vcombine.low %v897_v47, %v901_v37 }
 0x405   :  { %v9861_v63 = vcombine.low %v1033_v56, %v1037_v10 }
 0x406   :  { %v7773_v19 = vpop.f32.mrf.mxu0  ;;  %8018 = vmatmul.mubr.bf16.vlgmr.msra.gmra.mxu0 %v11628_v61 }
 0x407   :  { %8055 = vmatpush2.bf16.msra.mxu1 %v10659_v29  ;;  %8068 = vmatpush1.bf16.msra.mxu0 %v9749_v49  ;;  %v7774_v6 = vadd.f32 %v7773_v19, %v1950_v50  ;;  %v9862_v29 = vcombine.high %v1033_v56, %v1037_v10  ;;  %v881_v49 = vld [vmem:[#allocation8 + $0x98] sm:$0xff] }
 0x408   :  { %8099 = vmatprep.mubr.bf16.mxu0 %v11513_v43  ;;  %v7775_v39 = vpop.f32.mrf.mxu0  ;;  %8056 = vmatprep.subr.bf16.mxu1 %v10652_v31  ;;  %v9726_v43 = vcombine.high %v897_v47, %v901_v37 }
 0x409   :  { %8069 = vmatprep.subr.bf16.mxu0 %v9742_v42  ;;  %v7776_v52 = vadd.f32 %v7775_v39, %v1954_v60  ;;  %v1029_v42 = vld [vmem:[#allocation8 + $0x538] sm:$0xff] }
 0x40a   :  { %v7777_v54 = vpop.f32.mrf.mxu0  ;;  %v9854_v18 = vcombine.high %v1025_v33, %v1029_v42  ;;  %v1017_v39 = vld [vmem:[#allocation8 + $0x4d8] sm:$0xff]  ;;  %v9853_v50 = vcombine.low %v1025_v33, %v1029_v42 }
 0x40b   :  { %8057 = vmatpush2.bf16.msra.mxu1 %v10651_v36  ;;  %8070 = vmatpush1.bf16.msra.mxu0 %v9741_v38  ;;  %v873_v36 = vld [vmem:[#allocation8 + $0x58] sm:$0xff] }
 0x40c   :  { %v7778_v28 = vpop.f32.mrf.mxu0  ;;  %8071 = vmatprep.subr.bf16.mxu0 %v9734_v40  ;;  %8108 = vmatprep.subr.bf16.mxu1 %v9878_v20  ;;  %v877_v38 = vld [vmem:[#allocation8 + $0x78] sm:$0xff]  ;;  %v9709_v20 = vcombine.low %v881_v49, %v885_v34 }
 0x40d   :  { %v1021_v40 = vld [vmem:[#allocation8 + $0x4f8] sm:$0xff]  ;;  %v9702_v47 = vcombine.high %v873_v36, %v877_v38 }
 0x40e   :  { %v7814_v45 = vpop.f32.mrf.mxu1  ;;  %8059 = vmatmul.mubr.bf16.vlgmr.msra.gmra.mxu1 %v11639_v0  ;;  %v9846_v37 = vcombine.high %v1017_v39, %v1021_v40  ;;  %v865_v54 = vld [vmem:[#allocation8 + $0x18] sm:$0xff] }
 0x40f   :  { %v11732_v8 = vadd.f32 %v7814_v45, %v7774_v6  ;;  %8072 = vmatpush1.bf16.msra.mxu0 %v9733_v41  ;;  %8109 = vmatpush1.bf16.msra.mxu1 %v9877_v3  ;;  %v1013_v60 = vld [vmem:[#allocation8 + $0x4b8] sm:$0xff]  ;;  %v9701_v41 = vcombine.low %v873_v36, %v877_v38  ;;  %v9845_v3 = vcombine.low %v1017_v39, %v1021_v40 }
 0x410   :  { %8140 = vmatprep.mubr.bf16.mxu1 %v11538_v13  ;;  %v7816_v23 = vpop.f32.mrf.mxu1  ;;  %8073 = vmatprep.subr.bf16.mxu0 %v9726_v43  ;;  %v9710_v13 = vcombine.high %v881_v49, %v885_v34  ;;  %v9694_v28 = vcombine.high %v865_v54, %v869_v1  ;;  %v9838_v43 = vcombine.high %v1009_v55, %v1013_v60  ;;  %v989_v6 = vld [vmem:[#allocation8 + $0x3f8] sm:$0xff] }
 0x411   :  { %v11735_v31 = vadd.f32 %v7816_v23, %v7776_v52  ;;  %8110 = vmatprep.subr.bf16.mxu1 %v9870_v7  ;;  %v1001_v7 = vld [vmem:[#allocation8 + $0x458] sm:$0xff]  ;;  %v9693_v56 = vcombine.low %v865_v54, %v869_v1  ;;  %v9837_v10 = vcombine.low %v1009_v55, %v1013_v60  ;;  %v9814_v45 = vcombine.high %v985_v51, %v989_v6 }
 0x412   :  { %v7818_v25 = vpop.f32.mrf.mxu1  ;;  %v977_v52 = vld [vmem:[#allocation8 + $0x398] sm:$0xff]  ;;  %v9829_v49 = vcombine.low %v1001_v7, %v1005_v4 }
 0x413   :  { %8074 = vmatpush1.bf16.msra.mxu0 %v9725_v11  ;;  %8111 = vmatpush1.bf16.msra.mxu1 %v9869_v15  ;;  %v9830_v11 = vcombine.high %v1001_v7, %v1005_v4  ;;  %v981_v15 = vld [vmem:[#allocation8 + $0x3b8] sm:$0xff] }
 0x414   :  { %v7819_v19 = vpop.f32.mrf.mxu1  ;;  %8075 = vmatprep.subr.bf16.mxu0 %v9718_v9  ;;  %8112 = vmatprep.subr.bf16.mxu1 %v9862_v29  ;;  %v993_v23 = vld [vmem:[#allocation8 + $0x418] sm:$0xff]  ;;  %v9813_v29 = vcombine.low %v985_v51, %v989_v6  ;;  %v9806_v34 = vcombine.high %v977_v52, %v981_v15 }
 0x415   :  { %v997_v9 = vld [vmem:[#allocation8 + $0x438] sm:$0xff]  ;;  %v9805_v19 = vcombine.low %v977_v52, %v981_v15 }
 0x416   :  { %v9822_v33 = vcombine.high %v993_v23, %v997_v9  ;;  %v969_v42 = vld [vmem:[#allocation8 + $0x358] sm:$0xff] }
 0x417   :  { %8076 = vmatpush1.bf16.msra.mxu0 %v9717_v35  ;;  %8113 = vmatpush1.bf16.msra.mxu1 %v9861_v63  ;;  %v973_v25 = vld [vmem:[#allocation8 + $0x378] sm:$0xff] }
 0x418   :  { %8077 = vmatprep.subr.bf16.mxu0 %v9710_v13  ;;  %8114 = vmatprep.subr.bf16.mxu1 %v9854_v18  ;;  %v1113_v35 = vld [vmem:[#allocation8 + $0x7d8] sm:$0xff]  ;;  %v9821_v13 = vcombine.low %v993_v23, %v997_v9  ;;  %v9798_v18 = vcombine.high %v969_v42, %v973_v25 }
 0x419   :  { %v1117_v63 = vld [vmem:[#allocation8 + $0x7f8] sm:$0xff] }
 0x41a   :  { %v9942_v36 = vcombine.high %v1113_v35, %v1117_v63  ;;  %v961_v38 = vld [vmem:[#allocation8 + $0x318] sm:$0xff] }
 0x41b   :  { %8078 = vmatpush1.bf16.msra.mxu0 %v9709_v20  ;;  %8115 = vmatpush1.bf16.msra.mxu1 %v9853_v50  ;;  %v965_v39 = vld [vmem:[#allocation8 + $0x338] sm:$0xff]  ;;  %v9797_v50 = vcombine.low %v969_v42, %v973_v25 }
 0x41c   :  { %8079 = vmatprep.subr.bf16.mxu0 %v9702_v47  ;;  %8116 = vmatprep.subr.bf16.mxu1 %v9846_v37  ;;  %v1105_v40 = vld [vmem:[#allocation8 + $0x798] sm:$0xff]  ;;  %v9941_v47 = vcombine.low %v1113_v35, %v1117_v63  ;;  %v9790_v37 = vcombine.high %v961_v38, %v965_v39 }
 0x41d   :  { %v1109_v20 = vld [vmem:[#allocation8 + $0x7b8] sm:$0xff] }
 0x41e   :  { %v9934_v54 = vcombine.high %v1105_v40, %v1109_v20  ;;  %v953_v1 = vld [vmem:[#allocation8 + $0x2d8] sm:$0xff] }
 0x41f   :  { %8080 = vmatpush1.bf16.msra.mxu0 %v9701_v41  ;;  %8117 = vmatpush1.bf16.msra.mxu1 %v9845_v3  ;;  %v957_v55 = vld [vmem:[#allocation8 + $0x2f8] sm:$0xff]  ;;  %v9789_v3 = vcombine.low %v961_v38, %v965_v39 }
 0x420   :  { %8081 = vmatprep.subr.bf16.mxu0 %v9694_v28  ;;  %8118 = vmatprep.subr.bf16.mxu1 %v9838_v43  ;;  %v1097_v60 = vld [vmem:[#allocation8 + $0x758] sm:$0xff]  ;;  %v9933_v28 = vcombine.low %v1105_v40, %v1109_v20  ;;  %v9782_v43 = vcombine.high %v953_v1, %v957_v55 }
 0x421   :  { %v1101_v41 = vld [vmem:[#allocation8 + $0x778] sm:$0xff] }
 0x422   :  { %v9926_v51 = vcombine.high %v1097_v60, %v1101_v41  ;;  %v945_v6 = vld [vmem:[#allocation8 + $0x298] sm:$0xff] }
 0x423   :  { %8082 = vmatpush1.bf16.msra.mxu0 %v9693_v56  ;;  %8119 = vmatpush1.bf16.msra.mxu1 %v9837_v10  ;;  %v949_v7 = vld [vmem:[#allocation8 + $0x2b8] sm:$0xff]  ;;  %v9781_v10 = vcombine.low %v953_v1, %v957_v55 }
 0x424   :  { %8083 = vmatprep.subr.bf16.mxu0 %v9814_v45  ;;  %8120 = vmatprep.subr.bf16.mxu1 %v9830_v11  ;;  %v1089_v4 = vld [vmem:[#allocation8 + $0x718] sm:$0xff]  ;;  %v9925_v45 = vcombine.low %v1097_v60, %v1101_v41  ;;  %v9774_v11 = vcombine.high %v945_v6, %v949_v7 }
 0x425   :  { %v1093_v56 = vld [vmem:[#allocation8 + $0x738] sm:$0xff] }
 0x426   :  { %v9918_v52 = vcombine.high %v1089_v4, %v1093_v56  ;;  %v937_v15 = vld [vmem:[#allocation8 + $0x258] sm:$0xff] }
 0x427   :  { %8084 = vmatpush2.bf16.msra.mxu0 %v9813_v29  ;;  %8121 = vmatpush1.bf16.msra.mxu1 %v9829_v49  ;;  %v941_v23 = vld [vmem:[#allocation8 + $0x278] sm:$0xff]  ;;  %v9773_v49 = vcombine.low %v945_v6, %v949_v7 }
 0x428   :  { %8085 = vmatprep.subr.bf16.mxu0 %v9806_v34  ;;  %8122 = vmatprep.subr.bf16.mxu1 %v9822_v33  ;;  %v1081_v9 = vld [vmem:[#allocation8 + $0x6d8] sm:$0xff]  ;;  %v9917_v34 = vcombine.low %v1089_v4, %v1093_v56  ;;  %v9766_v33 = vcombine.high %v937_v15, %v941_v23 }
 0x429   :  { %v1085_v29 = vld [vmem:[#allocation8 + $0x6f8] sm:$0xff] }
 0x42a   :  { %v9910_v42 = vcombine.high %v1081_v9, %v1085_v29  ;;  %v929_v25 = vld [vmem:[#allocation8 + $0x218] sm:$0xff] }
 0x42b   :  { %8086 = vmatpush2.bf16.msra.mxu0 %v9805_v19  ;;  %8123 = vmatpush1.bf16.msra.mxu1 %v9821_v13  ;;  %v933_v35 = vld [vmem:[#allocation8 + $0x238] sm:$0xff]  ;;  %v9765_v13 = vcombine.low %v937_v15, %v941_v23 }
 0x42c   :  { %8087 = vmatprep.subr.bf16.mxu0 %v9798_v18  ;;  %8124 = vmatprep.subr.bf16.mxu1 %v9942_v36  ;;  %v1073_v63 = vld [vmem:[#allocation8 + $0x698] sm:$0xff]  ;;  %v9909_v18 = vcombine.low %v1081_v9, %v1085_v29  ;;  %v9758_v36 = vcombine.high %v929_v25, %v933_v35 }
 0x42d   :  { %v1077_v19 = vld [vmem:[#allocation8 + $0x6b8] sm:$0xff] }
 0x42e   :  { %v9902_v38 = vcombine.high %v1073_v63, %v1077_v19  ;;  %v1065_v39 = vld [vmem:[#allocation8 + $0x658] sm:$0xff] }
 0x42f   :  { %8088 = vmatpush2.bf16.msra.mxu0 %v9797_v50  ;;  %8125 = vmatpush2.bf16.msra.mxu1 %v9941_v47  ;;  %v1069_v40 = vld [vmem:[#allocation8 + $0x678] sm:$0xff]  ;;  %v9757_v47 = vcombine.low %v929_v25, %v933_v35 }
 0x430   :  { %8089 = vmatprep.subr.bf16.mxu0 %v9790_v37  ;;  %8126 = vmatprep.subr.bf16.mxu1 %v9934_v54  ;;  %v1177_v20 = vld [vmem:[#allocation8 + $0x9d8] sm:$0xff]  ;;  %v9901_v37 = vcombine.low %v1073_v63, %v1077_v19  ;;  %v9894_v54 = vcombine.high %v1065_v39, %v1069_v40 }
 0x431   :  { %v1181_v50 = vld [vmem:[#allocation8 + $0x9f8] sm:$0xff] }
 0x432   :  { %v10006_v1 = vcombine.high %v1177_v20, %v1181_v50  ;;  %v1057_v55 = vld [vmem:[#allocation8 + $0x618] sm:$0xff] }
 0x433   :  { %8090 = vmatpush2.bf16.msra.mxu0 %v9789_v3  ;;  %8127 = vmatpush2.bf16.msra.mxu1 %v9933_v28  ;;  %v1061_v60 = vld [vmem:[#allocation8 + $0x638] sm:$0xff]  ;;  %v9893_v28 = vcombine.low %v1065_v39, %v1069_v40 }
 0x434   :  { %8091 = vmatprep.subr.bf16.mxu0 %v9782_v43  ;;  %8128 = vmatprep.subr.bf16.mxu1 %v9926_v51  ;;  %v1169_v41 = vld [vmem:[#allocation8 + $0x998] sm:$0xff]  ;;  %v10005_v43 = vcombine.low %v1177_v20, %v1181_v50  ;;  %v9886_v51 = vcombine.high %v1057_v55, %v1061_v60 }
 0x435   :  { %v1173_v3 = vld [vmem:[#allocation8 + $0x9b8] sm:$0xff] }
 0x436   :  { %v1161_v6 = vld [vmem:[#allocation8 + $0x958] sm:$0xff]  ;;  %v9998_v7 = vcombine.high %v1169_v41, %v1173_v3  ;;  %v9997_v15 = vcombine.low %v1169_v41, %v1173_v3 }
 0x437   :  { %8092 = vmatpush2.bf16.msra.mxu0 %v9781_v10  ;;  %8129 = vmatpush2.bf16.msra.mxu1 %v9925_v45  ;;  %v1165_v4 = vld [vmem:[#allocation8 + $0x978] sm:$0xff] }
 0x438   :  { %8093 = vmatprep.subr.bf16.mxu0 %v9774_v11  ;;  %8130 = vmatprep.subr.bf16.mxu1 %v9918_v52  ;;  %v1305_v56 = vld [vmem:[#allocation8 + $0xdd8] sm:$0xff]  ;;  %v9885_v52 = vcombine.low %v1057_v55, %v1061_v60  ;;  %v9990_v9 = vcombine.high %v1161_v6, %v1165_v4 }
 0x439   :  { %v1309_v10 = vld [vmem:[#allocation8 + $0xdf8] sm:$0xff] }
 0x43a   :  { %v10134_v29 = vcombine.high %v1305_v56, %v1309_v10  ;;  %v1297_v25 = vld [vmem:[#allocation8 + $0xd98] sm:$0xff]  ;;  %v10133_v35 = vcombine.low %v1305_v56, %v1309_v10 }
 0x43b   :  { %8094 = vmatpush2.bf16.msra.mxu0 %v9773_v49  ;;  %8131 = vmatpush2.bf16.msra.mxu1 %v9917_v34  ;;  %v1153_v34 = vld [vmem:[#allocation8 + $0x918] sm:$0xff] }
 0x43c   :  { %8095 = vmatprep.subr.bf16.mxu0 %v9766_v33  ;;  %8132 = vmatprep.subr.bf16.mxu1 %v9910_v42  ;;  %v1157_v33 = vld [vmem:[#allocation8 + $0x938] sm:$0xff] }
 0x43d   :  { %v1145_v19 = vld [vmem:[#allocation8 + $0x8d8] sm:$0xff]  ;;  %v9981_v40 = vcombine.low %v1153_v34, %v1157_v33 }
 0x43e   :  { %v1141_v55 = vld [vmem:[#allocation8 + $0x8b8] sm:$0xff] }
 0x43f   :  { %8096 = vmatpush2.bf16.msra.mxu0 %v9765_v13  ;;  %8133 = vmatpush2.bf16.msra.mxu1 %v9909_v18  ;;  %v1149_v18 = vld [vmem:[#allocation8 + $0x8f8] sm:$0xff] }
 0x440   :  { %8097 = vmatprep.subr.bf16.mxu0 %v9758_v36  ;;  %8134 = vmatprep.subr.bf16.mxu1 %v9902_v38  ;;  %v1289_v36 = vld [vmem:[#allocation8 + $0xd58] sm:$0xff]  ;;  %v9973_v3 = vcombine.low %v1145_v19, %v1149_v18 }
 0x441   :  { %v1293_v38 = vld [vmem:[#allocation8 + $0xd78] sm:$0xff] }
 0x442   :  { %v1281_v60 = vld [vmem:[#allocation8 + $0xd18] sm:$0xff] }
 0x443   :  { %8098 = vmatpush2.bf16.msra.mxu0 %v9757_v47  ;;  %8135 = vmatpush2.bf16.msra.mxu1 %v9901_v37  ;;  %v9974_v47 = vcombine.high %v1145_v19, %v1149_v18  ;;  %v10118_v37 = vcombine.high %v1289_v36, %v1293_v38  ;;  %v1285_v41 = vld [vmem:[#allocation8 + $0xd38] sm:$0xff] }
 0x444   :  { %8136 = vmatprep.subr.bf16.mxu1 %v9894_v54  ;;  %8149 = vmatprep.subr.bf16.mxu0 %v10006_v1  ;;  %v1137_v54 = vld [vmem:[#allocation8 + $0x898] sm:$0xff] }
 0x445   :  { %v1277_v56 = vld [vmem:[#allocation8 + $0xcf8] sm:$0xff]  ;;  %v9965_v10 = vcombine.low %v1137_v54, %v1141_v55 }
 0x446   :  { %v7855_v45 = vpop.f32.mrf.mxu0  ;;  %8100 = vmatmul.mubr.bf16.vlgmr.msra.gmra.mxu0 %v11516_v24  ;;  %v1301_v24 = vld [vmem:[#allocation8 + $0xdb8] sm:$0xff] }
 0x447   :  { %v7856_v11 = vadd.f32 %v7855_v45, %v11732_v8  ;;  %8137 = vmatpush2.bf16.msra.mxu1 %v9893_v28  ;;  %8150 = vmatpush1.bf16.msra.mxu0 %v10005_v43  ;;  %v9989_v8 = vcombine.low %v1161_v6, %v1165_v4  ;;  %v10126_v13 = vcombine.high %v1297_v25, %v1301_v24  ;;  %v1129_v6 = vld [vmem:[#allocation8 + $0x858] sm:$0xff] }
 0x448   :  { %8181 = vmatprep.mubr.bf16.mxu0 %v11520_v57  ;;  %v7857_v23 = vpop.f32.mrf.mxu0  ;;  %8138 = vmatprep.subr.bf16.mxu1 %v9886_v51  ;;  %v9982_v57 = vcombine.high %v1153_v34, %v1157_v33  ;;  %v10125_v20 = vcombine.low %v1297_v25, %v1301_v24  ;;  %v10117_v28 = vcombine.low %v1289_v36, %v1293_v38  ;;  %v1273_v4 = vld [vmem:[#allocation8 + $0xcd8] sm:$0xff] }
 0x449   :  { %v7858_v49 = vadd.f32 %v7857_v23, %v11735_v31  ;;  %8151 = vmatprep.subr.bf16.mxu0 %v9998_v7  ;;  %v10110_v51 = vcombine.high %v1281_v60, %v1285_v41  ;;  %v1133_v7 = vld [vmem:[#allocation8 + $0x878] sm:$0xff]  ;;  %v10109_v45 = vcombine.low %v1281_v60, %v1285_v41  ;;  %v10101_v34 = vcombine.low %v1273_v4, %v1277_v56 }
 0x44a   :  { %v7859_v42 = vpop.f32.mrf.mxu0  ;;  %v1125_v23 = vld [vmem:[#allocation8 + $0x838] sm:$0xff] }
 0x44b   :  { %8139 = vmatpush2.bf16.msra.mxu1 %v9885_v52  ;;  %8152 = vmatpush1.bf16.msra.mxu0 %v9997_v15  ;;  %v10102_v52 = vcombine.high %v1273_v4, %v1277_v56  ;;  %v1121_v15 = vld [vmem:[#allocation8 + $0x818] sm:$0xff] }
 0x44c   :  { %v7860_v63 = vpop.f32.mrf.mxu0  ;;  %8153 = vmatprep.subr.bf16.mxu0 %v9990_v9  ;;  %8190 = vmatprep.subr.bf16.mxu1 %v10134_v29  ;;  %v1265_v9 = vld [vmem:[#allocation8 + $0xc98] sm:$0xff]  ;;  %v9950_v33 = vcombine.high %v1121_v15, %v1125_v23 }
 0x44d   :  { %v1269_v29 = vld [vmem:[#allocation8 + $0xcb8] sm:$0xff]  ;;  %v9949_v63 = vcombine.low %v1121_v15, %v1125_v23 }
 0x44e   :  { %v7896_v31 = vpop.f32.mrf.mxu1  ;;  %8141 = vmatmul.mubr.bf16.vlgmr.msra.gmra.mxu1 %v11543_v21  ;;  %v10094_v42 = vcombine.high %v1265_v9, %v1269_v29  ;;  %v1241_v25 = vld [vmem:[#allocation8 + $0xbd8] sm:$0xff] }
 0x44f   :  { %v11742_v39 = vadd.f32 %v7896_v31, %v7856_v11  ;;  %8154 = vmatpush1.bf16.msra.mxu0 %v9989_v8  ;;  %8191 = vmatpush1.bf16.msra.mxu1 %v10133_v35  ;;  %v9958_v11 = vcombine.high %v1129_v6, %v1133_v7  ;;  %v1245_v24 = vld [vmem:[#allocation8 + $0xbf8] sm:$0xff] }
 0x450   :  { %8222 = vmatprep.mubr.bf16.mxu1 %v11561_v58  ;;  %v7898_v50 = vpop.f32.mrf.mxu1  ;;  %8155 = vmatprep.subr.bf16.mxu0 %v9982_v57  ;;  %v9966_v58 = vcombine.high %v1137_v54, %v1141_v55  ;;  %v1257_v8 = vld [vmem:[#allocation8 + $0xc58] sm:$0xff]  ;;  %v10093_v57 = vcombine.low %v1265_v9, %v1269_v29  ;;  %v10070_v19 = vcombine.high %v1241_v25, %v1245_v24 }
 0x451   :  { %v11745_v1 = vadd.f32 %v7898_v50, %v7858_v49  ;;  %8192 = vmatprep.subr.bf16.mxu1 %v10126_v13  ;;  %v9957_v49 = vcombine.low %v1129_v6, %v1133_v7  ;;  %v1261_v35 = vld [vmem:[#allocation8 + $0xc78] sm:$0xff] }
 0x452   :  { %v7900_v21 = vpop.f32.mrf.mxu1  ;;  %v10086_v13 = vcombine.high %v1257_v8, %v1261_v35  ;;  %v1233_v18 = vld [vmem:[#allocation8 + $0xb98] sm:$0xff] }
 0x453   :  { %8156 = vmatpush1.bf16.msra.mxu0 %v9981_v40  ;;  %8193 = vmatpush1.bf16.msra.mxu1 %v10125_v20  ;;  %v1237_v36 = vld [vmem:[#allocation8 + $0xbb8] sm:$0xff]  ;;  %v10069_v40 = vcombine.low %v1241_v25, %v1245_v24  ;;  %v10085_v20 = vcombine.low %v1257_v8, %v1261_v35 }
 0x454   :  { %v7901_v43 = vpop.f32.mrf.mxu1  ;;  %8157 = vmatprep.subr.bf16.mxu0 %v9974_v47  ;;  %8194 = vmatprep.subr.bf16.mxu1 %v10118_v37  ;;  %v1249_v38 = vld [vmem:[#allocation8 + $0xc18] sm:$0xff]  ;;  %v10062_v50 = vcombine.high %v1233_v18, %v1237_v36  ;;  %v10061_v41 = vcombine.low %v1233_v18, %v1237_v36 }
 0x455   :  { %v1253_v31 = vld [vmem:[#allocation8 + $0xc38] sm:$0xff] }
 0x456   :  { %v10078_v47 = vcombine.high %v1249_v38, %v1253_v31  ;;  %v1225_v37 = vld [vmem:[#allocation8 + $0xb58] sm:$0xff]  ;;  %v10077_v21 = vcombine.low %v1249_v38, %v1253_v31 }
 0x457   :  { %8158 = vmatpush1.bf16.msra.mxu0 %v9973_v3  ;;  %8195 = vmatpush1.bf16.msra.mxu1 %v10117_v28  ;;  %v1229_v54 = vld [vmem:[#allocation8 + $0xb78] sm:$0xff] }
 0x458   :  { %8159 = vmatprep.subr.bf16.mxu0 %v9966_v58  ;;  %8196 = vmatprep.subr.bf16.mxu1 %v10110_v51  ;;  %v1369_v55 = vld [vmem:[#allocation8 + $0xfd8] sm:$0xff]  ;;  %v10054_v3 = vcombine.high %v1225_v37, %v1229_v54  ;;  %v10053_v7 = vcombine.low %v1225_v37, %v1229_v54 }
 0x459   :  { %v1373_v60 = vld [vmem:[#allocation8 + $0xff8] sm:$0xff] }
 0x45a   :  { %v10198_v28 = vcombine.high %v1369_v55, %v1373_v60  ;;  %v1217_v43 = vld [vmem:[#allocation8 + $0xb18] sm:$0xff]  ;;  %v10197_v4 = vcombine.low %v1369_v55, %v1373_v60 }
 0x45b   :  { %8160 = vmatpush1.bf16.msra.mxu0 %v9965_v10  ;;  %8197 = vmatpush1.bf16.msra.mxu1 %v10109_v45  ;;  %v1221_v58 = vld [vmem:[#allocation8 + $0xb38] sm:$0xff] }
 0x45c   :  { %8161 = vmatprep.subr.bf16.mxu0 %v9958_v11  ;;  %8198 = vmatprep.subr.bf16.mxu1 %v10102_v52  ;;  %v1361_v51 = vld [vmem:[#allocation8 + $0xf98] sm:$0xff]  ;;  %v10046_v56 = vcombine.high %v1217_v43, %v1221_v58  ;;  %v10045_v23 = vcombine.low %v1217_v43, %v1221_v58 }
 0x45d   :  { %v1365_v6 = vld [vmem:[#allocation8 + $0xfb8] sm:$0xff] }
 0x45e   :  { %v10190_v10 = vcombine.high %v1361_v51, %v1365_v6  ;;  %v1209_v45 = vld [vmem:[#allocation8 + $0xad8] sm:$0xff]  ;;  %v10189_v9 = vcombine.low %v1361_v51, %v1365_v6 }
 0x45f   :  { %8162 = vmatpush1.bf16.msra.mxu0 %v9957_v49  ;;  %8199 = vmatpush1.bf16.msra.mxu1 %v10101_v34  ;;  %v1213_v11 = vld [vmem:[#allocation8 + $0xaf8] sm:$0xff] }
 0x460   :  { %8163 = vmatprep.subr.bf16.mxu0 %v9950_v33  ;;  %8200 = vmatprep.subr.bf16.mxu1 %v10094_v42  ;;  %v1353_v52 = vld [vmem:[#allocation8 + $0xf58] sm:$0xff]  ;;  %v10038_v29 = vcombine.high %v1209_v45, %v1213_v11  ;;  %v10037_v24 = vcombine.low %v1209_v45, %v1213_v11 }
 0x461   :  { %v1357_v15 = vld [vmem:[#allocation8 + $0xf78] sm:$0xff] }
 0x462   :  { %v10182_v49 = vcombine.high %v1353_v52, %v1357_v15  ;;  %v1201_v34 = vld [vmem:[#allocation8 + $0xa98] sm:$0xff]  ;;  %v10181_v8 = vcombine.low %v1353_v52, %v1357_v15 }
 0x463   :  { %8164 = vmatpush1.bf16.msra.mxu0 %v9949_v63  ;;  %8201 = vmatpush1.bf16.msra.mxu1 %v10093_v57  ;;  %v1205_v33 = vld [vmem:[#allocation8 + $0xab8] sm:$0xff] }
 0x464   :  { %8165 = vmatprep.subr.bf16.mxu0 %v10070_v19  ;;  %8202 = vmatprep.subr.bf16.mxu1 %v10086_v13  ;;  %v1345_v42 = vld [vmem:[#allocation8 + $0xf18] sm:$0xff]  ;;  %v10030_v35 = vcombine.high %v1201_v34, %v1205_v33  ;;  %v10029_v36 = vcombine.low %v1201_v34, %v1205_v33 }
 0x465   :  { %v1349_v25 = vld [vmem:[#allocation8 + $0xf38] sm:$0xff] }
 0x466   :  { %v10174_v63 = vcombine.high %v1345_v42, %v1349_v25  ;;  %v1193_v57 = vld [vmem:[#allocation8 + $0xa58] sm:$0xff]  ;;  %v10173_v38 = vcombine.low %v1345_v42, %v1349_v25 }
 0x467   :  { %8166 = vmatpush2.bf16.msra.mxu0 %v10069_v40  ;;  %8203 = vmatpush1.bf16.msra.mxu1 %v10085_v20  ;;  %v1197_v19 = vld [vmem:[#allocation8 + $0xa78] sm:$0xff] }
 0x468   :  { %8167 = vmatprep.subr.bf16.mxu0 %v10062_v50  ;;  %8204 = vmatprep.subr.bf16.mxu1 %v10078_v47  ;;  %v1337_v13 = vld [vmem:[#allocation8 + $0xed8] sm:$0xff]  ;;  %v10022_v31 = vcombine.high %v1193_v57, %v1197_v19  ;;  %v10021_v54 = vcombine.low %v1193_v57, %v1197_v19 }
 0x469   :  { %v1341_v18 = vld [vmem:[#allocation8 + $0xef8] sm:$0xff] }
 0x46a   :  { %v10166_v40 = vcombine.high %v1337_v13, %v1341_v18  ;;  %v1185_v20 = vld [vmem:[#allocation8 + $0xa18] sm:$0xff]  ;;  %v10165_v55 = vcombine.low %v1337_v13, %v1341_v18 }
 0x46b   :  { %8168 = vmatpush2.bf16.msra.mxu0 %v10061_v41  ;;  %8205 = vmatpush1.bf16.msra.mxu1 %v10077_v21  ;;  %v1189_v50 = vld [vmem:[#allocation8 + $0xa38] sm:$0xff] }
 0x46c   :  { %8169 = vmatprep.subr.bf16.mxu0 %v10054_v3  ;;  %8206 = vmatprep.subr.bf16.mxu1 %v10198_v28  ;;  %v1329_v47 = vld [vmem:[#allocation8 + $0xe98] sm:$0xff]  ;;  %v10014_v60 = vcombine.high %v1185_v20, %v1189_v50  ;;  %v10013_v58 = vcombine.low %v1185_v20, %v1189_v50 }
 0x46d   :  { %v1333_v37 = vld [vmem:[#allocation8 + $0xeb8] sm:$0xff] }
 0x46e   :  { %v10158_v41 = vcombine.high %v1329_v47, %v1333_v37  ;;  %v1321_v21 = vld [vmem:[#allocation8 + $0xe58] sm:$0xff]  ;;  %v10157_v51 = vcombine.low %v1329_v47, %v1333_v37 }
 0x46f   :  { %8170 = vmatpush2.bf16.msra.mxu0 %v10053_v7  ;;  %8207 = vmatpush2.bf16.msra.mxu1 %v10197_v4  ;;  %v1325_v3 = vld [vmem:[#allocation8 + $0xe78] sm:$0xff] }
 0x470   :  { %8171 = vmatprep.subr.bf16.mxu0 %v10046_v56  ;;  %8208 = vmatprep.subr.bf16.mxu1 %v10190_v10  ;;  %v1433_v28 = vld [vmem:[#allocation8 + $0x11d8] sm:$0xff]  ;;  %v10150_v6 = vcombine.high %v1321_v21, %v1325_v3  ;;  %v10149_v11 = vcombine.low %v1321_v21, %v1325_v3 }
 0x471   :  { %v1437_v43 = vld [vmem:[#allocation8 + $0x11f8] sm:$0xff] }
 0x472   :  { %v10262_v7 = vcombine.high %v1433_v28, %v1437_v43  ;;  %v1313_v4 = vld [vmem:[#allocation8 + $0xe18] sm:$0xff]  ;;  %v10261_v52 = vcombine.low %v1433_v28, %v1437_v43 }
 0x473   :  { %8172 = vmatpush2.bf16.msra.mxu0 %v10045_v23  ;;  %8209 = vmatpush2.bf16.msra.mxu1 %v10189_v9  ;;  %v1317_v56 = vld [vmem:[#allocation8 + $0xe38] sm:$0xff] }
 0x474   :  { %8173 = vmatprep.subr.bf16.mxu0 %v10038_v29  ;;  %8210 = vmatprep.subr.bf16.mxu1 %v10182_v49  ;;  %v1425_v10 = vld [vmem:[#allocation8 + $0x1198] sm:$0xff]  ;;  %v10142_v15 = vcombine.high %v1313_v4, %v1317_v56  ;;  %v10141_v25 = vcombine.low %v1313_v4, %v1317_v56 }
 0x475   :  { %v1429_v45 = vld [vmem:[#allocation8 + $0x11b8] sm:$0xff] }
 0x476   :  { %v1417_v23 = vld [vmem:[#allocation8 + $0x1158] sm:$0xff]  ;;  %v10254_v9 = vcombine.high %v1425_v10, %v1429_v45 }
 0x477   :  { %8174 = vmatpush2.bf16.msra.mxu0 %v10037_v24  ;;  %8211 = vmatpush2.bf16.msra.mxu1 %v10181_v8  ;;  %v1421_v29 = vld [vmem:[#allocation8 + $0x1178] sm:$0xff]  ;;  %v10253_v24 = vcombine.low %v1425_v10, %v1429_v45 }
 0x478   :  { %8175 = vmatprep.subr.bf16.mxu0 %v10030_v35  ;;  %8212 = vmatprep.subr.bf16.mxu1 %v10174_v63  ;;  %v1561_v49 = vld [vmem:[#allocation8 + $0x15d8] sm:$0xff]  ;;  %v10246_v35 = vcombine.high %v1417_v23, %v1421_v29 }
 0x479   :  { %v1565_v34 = vld [vmem:[#allocation8 + $0x15f8] sm:$0xff] }
 0x47a   :  { %v10390_v63 = vcombine.high %v1561_v49, %v1565_v34  ;;  %v1409_v19 = vld [vmem:[#allocation8 + $0x1118] sm:$0xff] }
 0x47b   :  { %8176 = vmatpush2.bf16.msra.mxu0 %v10029_v36  ;;  %8213 = vmatpush2.bf16.msra.mxu1 %v10173_v38  ;;  %v1413_v13 = vld [vmem:[#allocation8 + $0x1138] sm:$0xff]  ;;  %v10389_v38 = vcombine.low %v1561_v49, %v1565_v34 }
 0x47c   :  { %8177 = vmatprep.subr.bf16.mxu0 %v10022_v31  ;;  %8214 = vmatprep.subr.bf16.mxu1 %v10166_v40  ;;  %v1553_v36 = vld [vmem:[#allocation8 + $0x1598] sm:$0xff] }
 0x47d   :  { %v1401_v40 = vld [vmem:[#allocation8 + $0x10d8] sm:$0xff] }
 0x47e   :  { %v1405_v50 = vld [vmem:[#allocation8 + $0x10f8] sm:$0xff] }
 0x47f   :  { %8178 = vmatpush2.bf16.msra.mxu0 %v10021_v54  ;;  %8215 = vmatpush2.bf16.msra.mxu1 %v10165_v55  ;;  %v1545_v47 = vld [vmem:[#allocation8 + $0x1558] sm:$0xff]  ;;  %v10237_v55 = vcombine.low %v1409_v19, %v1413_v13  ;;  %v10230_v21 = vcombine.high %v1401_v40, %v1405_v50 }
 0x480   :  { %8179 = vmatprep.subr.bf16.mxu0 %v10014_v60  ;;  %8216 = vmatprep.subr.bf16.mxu1 %v10158_v41  ;;  %v1549_v37 = vld [vmem:[#allocation8 + $0x1578] sm:$0xff] }
 0x481   :  { %v10374_v3 = vcombine.high %v1545_v47, %v1549_v37  ;;  %v1393_v28 = vld [vmem:[#allocation8 + $0x1098] sm:$0xff]  ;;  %v10373_v4 = vcombine.low %v1545_v47, %v1549_v37 }
 0x482   :  { %v1385_v45 = vld [vmem:[#allocation8 + $0x1058] sm:$0xff] }
 0x483   :  { %8180 = vmatpush2.bf16.msra.mxu0 %v10013_v58  ;;  %8217 = vmatpush2.bf16.msra.mxu1 %v10157_v51  ;;  %v1397_v58 = vld [vmem:[#allocation8 + $0x10b8] sm:$0xff] }
 0x484   :  { %8218 = vmatprep.subr.bf16.mxu1 %v10150_v6  ;;  %8231 = vmatprep.subr.bf16.mxu0 %v10262_v7  ;;  %v1537_v51 = vld [vmem:[#allocation8 + $0x1518] sm:$0xff]  ;;  %v10229_v7 = vcombine.low %v1401_v40, %v1405_v50 }
 0x485   :  { %v1541_v6 = vld [vmem:[#allocation8 + $0x1538] sm:$0xff] }
 0x486   :  { %v7937_v33 = vpop.f32.mrf.mxu0  ;;  %8182 = vmatmul.mubr.bf16.vlgmr.msra.gmra.mxu0 %v11592_v44  ;;  %v1557_v44 = vld [vmem:[#allocation8 + $0x15b8] sm:$0xff]  ;;  %v10366_v10 = vcombine.high %v1537_v51, %v1541_v6 }
 0x487   :  { %v7938_v42 = vadd.f32 %v7937_v33, %v11742_v39  ;;  %8219 = vmatpush2.bf16.msra.mxu1 %v10149_v11  ;;  %8232 = vmatpush1.bf16.msra.mxu0 %v10261_v52  ;;  %v10245_v39 = vcombine.low %v1417_v23, %v1421_v29  ;;  %v10382_v20 = vcombine.high %v1553_v36, %v1557_v44  ;;  %v1389_v11 = vld [vmem:[#allocation8 + $0x1078] sm:$0xff] }
 0x488   :  { %8263 = vmatprep.mubr.bf16.mxu0 %v11595_v59  ;;  %v7939_v8 = vpop.f32.mrf.mxu0  ;;  %8220 = vmatprep.subr.bf16.mxu1 %v10142_v15  ;;  %v10238_v59 = vcombine.high %v1409_v19, %v1413_v13  ;;  %v10381_v60 = vcombine.low %v1553_v36, %v1557_v44  ;;  %v1529_v52 = vld [vmem:[#allocation8 + $0x14d8] sm:$0xff]  ;;  %v10221_v23 = vcombine.low %v1393_v28, %v1397_v58 }
 0x489   :  { %v7940_v57 = vadd.f32 %v7939_v8, %v11745_v1  ;;  %8233 = vmatprep.subr.bf16.mxu0 %v10254_v9  ;;  %v1533_v15 = vld [vmem:[#allocation8 + $0x14f8] sm:$0xff]  ;;  %v10365_v9 = vcombine.low %v1537_v51, %v1541_v6  ;;  %v10214_v29 = vcombine.high %v1385_v45, %v1389_v11 }
 0x48a   :  { %v7941_v18 = vpop.f32.mrf.mxu0  ;;  %v10358_v49 = vcombine.high %v1529_v52, %v1533_v15  ;;  %v1377_v34 = vld [vmem:[#allocation8 + $0x1018] sm:$0xff]  ;;  %v10357_v8 = vcombine.low %v1529_v52, %v1533_v15 }
 0x48b   :  { %8221 = vmatpush2.bf16.msra.mxu1 %v10141_v25  ;;  %8234 = vmatpush1.bf16.msra.mxu0 %v10253_v24  ;;  %v1381_v33 = vld [vmem:[#allocation8 + $0x1038] sm:$0xff]  ;;  %v10213_v24 = vcombine.low %v1385_v45, %v1389_v11 }
 0x48c   :  { %v7942_v31 = vpop.f32.mrf.mxu0  ;;  %8235 = vmatprep.subr.bf16.mxu0 %v10246_v35  ;;  %8272 = vmatprep.subr.bf16.mxu1 %v10390_v63  ;;  %v1525_v25 = vld [vmem:[#allocation8 + $0x14b8] sm:$0xff]  ;;  %v10206_v35 = vcombine.high %v1377_v34, %v1381_v33  ;;  %v10205_v36 = vcombine.low %v1377_v34, %v1381_v33 }
 0x48d   :  { %v1501_v19 = vld [vmem:[#allocation8 + $0x13f8] sm:$0xff] }
 0x48e   :  { %v7978_v1 = vpop.f32.mrf.mxu1  ;;  %8223 = vmatmul.mubr.bf16.vlgmr.msra.gmra.mxu1 %v11600_v14  ;;  %v1513_v13 = vld [vmem:[#allocation8 + $0x1458] sm:$0xff] }
 0x48f   :  { %v11752_v54 = vadd.f32 %v7978_v1, %v7938_v42  ;;  %8236 = vmatpush1.bf16.msra.mxu0 %v10245_v39  ;;  %8273 = vmatpush1.bf16.msra.mxu1 %v10389_v38  ;;  %v1521_v42 = vld [vmem:[#allocation8 + $0x1498] sm:$0xff] }
 0x490   :  { %8304 = vmatprep.mubr.bf16.mxu1 %v11602_v30  ;;  %v7980_v41 = vpop.f32.mrf.mxu1  ;;  %8237 = vmatprep.subr.bf16.mxu0 %v10238_v59  ;;  %v10222_v30 = vcombine.high %v1393_v28, %v1397_v58  ;;  %v10350_v63 = vcombine.high %v1521_v42, %v1525_v25  ;;  %v1517_v18 = vld [vmem:[#allocation8 + $0x1478] sm:$0xff]  ;;  %v10349_v44 = vcombine.low %v1521_v42, %v1525_v25 }
 0x491   :  { %v11755_v43 = vadd.f32 %v7980_v41, %v7940_v57  ;;  %8274 = vmatprep.subr.bf16.mxu1 %v10382_v20  ;;  %v1497_v57 = vld [vmem:[#allocation8 + $0x13d8] sm:$0xff]  ;;  %v10342_v38 = vcombine.high %v1513_v13, %v1517_v18  ;;  %v10341_v47 = vcombine.low %v1513_v13, %v1517_v18 }
 0x492   :  { %v7982_v14 = vpop.f32.mrf.mxu1  ;;  %v10326_v39 = vcombine.high %v1497_v57, %v1501_v19  ;;  %v1489_v31 = vld [vmem:[#allocation8 + $0x1398] sm:$0xff]  ;;  %v10325_v50 = vcombine.low %v1497_v57, %v1501_v19 }
 0x493   :  { %8238 = vmatpush1.bf16.msra.mxu0 %v10237_v55  ;;  %8275 = vmatpush1.bf16.msra.mxu1 %v10381_v60  ;;  %v1493_v59 = vld [vmem:[#allocation8 + $0x13b8] sm:$0xff] }
 0x494   :  { %v7983_v56 = vpop.f32.mrf.mxu1  ;;  %8239 = vmatprep.subr.bf16.mxu0 %v10230_v21  ;;  %8276 = vmatprep.subr.bf16.mxu1 %v10374_v3  ;;  %v1505_v40 = vld [vmem:[#allocation8 + $0x1418] sm:$0xff]  ;;  %v10318_v37 = vcombine.high %v1489_v31, %v1493_v59  ;;  %v10317_v3 = vcombine.low %v1489_v31, %v1493_v59 }
 0x495   :  { %v1509_v20 = vld [vmem:[#allocation8 + $0x1438] sm:$0xff] }
 0x496   :  { %v10334_v1 = vcombine.high %v1505_v40, %v1509_v20  ;;  %v1481_v55 = vld [vmem:[#allocation8 + $0x1358] sm:$0xff]  ;;  %v10333_v28 = vcombine.low %v1505_v40, %v1509_v20 }
 0x497   :  { %8240 = vmatpush1.bf16.msra.mxu0 %v10229_v7  ;;  %8277 = vmatpush1.bf16.msra.mxu1 %v10373_v4  ;;  %v1485_v60 = vld [vmem:[#allocation8 + $0x1378] sm:$0xff] }
 0x498   :  { %8241 = vmatprep.subr.bf16.mxu0 %v10222_v30  ;;  %8278 = vmatprep.subr.bf16.mxu1 %v10366_v10  ;;  %v1625_v41 = vld [vmem:[#allocation8 + $0x17d8] sm:$0xff]  ;;  %v10310_v58 = vcombine.high %v1481_v55, %v1485_v60  ;;  %v10309_v56 = vcombine.low %v1481_v55, %v1485_v60 }
 0x499   :  { %v1629_v21 = vld [vmem:[#allocation8 + $0x17f8] sm:$0xff] }
 0x49a   :  { %v10454_v51 = vcombine.high %v1625_v41, %v1629_v21  ;;  %v1473_v6 = vld [vmem:[#allocation8 + $0x1318] sm:$0xff]  ;;  %v10453_v30 = vcombine.low %v1625_v41, %v1629_v21 }
 0x49b   :  { %8242 = vmatpush1.bf16.msra.mxu0 %v10221_v23  ;;  %8279 = vmatpush1.bf16.msra.mxu1 %v10365_v9  ;;  %v1477_v14 = vld [vmem:[#allocation8 + $0x1338] sm:$0xff] }
 0x49c   :  { %8243 = vmatprep.subr.bf16.mxu0 %v10214_v29  ;;  %8280 = vmatprep.subr.bf16.mxu1 %v10358_v49  ;;  %v1617_v7 = vld [vmem:[#allocation8 + $0x1798] sm:$0xff]  ;;  %v10302_v10 = vcombine.high %v1473_v6, %v1477_v14  ;;  %v10301_v9 = vcombine.low %v1473_v6, %v1477_v14 }
 0x49d   :  { %v1621_v4 = vld [vmem:[#allocation8 + $0x17b8] sm:$0xff] }
 0x49e   :  { %v10446_v45 = vcombine.high %v1617_v7, %v1621_v4  ;;  %v1465_v11 = vld [vmem:[#allocation8 + $0x12d8] sm:$0xff]  ;;  %v10445_v29 = vcombine.low %v1617_v7, %v1621_v4 }
 0x49f   :  { %8244 = vmatpush1.bf16.msra.mxu0 %v10213_v24  ;;  %8281 = vmatpush1.bf16.msra.mxu1 %v10357_v8  ;;  %v1469_v52 = vld [vmem:[#allocation8 + $0x12f8] sm:$0xff] }
 0x4a0   :  { %8245 = vmatprep.subr.bf16.mxu0 %v10206_v35  ;;  %8282 = vmatprep.subr.bf16.mxu1 %v10350_v63  ;;  %v1609_v15 = vld [vmem:[#allocation8 + $0x1758] sm:$0xff]  ;;  %v10294_v49 = vcombine.high %v1465_v11, %v1469_v52  ;;  %v10293_v8 = vcombine.low %v1465_v11, %v1469_v52 }
 0x4a1   :  { %v1613_v23 = vld [vmem:[#allocation8 + $0x1778] sm:$0xff] }
 0x4a2   :  { %v10438_v34 = vcombine.high %v1609_v15, %v1613_v23  ;;  %v1457_v33 = vld [vmem:[#allocation8 + $0x1298] sm:$0xff]  ;;  %v10437_v35 = vcombine.low %v1609_v15, %v1613_v23 }
 0x4a3   :  { %8246 = vmatpush1.bf16.msra.mxu0 %v10205_v36  ;;  %8283 = vmatpush1.bf16.msra.mxu1 %v10349_v44  ;;  %v1461_v42 = vld [vmem:[#allocation8 + $0x12b8] sm:$0xff] }
 0x4a4   :  { %8247 = vmatprep.subr.bf16.mxu0 %v10326_v39  ;;  %8284 = vmatprep.subr.bf16.mxu1 %v10342_v38  ;;  %v1601_v25 = vld [vmem:[#allocation8 + $0x1718] sm:$0xff]  ;;  %v10286_v63 = vcombine.high %v1457_v33, %v1461_v42  ;;  %v10285_v44 = vcombine.low %v1457_v33, %v1461_v42 }
 0x4a5   :  { %v1605_v24 = vld [vmem:[#allocation8 + $0x1738] sm:$0xff] }
 0x4a6   :  { %v10430_v57 = vcombine.high %v1601_v25, %v1605_v24  ;;  %v1449_v19 = vld [vmem:[#allocation8 + $0x1258] sm:$0xff]  ;;  %v10429_v39 = vcombine.low %v1601_v25, %v1605_v24 }
 0x4a7   :  { %8248 = vmatpush2.bf16.msra.mxu0 %v10325_v50  ;;  %8285 = vmatpush1.bf16.msra.mxu1 %v10341_v47  ;;  %v1453_v13 = vld [vmem:[#allocation8 + $0x1278] sm:$0xff] }
 0x4a8   :  { %8249 = vmatprep.subr.bf16.mxu0 %v10318_v37  ;;  %8286 = vmatprep.subr.bf16.mxu1 %v10334_v1  ;;  %v1593_v18 = vld [vmem:[#allocation8 + $0x16d8] sm:$0xff]  ;;  %v10278_v38 = vcombine.high %v1449_v19, %v1453_v13  ;;  %v10277_v47 = vcombine.low %v1449_v19, %v1453_v13 }
 0x4a9   :  { %v1597_v36 = vld [vmem:[#allocation8 + $0x16f8] sm:$0xff] }
 0x4aa   :  { %v10422_v31 = vcombine.high %v1593_v18, %v1597_v36  ;;  %v1441_v59 = vld [vmem:[#allocation8 + $0x1218] sm:$0xff]  ;;  %v10421_v37 = vcombine.low %v1593_v18, %v1597_v36 }
 0x4ab   :  { %8250 = vmatpush2.bf16.msra.mxu0 %v10317_v3  ;;  %8287 = vmatpush1.bf16.msra.mxu1 %v10333_v28  ;;  %v1445_v40 = vld [vmem:[#allocation8 + $0x1238] sm:$0xff] }
 0x4ac   :  { %8251 = vmatprep.subr.bf16.mxu0 %v10310_v58  ;;  %8288 = vmatprep.subr.bf16.mxu1 %v10454_v51  ;;  %v1585_v20 = vld [vmem:[#allocation8 + $0x1698] sm:$0xff]  ;;  %v10270_v1 = vcombine.high %v1441_v59, %v1445_v40  ;;  %v10269_v28 = vcombine.low %v1441_v59, %v1445_v40 }
 0x4ad   :  { %v1589_v50 = vld [vmem:[#allocation8 + $0x16b8] sm:$0xff] }
 0x4ae   :  { %v10414_v55 = vcombine.high %v1585_v20, %v1589_v50  ;;  %v1577_v60 = vld [vmem:[#allocation8 + $0x1658] sm:$0xff]  ;;  %v10413_v58 = vcombine.low %v1585_v20, %v1589_v50 }
 0x4af   :  { %8252 = vmatpush2.bf16.msra.mxu0 %v10309_v56  ;;  %8289 = vmatpush2.bf16.msra.mxu1 %v10453_v30  ;;  %v1581_v41 = vld [vmem:[#allocation8 + $0x1678] sm:$0xff] }
 0x4b0   :  { %8253 = vmatprep.subr.bf16.mxu0 %v10302_v10  ;;  %8290 = vmatprep.subr.bf16.mxu1 %v10446_v45  ;;  %v1689_v21 = vld [vmem:[#allocation8 + $0x19d8] sm:$0xff]  ;;  %v10406_v51 = vcombine.high %v1577_v60, %v1581_v41  ;;  %v10405_v30 = vcombine.low %v1577_v60, %v1581_v41 }
 0x4b1   :  { %v1693_v3 = vld [vmem:[#allocation8 + $0x19f8] sm:$0xff] }
 0x4b2   :  { %v10518_v6 = vcombine.high %v1689_v21, %v1693_v3  ;;  %v1569_v14 = vld [vmem:[#allocation8 + $0x1618] sm:$0xff]  ;;  %v10517_v10 = vcombine.low %v1689_v21, %v1693_v3 }
 0x4b3   :  { %8254 = vmatpush2.bf16.msra.mxu0 %v10301_v9  ;;  %8291 = vmatpush2.bf16.msra.mxu1 %v10445_v29  ;;  %v1573_v7 = vld [vmem:[#allocation8 + $0x1638] sm:$0xff] }
 0x4b4   :  { %8255 = vmatprep.subr.bf16.mxu0 %v10294_v49  ;;  %8292 = vmatprep.subr.bf16.mxu1 %v10438_v34  ;;  %v1681_v4 = vld [vmem:[#allocation8 + $0x1998] sm:$0xff]  ;;  %v10398_v45 = vcombine.high %v1569_v14, %v1573_v7  ;;  %v10397_v34 = vcombine.low %v1569_v14, %v1573_v7 }
 0x4b5   :  { %v1685_v56 = vld [vmem:[#allocation8 + $0x19b8] sm:$0xff] }
 0x4b6   :  { %v1673_v11 = vld [vmem:[#allocation8 + $0x1958] sm:$0xff]  ;;  %v10510_v52 = vcombine.high %v1681_v4, %v1685_v56  ;;  %v10509_v33 = vcombine.low %v1681_v4, %v1685_v56 }
 0x4b7   :  { %8256 = vmatpush2.bf16.msra.mxu0 %v10293_v8  ;;  %8293 = vmatpush2.bf16.msra.mxu1 %v10437_v35  ;;  %v1677_v15 = vld [vmem:[#allocation8 + $0x1978] sm:$0xff] }
 0x4b8   :  { %8257 = vmatprep.subr.bf16.mxu0 %v10286_v63  ;;  %8294 = vmatprep.subr.bf16.mxu1 %v10430_v57  ;;  %v1817_v23 = vld [vmem:[#allocation8 + $0x1dd8] sm:$0xff]  ;;  %v10502_v25 = vcombine.high %v1673_v11, %v1677_v15 }
 0x4b9   :  { %v1821_v9 = vld [vmem:[#allocation8 + $0x1df8] sm:$0xff] }
 0x4ba   :  { %v10646_v24 = vcombine.high %v1817_v23, %v1821_v9  ;;  %v1665_v35 = vld [vmem:[#allocation8 + $0x1918] sm:$0xff]  ;;  %v10645_v13 = vcombine.low %v1817_v23, %v1821_v9 }
 0x4bb   :  { %8258 = vmatpush2.bf16.msra.mxu0 %v10285_v44  ;;  %8295 = vmatpush2.bf16.msra.mxu1 %v10429_v39  ;;  %v1669_v63 = vld [vmem:[#allocation8 + $0x1938] sm:$0xff] }
 0x4bc   :  { %8259 = vmatprep.subr.bf16.mxu0 %v10278_v38  ;;  %8296 = vmatprep.subr.bf16.mxu1 %v10422_v31  ;;  %v1809_v19 = vld [vmem:[#allocation8 + $0x1d98] sm:$0xff]  ;;  %v10493_v40 = vcombine.low %v1665_v35, %v1669_v63 }
 0x4bd   :  { %v1657_v36 = vld [vmem:[#allocation8 + $0x18d8] sm:$0xff] }
 0x4be   :  { %v1661_v39 = vld [vmem:[#allocation8 + $0x18f8] sm:$0xff] }
 0x4bf   :  { %8260 = vmatpush2.bf16.msra.mxu0 %v10277_v47  ;;  %8297 = vmatpush2.bf16.msra.mxu1 %v10421_v37  ;;  %v1801_v38 = vld [vmem:[#allocation8 + $0x1d58] sm:$0xff]  ;;  %v10486_v47 = vcombine.high %v1657_v36, %v1661_v39  ;;  %v10485_v3 = vcombine.low %v1657_v36, %v1661_v39 }
 0x4c0   :  { %8261 = vmatprep.subr.bf16.mxu0 %v10270_v1  ;;  %8298 = vmatprep.subr.bf16.mxu1 %v10414_v55  ;;  %v1805_v31 = vld [vmem:[#allocation8 + $0x1d78] sm:$0xff] }
 0x4c1   :  { %v10630_v37 = vcombine.high %v1801_v38, %v1805_v31  ;;  %v1649_v1 = vld [vmem:[#allocation8 + $0x1898] sm:$0xff] }
 0x4c2   :  { %v1653_v60 = vld [vmem:[#allocation8 + $0x18b8] sm:$0xff] }
 0x4c3   :  { %8262 = vmatpush2.bf16.msra.mxu0 %v10269_v28  ;;  %8299 = vmatpush2.bf16.msra.mxu1 %v10413_v58  ;;  %v1793_v41 = vld [vmem:[#allocation8 + $0x1d18] sm:$0xff]  ;;  %v10629_v28 = vcombine.low %v1801_v38, %v1805_v31  ;;  %v10477_v56 = vcombine.low %v1649_v1, %v1653_v60 }
 0x4c4   :  { %8300 = vmatprep.subr.bf16.mxu1 %v10406_v51  ;;  %8313 = vmatprep.subr.bf16.mxu0 %v10518_v6  ;;  %v1797_v21 = vld [vmem:[#allocation8 + $0x1d38] sm:$0xff] }
 0x4c5   :  { %v10622_v51 = vcombine.high %v1793_v41, %v1797_v21  ;;  %v1641_v6 = vld [vmem:[#allocation8 + $0x1858] sm:$0xff] }
 0x4c6   :  { %v8019_v29 = vpop.f32.mrf.mxu0  ;;  %8264 = vmatmul.mubr.bf16.vlgmr.msra.gmra.mxu0 %v11611_v2  ;;  %v1813_v2 = vld [vmem:[#allocation8 + $0x1db8] sm:$0xff] }
 0x4c7   :  { %v8020_v49 = vadd.f32 %v8019_v29, %v11752_v54  ;;  %8301 = vmatpush2.bf16.msra.mxu1 %v10405_v30  ;;  %8314 = vmatpush1.bf16.msra.mxu0 %v10517_v10  ;;  %v10501_v54 = vcombine.low %v1673_v11, %v1677_v15  ;;  %v10638_v44 = vcombine.high %v1809_v19, %v1813_v2  ;;  %v1645_v14 = vld [vmem:[#allocation8 + $0x1878] sm:$0xff] }
 0x4c8   :  { %8345 = vmatprep.mubr.bf16.mxu0 %v11613_v5  ;;  %v8021_v42 = vpop.f32.mrf.mxu0  ;;  %8302 = vmatprep.subr.bf16.mxu1 %v10398_v45  ;;  %v10494_v5 = vcombine.high %v1665_v35, %v1669_v63  ;;  %v10637_v20 = vcombine.low %v1809_v19, %v1813_v2  ;;  %v1785_v7 = vld [vmem:[#allocation8 + $0x1cd8] sm:$0xff]  ;;  %v10621_v30 = vcombine.low %v1793_v41, %v1797_v21 }
 0x4c9   :  { %v8022_v8 = vadd.f32 %v8021_v42, %v11755_v43  ;;  %8315 = vmatprep.subr.bf16.mxu0 %v10510_v52  ;;  %v1789_v4 = vld [vmem:[#allocation8 + $0x1cf8] sm:$0xff]  ;;  %v10470_v10 = vcombine.high %v1641_v6, %v1645_v14  ;;  %v10469_v9 = vcombine.low %v1641_v6, %v1645_v14 }
 0x4ca   :  { %v8023_v57 = vpop.f32.mrf.mxu0  ;;  %v10614_v45 = vcombine.high %v1785_v7, %v1789_v4  ;;  %v1633_v11 = vld [vmem:[#allocation8 + $0x1818] sm:$0xff]  ;;  %v10613_v29 = vcombine.low %v1785_v7, %v1789_v4 }
 0x4cb   :  { %8303 = vmatpush2.bf16.msra.mxu1 %v10397_v34  ;;  %8316 = vmatpush1.bf16.msra.mxu0 %v10509_v33  ;;  %v1637_v52 = vld [vmem:[#allocation8 + $0x1838] sm:$0xff] }
 0x4cc   :  { %v8024_v18 = vpop.f32.mrf.mxu0  ;;  %8317 = vmatprep.subr.bf16.mxu0 %v10502_v25  ;;  %8354 = vmatprep.subr.bf16.mxu1 %v10646_v24  ;;  %v1777_v15 = vld [vmem:[#allocation8 + $0x1c98] sm:$0xff] }
 0x4cd   :  { %v1781_v23 = vld [vmem:[#allocation8 + $0x1cb8] sm:$0xff] }
 0x4ce   :  { %v8060_v43 = vpop.f32.mrf.mxu1  ;;  %8305 = vmatmul.mubr.bf16.vlgmr.msra.gmra.mxu1 %v11619_v27  ;;  %v10606_v34 = vcombine.high %v1777_v15, %v1781_v23  ;;  %v1753_v33 = vld [vmem:[#allocation8 + $0x1bd8] sm:$0xff]  ;;  %v10605_v35 = vcombine.low %v1777_v15, %v1781_v23 }
 0x4cf   :  { %v11762_v59 = vadd.f32 %v8060_v43, %v8020_v49  ;;  %8318 = vmatpush1.bf16.msra.mxu0 %v10501_v54  ;;  %8355 = vmatpush1.bf16.msra.mxu1 %v10645_v13  ;;  %v10462_v49 = vcombine.high %v1633_v11, %v1637_v52  ;;  %v1757_v42 = vld [vmem:[#allocation8 + $0x1bf8] sm:$0xff] }
 0x4d0   :  { %8386 = vmatprep.mubr.bf16.mxu1 %v11621_v32  ;;  %v8062_v50 = vpop.f32.mrf.mxu1  ;;  %8319 = vmatprep.subr.bf16.mxu0 %v10494_v5  ;;  %v10478_v32 = vcombine.high %v1649_v1, %v1653_v60  ;;  %v1769_v25 = vld [vmem:[#allocation8 + $0x1c58] sm:$0xff]  ;;  %v10582_v63 = vcombine.high %v1753_v33, %v1757_v42  ;;  %v10581_v18 = vcombine.low %v1753_v33, %v1757_v42 }
 0x4d1   :  { %v11765_v55 = vadd.f32 %v8062_v50, %v8022_v8  ;;  %8356 = vmatprep.subr.bf16.mxu1 %v10638_v44  ;;  %v1773_v24 = vld [vmem:[#allocation8 + $0x1c78] sm:$0xff]  ;;  %v10461_v8 = vcombine.low %v1633_v11, %v1637_v52 }
 0x4d2   :  { %v8064_v27 = vpop.f32.mrf.mxu1  ;;  %v10598_v57 = vcombine.high %v1769_v25, %v1773_v24  ;;  %v1745_v19 = vld [vmem:[#allocation8 + $0x1b98] sm:$0xff]  ;;  %v10597_v5 = vcombine.low %v1769_v25, %v1773_v24 }
 0x4d3   :  { %8320 = vmatpush1.bf16.msra.mxu0 %v10493_v40  ;;  %8357 = vmatpush1.bf16.msra.mxu1 %v10637_v20  ;;  %v1749_v2 = vld [vmem:[#allocation8 + $0x1bb8] sm:$0xff] }
 0x4d4   :  { %v8065_v58 = vpop.f32.mrf.mxu1  ;;  %8321 = vmatprep.subr.bf16.mxu0 %v10486_v47  ;;  %8358 = vmatprep.subr.bf16.mxu1 %v10630_v37  ;;  %v1761_v54 = vld [vmem:[#allocation8 + $0x1c18] sm:$0xff]  ;;  %v10574_v36 = vcombine.high %v1745_v19, %v1749_v2  ;;  %v10573_v40 = vcombine.low %v1745_v19, %v1749_v2 }
 0x4d5   :  { %v1765_v13 = vld [vmem:[#allocation8 + $0x1c38] sm:$0xff] }
 0x4d6   :  { %v10590_v44 = vcombine.high %v1761_v54, %v1765_v13  ;;  %v1737_v39 = vld [vmem:[#allocation8 + $0x1b58] sm:$0xff]  ;;  %v10589_v20 = vcombine.low %v1761_v54, %v1765_v13 }
 0x4d7   :  { %8322 = vmatpush1.bf16.msra.mxu0 %v10485_v3  ;;  %8359 = vmatpush1.bf16.msra.mxu1 %v10629_v28  ;;  %v1741_v38 = vld [vmem:[#allocation8 + $0x1b78] sm:$0xff] }
 0x4d8   :  { %8323 = vmatprep.subr.bf16.mxu0 %v10478_v32  ;;  %8360 = vmatprep.subr.bf16.mxu1 %v10622_v51  ;;  %v1881_v31 = vld [vmem:[#allocation8 + $0x1fd8] sm:$0xff]  ;;  %v10566_v50 = vcombine.high %v1737_v39, %v1741_v38  ;;  %v10565_v21 = vcombine.low %v1737_v39, %v1741_v38 }
 0x4d9   :  { %v1885_v43 = vld [vmem:[#allocation8 + $0x1ff8] sm:$0xff] }
 0x4da   :  { %v10710_v47 = vcombine.high %v1881_v31, %v1885_v43  ;;  %v1729_v37 = vld [vmem:[#allocation8 + $0x1b18] sm:$0xff]  ;;  %v10709_v27 = vcombine.low %v1881_v31, %v1885_v43 }
 0x4db   :  { %8324 = vmatpush1.bf16.msra.mxu0 %v10477_v56  ;;  %8361 = vmatpush1.bf16.msra.mxu1 %v10621_v30  ;;  %v1733_v1 = vld [vmem:[#allocation8 + $0x1b38] sm:$0xff] }
 0x4dc   :  { %8325 = vmatprep.subr.bf16.mxu0 %v10470_v10  ;;  %8362 = vmatprep.subr.bf16.mxu1 %v10614_v45  ;;  %v1873_v60 = vld [vmem:[#allocation8 + $0x1f98] sm:$0xff]  ;;  %v10558_v3 = vcombine.high %v1729_v37, %v1733_v1  ;;  %v10557_v14 = vcombine.low %v1729_v37, %v1733_v1  ;;  %v1918_v1 = vrot.slane %v11721_v12, %v11500_v22  ;;  %v8398_v22 = vmax.f32 %v11719_v62, 0.0  ;;  %v10930_v62 = vld [vmem:[#allocation11 + $0x40] ss:$8 sps:$4 sm:$0xff]  }
 0x4dd   :  { %v1877_v41 = vld [vmem:[#allocation8 + $0x1fb8] sm:$0xff] }
 0x4de   :  { %v10702_v28 = vcombine.high %v1873_v60, %v1877_v41  ;;  %v1721_v58 = vld [vmem:[#allocation8 + $0x1ad8] sm:$0xff]  ;;  %v10701_v7 = vcombine.low %v1873_v60, %v1877_v41  ;;  %v10923_v60 = vld [vmem:[#allocation11 + $0x64] ss:$8 sps:$4 sm:$0xff]  }
 0x4df   :  { %8326 = vmatpush1.bf16.msra.mxu0 %v10469_v9  ;;  %8363 = vmatpush1.bf16.msra.mxu1 %v10613_v29  ;;  %v1725_v32 = vld [vmem:[#allocation8 + $0x1af8] sm:$0xff] }
 0x4e0   :  { %8327 = vmatprep.subr.bf16.mxu0 %v10462_v49  ;;  %8364 = vmatprep.subr.bf16.mxu1 %v10606_v34  ;;  %v1865_v51 = vld [vmem:[#allocation8 + $0x1f58] sm:$0xff]  ;;  %v10550_v4 = vcombine.high %v1721_v58, %v1725_v32  ;;  %v10549_v52 = vcombine.low %v1721_v58, %v1725_v32 }
 0x4e1   :  { %v1869_v6 = vld [vmem:[#allocation8 + $0x1f78] sm:$0xff] }
 0x4e2   :  { %v10694_v56 = vcombine.high %v1865_v51, %v1869_v6  ;;  %v1713_v30 = vld [vmem:[#allocation8 + $0x1a98] sm:$0xff]  ;;  %v10693_v15 = vcombine.low %v1865_v51, %v1869_v6  ;;  %v1958_v51 = vrot.slane %v1918_v1, %v11491_v16  ;;  %v10980_v1 = vld [vmem:[#allocation11 + $0xc4] ss:$8 sps:$4 sm:$0xff]  }
 0x4e3   :  { %8328 = vmatpush1.bf16.msra.mxu0 %v10461_v8  ;;  %8365 = vmatpush1.bf16.msra.mxu1 %v10605_v35  ;;  %v1717_v10 = vld [vmem:[#allocation8 + $0x1ab8] sm:$0xff] }
 0x4e4   :  { %8329 = vmatprep.subr.bf16.mxu0 %v10582_v63  ;;  %8366 = vmatprep.subr.bf16.mxu1 %v10598_v57  ;;  %v1857_v45 = vld [vmem:[#allocation8 + $0x1f18] sm:$0xff]  ;;  %v10542_v23 = vcombine.high %v1713_v30, %v1717_v10  ;;  %v10541_v42 = vcombine.low %v1713_v30, %v1717_v10  ;;  %v8406_v30 = vpack.c.bf16 %v8398_v22, %v8398_v22  ;;  %v10993_v22 = vld [vmem:[#allocation11 + $0x1c0] ss:$8 sps:$4 sm:$0xff]  }
 0x4e5   :  { %v1861_v11 = vld [vmem:[#allocation8 + $0x1f38] sm:$0xff] }
 0x4e6   :  { %v10686_v9 = vcombine.high %v1857_v45, %v1861_v11  ;;  %v1705_v29 = vld [vmem:[#allocation8 + $0x1a58] sm:$0xff]  ;;  %v10685_v25 = vcombine.low %v1857_v45, %v1861_v11 }
 0x4e7   :  { %8330 = vmatpush2.bf16.msra.mxu0 %v10581_v18  ;;  %8367 = vmatpush1.bf16.msra.mxu1 %v10597_v5  ;;  %v1709_v49 = vld [vmem:[#allocation8 + $0x1a78] sm:$0xff] }
 0x4e8   :  { %8331 = vmatprep.subr.bf16.mxu0 %v10574_v36  ;;  %8368 = vmatprep.subr.bf16.mxu1 %v10590_v44  ;;  %v1849_v34 = vld [vmem:[#allocation8 + $0x1ed8] sm:$0xff]  ;;  %v10534_v24 = vcombine.high %v1705_v29, %v1709_v49  ;;  %v10533_v2 = vcombine.low %v1705_v29, %v1709_v49 }
 0x4e9   :  { %v1853_v33 = vld [vmem:[#allocation8 + $0x1ef8] sm:$0xff] }
 0x4ea   :  { %v10678_v8 = vcombine.high %v1849_v34, %v1853_v33  ;;  %v1697_v35 = vld [vmem:[#allocation8 + $0x1a18] sm:$0xff]  ;;  %v10677_v54 = vcombine.low %v1849_v34, %v1853_v33 }
 0x4eb   :  { %8332 = vmatpush2.bf16.msra.mxu0 %v10573_v40  ;;  %8369 = vmatpush1.bf16.msra.mxu1 %v10589_v20  ;;  %v1701_v63 = vld [vmem:[#allocation8 + $0x1a38] sm:$0xff]  ;;  %v8396_v20 = vmax.f32 %v11675_v46, 0.0  ;;  %v1922_v46 = vrot.slane %v11721_v12, %v11505_v26  ;;  %v10932_v12 = vld [vmem:[#allocation11 + $0x44] ss:$8 sps:$4 sm:$0xff]  }
 0x4ec   :  { %8333 = vmatprep.subr.bf16.mxu0 %v10566_v50  ;;  %8370 = vmatprep.subr.bf16.mxu1 %v10710_v47  ;;  %v1841_v57 = vld [vmem:[#allocation8 + $0x1e98] sm:$0xff]  ;;  %v10526_v13 = vcombine.high %v1697_v35, %v1701_v63  ;;  %v10525_v44 = vcombine.low %v1697_v35, %v1701_v63 }
 0x4ed   :  { %v1845_v19 = vld [vmem:[#allocation8 + $0x1eb8] sm:$0xff]  ;;  %v8404_v41 = vpack.c.bf16 %v8396_v20, %v8396_v20 }
 0x4ee   :  { %v10670_v18 = vcombine.high %v1841_v57, %v1845_v19  ;;  %v1833_v5 = vld [vmem:[#allocation8 + $0x1e58] sm:$0xff]  ;;  %v10669_v39 = vcombine.low %v1841_v57, %v1845_v19 }
 0x4ef   :  { %8334 = vmatpush2.bf16.msra.mxu0 %v10565_v21  ;;  %8371 = vmatpush2.bf16.msra.mxu1 %v10709_v27  ;;  %v1837_v36 = vld [vmem:[#allocation8 + $0x1e78] sm:$0xff] }
 0x4f0   :  { %8335 = vmatprep.subr.bf16.mxu0 %v10558_v3  ;;  %8372 = vmatprep.subr.bf16.mxu1 %v10702_v28  ;;  %v10662_v38 = vcombine.high %v1833_v5, %v1837_v36  ;;  %v10920_v31 = vld [vmem:[#allocation11 + $0x74] ss:$8 sps:$4 sm:$0xff]   ;;  %v10661_v50 = vcombine.low %v1833_v5, %v1837_v36  ;;  %v10918_v47 = vld [vmem:[#allocation11 + $0x70] ss:$8 sps:$4 sm:$0xff]   ;;  %v10921_v3 = vld [vmem:[#allocation11 + $0x60] ss:$8 sps:$4 sm:$0xff]  }
 0x4f1   :  { %v1825_v43 = vld [vmem:[#allocation8 + $0x1e18] sm:$0xff] }
 0x4f2   :  { %v1829_v40 = vld [vmem:[#allocation8 + $0x1e38] sm:$0xff] }
 0x4f3   :  { %8336 = vmatpush2.bf16.msra.mxu0 %v10557_v14  ;;  %8373 = vmatpush2.bf16.msra.mxu1 %v10701_v7  ;;  %v10654_v37 = vcombine.high %v1825_v43, %v1829_v40  ;;  %v10653_v27 = vcombine.low %v1825_v43, %v1829_v40  ;;  %v10926_v58 = vld [vmem:[#allocation11 + $0x54] ss:$8 sps:$4 sm:$0xff]   ;;  %v10924_v14 = vld [vmem:[#allocation11 + $0x50] ss:$8 sps:$4 sm:$0xff]   ;;  %v10966_v43 = vld [vmem:[#allocation11 + $0xe0] ss:$8 sps:$4 sm:$0xff]  }
 0x4f4   :  { %8337 = vmatprep.subr.bf16.mxu0 %v10550_v4  ;;  %8374 = vmatprep.subr.bf16.mxu1 %v10694_v56  ;;  %v10929_v32 = vld [vmem:[#allocation11 + $0x174] ss:$8 sps:$4 sm:$0xff]   ;;  %v10927_v7 = vld [vmem:[#allocation11 + $0x170] ss:$8 sps:$4 sm:$0xff]   ;;  %v10935_v56 = vld [vmem:[#allocation11 + $0x164] ss:$8 sps:$4 sm:$0xff]  }
 0x4f5   :  { %v10936_v34 = vld [vmem:[#allocation11 + $0x30] ss:$8 sps:$4 sm:$0xff]   ;;  %v10950_v35 = vld [vmem:[#allocation11 + $0x14] ss:$8 sps:$4 sm:$0xff]   ;;  %v10969_v40 = vld [vmem:[#allocation11 + $0x100] ss:$8 sps:$4 sm:$0xff]  }
 0x4f6   :  { %v10953_v63 = vld [vmem:[#allocation11 + $0x134] ss:$8 sps:$4 sm:$0xff]   ;;  %v10948_v57 = vld [vmem:[#allocation11 + $0x10] ss:$8 sps:$4 sm:$0xff]  }
 0x4f7   :  { %8338 = vmatpush2.bf16.msra.mxu0 %v10549_v52  ;;  %8375 = vmatpush2.bf16.msra.mxu1 %v10693_v15  ;;  %v10933_v52 = vld [vmem:[#allocation11 + $0x160] ss:$8 sps:$4 sm:$0xff]   ;;  %v10951_v19 = vld [vmem:[#allocation11 + $0x130] ss:$8 sps:$4 sm:$0xff]   ;;  %v10962_v5 = vld [vmem:[#allocation11 + $0xf4] ss:$8 sps:$4 sm:$0xff]  }
 0x4f8   :  { %8339 = vmatprep.subr.bf16.mxu0 %v10542_v23  ;;  %8376 = vmatprep.subr.bf16.mxu1 %v10686_v9  ;;  %v10938_v23 = vld [vmem:[#allocation11 + $0x34] ss:$8 sps:$4 sm:$0xff]  }
 0x4f9   :  { %v10941_v9 = vld [vmem:[#allocation11 + $0x154] ss:$8 sps:$4 sm:$0xff]  }
 0x4fa   :  { %v10965_v36 = vld [vmem:[#allocation11 + $0x114] ss:$8 sps:$4 sm:$0xff]  }
 0x4fb   :  { %8340 = vmatpush2.bf16.msra.mxu0 %v10541_v42  ;;  %8377 = vmatpush2.bf16.msra.mxu1 %v10685_v25  ;;  %v10944_v42 = vld [vmem:[#allocation11 + $0x24] ss:$8 sps:$4 sm:$0xff]   ;;  %v10974_v20 = vld [vmem:[#allocation11 + $0xd4] ss:$8 sps:$4 sm:$0xff]  }
 0x4fc   :  { %8341 = vmatprep.subr.bf16.mxu0 %v10534_v24  ;;  %8378 = vmatprep.subr.bf16.mxu1 %v10678_v8  ;;  %v10947_v25 = vld [vmem:[#allocation11 + $0x144] ss:$8 sps:$4 sm:$0xff]   ;;  %v10942_v24 = vld [vmem:[#allocation11 + $0x20] ss:$8 sps:$4 sm:$0xff]  }
 0x4fd   :  { %v10945_v8 = vld [vmem:[#allocation11 + $0x140] ss:$8 sps:$4 sm:$0xff]  }
 0x4ff   :  { %8342 = vmatpush2.bf16.msra.mxu0 %v10533_v2  ;;  %8379 = vmatpush2.bf16.msra.mxu1 %v10677_v54  ;;  %v10956_v2 = vld [vmem:[#allocation11 + $0x4] ss:$8 sps:$4 sm:$0xff]  }
 0x500   :  { %8343 = vmatprep.subr.bf16.mxu0 %v10526_v13  ;;  %8380 = vmatprep.subr.bf16.mxu1 %v10670_v18  ;;  %v10959_v54 = vld [vmem:[#allocation11 + $0x124] ss:$8 sps:$4 sm:$0xff]   ;;  %v10954_v13 = vld [vmem:[#allocation11] ss:$8 sps:$4 sm:$0xff]  }
 0x501   :  { %v10957_v18 = vld [vmem:[#allocation11 + $0x120] ss:$8 sps:$4 sm:$0xff]  }
 0x503   :  { %8344 = vmatpush2.bf16.msra.mxu0 %v10525_v44  ;;  %8381 = vmatpush2.bf16.msra.mxu1 %v10669_v39  ;;  %v10960_v44 = vld [vmem:[#allocation11 + $0xf0] ss:$8 sps:$4 sm:$0xff]  }
 0x504   :  { %8382 = vmatprep.subr.bf16.mxu1 %v10662_v38  ;;  %9200 = vmatprep.subr.bf16.mxu0 %v10920_v31  ;;  %v10963_v39 = vld [vmem:[#allocation11 + $0x110] ss:$8 sps:$4 sm:$0xff]   ;;  %v10968_v38 = vld [vmem:[#allocation11 + $0xe4] ss:$8 sps:$4 sm:$0xff]  }
 0x505   :  { %v10971_v31 = vld [vmem:[#allocation11 + $0x104] ss:$8 sps:$4 sm:$0xff]  }
 0x506   :  { %v8101_v21 = vpop.f32.mrf.mxu0  ;;  %8346 = vmatmul.mubr.bf16.vlgmr.msra.gmra.mxu0 %v11628_v61  ;;  %v1962_v61 = vrot.slane %v1922_v46, %v11491_v16  ;;  %v10986_v46 = vld [vmem:[#allocation11 + $0xb4] ss:$8 sps:$4 sm:$0xff]  }
 0x507   :  { %8383 = vmatpush2.bf16.msra.mxu1 %v10661_v50  ;;  %9201 = vmatpush1.bf16.msra.mxu0 %v10918_v47  ;;  %v8102_v4 = vadd.f32 %v8101_v21, %v1958_v51  ;;  %v10977_v50 = vld [vmem:[#allocation11 + $0x1f4] ss:$8 sps:$4 sm:$0xff]   ;;  %v10972_v47 = vld [vmem:[#allocation11 + $0xd0] ss:$8 sps:$4 sm:$0xff]   ;;  %v10981_v21 = vld [vmem:[#allocation11 + $0x1e0] ss:$8 sps:$4 sm:$0xff]  }
 0x508   :  { %9232 = vmatprep.mubr.bf16.mxu0 %v8404_v41  ;;  %v8103_v28 = vpop.f32.mrf.mxu0  ;;  %8384 = vmatprep.subr.bf16.mxu1 %v10654_v37  ;;  %v10975_v37 = vld [vmem:[#allocation11 + $0x1f0] ss:$8 sps:$4 sm:$0xff]   ;;  %v10978_v41 = vld [vmem:[#allocation11 + $0xc0] ss:$8 sps:$4 sm:$0xff]  }
 0x509   :  { %9202 = vmatprep.subr.bf16.mxu0 %v10923_v60  ;;  %v8104_v45 = vadd.f32 %v8103_v28, %v1962_v61  ;;  %v10983_v60 = vld [vmem:[#allocation11 + $0x1e4] ss:$8 sps:$4 sm:$0xff]   ;;  %v10987_v28 = vld [vmem:[#allocation11 + $0x1d0] ss:$8 sps:$4 sm:$0xff]   ;;  %v10990_v51 = vld [vmem:[#allocation11 + $0xa0] ss:$8 sps:$4 sm:$0xff]  }
 0x50a   :  { %v8105_v6 = vpop.f32.mrf.mxu0  ;;  %v11001_v61 = vld [vmem:[#allocation11 + $0x1b4] ss:$8 sps:$4 sm:$0xff]  }
 0x50b   :  { %8385 = vmatpush2.bf16.msra.mxu1 %v10653_v27  ;;  %9203 = vmatpush1.bf16.msra.mxu0 %v10921_v3  ;;  %v10989_v27 = vld [vmem:[#allocation11 + $0x1d4] ss:$8 sps:$4 sm:$0xff]   ;;  %v10984_v3 = vld [vmem:[#allocation11 + $0xb0] ss:$8 sps:$4 sm:$0xff]  }
 0x50c   :  { %v8106_v26 = vpop.f32.mrf.mxu0  ;;  %9204 = vmatprep.subr.bf16.mxu0 %v10926_v58  ;;  %9241 = vmatprep.subr.bf16.mxu1 %v10929_v32  ;;  %v10992_v58 = vld [vmem:[#allocation11 + $0xa4] ss:$8 sps:$4 sm:$0xff]   ;;  %v10998_v6 = vld [vmem:[#allocation11 + $0x94] ss:$8 sps:$4 sm:$0xff]  }
 0x50d   :  { %v10995_v32 = vld [vmem:[#allocation11 + $0x1c4] ss:$8 sps:$4 sm:$0xff]  }
 0x50e   :  { %v8142_v10 = vpop.f32.mrf.mxu1  ;;  %8387 = vmatmul.mubr.bf16.vlgmr.msra.gmra.mxu1 %v11639_v0  ;;  %v10939_v0 = vld [vmem:[#allocation11 + $0x150] ss:$8 sps:$4 sm:$0xff]   ;;  %v11004_v26 = vld [vmem:[#allocation11 + $0x84] ss:$8 sps:$4 sm:$0xff]  }
 0x50f   :  { %v11777_v11 = vadd.f32 %v8142_v10, %v8102_v4  ;;  %9205 = vmatpush1.bf16.msra.mxu0 %v10924_v14  ;;  %9242 = vmatpush1.bf16.msra.mxu1 %v10927_v7  ;;  %v10996_v14 = vld [vmem:[#allocation11 + $0x90] ss:$8 sps:$4 sm:$0xff]   ;;  %v11002_v4 = vld [vmem:[#allocation11 + $0x80] ss:$8 sps:$4 sm:$0xff]   ;;  %v11010_v10 = vld [vmem:[#allocation11 + $0x194] ss:$8 sps:$4 sm:$0xff]  }
 0x510   :  { %9273 = vmatprep.mubr.bf16.mxu1 %v8406_v30  ;;  %v8144_v15 = vpop.f32.mrf.mxu1  ;;  %9206 = vmatprep.subr.bf16.mxu0 %v10932_v12  ;;  %v10999_v7 = vld [vmem:[#allocation11 + $0x1b0] ss:$8 sps:$4 sm:$0xff]   ;;  %v11007_v12 = vld [vmem:[#allocation11 + $0x1a4] ss:$8 sps:$4 sm:$0xff]   ;;  %v8395_v30 = vmax.f32 %v11672_v53, 0.0 }
 0x511   :  { %v11779_v29 = vadd.f32 %v8144_v15, %v8104_v45  ;;  %9243 = vmatprep.subr.bf16.mxu1 %v10935_v56  ;;  %v11005_v56 = vld [vmem:[#allocation11 + $0x1a0] ss:$8 sps:$4 sm:$0xff]   ;;  %v11013_v45 = vld [vmem:[#allocation11 + $0x274] ss:$8 sps:$4 sm:$0xff]   ;;  %v11011_v15 = vld [vmem:[#allocation11 + $0x270] ss:$8 sps:$4 sm:$0xff]  }
 0x512   :  { %v8146_v49 = vpop.f32.mrf.mxu1 }
 0x513   :  { %9207 = vmatpush1.bf16.msra.mxu0 %v10930_v62  ;;  %9244 = vmatpush1.bf16.msra.mxu1 %v10933_v52  ;;  %v8400_v62 = vmax.f32 %v11765_v55, 0.0  ;;  %v11008_v52 = vld [vmem:[#allocation11 + $0x190] ss:$8 sps:$4 sm:$0xff]   ;;  %v11019_v49 = vld [vmem:[#allocation11 + $0x264] ss:$8 sps:$4 sm:$0xff]   ;;  %v8397_v55 = vmax.f32 %v11716_v48, 0.0 }
 0x514   :  { %v8147_v33 = vpop.f32.mrf.mxu1  ;;  %9208 = vmatprep.subr.bf16.mxu0 %v10938_v23  ;;  %9245 = vmatprep.subr.bf16.mxu1 %v10941_v9  ;;  %v8403_v23 = vpack.c.bf16 %v8395_v30, %v8395_v30  ;;  %v11016_v9 = vld [vmem:[#allocation11 + $0x184] ss:$8 sps:$4 sm:$0xff]   ;;  %v11086_v30 = vld [vmem:[#allocation11 + $0x3f0] ss:$8 sps:$4 sm:$0xff]  }
 0x515   :  { %v11014_v33 = vld [vmem:[#allocation11 + $0x180] ss:$8 sps:$4 sm:$0xff]  }
 0x517   :  { %9209 = vmatpush1.bf16.msra.mxu0 %v10936_v34  ;;  %9246 = vmatpush1.bf16.msra.mxu1 %v10939_v0  ;;  %v8408_v34 = vpack.c.bf16 %v8400_v62, %v8400_v62  ;;  %v11047_v62 = vld [vmem:[#allocation11 + $0x2c0] ss:$8 sps:$4 sm:$0xff]  }
 0x518   :  { %9210 = vmatprep.subr.bf16.mxu0 %v10944_v42  ;;  %9247 = vmatprep.subr.bf16.mxu1 %v10947_v25  ;;  %v11017_v42 = vld [vmem:[#allocation11 + $0x260] ss:$8 sps:$4 sm:$0xff]  }
 0x51b   :  { %9211 = vmatpush1.bf16.msra.mxu0 %v10942_v24  ;;  %9248 = vmatpush1.bf16.msra.mxu1 %v10945_v8  ;;  %v11022_v24 = vld [vmem:[#allocation11 + $0x254] ss:$8 sps:$4 sm:$0xff]  }
 0x51c   :  { %9212 = vmatprep.subr.bf16.mxu0 %v10950_v35  ;;  %9249 = vmatprep.subr.bf16.mxu1 %v10953_v63  ;;  %v11064_v8 = vld [vmem:[#allocation11 + $0x374] ss:$8 sps:$4 sm:$0xff]  }
 0x51f   :  { %9213 = vmatpush1.bf16.msra.mxu0 %v10948_v57  ;;  %9250 = vmatpush1.bf16.msra.mxu1 %v10951_v19  ;;  %v11020_v57 = vld [vmem:[#allocation11 + $0x250] ss:$8 sps:$4 sm:$0xff]  }
 0x520   :  { %9214 = vmatprep.subr.bf16.mxu0 %v10956_v2  ;;  %9251 = vmatprep.subr.bf16.mxu1 %v10959_v54  ;;  %v11062_v19 = vld [vmem:[#allocation11 + $0x370] ss:$8 sps:$4 sm:$0xff]   ;;  %v11025_v54 = vld [vmem:[#allocation11 + $0x244] ss:$8 sps:$4 sm:$0xff]  }
 0x523   :  { %9215 = vmatpush1.bf16.msra.mxu0 %v10954_v13  ;;  %9252 = vmatpush1.bf16.msra.mxu1 %v10957_v18  ;;  %v11067_v13 = vld [vmem:[#allocation11 + $0x364] ss:$8 sps:$4 sm:$0xff]  }
 0x524   :  { %9216 = vmatprep.subr.bf16.mxu0 %v10962_v5  ;;  %9253 = vmatprep.subr.bf16.mxu1 %v10965_v36  ;;  %v11023_v5 = vld [vmem:[#allocation11 + $0x240] ss:$8 sps:$4 sm:$0xff]  }
 0x527   :  { %9217 = vmatpush2.bf16.msra.mxu0 %v10960_v44  ;;  %9254 = vmatpush1.bf16.msra.mxu1 %v10963_v39  ;;  %v11028_v44 = vld [vmem:[#allocation11 + $0x234] ss:$8 sps:$4 sm:$0xff]  }
 0x528   :  { %9218 = vmatprep.subr.bf16.mxu0 %v10968_v38  ;;  %9255 = vmatprep.subr.bf16.mxu1 %v10971_v31  ;;  %v11070_v39 = vld [vmem:[#allocation11 + $0x354] ss:$8 sps:$4 sm:$0xff]  }
 0x52b   :  { %9219 = vmatpush2.bf16.msra.mxu0 %v10966_v43  ;;  %9256 = vmatpush1.bf16.msra.mxu1 %v10969_v40  ;;  %v11026_v43 = vld [vmem:[#allocation11 + $0x230] ss:$8 sps:$4 sm:$0xff]  }
 0x52c   :  { %9220 = vmatprep.subr.bf16.mxu0 %v10974_v20  ;;  %9257 = vmatprep.subr.bf16.mxu1 %v10977_v50  ;;  %v11068_v40 = vld [vmem:[#allocation11 + $0x350] ss:$8 sps:$4 sm:$0xff]   ;;  %v11031_v50 = vld [vmem:[#allocation11 + $0x224] ss:$8 sps:$4 sm:$0xff]  }
 0x52f   :  { %9221 = vmatpush2.bf16.msra.mxu0 %v10972_v47  ;;  %9258 = vmatpush2.bf16.msra.mxu1 %v10975_v37  ;;  %v11073_v47 = vld [vmem:[#allocation11 + $0x344] ss:$8 sps:$4 sm:$0xff]   ;;  %v11029_v37 = vld [vmem:[#allocation11 + $0x220] ss:$8 sps:$4 sm:$0xff]  }
 0x530   :  { %9222 = vmatprep.subr.bf16.mxu0 %v10980_v1  ;;  %9259 = vmatprep.subr.bf16.mxu1 %v10983_v60  ;;  %v11071_v1 = vld [vmem:[#allocation11 + $0x340] ss:$8 sps:$4 sm:$0xff]   ;;  %v11034_v60 = vld [vmem:[#allocation11 + $0x214] ss:$8 sps:$4 sm:$0xff]  }
 0x533   :  { %9223 = vmatpush2.bf16.msra.mxu0 %v10978_v41  ;;  %9260 = vmatpush2.bf16.msra.mxu1 %v10981_v21  ;;  %v11076_v41 = vld [vmem:[#allocation11 + $0x334] ss:$8 sps:$4 sm:$0xff]   ;;  %v11032_v21 = vld [vmem:[#allocation11 + $0x210] ss:$8 sps:$4 sm:$0xff]  }
 0x534   :  { %9224 = vmatprep.subr.bf16.mxu0 %v10986_v46  ;;  %9261 = vmatprep.subr.bf16.mxu1 %v10989_v27  ;;  %v11074_v46 = vld [vmem:[#allocation11 + $0x330] ss:$8 sps:$4 sm:$0xff]   ;;  %v11037_v27 = vld [vmem:[#allocation11 + $0x204] ss:$8 sps:$4 sm:$0xff]  }
 0x537   :  { %9225 = vmatpush2.bf16.msra.mxu0 %v10984_v3  ;;  %9262 = vmatpush2.bf16.msra.mxu1 %v10987_v28  ;;  %v11079_v3 = vld [vmem:[#allocation11 + $0x324] ss:$8 sps:$4 sm:$0xff]   ;;  %v11035_v28 = vld [vmem:[#allocation11 + $0x200] ss:$8 sps:$4 sm:$0xff]  }
 0x538   :  { %9226 = vmatprep.subr.bf16.mxu0 %v10992_v58  ;;  %9263 = vmatprep.subr.bf16.mxu1 %v10995_v32  ;;  %v11077_v58 = vld [vmem:[#allocation11 + $0x320] ss:$8 sps:$4 sm:$0xff]   ;;  %v11040_v32 = vld [vmem:[#allocation11 + $0x2f4] ss:$8 sps:$4 sm:$0xff]  }
 0x53b   :  { %9227 = vmatpush2.bf16.msra.mxu0 %v10990_v51  ;;  %9264 = vmatpush2.bf16.msra.mxu1 %v10993_v22  ;;  %v11082_v51 = vld [vmem:[#allocation11 + $0x314] ss:$8 sps:$4 sm:$0xff]   ;;  %v11038_v22 = vld [vmem:[#allocation11 + $0x2f0] ss:$8 sps:$4 sm:$0xff]  }
 0x53c   :  { %9228 = vmatprep.subr.bf16.mxu0 %v10998_v6  ;;  %9265 = vmatprep.subr.bf16.mxu1 %v11001_v61  ;;  %v11080_v6 = vld [vmem:[#allocation11 + $0x310] ss:$8 sps:$4 sm:$0xff]   ;;  %v11043_v61 = vld [vmem:[#allocation11 + $0x2e4] ss:$8 sps:$4 sm:$0xff]  }
 0x53f   :  { %9229 = vmatpush2.bf16.msra.mxu0 %v10996_v14  ;;  %9266 = vmatpush2.bf16.msra.mxu1 %v10999_v7  ;;  %v11085_v14 = vld [vmem:[#allocation11 + $0x304] ss:$8 sps:$4 sm:$0xff]   ;;  %v11041_v7 = vld [vmem:[#allocation11 + $0x2e0] ss:$8 sps:$4 sm:$0xff]  }
 0x540   :  { %9230 = vmatprep.subr.bf16.mxu0 %v11004_v26  ;;  %9267 = vmatprep.subr.bf16.mxu1 %v11007_v12  ;;  %v11083_v26 = vld [vmem:[#allocation11 + $0x300] ss:$8 sps:$4 sm:$0xff]   ;;  %v11046_v12 = vld [vmem:[#allocation11 + $0x2d4] ss:$8 sps:$4 sm:$0xff]  }
 0x543   :  { %9231 = vmatpush2.bf16.msra.mxu0 %v11002_v4  ;;  %9268 = vmatpush2.bf16.msra.mxu1 %v11005_v56  ;;  %v11088_v4 = vld [vmem:[#allocation11 + $0x3f4] ss:$8 sps:$4 sm:$0xff]   ;;  %v11044_v56 = vld [vmem:[#allocation11 + $0x2d0] ss:$8 sps:$4 sm:$0xff]  }
 0x544   :  { %9269 = vmatprep.subr.bf16.mxu1 %v11010_v10  ;;  %9282 = vmatprep.subr.bf16.mxu0 %v11013_v45  ;;  %v11049_v10 = vld [vmem:[#allocation11 + $0x2c4] ss:$8 sps:$4 sm:$0xff]  }
 0x545   :  { %v11091_v45 = vld [vmem:[#allocation11 + $0x3e4] ss:$8 sps:$4 sm:$0xff]  }
 0x546   :  { %v8183_v0 = vpop.f32.mrf.mxu0  ;;  %9233 = vmatmul.mubr.bf16.vlgmr.msra.gmra.mxu0 %v8403_v23  ;;  %v11094_v23 = vld [vmem:[#allocation11 + $0x3d4] ss:$8 sps:$4 sm:$0xff]  }
 0x547   :  { %v8184_v53 = vadd.f32 %v8183_v0, %v11777_v11  ;;  %9270 = vmatpush2.bf16.msra.mxu1 %v11008_v52  ;;  %9283 = vmatpush1.bf16.msra.mxu0 %v11011_v15  ;;  %v8405_v11 = vpack.c.bf16 %v8397_v55, %v8397_v55  ;;  %v11089_v52 = vld [vmem:[#allocation11 + $0x3e0] ss:$8 sps:$4 sm:$0xff]   ;;  %v11052_v15 = vld [vmem:[#allocation11 + $0x2b4] ss:$8 sps:$4 sm:$0xff]   ;;  %v11097_v0 = vld [vmem:[#allocation11 + $0x3c4] ss:$8 sps:$4 sm:$0xff]  }
 0x548   :  { %9314 = vmatprep.mubr.bf16.mxu0 %v8408_v34  ;;  %v8185_v25 = vpop.f32.mrf.mxu0  ;;  %9271 = vmatprep.subr.bf16.mxu1 %v11016_v9  ;;  %v11050_v9 = vld [vmem:[#allocation11 + $0x2b0] ss:$8 sps:$4 sm:$0xff]   ;;  %v11055_v34 = vld [vmem:[#allocation11 + $0x2a4] ss:$8 sps:$4 sm:$0xff]   ;;  %v11100_v55 = vld [vmem:[#allocation11 + $0x3b4] ss:$8 sps:$4 sm:$0xff]  }
 0x549   :  { %v8186_v35 = vadd.f32 %v8185_v25, %v11779_v29  ;;  %9284 = vmatprep.subr.bf16.mxu0 %v11019_v49  ;;  %v11065_v29 = vld [vmem:[#allocation11 + $0x360] ss:$8 sps:$4 sm:$0xff]   ;;  %v11092_v49 = vld [vmem:[#allocation11 + $0x3d0] ss:$8 sps:$4 sm:$0xff]  }
 0x54a   :  { %v8187_v63 = vpop.f32.mrf.mxu0  ;;  %v11056_v25 = vld [vmem:[#allocation11 + $0x290] ss:$8 sps:$4 sm:$0xff]  }
 0x54b   :  { %9272 = vmatpush2.bf16.msra.mxu1 %v11014_v33  ;;  %9285 = vmatpush1.bf16.msra.mxu0 %v11017_v42  ;;  %v11095_v33 = vld [vmem:[#allocation11 + $0x3c0] ss:$8 sps:$4 sm:$0xff]   ;;  %v11058_v42 = vld [vmem:[#allocation11 + $0x294] ss:$8 sps:$4 sm:$0xff]  }
 0x54c   :  { %v8188_v2 = vpop.f32.mrf.mxu0  ;;  %9286 = vmatprep.subr.bf16.mxu0 %v11022_v24  ;;  %9323 = vmatprep.subr.bf16.mxu1 %v11064_v8  ;;  %v11098_v24 = vld [vmem:[#allocation11 + $0x3b0] ss:$8 sps:$4 sm:$0xff]   ;;  %v11061_v8 = vld [vmem:[#allocation11 + $0x284] ss:$8 sps:$4 sm:$0xff]   ;;  %v11059_v63 = vld [vmem:[#allocation11 + $0x280] ss:$8 sps:$4 sm:$0xff]  }
 0x54d   :  { %v11104_v2 = vld [vmem:[#allocation11 + $0x390] ss:$8 sps:$4 sm:$0xff]  }
 0x54e   :  { %v8224_v48 = vpop.f32.mrf.mxu1  ;;  %9274 = vmatmul.mubr.bf16.vlgmr.msra.gmra.mxu1 %v8405_v11  ;;  %v11106_v11 = vld [vmem:[#allocation11 + $0x394] ss:$8 sps:$4 sm:$0xff]  }
 0x54f   :  { %v11786_v18 = vadd.f32 %v8224_v48, %v8184_v53  ;;  %9287 = vmatpush1.bf16.msra.mxu0 %v11020_v57  ;;  %9324 = vmatpush1.bf16.msra.mxu1 %v11062_v19  ;;  %v11053_v53 = vld [vmem:[#allocation11 + $0x2a0] ss:$8 sps:$4 sm:$0xff]   ;;  %v8399_v19 = vmax.f32 %v11762_v59, 0.0 }
 0x550   :  { %v8226_v36 = vpop.f32.mrf.mxu1  ;;  %9288 = vmatprep.subr.bf16.mxu0 %v11025_v54  ;;  %9325 = vmatprep.subr.bf16.mxu1 %v11067_v13  ;;  %v11101_v57 = vld [vmem:[#allocation11 + $0x3a0] ss:$8 sps:$4 sm:$0xff]   ;;  %v11109_v13 = vld [vmem:[#allocation11 + $0x384] ss:$8 sps:$4 sm:$0xff]  }
 0x551   :  { %v11788_v38 = vadd.f32 %v8226_v36, %v8186_v35  ;;  %v11103_v35 = vld [vmem:[#allocation11 + $0x3a4] ss:$8 sps:$4 sm:$0xff]   ;;  %v8407_v54 = vpack.c.bf16 %v8399_v19, %v8399_v19 }
 0x552   :  { %v8228_v31 = vpop.f32.mrf.mxu1 }
 0x553   :  { %9289 = vmatpush1.bf16.msra.mxu0 %v11023_v5  ;;  %9326 = vmatpush1.bf16.msra.mxu1 %v11065_v29  ;;  %v11107_v29 = vld [vmem:[#allocation11 + $0x380] ss:$8 sps:$4 sm:$0xff]  }
 0x554   :  { %v8229_v20 = vpop.f32.mrf.mxu1  ;;  %9290 = vmatprep.subr.bf16.mxu0 %v11028_v44  ;;  %9327 = vmatprep.subr.bf16.mxu1 %v11070_v39 }
 0x557   :  { %9291 = vmatpush1.bf16.msra.mxu0 %v11026_v43  ;;  %9328 = vmatpush1.bf16.msra.mxu1 %v11068_v40 }
 0x558   :  { %9292 = vmatprep.subr.bf16.mxu0 %v11031_v50  ;;  %9329 = vmatprep.subr.bf16.mxu1 %v11073_v47 }
 0x55b   :  { %9293 = vmatpush1.bf16.msra.mxu0 %v11029_v37  ;;  %9330 = vmatpush1.bf16.msra.mxu1 %v11071_v1 }
 0x55c   :  { %9294 = vmatprep.subr.bf16.mxu0 %v11034_v60  ;;  %9331 = vmatprep.subr.bf16.mxu1 %v11076_v41  ;;  %v11112_v41 = vld [vmem:[%s11869_s7 + $0x70] sm:$0xff]  }
 0x55f   :  { %9295 = vmatpush1.bf16.msra.mxu0 %v11032_v21  ;;  %9332 = vmatpush1.bf16.msra.mxu1 %v11074_v46 }
 0x560   :  { %9296 = vmatprep.subr.bf16.mxu0 %v11037_v27  ;;  %9333 = vmatprep.subr.bf16.mxu1 %v11079_v3 }
 0x563   :  { %9297 = vmatpush1.bf16.msra.mxu0 %v11035_v28  ;;  %9334 = vmatpush1.bf16.msra.mxu1 %v11077_v58  ;;  %v11113_v58 = vld [vmem:[%s11869_s7 + $0x30] sm:$0xff]  }
 0x564   :  { %9298 = vmatprep.subr.bf16.mxu0 %v11040_v32  ;;  %9335 = vmatprep.subr.bf16.mxu1 %v11082_v51  ;;  %v11114_v51 = vld [vmem:[%s11869_s7 + $0x68] sm:$0xff]  }
 0x567   :  { %9299 = vmatpush2.bf16.msra.mxu0 %v11038_v22  ;;  %9336 = vmatpush1.bf16.msra.mxu1 %v11080_v6 }
 0x568   :  { %9300 = vmatprep.subr.bf16.mxu0 %v11043_v61  ;;  %9337 = vmatprep.subr.bf16.mxu1 %v11085_v14 }
 0x56b   :  { %9301 = vmatpush2.bf16.msra.mxu0 %v11041_v7  ;;  %9338 = vmatpush1.bf16.msra.mxu1 %v11083_v26  ;;  %v11115_v7 = vld [vmem:[%s11869_s7 + $0x28] sm:$0xff]  }
 0x56c   :  { %9302 = vmatprep.subr.bf16.mxu0 %v11046_v12  ;;  %9339 = vmatprep.subr.bf16.mxu1 %v11088_v4  ;;  %v11116_v12 = vld [vmem:[%s11869_s7 + $0x60] sm:$0xff]  }
 0x56f   :  { %9303 = vmatpush2.bf16.msra.mxu0 %v11044_v56  ;;  %9340 = vmatpush2.bf16.msra.mxu1 %v11086_v30  ;;  %v11117_v30 = vld [vmem:[%s11869_s7 + $0x20] sm:$0xff]  }
 0x570   :  { %9304 = vmatprep.subr.bf16.mxu0 %v11049_v10  ;;  %9341 = vmatprep.subr.bf16.mxu1 %v11091_v45  ;;  %v11118_v10 = vld [vmem:[%s11869_s7 + $0x58] sm:$0xff]  }
 0x571   :  { %v11119_v45 = vld [vmem:[%s11869_s7 + $0x18] sm:$0xff]  }
 0x573   :  { %9305 = vmatpush2.bf16.msra.mxu0 %v11047_v62  ;;  %9342 = vmatpush2.bf16.msra.mxu1 %v11089_v52  ;;  %v11120_v62 = vld [vmem:[%s11869_s7 + $0x50] sm:$0xff]  }
 0x574   :  { %9306 = vmatprep.subr.bf16.mxu0 %v11052_v15  ;;  %9343 = vmatprep.subr.bf16.mxu1 %v11094_v23  ;;  %v11121_v52 = vld [vmem:[%s11869_s7 + $0x10] sm:$0xff]   ;;  %v8539_v15 = vld [vmem:[#allocation13] sm:$0x3] }
 0x575   :  { %v8540_v23 = vunpack.c.l.bf16 %v8539_v15 }
 0x577   :  { %9307 = vmatpush2.bf16.msra.mxu0 %v11050_v9  ;;  %9344 = vmatpush2.bf16.msra.mxu1 %v11092_v49  ;;  %v8545_v9 = vrot.slane %v8540_v23, %v11491_v16 }
 0x578   :  { %9308 = vmatprep.subr.bf16.mxu0 %v11055_v34  ;;  %9345 = vmatprep.subr.bf16.mxu1 %v11097_v0  ;;  %v8549_v34 = vrot.slane %v8540_v23, %v11493_v17  ;;  %v11123_v17 = vld [vmem:[%s11869_s7 + $0x8] sm:$0xff]  }
 0x57b   :  { %9309 = vmatpush2.bf16.msra.mxu0 %v11053_v53  ;;  %9346 = vmatpush2.bf16.msra.mxu1 %v11095_v33  ;;  %v8555_v53 = vrot.slane %v8545_v9, %v11491_v16 }
 0x57c   :  { %9310 = vmatprep.subr.bf16.mxu0 %v11058_v42  ;;  %9347 = vmatprep.subr.bf16.mxu1 %v11100_v55  ;;  %v8559_v42 = vrot.slane %v8549_v34, %v11491_v16 }
 0x57f   :  { %9311 = vmatpush2.bf16.msra.mxu0 %v11056_v25  ;;  %9348 = vmatpush2.bf16.msra.mxu1 %v11098_v24 }
 0x580   :  { %9312 = vmatprep.subr.bf16.mxu0 %v11061_v8  ;;  %9349 = vmatprep.subr.bf16.mxu1 %v11103_v35 }
 0x583   :  { %9313 = vmatpush2.bf16.msra.mxu0 %v11059_v63  ;;  %9350 = vmatpush2.bf16.msra.mxu1 %v11101_v57 }
 0x584   :  { %9351 = vmatprep.subr.bf16.mxu1 %v11106_v11 }
 0x586   :  { %v8265_v48 = vpop.f32.mrf.mxu0  ;;  %9315 = vmatmul.mubr.bf16.vlgmr.msra.gmra.mxu0 %v8407_v54  ;;  %v11124_v54 = vld [vmem:[%s11869_s7 + $0x40] sm:$0xff]  }
 0x587   :  { %v8266_v5 = vadd.f32 %v8265_v48, %v11786_v18  ;;  %9352 = vmatpush2.bf16.msra.mxu1 %v11104_v2  ;;  %v11110_v18 = vld [vmem:[%s11869_s7 + $0x78] sm:$0xff]   ;;  %v11122_v2 = vld [vmem:[%s11869_s7 + $0x48] sm:$0xff]  }
 0x588   :  { %v8267_v36 = vpop.f32.mrf.mxu0  ;;  %9353 = vmatprep.subr.bf16.mxu1 %v11109_v13  ;;  %10860 = vmatprep.subr.bf16.mxu0 %v11110_v18  ;;  %v11125_v13 = vld [vmem:[%s11869_s7] sm:$0xff]   ;;  %v11126_v48 = vld [vmem:[%s11871_s9 + $0x18] sm:$0xff]  }
 0x589   :  { %v8268_v44 = vadd.f32 %v8267_v36, %v11788_v38  ;;  %v11111_v38 = vld [vmem:[%s11869_s7 + $0x38] sm:$0xff]  }
 0x58a   :  { %v8269_v59 = vpop.f32.mrf.mxu0  ;;  %10861 = vmatpush3.bf16.msra.mxu0 %v11111_v38 }
 0x58b   :  { %9354 = vmatpush2.bf16.msra.mxu1 %v11107_v29  ;;  %10862 = vmatprep.subr.bf16.mxu0 %v11112_v41  ;;  %v11127_v41 = vld [vmem:[%s11871_s9 + $0x10] sm:$0xff]  }
 0x58c   :  { %v8270_v39 = vpop.f32.mrf.mxu0 }
 0x58e   :  { %v8306_v31 = vpop.f32.mrf.mxu1  ;;  %10863 = vmatpush3.bf16.msra.mxu0 %v11113_v58 }
 0x58f   :  { %v8307_v1 = vadd.f32 %v8306_v31, %v8266_v5  ;;  %10864 = vmatprep.subr.bf16.mxu0 %v11114_v51  ;;  %v11359_v5 = vmov 0.0  }
 0x590   :  { %v8308_v43 = vpop.f32.mrf.mxu1  ;;  %10887 = vmatprep.subr.bf16.mxu1 %v11359_v5 }
 0x591   :  { %v8309_v21 = vadd.f32 %v8308_v43, %v8268_v44 }
 0x592   :  { %v8310_v40 = vpop.f32.mrf.mxu1  ;;  %10865 = vmatpush3.bf16.msra.mxu0 %v11115_v7 }
 0x593   :  { %10866 = vmatprep.subr.bf16.mxu0 %v11116_v12 }
 0x594   :  { %v8311_v20 = vpop.f32.mrf.mxu1 }
 0x596   :  { %10867 = vmatpush3.bf16.msra.mxu0 %v11117_v30 }
 0x597   :  { %10868 = vmatprep.subr.bf16.mxu0 %v11118_v10 }
 0x59a   :  { %10869 = vmatpush3.bf16.msra.mxu0 %v11119_v45 }
 0x59b   :  { %10870 = vmatprep.subr.bf16.mxu0 %v11120_v62 }
 0x59e   :  { %10871 = vmatpush3.bf16.msra.mxu0 %v11121_v52 }
 0x59f   :  { %10872 = vmatprep.subr.bf16.mxu0 %v11122_v2 }
 0x5a2   :  { %10873 = vmatpush3.bf16.msra.mxu0 %v11123_v17 }
 0x5a3   :  { %10874 = vmatprep.subr.bf16.mxu0 %v11124_v54 }
 0x5a6   :  { %10875 = vmatpush3.bf16.msra.mxu0 %v11125_v13 }
 0x5c6   :  { %v8347_v50 = vpop.f32.mrf.mxu0 }
 0x5c7   :  { %v8348_v46 = vadd.f32 %v8347_v50, %v8307_v1 }
 0x5c8   :  { %v8349_v47 = vpop.f32.mrf.mxu0 }
 0x5c9   :  { %v8350_v3 = vadd.f32 %v8349_v47, %v8309_v21  ;;  %v11128_v21 = vld [vmem:[%s11871_s9 + $0x8] sm:$0xff]  }
 0x5ca   :  { %v8351_v37 = vpop.f32.mrf.mxu0 }
 0x5cc   :  { %v8352_v60 = vpop.f32.mrf.mxu0 }
 0x5ce   :  { %v8388_v27 = vpop.f32.mrf.mxu1 }
 0x5cf   :  { %v8389_v28 = vadd.f32 %v8388_v27, %v8348_v46  ;;  %v11129_v46 = vld [vmem:[%s11871_s9] sm:$0xff]   ;;  %s11361_s9 = smov [#allocation17]  }
 0x5d0   :  { %v8390_v32 = vpop.f32.mrf.mxu1  ;;  %v9400_v27 = vld [vmem:[#allocation14] sm:$0x1]  ;;  %s9634_s12 = sshll.u32 %s11361_s9, 4  ;;  %s9635_s12 = int_to_ptr.vmem [resolvable:$true] %s9634_s12 }
 0x5d1   :  { %v8391_v22 = vadd.f32 %v8390_v32, %v8350_v3  ;;  %v8401_v6 = vmax.f32 %v8389_v28, 0.0  ;;  %v9401_v3 = vunpack.c.l.bf16 %v9400_v27  ;;  %s11311_s8 = scalar_lea.vmem %s9635_s12, 128  ;;  %p11316_p4 = scmp.lt.s32.totalorder %s9635_s12, %s9635_s12 }
 0x5d2   :  { %v8392_v61 = vpop.f32.mrf.mxu1  ;;  %p11312_p3 = scmp.ne.s32.totalorder %s9635_s12, %s11311_s8  ;;  %p11317_p5 = scmp.lt.s32.totalorder %s11311_s8, %s11311_s8 }
 0x5d3   :  { %v8402_v14 = vmax.f32 %v8391_v22, 0.0  ;;  %v8409_v56 = vpack.c.bf16 %v8401_v6, %v8401_v6  ;;  %v9405_v58 = vrot.slane %v9401_v3, %v11491_v16 }
 0x5d4   :  { %v8393_v26 = vpop.f32.mrf.mxu1  ;;  %p11318_p6 = por %p11317_p5, %p11316_p4 }
 0x5d5   :  { %v8410_v4 = vpack.c.bf16 %v8402_v14, %v8402_v14  ;;  %v9552_v26 = vld [vmem:[#allocation16] sm:$0x1] }
 0x5d6   :  { %v9553_v12 = vunpack.c.l.bf16 %v9552_v26  ;;  %p11319_p7 = pnand %p11318_p6, %p11312_p3 }
 0x5d7   :  { %9355 = vmatprep.mubr.bf16.mxu1 %v8410_v4 }
 0x5d8   :  { %9356 = vmatmul.mubr.bf16.vlgmr.msra.gmra.mxu1 %v8409_v56  ;;  %v9557_v4 = vrot.slane %v9553_v12, %v11491_v16 }
 0x5d9   :  { %10888 = vmatpush3.bf16.msra.mxu1 %v11126_v48  ;;  %10895 = vmatprep.mubr.msk.bf16.mxu1 %vm11360_vm1, %v11359_v5 }
 0x5da   :  { %10889 = vmatprep.subr.bf16.mxu1 %v11359_v5 }
 0x5dd   :  { %10890 = vmatpush3.bf16.msra.mxu1 %v11127_v41 }
 0x5de   :  { %10891 = vmatprep.subr.bf16.mxu1 %v11359_v5 }
 0x5e1   :  { %10892 = vmatpush3.bf16.msra.mxu1 %v11128_v21 }
 0x5e2   :  { %10893 = vmatprep.subr.bf16.mxu1 %v11359_v5 }
 0x5e5   :  { %10894 = vmatpush3.bf16.msra.mxu1 %v11129_v46 }
 0x606   :  { %v9234_v49 = vpop.f32.mrf.mxu0 }
 0x607   :  { %v9235_v25 = vadd.f32 %v9234_v49, %v8555_v53 }
 0x608   :  { %v9236_v0 = vpop.f32.mrf.mxu0 }
 0x609   :  { %v9237_v8 = vadd.f32 %v9236_v0, %v8559_v42 }
 0x60a   :  { %v9238_v33 = vpop.f32.mrf.mxu0 }
 0x60c   :  { %v9239_v55 = vpop.f32.mrf.mxu0 }
 0x60e   :  { %v9275_v24 = vpop.f32.mrf.mxu1 }
 0x60f   :  { %v9276_v35 = vadd.f32 %v9275_v24, %v9235_v25 }
 0x610   :  { %v9277_v63 = vpop.f32.mrf.mxu1 }
 0x611   :  { %v9278_v57 = vadd.f32 %v9277_v63, %v9237_v8 }
 0x612   :  { %v9279_v19 = vpop.f32.mrf.mxu1 }
 0x614   :  { %v9280_v11 = vpop.f32.mrf.mxu1 }
 0x646   :  { %v9316_v29 = vpop.f32.mrf.mxu0 }
 0x647   :  { %v9317_v36 = vadd.f32 %v9316_v29, %v9276_v35 }
 0x648   :  { %v9318_v44 = vpop.f32.mrf.mxu0 }
 0x649   :  { %v9319_v59 = vadd.f32 %v9318_v44, %v9278_v57 }
 0x64a   :  { %v9320_v39 = vpop.f32.mrf.mxu0 }
 0x64c   :  { %v9321_v31 = vpop.f32.mrf.mxu0 }
 0x698   :  { %v9357_v43 = vpop.f32.mrf.mxu1 }
 0x699   :  { %v9358_v40 = vadd.f32 %v9357_v43, %v9317_v36 }
 0x69a   :  { %v9359_v20 = vpop.f32.mrf.mxu1 }
 0x69b   :  { %v9360_v50 = vadd.f32 %v9359_v20, %v9319_v59  ;;  %v9364_v47 = vmax.f32 %v9358_v40, 0.0 }
 0x69c   :  { %v9361_v37 = vpop.f32.mrf.mxu1 }
 0x69d   :  { %v9365_v1 = vmax.f32 %v9360_v50, 0.0  ;;  %v9366_v38 = vpack.c.bf16 %v9364_v47, %v9364_v47 }
 0x69e   :  { %v9362_v60 = vpop.f32.mrf.mxu1 }
 0x69f   :  { %v9367_v18 = vpack.c.bf16 %v9365_v1, %v9365_v1 }
 0x6a1   :  { %9534 = vmatprep.mubr.bf16.mxu0 %v9367_v18 }
 0x6a2   :  { %9535 = vmatmul.mubr.bf16.vlgmr.msra.gmra.mxu0 %v9366_v38 }
 0x762   :  { %v10876_v28 = vpop.f32.mrf.mxu0 }
 0x764   :  { %v10877_v32 = vpop.f32.mrf.mxu0 }
 0x765   :  { %v10878_v51 = vadd.f32 %v10877_v32, %v10876_v28 }
 0x766   :  { %v10879_v22 = vpop.f32.mrf.mxu0 }
 0x767   :  { %v9537_v6 = vadd.f32 %v10878_v51, %v9405_v58 }
 0x768   :  { %v10880_v61 = vpop.f32.mrf.mxu0 }
 0x769   :  { %v9542_v14 = vmax.f32 %v9537_v6, 0.0 }
 0x76b   :  { %v9543_v7 = vpack.c.bf16 %v9542_v14, %v9542_v14 }
 0x76d   :  { %10896 = vmatmul.mubr.msk.bf16.vlgmr.msra.gmra.mxu1 %vm9582_vm2, %v9543_v7 }
 0x82d   :  { %v9620_v56 = vpop.f32.mrf.mxu1 }
 0x82e   :  { %v9621_v30 = vadd.f32 %v9620_v56, %v9557_v4 }
 0x82f   :  { %v10897_v10 = vpop.f32.mrf.mxu1 }
 0x830   :  { %9627 = vst.msk [vmem:[#allocation17] sm:$0xff] %vm9626_vm3, %v9621_v30 }
 0x831   :  { %v9623_v45 = vpop.f32.mrf.mxu1 }
 0x832   :  { %11322 = shalt.err (!%p11319_p7)
}
 0x833   :  { %9637 = dma.vmem_to_hbm [thread:$0]  %s9635_s12, 128, %s11873_s11, [#allocation4]   ;;  %v10898_v16 = vpop.f32.mrf.mxu1 }
 0x834   :  { %11341 = dma.done.wait [#allocation4], 128  }
 0x835   :  { %11342 = vsyncadd [#allocation4], 4294967168 }
 0x836   :  { %9641 = vsyncpa [#allocation3], 1 }
 0x837   :  { %9642 = vsyncpa [#allocation6], 1 }
 0x838   :  { %9643 = vsyncpa [#allocation9], 1 }
 0x839   :  { %9644 = vsyncpa [#allocation12], 1 }
 0x83a   :  { %9645 = vsyncpa [#allocation15], 1 }
 0x83b   :  { %9646 = vsyncpa [#allocation4], 1 }

</bundles_post_ra>
